<compile_context>
chip_gen: v5e
topology: v5e:2x2
jax: 0.10.0
libtpu: 0.0.40
codegen_flags: <defaults>
</compile_context>

<pallas_src>
import functools

import jax
import jax.numpy as jnp
from jax import lax
from jax.experimental import pallas as pl
from jax.experimental.pallas import tpu as pltpu

BT = 8               # images per grid step -> (8, 128)-aligned output block
LOGITS_PAD = 128     # lane-dense logits width (sliced back to num_classes in wrapper)
IN_ROWS = 36         # 28 + 2*2 conv pad + 4 extra zero rows (8-aligned 32-row out slabs)
IN_COLS = 32         # 28 + 2*2 conv pad


# ---------------------------------------------------------------------------
# Fused kernel: one batch tile per grid step, all weights resident in VMEM.
# Activation layout: batch stacked along sublanes, planar [rows, C*cols].
# ---------------------------------------------------------------------------
def _lenet5_kernel(x_ref, a1_ref, b1_ref, r1_ref, c1_ref,
                   a2_ref, b2_ref, r2_ref, c2_ref,
                   wf1_ref, bf1_ref, wf2_ref, bf2_ref, wf3_ref, bf3_ref,
                   o_ref, *, bt):
    def mm(a, b):
        return jnp.dot(a, b, preferred_element_type=jnp.float32)

    # conv1 (5x5, padding folded into the input) -> (bt*32, 6*28).
    # Band matmuls: out[i] = sum_ki x[i+ki] @ A1[ki].  Rows 28..31 of each
    # 32-row image slab are junk and are dropped by the pooling selector.
    acc = mm(x_ref[:, 0:32, :].reshape(bt * 32, IN_COLS), a1_ref[0])
    for ki in range(1, 5):
        acc = acc + mm(x_ref[:, ki:ki + 32, :].reshape(bt * 32, IN_COLS), a1_ref[ki])
    h1 = jnp.maximum(acc + b1_ref[...], 0.0)                       # (bt*32, 168)

    # maxpool1 2x2: column-selection matmuls, then block-diagonal row-selection.
    pc1 = jnp.maximum(mm(h1, c1_ref[0]), mm(h1, c1_ref[1]))        # (bt*32, 84)
    p1 = jnp.maximum(mm(r1_ref[0], pc1), mm(r1_ref[1], pc1))       # (bt*24, 84)
    p1 = p1.reshape(bt, 24, 84)        # rows 14..23 per slab are zero padding

    # conv2 (5x5, valid) -> (bt*16, 16*10); rows 10..15 per slab are junk.
    acc = mm(p1[:, 0:16, :].reshape(bt * 16, 84), a2_ref[0])
    for ki in range(1, 5):
        acc = acc + mm(p1[:, ki:ki + 16, :].reshape(bt * 16, 84), a2_ref[ki])
    h2 = jnp.maximum(acc + b2_ref[...], 0.0)                       # (bt*16, 160)

    # maxpool2 2x2 -> (bt*8, 16*5); rows 5..7 per slab are zero.
    pc2 = jnp.maximum(mm(h2, c2_ref[0]), mm(h2, c2_ref[1]))        # (bt*16, 80)
    p2 = jnp.maximum(mm(r2_ref[0], pc2), mm(r2_ref[1], pc2))       # (bt*8, 80)
    p2 = p2.reshape(bt, 8, 80)

    # Fully-connected stack; torch's flatten permutation is folded into wf1:
    # fc1(x) = sum_i p2[:, i, :] @ wf1[i] + b.
    f1 = mm(p2[:, 0, :], wf1_ref[0])
    for i in range(1, 5):
        f1 = f1 + mm(p2[:, i, :], wf1_ref[i])
    f1 = jnp.maximum(f1 + bf1_ref[...], 0.0)                       # (bt, 120)
    f2 = jnp.maximum(mm(f1, wf2_ref[...]) + bf2_ref[...], 0.0)     # (bt, 84)
    # Single lane-dense (bt, 128) store.
    o_ref[...] = (mm(f2, wf3_ref[...]) + bf3_ref[...]).astype(o_ref.dtype)


# ---------------------------------------------------------------------------
# One-time weight preprocessing (outside the jitted forward).
# ---------------------------------------------------------------------------
def _conv_band_matrices(w, in_w, out_w):
    """w: [O, C, K, K] (PyTorch OIHW) -> A: [K, C*in_w, O*out_w] with
       A[ki, c*in_w + s, o*out_w + j] = w[o, c, ki, s - j] for 0 <= s-j < K.
       Then conv(x)[i, o*out_w + j] = sum_ki (x_rows[ki:ki+out_h, :] @ A[ki])."""
    O, C, K, _ = w.shape
    s = jnp.arange(in_w)
    j = jnp.arange(out_w)
    kj = jnp.arange(K)
    shift = (s[None, :, None] == (j[None, None, :] + kj[:, None, None])).astype(w.dtype)
    A = jnp.einsum("ocik,ksj->icsoj", w, shift)          # [K, C, in_w, O, out_w]
    return A.reshape(K, C * in_w, O * out_w)


def _rowpool_selectors(bt, in_rows, valid_out, out_rows, dtype=jnp.float32):
    """Block-diagonal row selectors R[d]: (bt*out_rows, bt*in_rows) with
       R[d][b*out_rows + ii, b*in_rows + 2*ii + d] = 1 for ii < valid_out.
       Rows ii >= valid_out are all-zero (zero padding rows)."""
    r = jnp.arange(bt * out_rows)
    c = jnp.arange(bt * in_rows)
    b = r // out_rows
    ii = r % out_rows
    valid = (ii < valid_out)[:, None]
    mats = []
    for d in (0, 1):
        src = b * in_rows + 2 * ii + d
        mats.append(((c[None, :] == src[:, None]) & valid).astype(dtype))
    return jnp.stack(mats)


def _colpool_selectors(in_w, channels, dtype=jnp.float32):
    """Column selectors for 2x2/stride-2 pooling on the planar [rows, C*cols]
       layout: pooled_cols = max_d (h @ C[d])."""
    out_w = in_w // 2
    row = jnp.arange(channels * in_w)
    col = jnp.arange(channels * out_w)
    src = (col // out_w) * in_w + 2 * (col % out_w)
    return jnp.stack([(row[:, None] == (src + d)[None, :]).astype(dtype) for d in (0, 1)])


def prepare_params(params, num_classes=10):
    """Convert PyTorch-layout params into the kernel's resident-weight layout."""
    f32 = jnp.float32
    A1 = _conv_band_matrices(params["conv1_w"].astype(f32), 32, 28)       # [5, 32, 168]
    b1 = jnp.repeat(params["conv1_b"].astype(f32), 28)[None, :]           # [1, 168]
    R1 = _rowpool_selectors(BT, 32, 14, 24)                               # [2, 192, 256]
    C1 = _colpool_selectors(28, 6)                                        # [2, 168, 84]
    A2 = _conv_band_matrices(params["conv2_w"].astype(f32), 14, 10)       # [5, 84, 160]
    b2 = jnp.repeat(params["conv2_b"].astype(f32), 10)[None, :]           # [1, 160]
    R2 = _rowpool_selectors(BT, 16, 5, 8)                                 # [2, 64, 128]
    C2 = _colpool_selectors(10, 16)                                       # [2, 160, 80]
    # fc1: fold torch's flatten index (c*25 + i*5 + j) into the weight.
    wfc1 = (params["fc1_w"].astype(f32).reshape(120, 16, 5, 5)
            .transpose(2, 1, 3, 0).reshape(5, 80, 120))                   # [5, 80, 120]
    bfc1 = params["fc1_b"].astype(f32)[None, :]                           # [1, 120]
    wfc2 = params["fc2_w"].astype(f32).T                                  # [120, 84]
    bfc2 = params["fc2_b"].astype(f32)[None, :]                           # [1, 84]
    wfc3 = jnp.zeros((84, LOGITS_PAD), f32).at[:, :num_classes].set(
        params["fc3_w"].astype(f32).T)                                    # [84, 128]
    bfc3 = jnp.zeros((1, LOGITS_PAD), f32).at[:, :num_classes].set(
        params["fc3_b"].astype(f32))                                      # [1, 128]
    return dict(A1=A1, b1=b1, R1=R1, C1=C1, A2=A2, b2=b2, R2=R2, C2=C2,
                wfc1=wfc1, bfc1=bfc1, wfc2=wfc2, bfc2=bfc2, wfc3=wfc3, bfc3=bfc3)


# ---------------------------------------------------------------------------
# Forward wrapper (single pallas_call)
# ---------------------------------------------------------------------------
@functools.partial(jax.jit, static_argnames=("num_classes",))
def lenet5_forward(kparams, x, *, num_classes=10):
    n = x.shape[0]
    # NCHW [N,1,28,28] -> [N,28,28]; conv1's padding=2 applied up front, plus 4
    # extra zero rows at the bottom so each image maps to an 8-aligned 32-row
    # output slab -> input is [N, 36, 32].
    xs = x.reshape(n, 28, 28).astype(jnp.float32)
    xs = jnp.pad(xs, ((0, 0), (2, IN_ROWS - 30), (2, 2)))
    n_pad = pl.cdiv(n, BT) * BT
    if n_pad != n:
        xs = jnp.pad(xs, ((0, n_pad - n), (0, 0), (0, 0)))

    kp = kparams
    full2 = lambda i: (0, 0)
    full3 = lambda i: (0, 0, 0)
    out = pl.pallas_call(
        functools.partial(_lenet5_kernel, bt=BT),
        out_shape=jax.ShapeDtypeStruct((n_pad, LOGITS_PAD), jnp.float32),
        grid_spec=pltpu.PrefetchScalarGridSpec(
            num_scalar_prefetch=0,
            grid=(n_pad // BT,),
            in_specs=[
                pl.BlockSpec((BT, IN_ROWS, IN_COLS), lambda i: (i, 0, 0)),  # image tile
                pl.BlockSpec(kp["A1"].shape, full3),     # resident weights below
                pl.BlockSpec(kp["b1"].shape, full2),
                pl.BlockSpec(kp["R1"].shape, full3),
                pl.BlockSpec(kp["C1"].shape, full3),
                pl.BlockSpec(kp["A2"].shape, full3),
                pl.BlockSpec(kp["b2"].shape, full2),
                pl.BlockSpec(kp["R2"].shape, full3),
                pl.BlockSpec(kp["C2"].shape, full3),
                pl.BlockSpec(kp["wfc1"].shape, full3),
                pl.BlockSpec(kp["bfc1"].shape, full2),
                pl.BlockSpec(kp["wfc2"].shape, full2),
                pl.BlockSpec(kp["bfc2"].shape, full2),
                pl.BlockSpec(kp["wfc3"].shape, full2),
                pl.BlockSpec(kp["bfc3"].shape, full2),
            ],
            out_specs=pl.BlockSpec((BT, LOGITS_PAD), lambda i: (i, 0)),
        ),
        compiler_params=pltpu.CompilerParams(
            dimension_semantics=("parallel",)),
    )(xs, kp["A1"], kp["b1"], kp["R1"], kp["C1"],
      kp["A2"], kp["b2"], kp["R2"], kp["C2"],
      kp["wfc1"], kp["bfc1"], kp["wfc2"], kp["bfc2"], kp["wfc3"], kp["bfc3"])
    return out[:n, :num_classes]


# ---------------------------------------------------------------------------
# Params (PyTorch-style init / layout) and a pure-JAX reference for checking.
# ---------------------------------------------------------------------------
def init_params(key, num_classes=10):
    ks = jax.random.split(key, 10)

    def u(k, shape, fan_in):
        bound = 1.0 / jnp.sqrt(fan_in)
        return jax.random.uniform(k, shape, jnp.float32, -bound, bound)

    return {
        "conv1_w": u(ks[0], (6, 1, 5, 5), 1 * 5 * 5),
        "conv1_b": u(ks[1], (6,), 1 * 5 * 5),
        "conv2_w": u(ks[2], (16, 6, 5, 5), 6 * 5 * 5),
        "conv2_b": u(ks[3], (16,), 6 * 5 * 5),
        "fc1_w": u(ks[4], (120, 400), 400),
        "fc1_b": u(ks[5], (120,), 400),
        "fc2_w": u(ks[6], (84, 120), 120),
        "fc2_b": u(ks[7], (84,), 120),
        "fc3_w": u(ks[8], (num_classes, 84), 84),
        "fc3_b": u(ks[9], (num_classes,), 84),
    }


def reference_forward(params, x):
    y = lax.conv_general_dilated(x, params["conv1_w"], (1, 1), ((2, 2), (2, 2)),
                                 dimension_numbers=("NCHW", "OIHW", "NCHW"))
    y = jax.nn.relu(y + params["conv1_b"][None, :, None, None])
    y = lax.reduce_window(y, -jnp.inf, lax.max, (1, 1, 2, 2), (1, 1, 2, 2), "VALID")
    y = lax.conv_general_dilated(y, params["conv2_w"], (1, 1), ((0, 0), (0, 0)),
                                 dimension_numbers=("NCHW", "OIHW", "NCHW"))
    y = jax.nn.relu(y + params["conv2_b"][None, :, None, None])
    y = lax.reduce_window(y, -jnp.inf, lax.max, (1, 1, 2, 2), (1, 1, 2, 2), "VALID")
    y = y.reshape(y.shape[0], -1)
    y = jax.nn.relu(y @ params["fc1_w"].T + params["fc1_b"])
    y = jax.nn.relu(y @ params["fc2_w"].T + params["fc2_b"])
    return y @ params["fc3_w"].T + params["fc3_b"]


if __name__ == "__main__":
    key = jax.random.PRNGKey(0)
    pkey, xkey = jax.random.split(key)
    params = init_params(pkey, num_classes=10)
    kparams = prepare_params(params, num_classes=10)
    # MNIST-like NCHW input (28x28 required so flatten -> 400 features).
    x = jax.random.normal(xkey, (2, 1, 28, 28), dtype=jnp.float32)
    logits = lenet5_forward(kparams, x, num_classes=10)
    jax.block_until_ready(logits)
    assert logits.shape == (2, 10)
    ref = reference_forward(params, x)
    err = float(jnp.max(jnp.abs(logits - ref)))
    assert err < 2e-3, f"mismatch vs reference: {err}"
    print("KERNEL_OK")
</pallas_src>

<mosaic_0001>
module attributes {stable_mosaic.version = 11 : i64} {
  func.func @_lenet5_kernel(%arg0: i32, %arg1: memref<8x36x32xf32, #tpu.memory_space<vmem>>, %arg2: memref<5x32x168xf32, #tpu.memory_space<vmem>>, %arg3: memref<1x168xf32, #tpu.memory_space<vmem>>, %arg4: memref<2x192x256xf32, #tpu.memory_space<vmem>>, %arg5: memref<2x168x84xf32, #tpu.memory_space<vmem>>, %arg6: memref<5x84x160xf32, #tpu.memory_space<vmem>>, %arg7: memref<1x160xf32, #tpu.memory_space<vmem>>, %arg8: memref<2x64x128xf32, #tpu.memory_space<vmem>>, %arg9: memref<2x160x80xf32, #tpu.memory_space<vmem>>, %arg10: memref<5x80x120xf32, #tpu.memory_space<vmem>>, %arg11: memref<1x120xf32, #tpu.memory_space<vmem>>, %arg12: memref<120x84xf32, #tpu.memory_space<vmem>>, %arg13: memref<1x84xf32, #tpu.memory_space<vmem>>, %arg14: memref<84x128xf32, #tpu.memory_space<vmem>>, %arg15: memref<1x128xf32, #tpu.memory_space<vmem>>, %arg16: memref<8x128xf32, #tpu.memory_space<vmem>>) attributes {dimension_semantics = [#tpu.dimension_semantics<parallel>], iteration_bounds = array<i64: 1>, scalar_prefetch = 0 : i64, scratch_operands = 0 : i64, tpu.core_type = #tpu.core_type<tc>, window_params = [{transform_indices = @transform_0, window_bounds = array<i64: 8, 36, 32>}, {pipeline_mode = #tpu.pipeline_mode<synchronous>, transform_indices = @transform_1, window_bounds = array<i64: 5, 32, 168>}, {pipeline_mode = #tpu.pipeline_mode<synchronous>, transform_indices = @transform_2, window_bounds = array<i64: 1, 168>}, {pipeline_mode = #tpu.pipeline_mode<synchronous>, transform_indices = @transform_3, window_bounds = array<i64: 2, 192, 256>}, {pipeline_mode = #tpu.pipeline_mode<synchronous>, transform_indices = @transform_4, window_bounds = array<i64: 2, 168, 84>}, {pipeline_mode = #tpu.pipeline_mode<synchronous>, transform_indices = @transform_5, window_bounds = array<i64: 5, 84, 160>}, {pipeline_mode = #tpu.pipeline_mode<synchronous>, transform_indices = @transform_6, window_bounds = array<i64: 1, 160>}, {pipeline_mode = #tpu.pipeline_mode<synchronous>, transform_indices = @transform_7, window_bounds = array<i64: 2, 64, 128>}, {pipeline_mode = #tpu.pipeline_mode<synchronous>, transform_indices = @transform_8, window_bounds = array<i64: 2, 160, 80>}, {pipeline_mode = #tpu.pipeline_mode<synchronous>, transform_indices = @transform_9, window_bounds = array<i64: 5, 80, 120>}, {pipeline_mode = #tpu.pipeline_mode<synchronous>, transform_indices = @transform_10, window_bounds = array<i64: 1, 120>}, {pipeline_mode = #tpu.pipeline_mode<synchronous>, transform_indices = @transform_11, window_bounds = array<i64: 120, 84>}, {pipeline_mode = #tpu.pipeline_mode<synchronous>, transform_indices = @transform_12, window_bounds = array<i64: 1, 84>}, {pipeline_mode = #tpu.pipeline_mode<synchronous>, transform_indices = @transform_13, window_bounds = array<i64: 84, 128>}, {pipeline_mode = #tpu.pipeline_mode<synchronous>, transform_indices = @transform_14, window_bounds = array<i64: 1, 128>}, {transform_indices = @transform_15, window_bounds = array<i64: 8, 128>}]} {
    %c0 = arith.constant 0 : index
    %c0_0 = arith.constant 0 : index
    %c0_1 = arith.constant 0 : index
    %0 = vector.load %arg1[%c0, %c0_0, %c0_1] : memref<8x36x32xf32, #tpu.memory_space<vmem>>, vector<8x32x32xf32>
    %1 = vector.shape_cast %0 : vector<8x32x32xf32> to vector<256x32xf32>
    %c0_2 = arith.constant 0 : index
    %c0_3 = arith.constant 0 : index
    %c0_4 = arith.constant 0 : index
    %2 = vector.load %arg2[%c0_2, %c0_3, %c0_4] : memref<5x32x168xf32, #tpu.memory_space<vmem>>, vector<1x32x168xf32>
    %3 = vector.shape_cast %2 : vector<1x32x168xf32> to vector<32x168xf32>
    %cst = arith.constant dense<0.000000e+00> : vector<256x168xf32>
    %4 = tpu.matmul %1, %3, %cst {dimension_numbers = #tpu.dot_dimension_numbers<[1], [0], [0], [1], [0, 0, 1, 1], [], []>} : vector<256x32xf32>, vector<32x168xf32>, vector<256x168xf32> -> vector<256x168xf32>
    %c0_5 = arith.constant 0 : index
    %c1 = arith.constant 1 : index
    %c0_6 = arith.constant 0 : index
    %5 = vector.load %arg1[%c0_5, %c1, %c0_6] : memref<8x36x32xf32, #tpu.memory_space<vmem>>, vector<8x32x32xf32>
    %6 = vector.shape_cast %5 : vector<8x32x32xf32> to vector<256x32xf32>
    %c1_7 = arith.constant 1 : index
    %c0_8 = arith.constant 0 : index
    %c0_9 = arith.constant 0 : index
    %7 = vector.load %arg2[%c1_7, %c0_8, %c0_9] : memref<5x32x168xf32, #tpu.memory_space<vmem>>, vector<1x32x168xf32>
    %8 = vector.shape_cast %7 : vector<1x32x168xf32> to vector<32x168xf32>
    %cst_10 = arith.constant dense<0.000000e+00> : vector<256x168xf32>
    %9 = tpu.matmul %6, %8, %cst_10 {dimension_numbers = #tpu.dot_dimension_numbers<[1], [0], [0], [1], [0, 0, 1, 1], [], []>} : vector<256x32xf32>, vector<32x168xf32>, vector<256x168xf32> -> vector<256x168xf32>
    %10 = arith.addf %4, %9 : vector<256x168xf32>
    %c0_11 = arith.constant 0 : index
    %c2 = arith.constant 2 : index
    %c0_12 = arith.constant 0 : index
    %11 = vector.load %arg1[%c0_11, %c2, %c0_12] : memref<8x36x32xf32, #tpu.memory_space<vmem>>, vector<8x32x32xf32>
    %12 = vector.shape_cast %11 : vector<8x32x32xf32> to vector<256x32xf32>
    %c2_13 = arith.constant 2 : index
    %c0_14 = arith.constant 0 : index
    %c0_15 = arith.constant 0 : index
    %13 = vector.load %arg2[%c2_13, %c0_14, %c0_15] : memref<5x32x168xf32, #tpu.memory_space<vmem>>, vector<1x32x168xf32>
    %14 = vector.shape_cast %13 : vector<1x32x168xf32> to vector<32x168xf32>
    %cst_16 = arith.constant dense<0.000000e+00> : vector<256x168xf32>
    %15 = tpu.matmul %12, %14, %cst_16 {dimension_numbers = #tpu.dot_dimension_numbers<[1], [0], [0], [1], [0, 0, 1, 1], [], []>} : vector<256x32xf32>, vector<32x168xf32>, vector<256x168xf32> -> vector<256x168xf32>
    %16 = arith.addf %10, %15 : vector<256x168xf32>
    %c0_17 = arith.constant 0 : index
    %c3 = arith.constant 3 : index
    %c0_18 = arith.constant 0 : index
    %17 = vector.load %arg1[%c0_17, %c3, %c0_18] : memref<8x36x32xf32, #tpu.memory_space<vmem>>, vector<8x32x32xf32>
    %18 = vector.shape_cast %17 : vector<8x32x32xf32> to vector<256x32xf32>
    %c3_19 = arith.constant 3 : index
    %c0_20 = arith.constant 0 : index
    %c0_21 = arith.constant 0 : index
    %19 = vector.load %arg2[%c3_19, %c0_20, %c0_21] : memref<5x32x168xf32, #tpu.memory_space<vmem>>, vector<1x32x168xf32>
    %20 = vector.shape_cast %19 : vector<1x32x168xf32> to vector<32x168xf32>
    %cst_22 = arith.constant dense<0.000000e+00> : vector<256x168xf32>
    %21 = tpu.matmul %18, %20, %cst_22 {dimension_numbers = #tpu.dot_dimension_numbers<[1], [0], [0], [1], [0, 0, 1, 1], [], []>} : vector<256x32xf32>, vector<32x168xf32>, vector<256x168xf32> -> vector<256x168xf32>
    %22 = arith.addf %16, %21 : vector<256x168xf32>
    %c0_23 = arith.constant 0 : index
    %c4 = arith.constant 4 : index
    %c0_24 = arith.constant 0 : index
    %23 = vector.load %arg1[%c0_23, %c4, %c0_24] : memref<8x36x32xf32, #tpu.memory_space<vmem>>, vector<8x32x32xf32>
    %24 = vector.shape_cast %23 : vector<8x32x32xf32> to vector<256x32xf32>
    %c4_25 = arith.constant 4 : index
    %c0_26 = arith.constant 0 : index
    %c0_27 = arith.constant 0 : index
    %25 = vector.load %arg2[%c4_25, %c0_26, %c0_27] : memref<5x32x168xf32, #tpu.memory_space<vmem>>, vector<1x32x168xf32>
    %26 = vector.shape_cast %25 : vector<1x32x168xf32> to vector<32x168xf32>
    %cst_28 = arith.constant dense<0.000000e+00> : vector<256x168xf32>
    %27 = tpu.matmul %24, %26, %cst_28 {dimension_numbers = #tpu.dot_dimension_numbers<[1], [0], [0], [1], [0, 0, 1, 1], [], []>} : vector<256x32xf32>, vector<32x168xf32>, vector<256x168xf32> -> vector<256x168xf32>
    %28 = arith.addf %22, %27 : vector<256x168xf32>
    %c0_29 = arith.constant 0 : index
    %c0_30 = arith.constant 0 : index
    %29 = vector.load %arg3[%c0_29, %c0_30] : memref<1x168xf32, #tpu.memory_space<vmem>>, vector<1x168xf32>
    %30 = vector.broadcast %29 : vector<1x168xf32> to vector<256x168xf32>
    %31 = arith.addf %28, %30 : vector<256x168xf32>
    %cst_31 = arith.constant 0.000000e+00 : f32
    %32 = vector.broadcast %cst_31 : f32 to vector<256x168xf32>
    %33 = arith.maximumf %31, %32 : vector<256x168xf32>
    %c0_32 = arith.constant 0 : index
    %c0_33 = arith.constant 0 : index
    %c0_34 = arith.constant 0 : index
    %34 = vector.load %arg5[%c0_32, %c0_33, %c0_34] : memref<2x168x84xf32, #tpu.memory_space<vmem>>, vector<1x168x84xf32>
    %35 = vector.shape_cast %34 : vector<1x168x84xf32> to vector<168x84xf32>
    %cst_35 = arith.constant dense<0.000000e+00> : vector<256x84xf32>
    %36 = tpu.matmul %33, %35, %cst_35 {dimension_numbers = #tpu.dot_dimension_numbers<[1], [0], [0], [1], [0, 0, 1, 1], [], []>} : vector<256x168xf32>, vector<168x84xf32>, vector<256x84xf32> -> vector<256x84xf32>
    %c1_36 = arith.constant 1 : index
    %c0_37 = arith.constant 0 : index
    %c0_38 = arith.constant 0 : index
    %37 = vector.load %arg5[%c1_36, %c0_37, %c0_38] : memref<2x168x84xf32, #tpu.memory_space<vmem>>, vector<1x168x84xf32>
    %38 = vector.shape_cast %37 : vector<1x168x84xf32> to vector<168x84xf32>
    %cst_39 = arith.constant dense<0.000000e+00> : vector<256x84xf32>
    %39 = tpu.matmul %33, %38, %cst_39 {dimension_numbers = #tpu.dot_dimension_numbers<[1], [0], [0], [1], [0, 0, 1, 1], [], []>} : vector<256x168xf32>, vector<168x84xf32>, vector<256x84xf32> -> vector<256x84xf32>
    %40 = arith.maximumf %36, %39 : vector<256x84xf32>
    %c0_40 = arith.constant 0 : index
    %c0_41 = arith.constant 0 : index
    %c0_42 = arith.constant 0 : index
    %41 = vector.load %arg4[%c0_40, %c0_41, %c0_42] : memref<2x192x256xf32, #tpu.memory_space<vmem>>, vector<1x192x256xf32>
    %42 = vector.shape_cast %41 : vector<1x192x256xf32> to vector<192x256xf32>
    %cst_43 = arith.constant dense<0.000000e+00> : vector<192x84xf32>
    %43 = tpu.matmul %42, %40, %cst_43 {dimension_numbers = #tpu.dot_dimension_numbers<[1], [0], [0], [1], [0, 0, 1, 1], [], []>} : vector<192x256xf32>, vector<256x84xf32>, vector<192x84xf32> -> vector<192x84xf32>
    %c1_44 = arith.constant 1 : index
    %c0_45 = arith.constant 0 : index
    %c0_46 = arith.constant 0 : index
    %44 = vector.load %arg4[%c1_44, %c0_45, %c0_46] : memref<2x192x256xf32, #tpu.memory_space<vmem>>, vector<1x192x256xf32>
    %45 = vector.shape_cast %44 : vector<1x192x256xf32> to vector<192x256xf32>
    %cst_47 = arith.constant dense<0.000000e+00> : vector<192x84xf32>
    %46 = tpu.matmul %45, %40, %cst_47 {dimension_numbers = #tpu.dot_dimension_numbers<[1], [0], [0], [1], [0, 0, 1, 1], [], []>} : vector<192x256xf32>, vector<256x84xf32>, vector<192x84xf32> -> vector<192x84xf32>
    %47 = arith.maximumf %43, %46 : vector<192x84xf32>
    %48 = vector.shape_cast %47 : vector<192x84xf32> to vector<8x24x84xf32>
    %49 = vector.extract_strided_slice %48 {offsets = [0, 0, 0], sizes = [8, 16, 84], strides = [1, 1, 1]} : vector<8x24x84xf32> to vector<8x16x84xf32>
    %50 = vector.shape_cast %49 : vector<8x16x84xf32> to vector<128x84xf32>
    %c0_48 = arith.constant 0 : index
    %c0_49 = arith.constant 0 : index
    %c0_50 = arith.constant 0 : index
    %51 = vector.load %arg6[%c0_48, %c0_49, %c0_50] : memref<5x84x160xf32, #tpu.memory_space<vmem>>, vector<1x84x160xf32>
    %52 = vector.shape_cast %51 : vector<1x84x160xf32> to vector<84x160xf32>
    %cst_51 = arith.constant dense<0.000000e+00> : vector<128x160xf32>
    %53 = tpu.matmul %50, %52, %cst_51 {dimension_numbers = #tpu.dot_dimension_numbers<[1], [0], [0], [1], [0, 0, 1, 1], [], []>} : vector<128x84xf32>, vector<84x160xf32>, vector<128x160xf32> -> vector<128x160xf32>
    %54 = vector.extract_strided_slice %48 {offsets = [0, 1, 0], sizes = [8, 16, 84], strides = [1, 1, 1]} : vector<8x24x84xf32> to vector<8x16x84xf32>
    %55 = vector.shape_cast %54 : vector<8x16x84xf32> to vector<128x84xf32>
    %c1_52 = arith.constant 1 : index
    %c0_53 = arith.constant 0 : index
    %c0_54 = arith.constant 0 : index
    %56 = vector.load %arg6[%c1_52, %c0_53, %c0_54] : memref<5x84x160xf32, #tpu.memory_space<vmem>>, vector<1x84x160xf32>
    %57 = vector.shape_cast %56 : vector<1x84x160xf32> to vector<84x160xf32>
    %cst_55 = arith.constant dense<0.000000e+00> : vector<128x160xf32>
    %58 = tpu.matmul %55, %57, %cst_55 {dimension_numbers = #tpu.dot_dimension_numbers<[1], [0], [0], [1], [0, 0, 1, 1], [], []>} : vector<128x84xf32>, vector<84x160xf32>, vector<128x160xf32> -> vector<128x160xf32>
    %59 = arith.addf %53, %58 : vector<128x160xf32>
    %60 = vector.extract_strided_slice %48 {offsets = [0, 2, 0], sizes = [8, 16, 84], strides = [1, 1, 1]} : vector<8x24x84xf32> to vector<8x16x84xf32>
    %61 = vector.shape_cast %60 : vector<8x16x84xf32> to vector<128x84xf32>
    %c2_56 = arith.constant 2 : index
    %c0_57 = arith.constant 0 : index
    %c0_58 = arith.constant 0 : index
    %62 = vector.load %arg6[%c2_56, %c0_57, %c0_58] : memref<5x84x160xf32, #tpu.memory_space<vmem>>, vector<1x84x160xf32>
    %63 = vector.shape_cast %62 : vector<1x84x160xf32> to vector<84x160xf32>
    %cst_59 = arith.constant dense<0.000000e+00> : vector<128x160xf32>
    %64 = tpu.matmul %61, %63, %cst_59 {dimension_numbers = #tpu.dot_dimension_numbers<[1], [0], [0], [1], [0, 0, 1, 1], [], []>} : vector<128x84xf32>, vector<84x160xf32>, vector<128x160xf32> -> vector<128x160xf32>
    %65 = arith.addf %59, %64 : vector<128x160xf32>
    %66 = vector.extract_strided_slice %48 {offsets = [0, 3, 0], sizes = [8, 16, 84], strides = [1, 1, 1]} : vector<8x24x84xf32> to vector<8x16x84xf32>
    %67 = vector.shape_cast %66 : vector<8x16x84xf32> to vector<128x84xf32>
    %c3_60 = arith.constant 3 : index
    %c0_61 = arith.constant 0 : index
    %c0_62 = arith.constant 0 : index
    %68 = vector.load %arg6[%c3_60, %c0_61, %c0_62] : memref<5x84x160xf32, #tpu.memory_space<vmem>>, vector<1x84x160xf32>
    %69 = vector.shape_cast %68 : vector<1x84x160xf32> to vector<84x160xf32>
    %cst_63 = arith.constant dense<0.000000e+00> : vector<128x160xf32>
    %70 = tpu.matmul %67, %69, %cst_63 {dimension_numbers = #tpu.dot_dimension_numbers<[1], [0], [0], [1], [0, 0, 1, 1], [], []>} : vector<128x84xf32>, vector<84x160xf32>, vector<128x160xf32> -> vector<128x160xf32>
    %71 = arith.addf %65, %70 : vector<128x160xf32>
    %72 = vector.extract_strided_slice %48 {offsets = [0, 4, 0], sizes = [8, 16, 84], strides = [1, 1, 1]} : vector<8x24x84xf32> to vector<8x16x84xf32>
    %73 = vector.shape_cast %72 : vector<8x16x84xf32> to vector<128x84xf32>
    %c4_64 = arith.constant 4 : index
    %c0_65 = arith.constant 0 : index
    %c0_66 = arith.constant 0 : index
    %74 = vector.load %arg6[%c4_64, %c0_65, %c0_66] : memref<5x84x160xf32, #tpu.memory_space<vmem>>, vector<1x84x160xf32>
    %75 = vector.shape_cast %74 : vector<1x84x160xf32> to vector<84x160xf32>
    %cst_67 = arith.constant dense<0.000000e+00> : vector<128x160xf32>
    %76 = tpu.matmul %73, %75, %cst_67 {dimension_numbers = #tpu.dot_dimension_numbers<[1], [0], [0], [1], [0, 0, 1, 1], [], []>} : vector<128x84xf32>, vector<84x160xf32>, vector<128x160xf32> -> vector<128x160xf32>
    %77 = arith.addf %71, %76 : vector<128x160xf32>
    %c0_68 = arith.constant 0 : index
    %c0_69 = arith.constant 0 : index
    %78 = vector.load %arg7[%c0_68, %c0_69] : memref<1x160xf32, #tpu.memory_space<vmem>>, vector<1x160xf32>
    %79 = vector.broadcast %78 : vector<1x160xf32> to vector<128x160xf32>
    %80 = arith.addf %77, %79 : vector<128x160xf32>
    %cst_70 = arith.constant 0.000000e+00 : f32
    %81 = vector.broadcast %cst_70 : f32 to vector<128x160xf32>
    %82 = arith.maximumf %80, %81 : vector<128x160xf32>
    %c0_71 = arith.constant 0 : index
    %c0_72 = arith.constant 0 : index
    %c0_73 = arith.constant 0 : index
    %83 = vector.load %arg9[%c0_71, %c0_72, %c0_73] : memref<2x160x80xf32, #tpu.memory_space<vmem>>, vector<1x160x80xf32>
    %84 = vector.shape_cast %83 : vector<1x160x80xf32> to vector<160x80xf32>
    %cst_74 = arith.constant dense<0.000000e+00> : vector<128x80xf32>
    %85 = tpu.matmul %82, %84, %cst_74 {dimension_numbers = #tpu.dot_dimension_numbers<[1], [0], [0], [1], [0, 0, 1, 1], [], []>} : vector<128x160xf32>, vector<160x80xf32>, vector<128x80xf32> -> vector<128x80xf32>
    %c1_75 = arith.constant 1 : index
    %c0_76 = arith.constant 0 : index
    %c0_77 = arith.constant 0 : index
    %86 = vector.load %arg9[%c1_75, %c0_76, %c0_77] : memref<2x160x80xf32, #tpu.memory_space<vmem>>, vector<1x160x80xf32>
    %87 = vector.shape_cast %86 : vector<1x160x80xf32> to vector<160x80xf32>
    %cst_78 = arith.constant dense<0.000000e+00> : vector<128x80xf32>
    %88 = tpu.matmul %82, %87, %cst_78 {dimension_numbers = #tpu.dot_dimension_numbers<[1], [0], [0], [1], [0, 0, 1, 1], [], []>} : vector<128x160xf32>, vector<160x80xf32>, vector<128x80xf32> -> vector<128x80xf32>
    %89 = arith.maximumf %85, %88 : vector<128x80xf32>
    %c0_79 = arith.constant 0 : index
    %c0_80 = arith.constant 0 : index
    %c0_81 = arith.constant 0 : index
    %90 = vector.load %arg8[%c0_79, %c0_80, %c0_81] : memref<2x64x128xf32, #tpu.memory_space<vmem>>, vector<1x64x128xf32>
    %91 = vector.shape_cast %90 : vector<1x64x128xf32> to vector<64x128xf32>
    %cst_82 = arith.constant dense<0.000000e+00> : vector<64x80xf32>
    %92 = tpu.matmul %91, %89, %cst_82 {dimension_numbers = #tpu.dot_dimension_numbers<[1], [0], [0], [1], [0, 0, 1, 1], [], []>} : vector<64x128xf32>, vector<128x80xf32>, vector<64x80xf32> -> vector<64x80xf32>
    %c1_83 = arith.constant 1 : index
    %c0_84 = arith.constant 0 : index
    %c0_85 = arith.constant 0 : index
    %93 = vector.load %arg8[%c1_83, %c0_84, %c0_85] : memref<2x64x128xf32, #tpu.memory_space<vmem>>, vector<1x64x128xf32>
    %94 = vector.shape_cast %93 : vector<1x64x128xf32> to vector<64x128xf32>
    %cst_86 = arith.constant dense<0.000000e+00> : vector<64x80xf32>
    %95 = tpu.matmul %94, %89, %cst_86 {dimension_numbers = #tpu.dot_dimension_numbers<[1], [0], [0], [1], [0, 0, 1, 1], [], []>} : vector<64x128xf32>, vector<128x80xf32>, vector<64x80xf32> -> vector<64x80xf32>
    %96 = arith.maximumf %92, %95 : vector<64x80xf32>
    %97 = vector.shape_cast %96 : vector<64x80xf32> to vector<8x8x80xf32>
    %98 = vector.extract_strided_slice %97 {offsets = [0, 0, 0], sizes = [8, 1, 80], strides = [1, 1, 1]} : vector<8x8x80xf32> to vector<8x1x80xf32>
    %99 = vector.shape_cast %98 : vector<8x1x80xf32> to vector<8x80xf32>
    %c0_87 = arith.constant 0 : index
    %c0_88 = arith.constant 0 : index
    %c0_89 = arith.constant 0 : index
    %100 = vector.load %arg10[%c0_87, %c0_88, %c0_89] : memref<5x80x120xf32, #tpu.memory_space<vmem>>, vector<1x80x120xf32>
    %101 = vector.shape_cast %100 : vector<1x80x120xf32> to vector<80x120xf32>
    %cst_90 = arith.constant dense<0.000000e+00> : vector<8x120xf32>
    %102 = tpu.matmul %99, %101, %cst_90 {dimension_numbers = #tpu.dot_dimension_numbers<[1], [0], [0], [1], [0, 0, 1, 1], [], []>} : vector<8x80xf32>, vector<80x120xf32>, vector<8x120xf32> -> vector<8x120xf32>
    %103 = vector.extract_strided_slice %97 {offsets = [0, 1, 0], sizes = [8, 1, 80], strides = [1, 1, 1]} : vector<8x8x80xf32> to vector<8x1x80xf32>
    %104 = vector.shape_cast %103 : vector<8x1x80xf32> to vector<8x80xf32>
    %c1_91 = arith.constant 1 : index
    %c0_92 = arith.constant 0 : index
    %c0_93 = arith.constant 0 : index
    %105 = vector.load %arg10[%c1_91, %c0_92, %c0_93] : memref<5x80x120xf32, #tpu.memory_space<vmem>>, vector<1x80x120xf32>
    %106 = vector.shape_cast %105 : vector<1x80x120xf32> to vector<80x120xf32>
    %cst_94 = arith.constant dense<0.000000e+00> : vector<8x120xf32>
    %107 = tpu.matmul %104, %106, %cst_94 {dimension_numbers = #tpu.dot_dimension_numbers<[1], [0], [0], [1], [0, 0, 1, 1], [], []>} : vector<8x80xf32>, vector<80x120xf32>, vector<8x120xf32> -> vector<8x120xf32>
    %108 = arith.addf %102, %107 : vector<8x120xf32>
    %109 = vector.extract_strided_slice %97 {offsets = [0, 2, 0], sizes = [8, 1, 80], strides = [1, 1, 1]} : vector<8x8x80xf32> to vector<8x1x80xf32>
    %110 = vector.shape_cast %109 : vector<8x1x80xf32> to vector<8x80xf32>
    %c2_95 = arith.constant 2 : index
    %c0_96 = arith.constant 0 : index
    %c0_97 = arith.constant 0 : index
    %111 = vector.load %arg10[%c2_95, %c0_96, %c0_97] : memref<5x80x120xf32, #tpu.memory_space<vmem>>, vector<1x80x120xf32>
    %112 = vector.shape_cast %111 : vector<1x80x120xf32> to vector<80x120xf32>
    %cst_98 = arith.constant dense<0.000000e+00> : vector<8x120xf32>
    %113 = tpu.matmul %110, %112, %cst_98 {dimension_numbers = #tpu.dot_dimension_numbers<[1], [0], [0], [1], [0, 0, 1, 1], [], []>} : vector<8x80xf32>, vector<80x120xf32>, vector<8x120xf32> -> vector<8x120xf32>
    %114 = arith.addf %108, %113 : vector<8x120xf32>
    %115 = vector.extract_strided_slice %97 {offsets = [0, 3, 0], sizes = [8, 1, 80], strides = [1, 1, 1]} : vector<8x8x80xf32> to vector<8x1x80xf32>
    %116 = vector.shape_cast %115 : vector<8x1x80xf32> to vector<8x80xf32>
    %c3_99 = arith.constant 3 : index
    %c0_100 = arith.constant 0 : index
    %c0_101 = arith.constant 0 : index
    %117 = vector.load %arg10[%c3_99, %c0_100, %c0_101] : memref<5x80x120xf32, #tpu.memory_space<vmem>>, vector<1x80x120xf32>
    %118 = vector.shape_cast %117 : vector<1x80x120xf32> to vector<80x120xf32>
    %cst_102 = arith.constant dense<0.000000e+00> : vector<8x120xf32>
    %119 = tpu.matmul %116, %118, %cst_102 {dimension_numbers = #tpu.dot_dimension_numbers<[1], [0], [0], [1], [0, 0, 1, 1], [], []>} : vector<8x80xf32>, vector<80x120xf32>, vector<8x120xf32> -> vector<8x120xf32>
    %120 = arith.addf %114, %119 : vector<8x120xf32>
    %121 = vector.extract_strided_slice %97 {offsets = [0, 4, 0], sizes = [8, 1, 80], strides = [1, 1, 1]} : vector<8x8x80xf32> to vector<8x1x80xf32>
    %122 = vector.shape_cast %121 : vector<8x1x80xf32> to vector<8x80xf32>
    %c4_103 = arith.constant 4 : index
    %c0_104 = arith.constant 0 : index
    %c0_105 = arith.constant 0 : index
    %123 = vector.load %arg10[%c4_103, %c0_104, %c0_105] : memref<5x80x120xf32, #tpu.memory_space<vmem>>, vector<1x80x120xf32>
    %124 = vector.shape_cast %123 : vector<1x80x120xf32> to vector<80x120xf32>
    %cst_106 = arith.constant dense<0.000000e+00> : vector<8x120xf32>
    %125 = tpu.matmul %122, %124, %cst_106 {dimension_numbers = #tpu.dot_dimension_numbers<[1], [0], [0], [1], [0, 0, 1, 1], [], []>} : vector<8x80xf32>, vector<80x120xf32>, vector<8x120xf32> -> vector<8x120xf32>
    %126 = arith.addf %120, %125 : vector<8x120xf32>
    %c0_107 = arith.constant 0 : index
    %c0_108 = arith.constant 0 : index
    %127 = vector.load %arg11[%c0_107, %c0_108] : memref<1x120xf32, #tpu.memory_space<vmem>>, vector<1x120xf32>
    %128 = vector.broadcast %127 : vector<1x120xf32> to vector<8x120xf32>
    %129 = arith.addf %126, %128 : vector<8x120xf32>
    %cst_109 = arith.constant 0.000000e+00 : f32
    %130 = vector.broadcast %cst_109 : f32 to vector<8x120xf32>
    %131 = arith.maximumf %129, %130 : vector<8x120xf32>
    %c0_110 = arith.constant 0 : index
    %c0_111 = arith.constant 0 : index
    %132 = vector.load %arg12[%c0_110, %c0_111] : memref<120x84xf32, #tpu.memory_space<vmem>>, vector<120x84xf32>
    %cst_112 = arith.constant dense<0.000000e+00> : vector<8x84xf32>
    %133 = tpu.matmul %131, %132, %cst_112 {dimension_numbers = #tpu.dot_dimension_numbers<[1], [0], [0], [1], [0, 0, 1, 1], [], []>} : vector<8x120xf32>, vector<120x84xf32>, vector<8x84xf32> -> vector<8x84xf32>
    %c0_113 = arith.constant 0 : index
    %c0_114 = arith.constant 0 : index
    %134 = vector.load %arg13[%c0_113, %c0_114] : memref<1x84xf32, #tpu.memory_space<vmem>>, vector<1x84xf32>
    %135 = vector.broadcast %134 : vector<1x84xf32> to vector<8x84xf32>
    %136 = arith.addf %133, %135 : vector<8x84xf32>
    %cst_115 = arith.constant 0.000000e+00 : f32
    %137 = vector.broadcast %cst_115 : f32 to vector<8x84xf32>
    %138 = arith.maximumf %136, %137 : vector<8x84xf32>
    %c0_116 = arith.constant 0 : index
    %c0_117 = arith.constant 0 : index
    %139 = vector.load %arg14[%c0_116, %c0_117] : memref<84x128xf32, #tpu.memory_space<vmem>>, vector<84x128xf32>
    %cst_118 = arith.constant dense<0.000000e+00> : vector<8x128xf32>
    %140 = tpu.matmul %138, %139, %cst_118 {dimension_numbers = #tpu.dot_dimension_numbers<[1], [0], [0], [1], [0, 0, 1, 1], [], []>} : vector<8x84xf32>, vector<84x128xf32>, vector<8x128xf32> -> vector<8x128xf32>
    %c0_119 = arith.constant 0 : index
    %c0_120 = arith.constant 0 : index
    %141 = vector.load %arg15[%c0_119, %c0_120] : memref<1x128xf32, #tpu.memory_space<vmem>>, vector<1x128xf32>
    %142 = vector.broadcast %141 : vector<1x128xf32> to vector<8x128xf32>
    %143 = arith.addf %140, %142 : vector<8x128xf32>
    %c0_121 = arith.constant 0 : index
    %c0_122 = arith.constant 0 : index
    %144 = vector.load %arg16[%c0_121, %c0_122] : memref<8x128xf32, #tpu.memory_space<vmem>>, vector<8x128xf32>
    tpu.vector_store %arg16[%c0_121, %c0_122], %143 {strides = array<i32>} : memref<8x128xf32, #tpu.memory_space<vmem>>, vector<8x128xf32>,
    return
  }
  func.func @transform_0(%arg0: i32) -> (i32, i32, i32) {
    %c0_i32 = arith.constant 0 : i32
    %c0_i32_0 = arith.constant 0 : i32
    %c0_i32_1 = arith.constant 0 : i32
    return %arg0, %c0_i32, %c0_i32_0 : i32, i32, i32
  }
  func.func @transform_1(%arg0: i32) -> (i32, i32, i32) {
    %c0_i32 = arith.constant 0 : i32
    %c0_i32_0 = arith.constant 0 : i32
    %c0_i32_1 = arith.constant 0 : i32
    %c0_i32_2 = arith.constant 0 : i32
    return %c0_i32, %c0_i32_0, %c0_i32_1 : i32, i32, i32
  }
  func.func @transform_2(%arg0: i32) -> (i32, i32) {
    %c0_i32 = arith.constant 0 : i32
    %c0_i32_0 = arith.constant 0 : i32
    %c0_i32_1 = arith.constant 0 : i32
    return %c0_i32, %c0_i32_0 : i32, i32
  }
  func.func @transform_3(%arg0: i32) -> (i32, i32, i32) {
    %c0_i32 = arith.constant 0 : i32
    %c0_i32_0 = arith.constant 0 : i32
    %c0_i32_1 = arith.constant 0 : i32
    %c0_i32_2 = arith.constant 0 : i32
    return %c0_i32, %c0_i32_0, %c0_i32_1 : i32, i32, i32
  }
  func.func @transform_4(%arg0: i32) -> (i32, i32, i32) {
    %c0_i32 = arith.constant 0 : i32
    %c0_i32_0 = arith.constant 0 : i32
    %c0_i32_1 = arith.constant 0 : i32
    %c0_i32_2 = arith.constant 0 : i32
    return %c0_i32, %c0_i32_0, %c0_i32_1 : i32, i32, i32
  }
  func.func @transform_5(%arg0: i32) -> (i32, i32, i32) {
    %c0_i32 = arith.constant 0 : i32
    %c0_i32_0 = arith.constant 0 : i32
    %c0_i32_1 = arith.constant 0 : i32
    %c0_i32_2 = arith.constant 0 : i32
    return %c0_i32, %c0_i32_0, %c0_i32_1 : i32, i32, i32
  }
  func.func @transform_6(%arg0: i32) -> (i32, i32) {
    %c0_i32 = arith.constant 0 : i32
    %c0_i32_0 = arith.constant 0 : i32
    %c0_i32_1 = arith.constant 0 : i32
    return %c0_i32, %c0_i32_0 : i32, i32
  }
  func.func @transform_7(%arg0: i32) -> (i32, i32, i32) {
    %c0_i32 = arith.constant 0 : i32
    %c0_i32_0 = arith.constant 0 : i32
    %c0_i32_1 = arith.constant 0 : i32
    %c0_i32_2 = arith.constant 0 : i32
    return %c0_i32, %c0_i32_0, %c0_i32_1 : i32, i32, i32
  }
  func.func @transform_8(%arg0: i32) -> (i32, i32, i32) {
    %c0_i32 = arith.constant 0 : i32
    %c0_i32_0 = arith.constant 0 : i32
    %c0_i32_1 = arith.constant 0 : i32
    %c0_i32_2 = arith.constant 0 : i32
    return %c0_i32, %c0_i32_0, %c0_i32_1 : i32, i32, i32
  }
  func.func @transform_9(%arg0: i32) -> (i32, i32, i32) {
    %c0_i32 = arith.constant 0 : i32
    %c0_i32_0 = arith.constant 0 : i32
    %c0_i32_1 = arith.constant 0 : i32
    %c0_i32_2 = arith.constant 0 : i32
    return %c0_i32, %c0_i32_0, %c0_i32_1 : i32, i32, i32
  }
  func.func @transform_10(%arg0: i32) -> (i32, i32) {
    %c0_i32 = arith.constant 0 : i32
    %c0_i32_0 = arith.constant 0 : i32
    %c0_i32_1 = arith.constant 0 : i32
    return %c0_i32, %c0_i32_0 : i32, i32
  }
  func.func @transform_11(%arg0: i32) -> (i32, i32) {
    %c0_i32 = arith.constant 0 : i32
    %c0_i32_0 = arith.constant 0 : i32
    %c0_i32_1 = arith.constant 0 : i32
    return %c0_i32, %c0_i32_0 : i32, i32
  }
  func.func @transform_12(%arg0: i32) -> (i32, i32) {
    %c0_i32 = arith.constant 0 : i32
    %c0_i32_0 = arith.constant 0 : i32
    %c0_i32_1 = arith.constant 0 : i32
    return %c0_i32, %c0_i32_0 : i32, i32
  }
  func.func @transform_13(%arg0: i32) -> (i32, i32) {
    %c0_i32 = arith.constant 0 : i32
    %c0_i32_0 = arith.constant 0 : i32
    %c0_i32_1 = arith.constant 0 : i32
    return %c0_i32, %c0_i32_0 : i32, i32
  }
  func.func @transform_14(%arg0: i32) -> (i32, i32) {
    %c0_i32 = arith.constant 0 : i32
    %c0_i32_0 = arith.constant 0 : i32
    %c0_i32_1 = arith.constant 0 : i32
    return %c0_i32, %c0_i32_0 : i32, i32
  }
  func.func @transform_15(%arg0: i32) -> (i32, i32) {
    %c0_i32 = arith.constant 0 : i32
    %c0_i32_0 = arith.constant 0 : i32
    return %arg0, %c0_i32 : i32, i32
  }
}

</mosaic_0001>

<bundles_post_ra>
// kernel: lenet5_forward.1
= control target key start
LH: loop header
LB: loop body
LE: loop exit
PB: predicated region body
PF: predicated region fallthrough
CT: control target
= control target key end

     0   :  { %20 = vsyncpa [#allocation3], 0  ;;  %s10690_s0 = inlined_call_operand.vmem [shape: f32[8,36,32], index: 0, kind: input, shape index: {}]   ;;  %s10691_s1 = inlined_call_operand.hbm [shape: f32[5,32,168], index: 1, kind: input, shape index: {}]   ;;  %s10692_s2 = inlined_call_operand.vmem [shape: f32[1,168], index: 2, kind: input, shape index: {}]   ;;  %s10693_s3 = inlined_call_operand.vmem [shape: f32[2,192,256], index: 3, kind: input, shape index: {}]   ;;  %s10694_s4 = inlined_call_operand.vmem [shape: f32[2,168,84], index: 4, kind: input, shape index: {}]   ;;  %s10695_s5 = inlined_call_operand.vmem [shape: f32[5,84,160], index: 5, kind: input, shape index: {}]   ;;  %s10696_s6 = inlined_call_operand.vmem [shape: f32[1,160], index: 6, kind: input, shape index: {}]   ;;  %s10697_s7 = inlined_call_operand.vmem [shape: f32[2,64,128], index: 7, kind: input, shape index: {}]   ;;  %s10698_s8 = inlined_call_operand.hbm [shape: f32[2,160,80], index: 8, kind: input, shape index: {}]   ;;  %s10699_s9 = inlined_call_operand.vmem [shape: f32[5,80,120], index: 9, kind: input, shape index: {}]   ;;  %s10700_s10 = inlined_call_operand.vmem [shape: f32[1,120], index: 10, kind: input, shape index: {}]   ;;  %s10701_s11 = inlined_call_operand.vmem [shape: f32[120,84], index: 11, kind: input, shape index: {}]   ;;  %s10702_s12 = inlined_call_operand.vmem [shape: f32[1,84], index: 12, kind: input, shape index: {}]   ;;  %s10703_s13 = inlined_call_operand.hbm [shape: f32[84,128], index: 13, kind: input, shape index: {}]   ;;  %s10704_s14 = inlined_call_operand.vmem [shape: f32[1,128], index: 14, kind: input, shape index: {}]   ;;  %s10705_s15 = inlined_call_operand.vmem [shape: f32[8,128], index: 15, kind: output, shape index: {}]  }
   0x1   :  { %21 = vsyncpa [#allocation5], 0  ;;  %s53_s20 = sshll.u32 %s10698_s8, 4  ;;  %s6356_s21 = smov [#allocation4]   ;;  %s54_s20 = int_to_ptr.hbm [resolvable:$true] %s53_s20 }
   0x2   :  { %s55_s22 = sshll.u32 %s6356_s21, 4  ;;  %s28_s25 = sshll.u32 %s10691_s1, 4  ;;  %s56_s22 = int_to_ptr.vmem [resolvable:$true] %s55_s22  ;;  %s29_s25 = int_to_ptr.hbm [resolvable:$true] %s28_s25 }
   0x3   :  { %s6357_s26 = smov 128   ;;  %s6358_s27 = smov 8  }
   0x4   :  { %61 = dma.hbm_to_vmem [thread:$0]  %s54_s20, 5120, %s56_s22, [#allocation5], %s6357_s26, %s6357_s26, %s6358_s27  }
   0x5   :  { %s6359_s28 = smov [#allocation2]   ;;  %s6360_s30 = smov 256  }
   0x6   :  { %s30_s29 = sshll.u32 %s6359_s28, 4  ;;  %s6361_s16 = smov 16   ;;  %s31_s29 = int_to_ptr.vmem [resolvable:$true] %s30_s29 }
   0x7   :  { %36 = dma.hbm_to_vmem [thread:$0]  %s29_s25, 5120, %s31_s29, [#allocation3], %s6360_s30, %s6360_s30, %s6361_s16  }
   0x8   :  { %s74_s18 = sshll.u32 %s10703_s13, 4  ;;  %s6362_s19 = smov [#allocation6]   ;;  %s75_s18 = int_to_ptr.hbm [resolvable:$true] %s74_s18 }
   0x9   :  { %s76_s21 = sshll.u32 %s6362_s19, 4  ;;  %s77_s21 = int_to_ptr.vmem [resolvable:$true] %s76_s21 }
   0xa   :  { %82 = dma.hbm_to_vmem [thread:$0]  %s75_s18, 1408, %s77_s21, [#allocation5], %s6357_s26, %s6357_s26, %s6358_s27  }
   0xb   :  { %6352 = dma.done.wait [#allocation3], 5120  }
   0xc   :  { %6353 = vsyncadd [#allocation3], 4294962176 }
   0xd   :  { %6354 = dma.done.wait [#allocation5], 6528  }
   0xe   :  { %6355 = vsyncadd [#allocation5], 4294960768  ;;  %v176_v0 = vld [vmem:[#allocation2 + $0x70] sm:$0xff]  ;;  %v177_v1 = vld [vmem:[#allocation2 + $0x78] sm:$0xff]  ;;  %vm178_vm0 = vcmask 261120   ;;  %vm2259_vm1 = vcmask 326656  }
   0xf   :  { %v135_v2 = vld [vmem:[#allocation2 + $0x30] sm:$0xff]  ;;  %287 = vmatpush.msra.mxu0 %v176_v0  ;;  %400 = vmatpush.msra.mxu1 %v177_v1  ;;  %v136_v3 = vld [vmem:[#allocation2 + $0x38] sm:$0xff]  ;;  %v174_v4 = vld [vmem:[#allocation2 + $0x60] sm:$0xff]  ;;  %vm3482_vm2 = vcmask 1043456   ;;  %vm3385_vm3 = vcmask 1046528   ;;  %vm3449_vm4 = vcmask 687104  }
  0x10   :  { %v175_v5 = vld [vmem:[#allocation2 + $0x68] sm:$0xff]  ;;  %609 = vmatpush.msra.mxu2 %v135_v2  ;;  %722 = vmatpush.msra.mxu3 %v136_v3  ;;  %v133_v6 = vld [vmem:[#allocation2 + $0x20] sm:$0xff]  ;;  %v172_v8 = vld [vmem:[#allocation2 + $0x50] sm:$0xff]  ;;  %vm3787_vm5 = vcmask 1045504   ;;  %vm4051_vm6 = vcmask 1044480   ;;  %vm5150_vm7 = vcmask 1041409  }
  0x11   :  { %v134_v7 = vld [vmem:[#allocation2 + $0x28] sm:$0xff]  ;;  %288 = vmatpush.msra.mxu0 %v174_v4  ;;  %401 = vmatpush.msra.mxu1 %v175_v5  ;;  %v173_v9 = vld [vmem:[#allocation2 + $0x58] sm:$0xff]  ;;  %v131_v10 = vld [vmem:[#allocation2 + $0x10] sm:$0xff]  ;;  %vm5153_vm8 = vcmask 1042434   ;;  %vm5156_vm9 = vcmask 1043459   ;;  %vm5159_vm10 = vcmask 1044484  }
  0x12   :  { %v132_v11 = vld [vmem:[#allocation2 + $0x18] sm:$0xff]  ;;  %610 = vmatpush.msra.mxu2 %v133_v6  ;;  %723 = vmatpush.msra.mxu3 %v134_v7  ;;  %v170_v12 = vld [vmem:[#allocation2 + $0x40] sm:$0xff]  ;;  %v171_v13 = vld [vmem:[#allocation2 + $0x48] sm:$0xff]  ;;  %vm5162_vm11 = vcmask 1045509   ;;  %vm5165_vm12 = vcmask 1046534   ;;  %vm5168_vm13 = vcmask 1047559  }
  0x13   :  { %289 = vmatpush.msra.mxu0 %v172_v8  ;;  %402 = vmatpush.msra.mxu1 %v173_v9  ;;  %v129_v14 = vld [vmem:[#allocation2] sm:$0xff]  ;;  %v130_v15 = vld [vmem:[#allocation2 + $0x8] sm:$0xff]  ;;  %v139_v20 = vld [vmem:[%s10690_s0 + $0x11] sm:$0xff]  ;;  %vm5170_vm14 = vcmask 654336   ;;  %vm5398_vm15 = vcmask 982016  }
  0x14   :  { %611 = vmatpush.msra.mxu2 %v131_v10  ;;  %724 = vmatpush.msra.mxu3 %v132_v11  ;;  %v137_v16 = vld [vmem:[%s10690_s0 + $0x1] sm:$0xff]  ;;  %v138_v18 = vld [vmem:[%s10690_s0 + $0x9] sm:$0xff]  ;;  %v140_v22 = vld [vmem:[%s10690_s0 + $0x19] sm:$0xff] }
  0x15   :  { %290 = vmatpush.msra.mxu0 %v170_v12  ;;  %403 = vmatpush.msra.mxu1 %v171_v13  ;;  %v97_v17 = vld [vmem:[%s10690_s0] sm:$0xff]  ;;  %v98_v19 = vld [vmem:[%s10690_s0 + $0x8] sm:$0xff]  ;;  %v99_v21 = vld [vmem:[%s10690_s0 + $0x10] sm:$0xff] }
  0x16   :  { %612 = vmatpush.msra.mxu2 %v129_v14  ;;  %725 = vmatpush.msra.mxu3 %v130_v15  ;;  %v100_v23 = vld [vmem:[%s10690_s0 + $0x18] sm:$0xff]  ;;  %v141_v24 = vld [vmem:[%s10690_s0 + $0x29] sm:$0xff]  ;;  %v144_v30 = vld [vmem:[%s10690_s0 + $0x41] sm:$0xff] }
  0x17   :  { %5471 = vmatmul.msk.f32.vlgmr.msra.gmra.mxu0 %vm178_vm0, %v137_v16  ;;  %5503 = vmatmul.msk.f32.vlgmr.msra.gmra.mxu1 %vm178_vm0, %v137_v16  ;;  %v101_v25 = vld [vmem:[%s10690_s0 + $0x28] sm:$0xff]  ;;  %v142_v26 = vld [vmem:[%s10690_s0 + $0x31] sm:$0xff]  ;;  %v143_v28 = vld [vmem:[%s10690_s0 + $0x39] sm:$0xff] }
  0x18   :  { %5535 = vmatmul.msk.f32.vlgmr.msra.gmra.mxu2 %vm178_vm0, %v97_v17  ;;  %5567 = vmatmul.msk.f32.vlgmr.msra.gmra.mxu3 %vm178_vm0, %v97_v17  ;;  %v102_v27 = vld [vmem:[%s10690_s0 + $0x30] sm:$0xff]  ;;  %v103_v29 = vld [vmem:[%s10690_s0 + $0x38] sm:$0xff]  ;;  %v104_v31 = vld [vmem:[%s10690_s0 + $0x40] sm:$0xff] }
  0x19   :  { %v145_v32 = vld [vmem:[%s10690_s0 + $0x51] sm:$0xff]  ;;  %v146_v34 = vld [vmem:[%s10690_s0 + $0x59] sm:$0xff]  ;;  %v147_v36 = vld [vmem:[%s10690_s0 + $0x61] sm:$0xff] }
  0x1a   :  { %v105_v33 = vld [vmem:[%s10690_s0 + $0x50] sm:$0xff]  ;;  %v106_v35 = vld [vmem:[%s10690_s0 + $0x58] sm:$0xff]  ;;  %v107_v37 = vld [vmem:[%s10690_s0 + $0x60] sm:$0xff] }
  0x1b   :  { %v148_v38 = vld [vmem:[%s10690_s0 + $0x69] sm:$0xff]  ;;  %v149_v40 = vld [vmem:[%s10690_s0 + $0x79] sm:$0xff]  ;;  %v150_v42 = vld [vmem:[%s10690_s0 + $0x81] sm:$0xff] }
  0x1c   :  { %v108_v39 = vld [vmem:[%s10690_s0 + $0x68] sm:$0xff]  ;;  %v109_v41 = vld [vmem:[%s10690_s0 + $0x78] sm:$0xff]  ;;  %v110_v43 = vld [vmem:[%s10690_s0 + $0x80] sm:$0xff] }
  0x1d   :  { %v151_v44 = vld [vmem:[%s10690_s0 + $0x89] sm:$0xff]  ;;  %v152_v46 = vld [vmem:[%s10690_s0 + $0x91] sm:$0xff]  ;;  %v153_v50 = vld [vmem:[%s10690_s0 + $0xa1] sm:$0xff] }
  0x1e   :  { %v111_v45 = vld [vmem:[%s10690_s0 + $0x88] sm:$0xff]  ;;  %v112_v47 = vld [vmem:[%s10690_s0 + $0x90] sm:$0xff]  ;;  %v113_v51 = vld [vmem:[%s10690_s0 + $0xa0] sm:$0xff] }
  0x1f   :  { %5472 = vmatmul.msk.f32.gmra.mxu0 %vm178_vm0, %v138_v18  ;;  %5504 = vmatmul.msk.f32.gmra.mxu1 %vm178_vm0, %v138_v18  ;;  %v154_v58 = vld [vmem:[%s10690_s0 + $0xa9] sm:$0xff]  ;;  %v155_v2 = vld [vmem:[%s10690_s0 + $0xb1] sm:$0xff]  ;;  %v156_v10 = vld [vmem:[%s10690_s0 + $0xb9] sm:$0xff] }
  0x20   :  { %5536 = vmatmul.msk.f32.gmra.mxu2 %vm178_vm0, %v98_v19  ;;  %5568 = vmatmul.msk.f32.gmra.mxu3 %vm178_vm0, %v98_v19  ;;  %v114_v59 = vld [vmem:[%s10690_s0 + $0xa8] sm:$0xff]  ;;  %v115_v3 = vld [vmem:[%s10690_s0 + $0xb0] sm:$0xff]  ;;  %v116_v11 = vld [vmem:[%s10690_s0 + $0xb8] sm:$0xff] }
  0x21   :  { %v157_v18 = vld [vmem:[%s10690_s0 + $0xc9] sm:$0xff] }
  0x22   :  { %v117_v19 = vld [vmem:[%s10690_s0 + $0xc8] sm:$0xff] }
  0x27   :  { %5473 = vmatmul.msk.f32.gmra.mxu0 %vm178_vm0, %v139_v20  ;;  %5505 = vmatmul.msk.f32.gmra.mxu1 %vm178_vm0, %v139_v20 }
  0x28   :  { %5537 = vmatmul.msk.f32.gmra.mxu2 %vm178_vm0, %v99_v21  ;;  %5569 = vmatmul.msk.f32.gmra.mxu3 %vm178_vm0, %v99_v21 }
  0x2f   :  { %5474 = vmatmul.msk.f32.gmra.mxu0 %vm178_vm0, %v140_v22  ;;  %5506 = vmatmul.msk.f32.gmra.mxu1 %vm178_vm0, %v140_v22 }
  0x30   :  { %5538 = vmatmul.msk.f32.gmra.mxu2 %vm178_vm0, %v100_v23  ;;  %5570 = vmatmul.msk.f32.gmra.mxu3 %vm178_vm0, %v100_v23 }
  0x37   :  { %5475 = vmatmul.msk.f32.gmra.mxu0 %vm178_vm0, %v141_v24  ;;  %5507 = vmatmul.msk.f32.gmra.mxu1 %vm178_vm0, %v141_v24 }
  0x38   :  { %5539 = vmatmul.msk.f32.gmra.mxu2 %vm178_vm0, %v101_v25  ;;  %5571 = vmatmul.msk.f32.gmra.mxu3 %vm178_vm0, %v101_v25 }
  0x3f   :  { %5476 = vmatmul.msk.f32.gmra.mxu0 %vm178_vm0, %v142_v26  ;;  %5508 = vmatmul.msk.f32.gmra.mxu1 %vm178_vm0, %v142_v26  ;;  %v158_v26 = vld [vmem:[%s10690_s0 + $0xd1] sm:$0xff] }
  0x40   :  { %5540 = vmatmul.msk.f32.gmra.mxu2 %vm178_vm0, %v102_v27  ;;  %5572 = vmatmul.msk.f32.gmra.mxu3 %vm178_vm0, %v102_v27  ;;  %v118_v27 = vld [vmem:[%s10690_s0 + $0xd0] sm:$0xff] }
  0x47   :  { %5477 = vmatmul.msk.f32.gmra.mxu0 %vm178_vm0, %v143_v28  ;;  %5509 = vmatmul.msk.f32.gmra.mxu1 %vm178_vm0, %v143_v28 }
  0x48   :  { %5541 = vmatmul.msk.f32.gmra.mxu2 %vm178_vm0, %v103_v29  ;;  %5573 = vmatmul.msk.f32.gmra.mxu3 %vm178_vm0, %v103_v29 }
  0x4f   :  { %5478 = vmatmul.msk.f32.gmra.mxu0 %vm178_vm0, %v144_v30  ;;  %5510 = vmatmul.msk.f32.gmra.mxu1 %vm178_vm0, %v144_v30 }
  0x50   :  { %5542 = vmatmul.msk.f32.gmra.mxu2 %vm178_vm0, %v104_v31  ;;  %5574 = vmatmul.msk.f32.gmra.mxu3 %vm178_vm0, %v104_v31 }
  0x57   :  { %5479 = vmatmul.msk.f32.gmra.mxu0 %vm178_vm0, %v145_v32  ;;  %5511 = vmatmul.msk.f32.gmra.mxu1 %vm178_vm0, %v145_v32 }
  0x58   :  { %5543 = vmatmul.msk.f32.gmra.mxu2 %vm178_vm0, %v105_v33  ;;  %5575 = vmatmul.msk.f32.gmra.mxu3 %vm178_vm0, %v105_v33 }
  0x5f   :  { %5480 = vmatmul.msk.f32.gmra.mxu0 %vm178_vm0, %v146_v34  ;;  %5512 = vmatmul.msk.f32.gmra.mxu1 %vm178_vm0, %v146_v34  ;;  %v159_v34 = vld [vmem:[%s10690_s0 + $0xd9] sm:$0xff] }
  0x60   :  { %5544 = vmatmul.msk.f32.gmra.mxu2 %vm178_vm0, %v106_v35  ;;  %5576 = vmatmul.msk.f32.gmra.mxu3 %vm178_vm0, %v106_v35  ;;  %v119_v35 = vld [vmem:[%s10690_s0 + $0xd8] sm:$0xff] }
  0x67   :  { %5481 = vmatmul.msk.f32.gmra.mxu0 %vm178_vm0, %v147_v36  ;;  %5513 = vmatmul.msk.f32.gmra.mxu1 %vm178_vm0, %v147_v36 }
  0x68   :  { %5545 = vmatmul.msk.f32.gmra.mxu2 %vm178_vm0, %v107_v37  ;;  %5577 = vmatmul.msk.f32.gmra.mxu3 %vm178_vm0, %v107_v37 }
  0x6f   :  { %5482 = vmatmul.msk.f32.gmra.mxu0 %vm178_vm0, %v148_v38  ;;  %5514 = vmatmul.msk.f32.gmra.mxu1 %vm178_vm0, %v148_v38 }
  0x70   :  { %5546 = vmatmul.msk.f32.gmra.mxu2 %vm178_vm0, %v108_v39  ;;  %5578 = vmatmul.msk.f32.gmra.mxu3 %vm178_vm0, %v108_v39 }
  0x77   :  { %5483 = vmatmul.msk.f32.gmra.mxu0 %vm178_vm0, %v149_v40  ;;  %5515 = vmatmul.msk.f32.gmra.mxu1 %vm178_vm0, %v149_v40 }
  0x78   :  { %5547 = vmatmul.msk.f32.gmra.mxu2 %vm178_vm0, %v109_v41  ;;  %5579 = vmatmul.msk.f32.gmra.mxu3 %vm178_vm0, %v109_v41 }
  0x7f   :  { %5484 = vmatmul.msk.f32.gmra.mxu0 %vm178_vm0, %v150_v42  ;;  %5516 = vmatmul.msk.f32.gmra.mxu1 %vm178_vm0, %v150_v42  ;;  %v160_v42 = vld [vmem:[%s10690_s0 + $0xe1] sm:$0xff] }
  0x80   :  { %5548 = vmatmul.msk.f32.gmra.mxu2 %vm178_vm0, %v110_v43  ;;  %5580 = vmatmul.msk.f32.gmra.mxu3 %vm178_vm0, %v110_v43  ;;  %v120_v43 = vld [vmem:[%s10690_s0 + $0xe0] sm:$0xff] }
  0x87   :  { %5485 = vmatmul.msk.f32.gmra.mxu0 %vm178_vm0, %v151_v44  ;;  %5517 = vmatmul.msk.f32.gmra.mxu1 %vm178_vm0, %v151_v44 }
  0x88   :  { %5549 = vmatmul.msk.f32.gmra.mxu2 %vm178_vm0, %v111_v45  ;;  %5581 = vmatmul.msk.f32.gmra.mxu3 %vm178_vm0, %v111_v45 }
  0x8f   :  { %5486 = vmatmul.msk.f32.gmra.mxu0 %vm178_vm0, %v152_v46  ;;  %5518 = vmatmul.msk.f32.gmra.mxu1 %vm178_vm0, %v152_v46 }
  0x90   :  { %5550 = vmatmul.msk.f32.gmra.mxu2 %vm178_vm0, %v112_v47  ;;  %5582 = vmatmul.msk.f32.gmra.mxu3 %vm178_vm0, %v112_v47 }
  0x94   :  { %v292_v48 = vpop.f32.mrf.mxu0  ;;  %v405_v49 = vpop.f32.mrf.mxu1 }
  0x97   :  { %5487 = vmatmul.msk.f32.gmra.mxu0 %vm178_vm0, %v153_v50  ;;  %5519 = vmatmul.msk.f32.gmra.mxu1 %vm178_vm0, %v153_v50  ;;  %v161_v50 = vld [vmem:[%s10690_s0 + $0xf1] sm:$0xff] }
  0x98   :  { %5551 = vmatmul.msk.f32.gmra.mxu2 %vm178_vm0, %v113_v51  ;;  %5583 = vmatmul.msk.f32.gmra.mxu3 %vm178_vm0, %v113_v51  ;;  %v121_v51 = vld [vmem:[%s10690_s0 + $0xf0] sm:$0xff] }
  0x9b   :  { %v614_v52 = vpop.f32.mrf.mxu2  ;;  %v727_v53 = vpop.f32.mrf.mxu3 }
  0x9c   :  { %v6622_v54 = vadd.f32 %v614_v52, %v292_v48  ;;  %v6624_v55 = vadd.f32 %v727_v53, %v405_v49  ;;  %v295_v56 = vpop.f32.mrf.mxu0  ;;  %v408_v57 = vpop.f32.mrf.mxu1  ;;  %v862_v52 = vld [vmem:[#allocation2 + $0xb0] sm:$0xff]  ;;  %v863_v53 = vld [vmem:[#allocation2 + $0xb8] sm:$0xff] }
  0x9d   :  { %972 = vmatpush.msrb.mxu0 %v862_v52  ;;  %1085 = vmatpush.msrb.mxu1 %v863_v53 }
  0x9f   :  { %5488 = vmatmul.msk.f32.gmra.mxu0 %vm178_vm0, %v154_v58  ;;  %5520 = vmatmul.msk.f32.gmra.mxu1 %vm178_vm0, %v154_v58 }
  0xa0   :  { %5552 = vmatmul.msk.f32.gmra.mxu2 %vm178_vm0, %v114_v59  ;;  %5584 = vmatmul.msk.f32.gmra.mxu3 %vm178_vm0, %v114_v59 }
  0xa3   :  { %v617_v60 = vpop.f32.mrf.mxu2  ;;  %v730_v61 = vpop.f32.mrf.mxu3 }
  0xa4   :  { %v6636_v62 = vadd.f32 %v617_v60, %v295_v56  ;;  %v6638_v63 = vadd.f32 %v730_v61, %v408_v57  ;;  %v298_v0 = vpop.f32.mrf.mxu0  ;;  %v411_v1 = vpop.f32.mrf.mxu1 }
  0xa7   :  { %5489 = vmatmul.msk.f32.gmra.mxu0 %vm178_vm0, %v155_v2  ;;  %5521 = vmatmul.msk.f32.gmra.mxu1 %vm178_vm0, %v155_v2 }
  0xa8   :  { %5553 = vmatmul.msk.f32.gmra.mxu2 %vm178_vm0, %v115_v3  ;;  %5585 = vmatmul.msk.f32.gmra.mxu3 %vm178_vm0, %v115_v3 }
  0xab   :  { %v620_v4 = vpop.f32.mrf.mxu2  ;;  %v733_v5 = vpop.f32.mrf.mxu3 }
  0xac   :  { %v6650_v6 = vadd.f32 %v620_v4, %v298_v0  ;;  %v6652_v7 = vadd.f32 %v733_v5, %v411_v1  ;;  %v301_v8 = vpop.f32.mrf.mxu0  ;;  %v414_v9 = vpop.f32.mrf.mxu1  ;;  %v162_v0 = vld [vmem:[%s10690_s0 + $0xf9] sm:$0xff] }
  0xad   :  { %v122_v1 = vld [vmem:[%s10690_s0 + $0xf8] sm:$0xff] }
  0xaf   :  { %5490 = vmatmul.msk.f32.gmra.mxu0 %vm178_vm0, %v156_v10  ;;  %5522 = vmatmul.msk.f32.gmra.mxu1 %vm178_vm0, %v156_v10  ;;  %v163_v10 = vld [vmem:[%s10690_s0 + $0x101] sm:$0xff] }
  0xb0   :  { %5554 = vmatmul.msk.f32.gmra.mxu2 %vm178_vm0, %v116_v11  ;;  %5586 = vmatmul.msk.f32.gmra.mxu3 %vm178_vm0, %v116_v11  ;;  %v123_v11 = vld [vmem:[%s10690_s0 + $0x100] sm:$0xff] }
  0xb3   :  { %v623_v12 = vpop.f32.mrf.mxu2  ;;  %v736_v13 = vpop.f32.mrf.mxu3 }
  0xb4   :  { %v6664_v14 = vadd.f32 %v623_v12, %v301_v8  ;;  %v6666_v15 = vadd.f32 %v736_v13, %v414_v9  ;;  %v304_v16 = vpop.f32.mrf.mxu0  ;;  %v417_v17 = vpop.f32.mrf.mxu1 }
  0xb7   :  { %5491 = vmatmul.msk.f32.gmra.mxu0 %vm178_vm0, %v157_v18  ;;  %5523 = vmatmul.msk.f32.gmra.mxu1 %vm178_vm0, %v157_v18 }
  0xb8   :  { %5555 = vmatmul.msk.f32.gmra.mxu2 %vm178_vm0, %v117_v19  ;;  %5587 = vmatmul.msk.f32.gmra.mxu3 %vm178_vm0, %v117_v19 }
  0xbb   :  { %v626_v20 = vpop.f32.mrf.mxu2  ;;  %v739_v21 = vpop.f32.mrf.mxu3 }
  0xbc   :  { %v6678_v22 = vadd.f32 %v626_v20, %v304_v16  ;;  %v6680_v23 = vadd.f32 %v739_v21, %v417_v17  ;;  %v307_v24 = vpop.f32.mrf.mxu0  ;;  %v420_v25 = vpop.f32.mrf.mxu1  ;;  %v164_v20 = vld [vmem:[%s10690_s0 + $0x109] sm:$0xff] }
  0xbd   :  { %v124_v21 = vld [vmem:[%s10690_s0 + $0x108] sm:$0xff] }
  0xbf   :  { %5492 = vmatmul.msk.f32.gmra.mxu0 %vm178_vm0, %v158_v26  ;;  %5524 = vmatmul.msk.f32.gmra.mxu1 %vm178_vm0, %v158_v26  ;;  %v860_v26 = vld [vmem:[#allocation2 + $0xa0] sm:$0xff] }
  0xc0   :  { %5556 = vmatmul.msk.f32.gmra.mxu2 %vm178_vm0, %v118_v27  ;;  %5588 = vmatmul.msk.f32.gmra.mxu3 %vm178_vm0, %v118_v27  ;;  %v861_v27 = vld [vmem:[#allocation2 + $0xa8] sm:$0xff] }
  0xc1   :  { %973 = vmatpush.msrb.mxu0 %v860_v26  ;;  %1086 = vmatpush.msrb.mxu1 %v861_v27  ;;  %v168_v26 = vld [vmem:[%s10690_s0 + $0x131] sm:$0xff] }
  0xc2   :  { %v128_v27 = vld [vmem:[%s10690_s0 + $0x130] sm:$0xff] }
  0xc3   :  { %v629_v28 = vpop.f32.mrf.mxu2  ;;  %v742_v29 = vpop.f32.mrf.mxu3 }
  0xc4   :  { %v6692_v30 = vadd.f32 %v629_v28, %v307_v24  ;;  %v6694_v31 = vadd.f32 %v742_v29, %v420_v25  ;;  %v310_v32 = vpop.f32.mrf.mxu0  ;;  %v423_v33 = vpop.f32.mrf.mxu1  ;;  %v1289_v24 = vld [vmem:[#allocation2 + $0xf0] sm:$0xff]  ;;  %v1290_v25 = vld [vmem:[#allocation2 + $0xf8] sm:$0xff]  ;;  %v1287_v28 = vld [vmem:[#allocation2 + $0xe0] sm:$0xff] }
  0xc5   :  { %1399 = vmatpush.msrb.mxu2 %v1289_v24  ;;  %1512 = vmatpush.msrb.mxu3 %v1290_v25 }
  0xc7   :  { %5493 = vmatmul.msk.f32.gmra.mxu0 %vm178_vm0, %v159_v34  ;;  %5525 = vmatmul.msk.f32.gmra.mxu1 %vm178_vm0, %v159_v34  ;;  %v1288_v34 = vld [vmem:[#allocation2 + $0xe8] sm:$0xff] }
  0xc8   :  { %5557 = vmatmul.msk.f32.gmra.mxu2 %vm178_vm0, %v119_v35  ;;  %5589 = vmatmul.msk.f32.gmra.mxu3 %vm178_vm0, %v119_v35 }
  0xc9   :  { %1400 = vmatpush.msrb.mxu2 %v1287_v28  ;;  %1513 = vmatpush.msrb.mxu3 %v1288_v34 }
  0xcb   :  { %v632_v36 = vpop.f32.mrf.mxu2  ;;  %v745_v37 = vpop.f32.mrf.mxu3 }
  0xcc   :  { %v6706_v38 = vadd.f32 %v632_v36, %v310_v32  ;;  %v6708_v39 = vadd.f32 %v745_v37, %v423_v33  ;;  %v313_v40 = vpop.f32.mrf.mxu0  ;;  %v426_v41 = vpop.f32.mrf.mxu1  ;;  %v165_v33 = vld [vmem:[%s10690_s0 + $0x119] sm:$0xff] }
  0xcf   :  { %5494 = vmatmul.msk.f32.gmra.mxu0 %vm178_vm0, %v160_v42  ;;  %5526 = vmatmul.msk.f32.gmra.mxu1 %vm178_vm0, %v160_v42  ;;  %v859_v42 = vld [vmem:[#allocation2 + $0x98] sm:$0xff] }
  0xd0   :  { %5558 = vmatmul.msk.f32.gmra.mxu2 %vm178_vm0, %v120_v43  ;;  %5590 = vmatmul.msk.f32.gmra.mxu3 %vm178_vm0, %v120_v43  ;;  %v1285_v43 = vld [vmem:[#allocation2 + $0xd0] sm:$0xff] }
  0xd1   :  { %1087 = vmatpush.msrb.mxu1 %v859_v42  ;;  %1401 = vmatpush.msrb.mxu2 %v1285_v43 }
  0xd3   :  { %v635_v44 = vpop.f32.mrf.mxu2  ;;  %v748_v45 = vpop.f32.mrf.mxu3 }
  0xd4   :  { %v6720_v46 = vadd.f32 %v635_v44, %v313_v40  ;;  %v6722_v47 = vadd.f32 %v748_v45, %v426_v41  ;;  %v316_v48 = vpop.f32.mrf.mxu0  ;;  %v429_v49 = vpop.f32.mrf.mxu1  ;;  %v858_v41 = vld [vmem:[#allocation2 + $0x90] sm:$0xff]  ;;  %v125_v44 = vld [vmem:[%s10690_s0 + $0x118] sm:$0xff] }
  0xd5   :  { %974 = vmatpush.msrb.mxu0 %v858_v41  ;;  %v1286_v45 = vld [vmem:[#allocation2 + $0xd8] sm:$0xff]  ;;  %v1250_v41 = vld [vmem:[%s10690_s0 + $0x3] sm:$0xff] }
  0xd6   :  { %1514 = vmatpush.msrb.mxu3 %v1286_v45 }
  0xd7   :  { %5495 = vmatmul.msk.f32.gmra.mxu0 %vm178_vm0, %v161_v50  ;;  %5527 = vmatmul.msk.f32.gmra.mxu1 %vm178_vm0, %v161_v50  ;;  %v1283_v50 = vld [vmem:[#allocation2 + $0xc0] sm:$0xff] }
  0xd8   :  { %5559 = vmatmul.msk.f32.gmra.mxu2 %vm178_vm0, %v121_v51  ;;  %5591 = vmatmul.msk.f32.gmra.mxu3 %vm178_vm0, %v121_v51  ;;  %v1284_v51 = vld [vmem:[#allocation2 + $0xc8] sm:$0xff] }
  0xd9   :  { %1402 = vmatpush.msrb.mxu2 %v1283_v50  ;;  %1515 = vmatpush.msrb.mxu3 %v1284_v51  ;;  %v824_v50 = vld [vmem:[%s10690_s0 + $0xa] sm:$0xff] }
  0xda   :  { %v1251_v51 = vld [vmem:[%s10690_s0 + $0xb] sm:$0xff] }
  0xdb   :  { %v638_v56 = vpop.f32.mrf.mxu2  ;;  %v751_v57 = vpop.f32.mrf.mxu3 }
  0xdc   :  { %v6734_v58 = vadd.f32 %v638_v56, %v316_v48  ;;  %v6736_v59 = vadd.f32 %v751_v57, %v429_v49  ;;  %v319_v60 = vpop.f32.mrf.mxu0  ;;  %v432_v61 = vpop.f32.mrf.mxu1  ;;  %v856_v48 = vld [vmem:[#allocation2 + $0x80] sm:$0xff]  ;;  %v857_v49 = vld [vmem:[#allocation2 + $0x88] sm:$0xff] }
  0xdd   :  { %975 = vmatpush.msrb.mxu0 %v856_v48  ;;  %1088 = vmatpush.msrb.mxu1 %v857_v49 }
  0xdf   :  { %5496 = vmatmul.msk.f32.gmra.mxu0 %vm178_vm0, %v162_v0  ;;  %5528 = vmatmul.msk.f32.gmra.mxu1 %vm178_vm0, %v162_v0  ;;  %v166_v0 = vld [vmem:[%s10690_s0 + $0x121] sm:$0xff] }
  0xe0   :  { %5560 = vmatmul.msk.f32.gmra.mxu2 %vm178_vm0, %v122_v1  ;;  %5592 = vmatmul.msk.f32.gmra.mxu3 %vm178_vm0, %v122_v1  ;;  %v126_v1 = vld [vmem:[%s10690_s0 + $0x120] sm:$0xff] }
  0xe3   :  { %v641_v2 = vpop.f32.mrf.mxu2  ;;  %v754_v3 = vpop.f32.mrf.mxu3 }
  0xe4   :  { %v6748_v4 = vadd.f32 %v641_v2, %v319_v60  ;;  %v6750_v5 = vadd.f32 %v754_v3, %v432_v61  ;;  %v322_v8 = vpop.f32.mrf.mxu0  ;;  %v435_v9 = vpop.f32.mrf.mxu1 }
  0xe7   :  { %5497 = vmatmul.msk.f32.gmra.mxu0 %vm178_vm0, %v163_v10  ;;  %5529 = vmatmul.msk.f32.gmra.mxu1 %vm178_vm0, %v163_v10 }
  0xe8   :  { %5561 = vmatmul.msk.f32.gmra.mxu2 %vm178_vm0, %v123_v11  ;;  %5593 = vmatmul.msk.f32.gmra.mxu3 %vm178_vm0, %v123_v11 }
  0xeb   :  { %v644_v12 = vpop.f32.mrf.mxu2  ;;  %v757_v13 = vpop.f32.mrf.mxu3 }
  0xec   :  { %v6762_v16 = vadd.f32 %v644_v12, %v322_v8  ;;  %v6764_v17 = vadd.f32 %v757_v13, %v435_v9  ;;  %v325_v18 = vpop.f32.mrf.mxu0  ;;  %v438_v19 = vpop.f32.mrf.mxu1  ;;  %v167_v12 = vld [vmem:[%s10690_s0 + $0x129] sm:$0xff] }
  0xed   :  { %v127_v13 = vld [vmem:[%s10690_s0 + $0x128] sm:$0xff] }
  0xef   :  { %5498 = vmatmul.msk.f32.gmra.mxu0 %vm178_vm0, %v164_v20  ;;  %5530 = vmatmul.msk.f32.gmra.mxu1 %vm178_vm0, %v164_v20 }
  0xf0   :  { %5562 = vmatmul.msk.f32.gmra.mxu2 %vm178_vm0, %v124_v21  ;;  %5594 = vmatmul.msk.f32.gmra.mxu3 %vm178_vm0, %v124_v21 }
  0xf3   :  { %v647_v29 = vpop.f32.mrf.mxu2  ;;  %v760_v32 = vpop.f32.mrf.mxu3 }
  0xf4   :  { %v6779_v35 = vadd.f32 %v647_v29, %v325_v18  ;;  %v6781_v36 = vadd.f32 %v760_v32, %v438_v19  ;;  %v328_v37 = vpop.f32.mrf.mxu0  ;;  %v441_v40 = vpop.f32.mrf.mxu1 }
  0xf7   :  { %5499 = vmatmul.msk.f32.gmra.mxu0 %vm178_vm0, %v165_v33  ;;  %5531 = vmatmul.msk.f32.gmra.mxu1 %vm178_vm0, %v165_v33 }
  0xf8   :  { %5563 = vmatmul.msk.f32.gmra.mxu2 %vm178_vm0, %v125_v44  ;;  %5595 = vmatmul.msk.f32.gmra.mxu3 %vm178_vm0, %v125_v44 }
  0xfb   :  { %v650_v52 = vpop.f32.mrf.mxu2  ;;  %v763_v53 = vpop.f32.mrf.mxu3 }
  0xfc   :  { %v6790_v56 = vadd.f32 %v650_v52, %v328_v37  ;;  %v6792_v57 = vadd.f32 %v763_v53, %v441_v40  ;;  %v331_v60 = vpop.f32.mrf.mxu0  ;;  %v444_v61 = vpop.f32.mrf.mxu1  ;;  %v823_v40 = vld [vmem:[%s10690_s0 + $0x2] sm:$0xff] }
  0xff   :  { %5500 = vmatmul.msk.f32.gmra.mxu0 %vm178_vm0, %v166_v0  ;;  %5532 = vmatmul.msk.f32.gmra.mxu1 %vm178_vm0, %v166_v0 }
 0x100   :  { %5564 = vmatmul.msk.f32.gmra.mxu2 %vm178_vm0, %v126_v1  ;;  %5596 = vmatmul.msk.f32.gmra.mxu3 %vm178_vm0, %v126_v1 }
 0x103   :  { %v653_v2 = vpop.f32.mrf.mxu2  ;;  %v766_v3 = vpop.f32.mrf.mxu3 }
 0x104   :  { %v6804_v8 = vadd.f32 %v653_v2, %v331_v60  ;;  %v6806_v9 = vadd.f32 %v766_v3, %v444_v61  ;;  %v334_v10 = vpop.f32.mrf.mxu0  ;;  %v447_v11 = vpop.f32.mrf.mxu1  ;;  %v825_v2 = vld [vmem:[%s10690_s0 + $0x12] sm:$0xff] }
 0x105   :  { %v1252_v3 = vld [vmem:[%s10690_s0 + $0x13] sm:$0xff] }
 0x107   :  { %5501 = vmatmul.msk.f32.gmra.mxu0 %vm178_vm0, %v167_v12  ;;  %5533 = vmatmul.msk.f32.gmra.mxu1 %vm178_vm0, %v167_v12 }
 0x108   :  { %5565 = vmatmul.msk.f32.gmra.mxu2 %vm178_vm0, %v127_v13  ;;  %5597 = vmatmul.msk.f32.gmra.mxu3 %vm178_vm0, %v127_v13 }
 0x10b   :  { %v656_v18 = vpop.f32.mrf.mxu2  ;;  %v769_v19 = vpop.f32.mrf.mxu3 }
 0x10c   :  { %v6818_v20 = vadd.f32 %v656_v18, %v334_v10  ;;  %v6820_v21 = vadd.f32 %v769_v19, %v447_v11  ;;  %v337_v24 = vpop.f32.mrf.mxu0  ;;  %v450_v25 = vpop.f32.mrf.mxu1 }
 0x10e   :  { %10765 = vst [vmem:[#allocation9_spill] sm:$0xff] %v6820_v21 }
 0x10f   :  { %5502 = vmatmul.msk.f32.gmra.mxu0 %vm178_vm0, %v168_v26  ;;  %5534 = vmatmul.msk.f32.gmra.mxu1 %vm178_vm0, %v168_v26 }
 0x110   :  { %5566 = vmatmul.msk.f32.gmra.mxu2 %vm178_vm0, %v128_v27  ;;  %5598 = vmatmul.msk.f32.gmra.mxu3 %vm178_vm0, %v128_v27 }
 0x113   :  { %v659_v28 = vpop.f32.mrf.mxu2  ;;  %v772_v29 = vpop.f32.mrf.mxu3 }
 0x114   :  { %v6832_v32 = vadd.f32 %v659_v28, %v337_v24  ;;  %v6834_v33 = vadd.f32 %v772_v29, %v450_v25  ;;  %v340_v34 = vpop.f32.mrf.mxu0  ;;  %v453_v37 = vpop.f32.mrf.mxu1  ;;  %v826_v24 = vld [vmem:[%s10690_s0 + $0x1a] sm:$0xff] }
 0x115   :  { %v1253_v25 = vld [vmem:[%s10690_s0 + $0x1b] sm:$0xff] }
 0x116   :  { %10766 = vst [vmem:[#allocation10_spill] sm:$0xff] %v6832_v32 }
 0x117   :  { %10767 = vst [vmem:[#allocation11_spill] sm:$0xff] %v6834_v33  ;;  %5599 = vmatmul.msk.f32.vlgmr.msrb.gmra.mxu0 %vm178_vm0, %v823_v40  ;;  %5631 = vmatmul.msk.f32.vlgmr.msrb.gmra.mxu1 %vm178_vm0, %v823_v40  ;;  %v827_v40 = vld [vmem:[%s10690_s0 + $0x2a] sm:$0xff] }
 0x118   :  { %5663 = vmatmul.msk.f32.vlgmr.msrb.gmra.mxu2 %vm178_vm0, %v1250_v41  ;;  %5695 = vmatmul.msk.f32.vlgmr.msrb.gmra.mxu3 %vm178_vm0, %v1250_v41  ;;  %v1254_v41 = vld [vmem:[%s10690_s0 + $0x2b] sm:$0xff] }
 0x11b   :  { %v662_v42 = vpop.f32.mrf.mxu2  ;;  %v775_v43 = vpop.f32.mrf.mxu3 }
 0x11c   :  { %v6846_v44 = vadd.f32 %v662_v42, %v340_v34  ;;  %v6848_v45 = vadd.f32 %v775_v43, %v453_v37  ;;  %v343_v48 = vpop.f32.mrf.mxu0  ;;  %v456_v49 = vpop.f32.mrf.mxu1 }
 0x11e   :  { %10768 = vst [vmem:[#allocation12_spill] sm:$0xff] %v6846_v44 }
 0x11f   :  { %10769 = vst [vmem:[#allocation13_spill] sm:$0xff] %v6848_v45  ;;  %5600 = vmatmul.msk.f32.gmra.mxu0 %vm178_vm0, %v824_v50  ;;  %5632 = vmatmul.msk.f32.gmra.mxu1 %vm178_vm0, %v824_v50 }
 0x120   :  { %5664 = vmatmul.msk.f32.gmra.mxu2 %vm178_vm0, %v1251_v51  ;;  %5696 = vmatmul.msk.f32.gmra.mxu3 %vm178_vm0, %v1251_v51 }
 0x123   :  { %v665_v52 = vpop.f32.mrf.mxu2  ;;  %v778_v53 = vpop.f32.mrf.mxu3 }
 0x124   :  { %v6860_v60 = vadd.f32 %v665_v52, %v343_v48  ;;  %v6862_v61 = vadd.f32 %v778_v53, %v456_v49  ;;  %v346_v0 = vpop.f32.mrf.mxu0  ;;  %v459_v1 = vpop.f32.mrf.mxu1  ;;  %v828_v52 = vld [vmem:[%s10690_s0 + $0x32] sm:$0xff] }
 0x125   :  { %v1255_v53 = vld [vmem:[%s10690_s0 + $0x33] sm:$0xff] }
 0x126   :  { %10770 = vst [vmem:[#allocation14_spill] sm:$0xff] %v6860_v60 }
 0x127   :  { %10771 = vst [vmem:[#allocation15_spill] sm:$0xff] %v6862_v61  ;;  %5601 = vmatmul.msk.f32.gmra.mxu0 %vm178_vm0, %v825_v2  ;;  %5633 = vmatmul.msk.f32.gmra.mxu1 %vm178_vm0, %v825_v2 }
 0x128   :  { %5665 = vmatmul.msk.f32.gmra.mxu2 %vm178_vm0, %v1252_v3  ;;  %5697 = vmatmul.msk.f32.gmra.mxu3 %vm178_vm0, %v1252_v3 }
 0x12b   :  { %v668_v10 = vpop.f32.mrf.mxu2  ;;  %v781_v11 = vpop.f32.mrf.mxu3 }
 0x12c   :  { %v6874_v12 = vadd.f32 %v668_v10, %v346_v0  ;;  %v6876_v13 = vadd.f32 %v781_v11, %v459_v1  ;;  %v349_v18 = vpop.f32.mrf.mxu0  ;;  %v462_v19 = vpop.f32.mrf.mxu1 }
 0x12e   :  { %10772 = vst [vmem:[#allocation16_spill] sm:$0xff] %v6874_v12 }
 0x12f   :  { %10773 = vst [vmem:[#allocation17_spill] sm:$0xff] %v6876_v13  ;;  %5602 = vmatmul.msk.f32.gmra.mxu0 %vm178_vm0, %v826_v24  ;;  %5634 = vmatmul.msk.f32.gmra.mxu1 %vm178_vm0, %v826_v24 }
 0x130   :  { %5666 = vmatmul.msk.f32.gmra.mxu2 %vm178_vm0, %v1253_v25  ;;  %5698 = vmatmul.msk.f32.gmra.mxu3 %vm178_vm0, %v1253_v25 }
 0x133   :  { %v671_v26 = vpop.f32.mrf.mxu2  ;;  %v784_v27 = vpop.f32.mrf.mxu3 }
 0x134   :  { %v6888_v28 = vadd.f32 %v671_v26, %v349_v18  ;;  %v6890_v29 = vadd.f32 %v784_v27, %v462_v19  ;;  %v352_v34 = vpop.f32.mrf.mxu0  ;;  %v465_v37 = vpop.f32.mrf.mxu1  ;;  %v829_v18 = vld [vmem:[%s10690_s0 + $0x3a] sm:$0xff] }
 0x135   :  { %v1256_v19 = vld [vmem:[%s10690_s0 + $0x3b] sm:$0xff] }
 0x136   :  { %10774 = vst [vmem:[#allocation18_spill] sm:$0xff] %v6888_v28 }
 0x137   :  { %10775 = vst [vmem:[#allocation19_spill] sm:$0xff] %v6890_v29  ;;  %5603 = vmatmul.msk.f32.gmra.mxu0 %vm178_vm0, %v827_v40  ;;  %5635 = vmatmul.msk.f32.gmra.mxu1 %vm178_vm0, %v827_v40  ;;  %v830_v40 = vld [vmem:[%s10690_s0 + $0x42] sm:$0xff] }
 0x138   :  { %5667 = vmatmul.msk.f32.gmra.mxu2 %vm178_vm0, %v1254_v41  ;;  %5699 = vmatmul.msk.f32.gmra.mxu3 %vm178_vm0, %v1254_v41  ;;  %v1257_v41 = vld [vmem:[%s10690_s0 + $0x43] sm:$0xff] }
 0x13b   :  { %v674_v42 = vpop.f32.mrf.mxu2  ;;  %v787_v43 = vpop.f32.mrf.mxu3 }
 0x13c   :  { %v6902_v48 = vadd.f32 %v674_v42, %v352_v34  ;;  %v6904_v49 = vadd.f32 %v787_v43, %v465_v37  ;;  %v355_v50 = vpop.f32.mrf.mxu0  ;;  %v468_v51 = vpop.f32.mrf.mxu1 }
 0x13e   :  { %10776 = vst [vmem:[#allocation20_spill] sm:$0xff] %v6902_v48 }
 0x13f   :  { %10777 = vst [vmem:[#allocation21_spill] sm:$0xff] %v6904_v49  ;;  %5604 = vmatmul.msk.f32.gmra.mxu0 %vm178_vm0, %v828_v52  ;;  %5636 = vmatmul.msk.f32.gmra.mxu1 %vm178_vm0, %v828_v52 }
 0x140   :  { %5668 = vmatmul.msk.f32.gmra.mxu2 %vm178_vm0, %v1255_v53  ;;  %5700 = vmatmul.msk.f32.gmra.mxu3 %vm178_vm0, %v1255_v53 }
 0x143   :  { %v677_v0 = vpop.f32.mrf.mxu2  ;;  %v790_v1 = vpop.f32.mrf.mxu3 }
 0x144   :  { %v6916_v2 = vadd.f32 %v677_v0, %v355_v50  ;;  %v6918_v3 = vadd.f32 %v790_v1, %v468_v51  ;;  %v358_v10 = vpop.f32.mrf.mxu0  ;;  %v471_v11 = vpop.f32.mrf.mxu1  ;;  %v831_v0 = vld [vmem:[%s10690_s0 + $0x52] sm:$0xff] }
 0x145   :  { %v1258_v1 = vld [vmem:[%s10690_s0 + $0x53] sm:$0xff] }
 0x146   :  { %10778 = vst [vmem:[#allocation22_spill] sm:$0xff] %v6916_v2 }
 0x147   :  { %10779 = vst [vmem:[#allocation23_spill] sm:$0xff] %v6918_v3  ;;  %5605 = vmatmul.msk.f32.gmra.mxu0 %vm178_vm0, %v829_v18  ;;  %5637 = vmatmul.msk.f32.gmra.mxu1 %vm178_vm0, %v829_v18  ;;  %v1677_v3 = vld [vmem:[%s10690_s0 + $0x4] sm:$0xff] }
 0x148   :  { %5669 = vmatmul.msk.f32.gmra.mxu2 %vm178_vm0, %v1256_v19  ;;  %5701 = vmatmul.msk.f32.gmra.mxu3 %vm178_vm0, %v1256_v19 }
 0x14b   :  { %v680_v24 = vpop.f32.mrf.mxu2  ;;  %v793_v25 = vpop.f32.mrf.mxu3 }
 0x14c   :  { %v6930_v26 = vadd.f32 %v680_v24, %v358_v10  ;;  %v6932_v27 = vadd.f32 %v793_v25, %v471_v11  ;;  %v361_v34 = vpop.f32.mrf.mxu0  ;;  %v474_v37 = vpop.f32.mrf.mxu1 }
 0x14e   :  { %10780 = vst [vmem:[#allocation24_spill] sm:$0xff] %v6930_v26  ;;  %v1281_v26 = vld [vmem:[%s10690_s0 + $0x133] sm:$0xff] }
 0x14f   :  { %10781 = vst [vmem:[#allocation25_spill] sm:$0xff] %v6932_v27  ;;  %5606 = vmatmul.msk.f32.gmra.mxu0 %vm178_vm0, %v830_v40  ;;  %5638 = vmatmul.msk.f32.gmra.mxu1 %vm178_vm0, %v830_v40  ;;  %v854_v27 = vld [vmem:[%s10690_s0 + $0x132] sm:$0xff] }
 0x150   :  { %5670 = vmatmul.msk.f32.gmra.mxu2 %vm178_vm0, %v1257_v41  ;;  %5702 = vmatmul.msk.f32.gmra.mxu3 %vm178_vm0, %v1257_v41 }
 0x153   :  { %v683_v42 = vpop.f32.mrf.mxu2  ;;  %v796_v43 = vpop.f32.mrf.mxu3 }
 0x154   :  { %v6944_v50 = vadd.f32 %v683_v42, %v361_v34  ;;  %v6946_v51 = vadd.f32 %v796_v43, %v474_v37  ;;  %v364_v52 = vpop.f32.mrf.mxu0  ;;  %v477_v53 = vpop.f32.mrf.mxu1  ;;  %v832_v34 = vld [vmem:[%s10690_s0 + $0x5a] sm:$0xff] }
 0x155   :  { %v1259_v37 = vld [vmem:[%s10690_s0 + $0x5b] sm:$0xff] }
 0x156   :  { %10782 = vst [vmem:[#allocation26_spill] sm:$0xff] %v6944_v50  ;;  %v1711_v50 = vld [vmem:[#allocation2 + $0x108] sm:$0xff] }
 0x157   :  { %10783 = vst [vmem:[#allocation27_spill] sm:$0xff] %v6946_v51  ;;  %5607 = vmatmul.msk.f32.gmra.mxu0 %vm178_vm0, %v831_v0  ;;  %5639 = vmatmul.msk.f32.gmra.mxu1 %vm178_vm0, %v831_v0  ;;  %v833_v0 = vld [vmem:[%s10690_s0 + $0x62] sm:$0xff]  ;;  %v1713_v51 = vld [vmem:[#allocation2 + $0x118] sm:$0xff] }
 0x158   :  { %5671 = vmatmul.msk.f32.gmra.mxu2 %vm178_vm0, %v1258_v1  ;;  %5703 = vmatmul.msk.f32.gmra.mxu3 %vm178_vm0, %v1258_v1  ;;  %v1260_v1 = vld [vmem:[%s10690_s0 + $0x63] sm:$0xff] }
 0x15b   :  { %v686_v10 = vpop.f32.mrf.mxu2  ;;  %v799_v11 = vpop.f32.mrf.mxu3 }
 0x15c   :  { %v6958_v18 = vadd.f32 %v686_v10, %v364_v52  ;;  %v6960_v19 = vadd.f32 %v799_v11, %v477_v53  ;;  %v367_v24 = vpop.f32.mrf.mxu0  ;;  %v480_v25 = vpop.f32.mrf.mxu1 }
 0x15e   :  { %10784 = vst [vmem:[#allocation28_spill] sm:$0xff] %v6958_v18  ;;  %v1712_v18 = vld [vmem:[#allocation2 + $0x110] sm:$0xff] }
 0x15f   :  { %10785 = vst [vmem:[#allocation29_spill] sm:$0xff] %v6960_v19  ;;  %5608 = vmatmul.msk.f32.gmra.mxu0 %vm178_vm0, %v832_v34  ;;  %5640 = vmatmul.msk.f32.gmra.mxu1 %vm178_vm0, %v832_v34  ;;  %v851_v19 = vld [vmem:[%s10690_s0 + $0x11a] sm:$0xff] }
 0x160   :  { %5672 = vmatmul.msk.f32.gmra.mxu2 %vm178_vm0, %v1259_v37  ;;  %5704 = vmatmul.msk.f32.gmra.mxu3 %vm178_vm0, %v1259_v37 }
 0x163   :  { %v689_v40 = vpop.f32.mrf.mxu2  ;;  %v802_v41 = vpop.f32.mrf.mxu3 }
 0x164   :  { %v6972_v42 = vadd.f32 %v689_v40, %v367_v24  ;;  %v6974_v43 = vadd.f32 %v802_v41, %v480_v25  ;;  %v370_v52 = vpop.f32.mrf.mxu0  ;;  %v483_v53 = vpop.f32.mrf.mxu1  ;;  %v834_v40 = vld [vmem:[%s10690_s0 + $0x6a] sm:$0xff] }
 0x165   :  { %v1261_v41 = vld [vmem:[%s10690_s0 + $0x6b] sm:$0xff] }
 0x166   :  { %10786 = vst [vmem:[#allocation30_spill] sm:$0xff] %v6972_v42 }
 0x167   :  { %10787 = vst [vmem:[#allocation31_spill] sm:$0xff] %v6974_v43  ;;  %5609 = vmatmul.msk.f32.gmra.mxu0 %vm178_vm0, %v833_v0  ;;  %5641 = vmatmul.msk.f32.gmra.mxu1 %vm178_vm0, %v833_v0 }
 0x168   :  { %5673 = vmatmul.msk.f32.gmra.mxu2 %vm178_vm0, %v1260_v1  ;;  %5705 = vmatmul.msk.f32.gmra.mxu3 %vm178_vm0, %v1260_v1 }
 0x16b   :  { %v692_v10 = vpop.f32.mrf.mxu2  ;;  %v805_v11 = vpop.f32.mrf.mxu3 }
 0x16c   :  { %v6986_v24 = vadd.f32 %v692_v10, %v370_v52  ;;  %v6988_v25 = vadd.f32 %v805_v11, %v483_v53  ;;  %v373_v34 = vpop.f32.mrf.mxu0  ;;  %v486_v37 = vpop.f32.mrf.mxu1 }
 0x16e   :  { %10788 = vst [vmem:[#allocation32_spill] sm:$0xff] %v6986_v24 }
 0x16f   :  { %10789 = vst [vmem:[#allocation33_spill] sm:$0xff] %v6988_v25  ;;  %5610 = vmatmul.msk.f32.gmra.mxu0 %vm178_vm0, %v834_v40  ;;  %5642 = vmatmul.msk.f32.gmra.mxu1 %vm178_vm0, %v834_v40  ;;  %v835_v25 = vld [vmem:[%s10690_s0 + $0x7a] sm:$0xff] }
 0x170   :  { %5674 = vmatmul.msk.f32.gmra.mxu2 %vm178_vm0, %v1261_v41  ;;  %5706 = vmatmul.msk.f32.gmra.mxu3 %vm178_vm0, %v1261_v41  ;;  %v1262_v40 = vld [vmem:[%s10690_s0 + $0x7b] sm:$0xff] }
 0x173   :  { %v695_v52 = vpop.f32.mrf.mxu2  ;;  %v808_v53 = vpop.f32.mrf.mxu3 }
 0x174   :  { %v7000_v0 = vadd.f32 %v695_v52, %v373_v34  ;;  %v7002_v1 = vadd.f32 %v808_v53, %v486_v37  ;;  %v376_v10 = vpop.f32.mrf.mxu0  ;;  %v489_v11 = vpop.f32.mrf.mxu1 }
 0x176   :  { %10790 = vst [vmem:[#allocation34_spill] sm:$0xff] %v7000_v0  ;;  %v836_v0 = vld [vmem:[%s10690_s0 + $0x82] sm:$0xff] }
 0x177   :  { %10791 = vst [vmem:[#allocation35_spill] sm:$0xff] %v7002_v1  ;;  %5611 = vmatmul.msk.f32.gmra.mxu0 %vm178_vm0, %v835_v25  ;;  %5643 = vmatmul.msk.f32.gmra.mxu1 %vm178_vm0, %v835_v25  ;;  %v1263_v25 = vld [vmem:[%s10690_s0 + $0x83] sm:$0xff] }
 0x178   :  { %5675 = vmatmul.msk.f32.gmra.mxu2 %vm178_vm0, %v1262_v40  ;;  %5707 = vmatmul.msk.f32.gmra.mxu3 %vm178_vm0, %v1262_v40 }
 0x17b   :  { %v698_v34 = vpop.f32.mrf.mxu2  ;;  %v811_v37 = vpop.f32.mrf.mxu3 }
 0x17c   :  { %v7014_v41 = vadd.f32 %v698_v34, %v376_v10  ;;  %v7016_v52 = vadd.f32 %v811_v37, %v489_v11  ;;  %v379_v53 = vpop.f32.mrf.mxu0  ;;  %v492_v1 = vpop.f32.mrf.mxu1 }
 0x17e   :  { %10792 = vst [vmem:[#allocation36_spill] sm:$0xff] %v7014_v41  ;;  %v837_v41 = vld [vmem:[%s10690_s0 + $0x8a] sm:$0xff] }
 0x17f   :  { %10793 = vst [vmem:[#allocation37_spill] sm:$0xff] %v7016_v52  ;;  %5612 = vmatmul.msk.f32.gmra.mxu0 %vm178_vm0, %v836_v0  ;;  %5644 = vmatmul.msk.f32.gmra.mxu1 %vm178_vm0, %v836_v0  ;;  %v1264_v0 = vld [vmem:[%s10690_s0 + $0x8b] sm:$0xff] }
 0x180   :  { %5676 = vmatmul.msk.f32.gmra.mxu2 %vm178_vm0, %v1263_v25  ;;  %5708 = vmatmul.msk.f32.gmra.mxu3 %vm178_vm0, %v1263_v25 }
 0x183   :  { %v701_v10 = vpop.f32.mrf.mxu2  ;;  %v814_v11 = vpop.f32.mrf.mxu3 }
 0x184   :  { %v7028_v40 = vadd.f32 %v701_v10, %v379_v53  ;;  %v7030_v34 = vadd.f32 %v814_v11, %v492_v1  ;;  %v382_v37 = vpop.f32.mrf.mxu0  ;;  %v495_v52 = vpop.f32.mrf.mxu1 }
 0x186   :  { %10794 = vst [vmem:[#allocation38_spill] sm:$0xff] %v7028_v40  ;;  %v838_v40 = vld [vmem:[%s10690_s0 + $0x92] sm:$0xff] }
 0x187   :  { %10795 = vst [vmem:[#allocation39_spill] sm:$0xff] %v7030_v34  ;;  %5613 = vmatmul.msk.f32.gmra.mxu0 %vm178_vm0, %v837_v41  ;;  %5645 = vmatmul.msk.f32.gmra.mxu1 %vm178_vm0, %v837_v41  ;;  %v1265_v41 = vld [vmem:[%s10690_s0 + $0x93] sm:$0xff] }
 0x188   :  { %5677 = vmatmul.msk.f32.gmra.mxu2 %vm178_vm0, %v1264_v0  ;;  %5709 = vmatmul.msk.f32.gmra.mxu3 %vm178_vm0, %v1264_v0 }
 0x18b   :  { %v704_v1 = vpop.f32.mrf.mxu2  ;;  %v817_v53 = vpop.f32.mrf.mxu3 }
 0x18c   :  { %v7042_v25 = vadd.f32 %v704_v1, %v382_v37  ;;  %v7044_v10 = vadd.f32 %v817_v53, %v495_v52  ;;  %v385_v11 = vpop.f32.mrf.mxu0  ;;  %v498_v34 = vpop.f32.mrf.mxu1 }
 0x18e   :  { %10796 = vst [vmem:[#allocation40_spill] sm:$0xff] %v7042_v25  ;;  %v839_v25 = vld [vmem:[%s10690_s0 + $0xa2] sm:$0xff] }
 0x18f   :  { %10797 = vst [vmem:[#allocation41_spill] sm:$0xff] %v7044_v10  ;;  %5614 = vmatmul.msk.f32.gmra.mxu0 %vm178_vm0, %v838_v40  ;;  %5646 = vmatmul.msk.f32.gmra.mxu1 %vm178_vm0, %v838_v40  ;;  %v1266_v40 = vld [vmem:[%s10690_s0 + $0xa3] sm:$0xff] }
 0x190   :  { %5678 = vmatmul.msk.f32.gmra.mxu2 %vm178_vm0, %v1265_v41  ;;  %5710 = vmatmul.msk.f32.gmra.mxu3 %vm178_vm0, %v1265_v41 }
 0x193   :  { %v707_v52 = vpop.f32.mrf.mxu2  ;;  %v820_v37 = vpop.f32.mrf.mxu3 }
 0x194   :  { %v7056_v0 = vadd.f32 %v707_v52, %v385_v11  ;;  %v7058_v1 = vadd.f32 %v820_v37, %v498_v34  ;;  %v977_v53 = vpop.f32.mrf.mxu0  ;;  %v1090_v10 = vpop.f32.mrf.mxu1 }
 0x195   :  { %v1186_v34 = vadd.f32 %v977_v53, %v6622_v54  ;;  %v1187_v11 = vadd.f32 %v1090_v10, %v6624_v55 }
 0x196   :  { %10798 = vst [vmem:[#allocation42_spill] sm:$0xff] %v7056_v0 }
 0x197   :  { %10799 = vst [vmem:[#allocation43_spill] sm:$0xff] %v7058_v1  ;;  %5615 = vmatmul.msk.f32.gmra.mxu0 %vm178_vm0, %v839_v25  ;;  %5647 = vmatmul.msk.f32.gmra.mxu1 %vm178_vm0, %v839_v25  ;;  %v840_v25 = vld [vmem:[%s10690_s0 + $0xaa] sm:$0xff] }
 0x198   :  { %5679 = vmatmul.msk.f32.gmra.mxu2 %vm178_vm0, %v1266_v40  ;;  %5711 = vmatmul.msk.f32.gmra.mxu3 %vm178_vm0, %v1266_v40  ;;  %v1267_v40 = vld [vmem:[%s10690_s0 + $0xab] sm:$0xff] }
 0x19b   :  { %v1404_v41 = vpop.f32.mrf.mxu2  ;;  %v1517_v52 = vpop.f32.mrf.mxu3 }
 0x19c   :  { %v7072_v37 = vadd.f32 %v1404_v41, %v1186_v34  ;;  %v7074_v1 = vadd.f32 %v1517_v52, %v1187_v11  ;;  %v980_v0 = vpop.f32.mrf.mxu0  ;;  %v1093_v24 = vpop.f32.mrf.mxu1 }
 0x19d   :  { %v1188_v54 = vadd.f32 %v980_v0, %v6636_v62  ;;  %v1189_v55 = vadd.f32 %v1093_v24, %v6638_v63 }
 0x19f   :  { %5616 = vmatmul.msk.f32.gmra.mxu0 %vm178_vm0, %v840_v25  ;;  %5648 = vmatmul.msk.f32.gmra.mxu1 %vm178_vm0, %v840_v25  ;;  %v841_v25 = vld [vmem:[%s10690_s0 + $0xb2] sm:$0xff] }
 0x1a0   :  { %5680 = vmatmul.msk.f32.gmra.mxu2 %vm178_vm0, %v1267_v40  ;;  %5712 = vmatmul.msk.f32.gmra.mxu3 %vm178_vm0, %v1267_v40  ;;  %v1268_v40 = vld [vmem:[%s10690_s0 + $0xb3] sm:$0xff] }
 0x1a3   :  { %v1407_v10 = vpop.f32.mrf.mxu2  ;;  %v1520_v53 = vpop.f32.mrf.mxu3 }
 0x1a4   :  { %v7088_v34 = vadd.f32 %v1407_v10, %v1188_v54  ;;  %v7090_v11 = vadd.f32 %v1520_v53, %v1189_v55  ;;  %v983_v41 = vpop.f32.mrf.mxu0  ;;  %v1096_v52 = vpop.f32.mrf.mxu1 }
 0x1a5   :  { %v1190_v62 = vadd.f32 %v983_v41, %v6650_v6  ;;  %v1191_v63 = vadd.f32 %v1096_v52, %v6652_v7 }
 0x1a7   :  { %5617 = vmatmul.msk.f32.gmra.mxu0 %vm178_vm0, %v841_v25  ;;  %5649 = vmatmul.msk.f32.gmra.mxu1 %vm178_vm0, %v841_v25  ;;  %v842_v25 = vld [vmem:[%s10690_s0 + $0xba] sm:$0xff] }
 0x1a8   :  { %5681 = vmatmul.msk.f32.gmra.mxu2 %vm178_vm0, %v1268_v40  ;;  %5713 = vmatmul.msk.f32.gmra.mxu3 %vm178_vm0, %v1268_v40  ;;  %v1269_v40 = vld [vmem:[%s10690_s0 + $0xbb] sm:$0xff] }
 0x1ab   :  { %v1410_v24 = vpop.f32.mrf.mxu2  ;;  %v1523_v0 = vpop.f32.mrf.mxu3 }
 0x1ac   :  { %v7104_v54 = vadd.f32 %v1410_v24, %v1190_v62  ;;  %v7106_v55 = vadd.f32 %v1523_v0, %v1191_v63  ;;  %v986_v10 = vpop.f32.mrf.mxu0  ;;  %v1099_v53 = vpop.f32.mrf.mxu1 }
 0x1ad   :  { %v1192_v6 = vadd.f32 %v986_v10, %v6664_v14  ;;  %v1193_v7 = vadd.f32 %v1099_v53, %v6666_v15 }
 0x1af   :  { %5618 = vmatmul.msk.f32.gmra.mxu0 %vm178_vm0, %v842_v25  ;;  %5650 = vmatmul.msk.f32.gmra.mxu1 %vm178_vm0, %v842_v25  ;;  %v843_v25 = vld [vmem:[%s10690_s0 + $0xca] sm:$0xff] }
 0x1b0   :  { %5682 = vmatmul.msk.f32.gmra.mxu2 %vm178_vm0, %v1269_v40  ;;  %5714 = vmatmul.msk.f32.gmra.mxu3 %vm178_vm0, %v1269_v40  ;;  %v1270_v40 = vld [vmem:[%s10690_s0 + $0xcb] sm:$0xff] }
 0x1b3   :  { %v1413_v41 = vpop.f32.mrf.mxu2  ;;  %v1526_v52 = vpop.f32.mrf.mxu3 }
 0x1b4   :  { %v7120_v62 = vadd.f32 %v1413_v41, %v1192_v6  ;;  %v7122_v63 = vadd.f32 %v1526_v52, %v1193_v7  ;;  %v989_v24 = vpop.f32.mrf.mxu0  ;;  %v1102_v0 = vpop.f32.mrf.mxu1 }
 0x1b5   :  { %v1194_v14 = vadd.f32 %v989_v24, %v6678_v22  ;;  %v1195_v15 = vadd.f32 %v1102_v0, %v6680_v23 }
 0x1b7   :  { %5619 = vmatmul.msk.f32.gmra.mxu0 %vm178_vm0, %v843_v25  ;;  %5651 = vmatmul.msk.f32.gmra.mxu1 %vm178_vm0, %v843_v25  ;;  %v844_v25 = vld [vmem:[%s10690_s0 + $0xd2] sm:$0xff] }
 0x1b8   :  { %5683 = vmatmul.msk.f32.gmra.mxu2 %vm178_vm0, %v1270_v40  ;;  %5715 = vmatmul.msk.f32.gmra.mxu3 %vm178_vm0, %v1270_v40  ;;  %v1271_v40 = vld [vmem:[%s10690_s0 + $0xd3] sm:$0xff] }
 0x1bb   :  { %v1416_v10 = vpop.f32.mrf.mxu2  ;;  %v1529_v53 = vpop.f32.mrf.mxu3 }
 0x1bc   :  { %v7136_v6 = vadd.f32 %v1416_v10, %v1194_v14  ;;  %v7138_v7 = vadd.f32 %v1529_v53, %v1195_v15  ;;  %v992_v41 = vpop.f32.mrf.mxu0  ;;  %v1105_v52 = vpop.f32.mrf.mxu1 }
 0x1bd   :  { %v1196_v22 = vadd.f32 %v992_v41, %v6692_v30  ;;  %v1197_v23 = vadd.f32 %v1105_v52, %v6694_v31 }
 0x1bf   :  { %5620 = vmatmul.msk.f32.gmra.mxu0 %vm178_vm0, %v844_v25  ;;  %5652 = vmatmul.msk.f32.gmra.mxu1 %vm178_vm0, %v844_v25  ;;  %v845_v25 = vld [vmem:[%s10690_s0 + $0xda] sm:$0xff] }
 0x1c0   :  { %5684 = vmatmul.msk.f32.gmra.mxu2 %vm178_vm0, %v1271_v40  ;;  %5716 = vmatmul.msk.f32.gmra.mxu3 %vm178_vm0, %v1271_v40  ;;  %v1272_v40 = vld [vmem:[%s10690_s0 + $0xdb] sm:$0xff] }
 0x1c3   :  { %v1419_v24 = vpop.f32.mrf.mxu2  ;;  %v1532_v0 = vpop.f32.mrf.mxu3 }
 0x1c4   :  { %v7152_v14 = vadd.f32 %v1419_v24, %v1196_v22  ;;  %v7154_v15 = vadd.f32 %v1532_v0, %v1197_v23  ;;  %v995_v10 = vpop.f32.mrf.mxu0  ;;  %v1108_v53 = vpop.f32.mrf.mxu1 }
 0x1c5   :  { %v1198_v30 = vadd.f32 %v995_v10, %v6706_v38  ;;  %v1199_v31 = vadd.f32 %v1108_v53, %v6708_v39 }
 0x1c7   :  { %5621 = vmatmul.msk.f32.gmra.mxu0 %vm178_vm0, %v845_v25  ;;  %5653 = vmatmul.msk.f32.gmra.mxu1 %vm178_vm0, %v845_v25  ;;  %v846_v25 = vld [vmem:[%s10690_s0 + $0xe2] sm:$0xff] }
 0x1c8   :  { %5685 = vmatmul.msk.f32.gmra.mxu2 %vm178_vm0, %v1272_v40  ;;  %5717 = vmatmul.msk.f32.gmra.mxu3 %vm178_vm0, %v1272_v40  ;;  %v1273_v40 = vld [vmem:[%s10690_s0 + $0xe3] sm:$0xff] }
 0x1cb   :  { %v1422_v41 = vpop.f32.mrf.mxu2  ;;  %v1535_v52 = vpop.f32.mrf.mxu3 }
 0x1cc   :  { %v7168_v22 = vadd.f32 %v1422_v41, %v1198_v30  ;;  %v7170_v23 = vadd.f32 %v1535_v52, %v1199_v31  ;;  %v998_v24 = vpop.f32.mrf.mxu0  ;;  %v1111_v0 = vpop.f32.mrf.mxu1 }
 0x1cd   :  { %v1200_v38 = vadd.f32 %v998_v24, %v6720_v46  ;;  %v1201_v39 = vadd.f32 %v1111_v0, %v6722_v47  ;;  %v1274_v46 = vld [vmem:[%s10690_s0 + $0xf3] sm:$0xff] }
 0x1ce   :  { %v1716_v47 = vld [vmem:[#allocation2 + $0x130] sm:$0xff]  ;;  %v1717_v24 = vld [vmem:[#allocation2 + $0x138] sm:$0xff] }
 0x1cf   :  { %5622 = vmatmul.msk.f32.gmra.mxu0 %vm178_vm0, %v846_v25  ;;  %5654 = vmatmul.msk.f32.gmra.mxu1 %vm178_vm0, %v846_v25  ;;  %v847_v25 = vld [vmem:[%s10690_s0 + $0xf2] sm:$0xff] }
 0x1d0   :  { %5686 = vmatmul.msk.f32.gmra.mxu2 %vm178_vm0, %v1273_v40  ;;  %5718 = vmatmul.msk.f32.gmra.mxu3 %vm178_vm0, %v1273_v40 }
 0x1d1   :  { %1826 = vmatpush.msra.mxu0 %v1716_v47  ;;  %1939 = vmatpush.msra.mxu1 %v1717_v24 }
 0x1d3   :  { %v1425_v10 = vpop.f32.mrf.mxu2  ;;  %v1538_v53 = vpop.f32.mrf.mxu3 }
 0x1d4   :  { %v7184_v30 = vadd.f32 %v1425_v10, %v1200_v38  ;;  %v7186_v31 = vadd.f32 %v1538_v53, %v1201_v39  ;;  %v7188_v41 = vpop.f32.mrf.mxu0  ;;  %v7190_v52 = vpop.f32.mrf.mxu1  ;;  %v848_v38 = vld [vmem:[%s10690_s0 + $0xfa] sm:$0xff] }
 0x1d5   :  { %v1275_v39 = vld [vmem:[%s10690_s0 + $0xfb] sm:$0xff] }
 0x1d7   :  { %5623 = vmatmul.msk.f32.gmra.mxu0 %vm178_vm0, %v847_v25  ;;  %5655 = vmatmul.msk.f32.gmra.mxu1 %vm178_vm0, %v847_v25  ;;  %v849_v25 = vld [vmem:[%s10690_s0 + $0x102] sm:$0xff] }
 0x1d8   :  { %5687 = vmatmul.msk.f32.gmra.mxu2 %vm178_vm0, %v1274_v46  ;;  %5719 = vmatmul.msk.f32.gmra.mxu3 %vm178_vm0, %v1274_v46  ;;  %v1276_v46 = vld [vmem:[%s10690_s0 + $0x103] sm:$0xff] }
 0x1db   :  { %v7334_v13 = vpop.f32.mrf.mxu2 }
 0x1dc   :  { %v7202_v0 = vpop.f32.mrf.mxu0  ;;  %v7204_v40 = vpop.f32.mrf.mxu1 }
 0x1df   :  { %5624 = vmatmul.msk.f32.gmra.mxu0 %vm178_vm0, %v848_v38  ;;  %5656 = vmatmul.msk.f32.gmra.mxu1 %vm178_vm0, %v848_v38  ;;  %v850_v38 = vld [vmem:[%s10690_s0 + $0x10a] sm:$0xff] }
 0x1e0   :  { %5688 = vmatmul.msk.f32.gmra.mxu2 %vm178_vm0, %v1275_v39  ;;  %5720 = vmatmul.msk.f32.gmra.mxu3 %vm178_vm0, %v1275_v39  ;;  %v1277_v39 = vld [vmem:[%s10690_s0 + $0x10b] sm:$0xff] }
 0x1e4   :  { %v7216_v10 = vpop.f32.mrf.mxu0  ;;  %v7218_v53 = vpop.f32.mrf.mxu1 }
 0x1e7   :  { %5625 = vmatmul.msk.f32.gmra.mxu0 %vm178_vm0, %v849_v25  ;;  %5657 = vmatmul.msk.f32.gmra.mxu1 %vm178_vm0, %v849_v25  ;;  %v1714_v25 = vld [vmem:[#allocation2 + $0x120] sm:$0xff] }
 0x1e8   :  { %5689 = vmatmul.msk.f32.gmra.mxu2 %vm178_vm0, %v1276_v46  ;;  %5721 = vmatmul.msk.f32.gmra.mxu3 %vm178_vm0, %v1276_v46  ;;  %v1715_v46 = vld [vmem:[#allocation2 + $0x128] sm:$0xff] }
 0x1e9   :  { %1827 = vmatpush.msra.mxu0 %v1714_v25  ;;  %1940 = vmatpush.msra.mxu1 %v1715_v46 }
 0x1eb   :  { %1828 = vmatpush.msra.mxu0 %v1712_v18  ;;  %1941 = vmatpush.msra.mxu1 %v1713_v51  ;;  %v852_v51 = vld [vmem:[%s10690_s0 + $0x122] sm:$0xff] }
 0x1ec   :  { %v7230_v47 = vpop.f32.mrf.mxu0  ;;  %v7232_v24 = vpop.f32.mrf.mxu1  ;;  %v1279_v18 = vld [vmem:[%s10690_s0 + $0x123] sm:$0xff] }
 0x1ed   :  { %1942 = vmatpush.msra.mxu1 %v1711_v50 }
 0x1ef   :  { %5626 = vmatmul.msk.f32.gmra.mxu0 %vm178_vm0, %v850_v38  ;;  %5658 = vmatmul.msk.f32.gmra.mxu1 %vm178_vm0, %v850_v38  ;;  %v1278_v38 = vld [vmem:[%s10690_s0 + $0x11b] sm:$0xff] }
 0x1f0   :  { %5690 = vmatmul.msk.f32.gmra.mxu2 %vm178_vm0, %v1277_v39  ;;  %5722 = vmatmul.msk.f32.gmra.mxu3 %vm178_vm0, %v1277_v39  ;;  %v1710_v39 = vld [vmem:[#allocation2 + $0x100] sm:$0xff] }
 0x1f1   :  { %1829 = vmatpush.msra.mxu0 %v1710_v39  ;;  %v1280_v39 = vld [vmem:[%s10690_s0 + $0x12b] sm:$0xff] }
 0x1f4   :  { %v7244_v43 = vpop.f32.mrf.mxu0  ;;  %v7246_v42 = vpop.f32.mrf.mxu1 }
 0x1f7   :  { %5627 = vmatmul.msk.f32.gmra.mxu0 %vm178_vm0, %v851_v19  ;;  %5659 = vmatmul.msk.f32.gmra.mxu1 %vm178_vm0, %v851_v19 }
 0x1f8   :  { %5691 = vmatmul.msk.f32.gmra.mxu2 %vm178_vm0, %v1278_v38  ;;  %5723 = vmatmul.msk.f32.gmra.mxu3 %vm178_vm0, %v1278_v38  ;;  %v853_v38 = vld [vmem:[%s10690_s0 + $0x12a] sm:$0xff] }
 0x1fc   :  { %v7258_v25 = vpop.f32.mrf.mxu0  ;;  %v7260_v46 = vpop.f32.mrf.mxu1 }
 0x1ff   :  { %5628 = vmatmul.msk.f32.gmra.mxu0 %vm178_vm0, %v852_v51  ;;  %5660 = vmatmul.msk.f32.gmra.mxu1 %vm178_vm0, %v852_v51 }
 0x200   :  { %5692 = vmatmul.msk.f32.gmra.mxu2 %vm178_vm0, %v1279_v18  ;;  %5724 = vmatmul.msk.f32.gmra.mxu3 %vm178_vm0, %v1279_v18 }
 0x204   :  { %v7272_v50 = vpop.f32.mrf.mxu0  ;;  %v7274_v19 = vpop.f32.mrf.mxu1 }
 0x205   :  { %10800 = vst [vmem:[#allocation44_spill] sm:$0xff] %v7272_v50 }
 0x206   :  { %10801 = vst [vmem:[#allocation45_spill] sm:$0xff] %v7274_v19 }
 0x207   :  { %5629 = vmatmul.msk.f32.gmra.mxu0 %vm178_vm0, %v853_v38  ;;  %5661 = vmatmul.msk.f32.gmra.mxu1 %vm178_vm0, %v853_v38 }
 0x208   :  { %5693 = vmatmul.msk.f32.gmra.mxu2 %vm178_vm0, %v1280_v39  ;;  %5725 = vmatmul.msk.f32.gmra.mxu3 %vm178_vm0, %v1280_v39 }
 0x20c   :  { %v7286_v51 = vpop.f32.mrf.mxu0  ;;  %v7288_v18 = vpop.f32.mrf.mxu1 }
 0x20d   :  { %10802 = vst [vmem:[#allocation46_spill] sm:$0xff] %v7286_v51 }
 0x20e   :  { %10803 = vst [vmem:[#allocation47_spill] sm:$0xff] %v7288_v18 }
 0x20f   :  { %5630 = vmatmul.msk.f32.gmra.mxu0 %vm178_vm0, %v854_v27  ;;  %5662 = vmatmul.msk.f32.gmra.mxu1 %vm178_vm0, %v854_v27 }
 0x210   :  { %5694 = vmatmul.msk.f32.gmra.mxu2 %vm178_vm0, %v1281_v26  ;;  %5726 = vmatmul.msk.f32.gmra.mxu3 %vm178_vm0, %v1281_v26  ;;  %v1678_v26 = vld [vmem:[%s10690_s0 + $0xc] sm:$0xff] }
 0x214   :  { %v7300_v38 = vpop.f32.mrf.mxu0  ;;  %v7302_v39 = vpop.f32.mrf.mxu1 }
 0x215   :  { %10804 = vst [vmem:[#allocation48_spill] sm:$0xff] %v7300_v38 }
 0x216   :  { %10805 = vst [vmem:[#allocation49_spill] sm:$0xff] %v7302_v39 }
 0x217   :  { %5727 = vmatmul.msk.f32.vlgmr.msra.gmra.mxu0 %vm178_vm0, %v1677_v3  ;;  %5759 = vmatmul.msk.f32.vlgmr.msra.gmra.mxu1 %vm178_vm0, %v1677_v3  ;;  %v1679_v3 = vld [vmem:[%s10690_s0 + $0x14] sm:$0xff] }
 0x21c   :  { %v7309_v2 = vpop.f32.mrf.mxu0  ;;  %v7311_v49 = vpop.f32.mrf.mxu1 }
 0x21d   :  { %10806 = vst [vmem:[#allocation50_spill] sm:$0xff] %v7309_v2 }
 0x21e   :  { %10807 = vst [vmem:[#allocation51_spill] sm:$0xff] %v7311_v49 }
 0x21f   :  { %5728 = vmatmul.msk.f32.gmra.mxu0 %vm178_vm0, %v1678_v26  ;;  %5760 = vmatmul.msk.f32.gmra.mxu1 %vm178_vm0, %v1678_v26  ;;  %v1680_v26 = vld [vmem:[%s10690_s0 + $0x1c] sm:$0xff] }
 0x224   :  { %v7318_v27 = vpop.f32.mrf.mxu0  ;;  %v7320_v48 = vpop.f32.mrf.mxu1 }
 0x225   :  { %10808 = vst [vmem:[#allocation52_spill] sm:$0xff] %v7318_v27  ;;  %v7336_v27 = vpop.f32.mrf.mxu3 }
 0x226   :  { %10809 = vst [vmem:[#allocation53_spill] sm:$0xff] %v7320_v48 }
 0x227   :  { %5729 = vmatmul.msk.f32.gmra.mxu0 %vm178_vm0, %v1679_v3  ;;  %5761 = vmatmul.msk.f32.gmra.mxu1 %vm178_vm0, %v1679_v3  ;;  %v1681_v3 = vld [vmem:[%s10690_s0 + $0x2c] sm:$0xff] }
 0x22c   :  { %v7327_v29 = vpop.f32.mrf.mxu0  ;;  %v7329_v28 = vpop.f32.mrf.mxu1 }
 0x22d   :  { %10810 = vst [vmem:[#allocation54_spill] sm:$0xff] %v7327_v29  ;;  %v7351_v29 = vpop.f32.mrf.mxu3 }
 0x22e   :  { %10811 = vst [vmem:[#allocation55_spill] sm:$0xff] %v7329_v28  ;;  %v7349_v28 = vpop.f32.mrf.mxu2 }
 0x22f   :  { %5730 = vmatmul.msk.f32.gmra.mxu0 %vm178_vm0, %v1680_v26  ;;  %5762 = vmatmul.msk.f32.gmra.mxu1 %vm178_vm0, %v1680_v26  ;;  %v1682_v26 = vld [vmem:[%s10690_s0 + $0x34] sm:$0xff] }
 0x234   :  { %v7340_v48 = vpop.f32.mrf.mxu0  ;;  %v7342_v12 = vpop.f32.mrf.mxu1 }
 0x235   :  { %10812 = vst [vmem:[#allocation56_spill] sm:$0xff] %v7340_v48  ;;  %v7364_v48 = vpop.f32.mrf.mxu3 }
 0x236   :  { %10813 = vst [vmem:[#allocation57_spill] sm:$0xff] %v7342_v12  ;;  %v7362_v12 = vpop.f32.mrf.mxu2 }
 0x237   :  { %5731 = vmatmul.msk.f32.gmra.mxu0 %vm178_vm0, %v1681_v3  ;;  %5763 = vmatmul.msk.f32.gmra.mxu1 %vm178_vm0, %v1681_v3 }
 0x23c   :  { %v7353_v49 = vpop.f32.mrf.mxu0  ;;  %v7355_v61 = vpop.f32.mrf.mxu1 }
 0x23d   :  { %10814 = vst [vmem:[#allocation58_spill] sm:$0xff] %v7353_v49 }
 0x23e   :  { %10815 = vst [vmem:[#allocation59_spill] sm:$0xff] %v7355_v61  ;;  %v1683_v61 = vld [vmem:[%s10690_s0 + $0x3c] sm:$0xff]  ;;  %v7382_v39 = vpop.f32.mrf.mxu2 }
 0x23f   :  { %5732 = vmatmul.msk.f32.gmra.mxu0 %vm178_vm0, %v1682_v26  ;;  %5764 = vmatmul.msk.f32.gmra.mxu1 %vm178_vm0, %v1682_v26  ;;  %v1684_v26 = vld [vmem:[%s10690_s0 + $0x44] sm:$0xff] }
 0x244   :  { %v7366_v3 = vpop.f32.mrf.mxu0  ;;  %v7368_v2 = vpop.f32.mrf.mxu1 }
 0x245   :  { %10816 = vst [vmem:[#allocation60_spill] sm:$0xff] %v7366_v3  ;;  %v7384_v3 = vpop.f32.mrf.mxu3 }
 0x246   :  { %10817 = vst [vmem:[#allocation61_spill] sm:$0xff] %v7368_v2 }
 0x247   :  { %5733 = vmatmul.msk.f32.gmra.mxu0 %vm178_vm0, %v1683_v61  ;;  %5765 = vmatmul.msk.f32.gmra.mxu1 %vm178_vm0, %v1683_v61  ;;  %v1685_v61 = vld [vmem:[%s10690_s0 + $0x54] sm:$0xff] }
 0x24c   :  { %v7375_v49 = vpop.f32.mrf.mxu0  ;;  %v7377_v60 = vpop.f32.mrf.mxu1 }
 0x24d   :  { %10818 = vst [vmem:[#allocation62_spill] sm:$0xff] %v7375_v49  ;;  %v7397_v49 = vpop.f32.mrf.mxu3 }
 0x24e   :  { %10819 = vst [vmem:[#allocation63_spill] sm:$0xff] %v7377_v60  ;;  %v7395_v60 = vpop.f32.mrf.mxu2 }
 0x24f   :  { %5734 = vmatmul.msk.f32.gmra.mxu0 %vm178_vm0, %v1684_v26  ;;  %5766 = vmatmul.msk.f32.gmra.mxu1 %vm178_vm0, %v1684_v26  ;;  %v1686_v26 = vld [vmem:[%s10690_s0 + $0x5c] sm:$0xff] }
 0x254   :  { %v7388_v2 = vpop.f32.mrf.mxu0  ;;  %v7390_v45 = vpop.f32.mrf.mxu1 }
 0x255   :  { %10820 = vst [vmem:[#allocation64_spill] sm:$0xff] %v7388_v2  ;;  %v2252_v2 = vld [vmem:[%s10694_s4 + $0x70] sm:$0xff] }
 0x256   :  { %10821 = vst [vmem:[#allocation65_spill] sm:$0xff] %v7390_v45  ;;  %v2253_v45 = vld [vmem:[%s10694_s4 + $0x78] sm:$0xff] }
 0x257   :  { %5735 = vmatmul.msk.f32.gmra.mxu0 %vm178_vm0, %v1685_v61  ;;  %5767 = vmatmul.msk.f32.gmra.mxu1 %vm178_vm0, %v1685_v61  ;;  %v2251_v61 = vld [vmem:[%s10694_s4 + $0x68] sm:$0xff] }
 0x258   :  { %2356 = vmatpush.msra.mxu2 %v2253_v45  ;;  %v2250_v45 = vld [vmem:[%s10694_s4 + $0x60] sm:$0xff] }
 0x25a   :  { %2357 = vmatpush.msra.mxu2 %v2252_v2  ;;  %v2249_v2 = vld [vmem:[%s10694_s4 + $0x58] sm:$0xff] }
 0x25c   :  { %v7401_v38 = vpop.f32.mrf.mxu0  ;;  %v7403_v44 = vpop.f32.mrf.mxu1  ;;  %2358 = vmatpush.msra.mxu2 %v2251_v61  ;;  %v2248_v61 = vld [vmem:[%s10694_s4 + $0x50] sm:$0xff] }
 0x25d   :  { %10822 = vst [vmem:[#allocation66_spill] sm:$0xff] %v7401_v38  ;;  %v7421_v38 = vpop.f32.mrf.mxu3 }
 0x25e   :  { %10823 = vst [vmem:[#allocation67_spill] sm:$0xff] %v7403_v44  ;;  %v7419_v44 = vpop.f32.mrf.mxu2  ;;  %2359 = vmatpush.msra.mxu2 %v2250_v45  ;;  %v2246_v45 = vld [vmem:[%s10694_s4 + $0x40] sm:$0xff] }
 0x25f   :  { %5736 = vmatmul.msk.f32.gmra.mxu0 %vm178_vm0, %v1686_v26  ;;  %5768 = vmatmul.msk.f32.gmra.mxu1 %vm178_vm0, %v1686_v26  ;;  %v1687_v26 = vld [vmem:[%s10690_s0 + $0x64] sm:$0xff] }
 0x260   :  { %2360 = vmatpush.msra.mxu2 %v2249_v2 }
 0x262   :  { %2361 = vmatpush.msra.mxu2 %v2248_v61  ;;  %v2244_v61 = vld [vmem:[%s10694_s4 + $0x30] sm:$0xff] }
 0x264   :  { %v7426_v18 = vpop.f32.mrf.mxu0  ;;  %v7428_v33 = vpop.f32.mrf.mxu1 }
 0x265   :  { %10824 = vst [vmem:[#allocation68_spill] sm:$0xff] %v7426_v18  ;;  %v7449_v51 = vpop.f32.mrf.mxu3 }
 0x266   :  { %10825 = vst [vmem:[#allocation69_spill] sm:$0xff] %v7428_v33  ;;  %v2247_v33 = vld [vmem:[%s10694_s4 + $0x48] sm:$0xff]  ;;  %v7447_v18 = vpop.f32.mrf.mxu2 }
 0x267   :  { %5737 = vmatmul.msk.f32.gmra.mxu0 %vm178_vm0, %v1687_v26  ;;  %5769 = vmatmul.msk.f32.gmra.mxu1 %vm178_vm0, %v1687_v26  ;;  %10826 = vst [vmem:[#allocation70_spill] sm:$0xff] %v7447_v18  ;;  %v1688_v26 = vld [vmem:[%s10690_s0 + $0x6c] sm:$0xff] }
 0x268   :  { %2362 = vmatpush.msra.mxu2 %v2247_v33  ;;  %10827 = vst [vmem:[#allocation71_spill] sm:$0xff] %v7449_v51  ;;  %v2245_v33 = vld [vmem:[%s10694_s4 + $0x38] sm:$0xff] }
 0x26a   :  { %2363 = vmatpush.msra.mxu2 %v2246_v45  ;;  %v2242_v45 = vld [vmem:[%s10694_s4 + $0x20] sm:$0xff] }
 0x26c   :  { %v7451_v32 = vpop.f32.mrf.mxu0  ;;  %v7453_v2 = vpop.f32.mrf.mxu1  ;;  %2364 = vmatpush.msra.mxu2 %v2245_v33 }
 0x26d   :  { %10828 = vst [vmem:[#allocation72_spill] sm:$0xff] %v7451_v32  ;;  %v2258_v32 = vld [vmem:[%s10694_s4 + $0xa0] sm:$0xff] }
 0x26e   :  { %10829 = vst [vmem:[#allocation73_spill] sm:$0xff] %v7453_v2  ;;  %v2243_v2 = vld [vmem:[%s10694_s4 + $0x28] sm:$0xff]  ;;  %2365 = vmatpush.msra.mxu2 %v2244_v61  ;;  %2480 = vmatpush.msra.mxu3 %v2258_v32  ;;  %v2257_v61 = vld [vmem:[%s10694_s4 + $0x98] sm:$0xff]  ;;  %v7488_v18 = vpop.f32.mrf.mxu2  ;;  %v7490_v32 = vpop.f32.mrf.mxu3 }
 0x26f   :  { %5738 = vmatmul.msk.f32.gmra.mxu0 %vm178_vm0, %v1688_v26  ;;  %5770 = vmatmul.msk.f32.gmra.mxu1 %vm178_vm0, %v1688_v26  ;;  %v1689_v26 = vld [vmem:[%s10690_s0 + $0x7c] sm:$0xff]  ;;  %10832 = vst [vmem:[#allocation76_spill] sm:$0xff] %v7488_v18 }
 0x270   :  { %2366 = vmatpush.msra.mxu2 %v2243_v2  ;;  %v2241_v2 = vld [vmem:[%s10694_s4 + $0x18] sm:$0xff]  ;;  %10833 = vst [vmem:[#allocation77_spill] sm:$0xff] %v7490_v32  ;;  %2481 = vmatpush.msra.mxu3 %v2257_v61  ;;  %v2238_v61 = vld [vmem:[%s10694_s4] sm:$0xff] }
 0x271   :  { %v2254_v32 = vld [vmem:[%s10694_s4 + $0x80] sm:$0xff] }
 0x272   :  { %2367 = vmatpush.msra.mxu2 %v2242_v45  ;;  %v2256_v45 = vld [vmem:[%s10694_s4 + $0x90] sm:$0xff] }
 0x273   :  { %2482 = vmatpush.msra.mxu3 %v2256_v45  ;;  %v1690_v45 = vld [vmem:[%s10690_s0 + $0x84] sm:$0xff] }
 0x274   :  { %v7475_v33 = vpop.f32.mrf.mxu0  ;;  %v7477_v51 = vpop.f32.mrf.mxu1  ;;  %2368 = vmatpush.msra.mxu2 %v2241_v2  ;;  %v2255_v2 = vld [vmem:[%s10694_s4 + $0x88] sm:$0xff] }
 0x275   :  { %10830 = vst [vmem:[#allocation74_spill] sm:$0xff] %v7475_v33  ;;  %v2239_v33 = vld [vmem:[%s10694_s4 + $0x8] sm:$0xff]  ;;  %2483 = vmatpush.msra.mxu3 %v2255_v2 }
 0x276   :  { %10831 = vst [vmem:[#allocation75_spill] sm:$0xff] %v7477_v51  ;;  %v2240_v51 = vld [vmem:[%s10694_s4 + $0x10] sm:$0xff]  ;;  %v7519_v18 = vpop.f32.mrf.mxu2  ;;  %v7521_v19 = vpop.f32.mrf.mxu3 }
 0x277   :  { %5739 = vmatmul.msk.f32.gmra.mxu0 %vm178_vm0, %v1689_v26  ;;  %5771 = vmatmul.msk.f32.gmra.mxu1 %vm178_vm0, %v1689_v26  ;;  %10836 = vst [vmem:[#allocation80_spill] sm:$0xff] %v7519_v18  ;;  %v1693_v18 = vld [vmem:[%s10690_s0 + $0xa4] sm:$0xff] }
 0x278   :  { %2369 = vmatpush.msra.mxu2 %v2240_v51  ;;  %2484 = vmatpush.msra.mxu3 %v2254_v32  ;;  %10837 = vst [vmem:[#allocation81_spill] sm:$0xff] %v7521_v19 }
 0x27a   :  { %2370 = vmatpush.msra.mxu2 %v2239_v33 }
 0x27c   :  { %v7512_v51 = vpop.f32.mrf.mxu0  ;;  %v7514_v26 = vpop.f32.mrf.mxu1  ;;  %2371 = vmatpush.msra.mxu2 %v2238_v61 }
 0x27d   :  { %10834 = vst [vmem:[#allocation78_spill] sm:$0xff] %v7512_v51 }
 0x27e   :  { %10835 = vst [vmem:[#allocation79_spill] sm:$0xff] %v7514_v26  ;;  %v1691_v26 = vld [vmem:[%s10690_s0 + $0x8c] sm:$0xff]  ;;  %v7534_v32 = vpop.f32.mrf.mxu2  ;;  %v7536_v61 = vpop.f32.mrf.mxu3 }
 0x27f   :  { %5740 = vmatmul.msk.f32.gmra.mxu0 %vm178_vm0, %v1690_v45  ;;  %5772 = vmatmul.msk.f32.gmra.mxu1 %vm178_vm0, %v1690_v45  ;;  %10840 = vst [vmem:[#allocation84_spill] sm:$0xff] %v7534_v32  ;;  %v1692_v45 = vld [vmem:[%s10690_s0 + $0x94] sm:$0xff] }
 0x280   :  { %10841 = vst [vmem:[#allocation85_spill] sm:$0xff] %v7536_v61 }
 0x284   :  { %v7525_v33 = vpop.f32.mrf.mxu0  ;;  %v7527_v2 = vpop.f32.mrf.mxu1 }
 0x285   :  { %10838 = vst [vmem:[#allocation82_spill] sm:$0xff] %v7525_v33 }
 0x286   :  { %10839 = vst [vmem:[#allocation83_spill] sm:$0xff] %v7527_v2  ;;  %v7550_v2 = vpop.f32.mrf.mxu2  ;;  %v7552_v33 = vpop.f32.mrf.mxu3 }
 0x287   :  { %5741 = vmatmul.msk.f32.gmra.mxu0 %vm178_vm0, %v1691_v26  ;;  %5773 = vmatmul.msk.f32.gmra.mxu1 %vm178_vm0, %v1691_v26  ;;  %v2104_v26 = vld [vmem:[%s10692_s2] sm:$0x3]  ;;  %10844 = vst [vmem:[#allocation88_spill] sm:$0xff] %v7550_v2 }
 0x288   :  { %10845 = vst [vmem:[#allocation89_spill] sm:$0xff] %v7552_v33  ;;  %v7554_v61 = vperm.slane %v2104_v26, 0 }
 0x28c   :  { %v7538_v51 = vpop.f32.mrf.mxu0  ;;  %v7540_v19 = vpop.f32.mrf.mxu1 }
 0x28d   :  { %10842 = vst [vmem:[#allocation86_spill] sm:$0xff] %v7538_v51  ;;  %v7556_v51 = vperm.slane %v2104_v26, 1 }
 0x28e   :  { %10843 = vst [vmem:[#allocation87_spill] sm:$0xff] %v7540_v19 }
 0x28f   :  { %5742 = vmatmul.msk.f32.gmra.mxu0 %vm178_vm0, %v1692_v45  ;;  %5774 = vmatmul.msk.f32.gmra.mxu1 %vm178_vm0, %v1692_v45 }
 0x294   :  { %v1831_v19 = vpop.f32.mrf.mxu0  ;;  %v1944_v32 = vpop.f32.mrf.mxu1 }
 0x295   :  { %v2040_v45 = vadd.f32 %v1831_v19, %v7072_v37  ;;  %v2041_v21 = vadd.f32 %v1944_v32, %v7074_v1  ;;  %v7581_v19 = vpop.f32.mrf.mxu2 }
 0x296   :  { %10847 = vst [vmem:[#allocation91_spill] sm:$0xff] %v7581_v19 }
 0x297   :  { %v7564_v50 = vadd.f32 %v7554_v61, %v2040_v45  ;;  %v7567_v2 = vadd.f32 %v7556_v51, %v2041_v21  ;;  %5743 = vmatmul.msk.f32.gmra.mxu0 %vm178_vm0, %v1693_v18  ;;  %5775 = vmatmul.msk.f32.gmra.mxu1 %vm178_vm0, %v1693_v18  ;;  %v1694_v21 = vld [vmem:[%s10690_s0 + $0xac] sm:$0xff]  ;;  %v7583_v18 = vpop.f32.mrf.mxu3 }
 0x298   :  { %10848 = vst [vmem:[#allocation92_spill] sm:$0xff] %v7583_v18 }
 0x299   :  { %10846 = vst [vmem:[#allocation90_spill] sm:$0xff] %v7567_v2  ;;  %v10706_v26 = vmax.f32 %v7564_v50, 0.0  ;;  %v10708_v33 = vmax.f32 %v7567_v2, 0.0 }
 0x29b   :  { %2372 = vmatmul.f32.vlgmr.msra.gmra.mxu2 %v10706_v26  ;;  %5791 = vmatmul.msk.f32.vlgmr.msra.gmra.mxu3 %vm2259_vm1, %v10708_v33 }
 0x29c   :  { %v1834_v1 = vpop.f32.mrf.mxu0  ;;  %v1947_v37 = vpop.f32.mrf.mxu1 }
 0x29d   :  { %v2042_v32 = vadd.f32 %v1834_v1, %v7088_v34  ;;  %v2043_v45 = vadd.f32 %v1947_v37, %v7090_v11  ;;  %v1695_v1 = vld [vmem:[%s10690_s0 + $0xb4] sm:$0xff] }
 0x29f   :  { %v7588_v26 = vadd.f32 %v7554_v61, %v2042_v32  ;;  %v7591_v2 = vadd.f32 %v7556_v51, %v2043_v45  ;;  %5744 = vmatmul.msk.f32.gmra.mxu0 %vm178_vm0, %v1694_v21  ;;  %5776 = vmatmul.msk.f32.gmra.mxu1 %vm178_vm0, %v1694_v21  ;;  %v7607_v32 = vpop.f32.mrf.mxu2  ;;  %v7609_v45 = vpop.f32.mrf.mxu3 }
 0x2a0   :  { %10849 = vst [vmem:[#allocation93_spill] sm:$0xff] %v7607_v32 }
 0x2a1   :  { %v10710_v33 = vmax.f32 %v7591_v2, 0.0  ;;  %v10709_v19 = vmax.f32 %v7588_v26, 0.0  ;;  %10850 = vst [vmem:[#allocation94_spill] sm:$0xff] %v7609_v45 }
 0x2a3   :  { %2375 = vmatmul.f32.gmra.mxu2 %v10709_v19  ;;  %5792 = vmatmul.msk.f32.gmra.mxu3 %vm2259_vm1, %v10710_v33 }
 0x2a4   :  { %v1837_v34 = vpop.f32.mrf.mxu0  ;;  %v1950_v11 = vpop.f32.mrf.mxu1 }
 0x2a5   :  { %v2044_v37 = vadd.f32 %v1837_v34, %v7104_v54  ;;  %v2045_v21 = vadd.f32 %v1950_v11, %v7106_v55  ;;  %v1696_v11 = vld [vmem:[%s10690_s0 + $0xbc] sm:$0xff] }
 0x2a7   :  { %v7612_v19 = vadd.f32 %v7554_v61, %v2044_v37  ;;  %v7615_v18 = vadd.f32 %v7556_v51, %v2045_v21  ;;  %5745 = vmatmul.msk.f32.gmra.mxu0 %vm178_vm0, %v1695_v1  ;;  %5777 = vmatmul.msk.f32.gmra.mxu1 %vm178_vm0, %v1695_v1 }
 0x2a9   :  { %v10711_v33 = vmax.f32 %v7615_v18, 0.0  ;;  %v10712_v54 = vmax.f32 %v7612_v19, 0.0 }
 0x2ab   :  { %2378 = vmatmul.f32.gmra.mxu2 %v10712_v54  ;;  %5793 = vmatmul.msk.f32.gmra.mxu3 %vm2259_vm1, %v10711_v33  ;;  %v7639_v33 = vpop.f32.mrf.mxu2  ;;  %v7641_v54 = vpop.f32.mrf.mxu3 }
 0x2ac   :  { %v1840_v55 = vpop.f32.mrf.mxu0  ;;  %v1953_v34 = vpop.f32.mrf.mxu1  ;;  %10852 = vst [vmem:[#allocation96_spill] sm:$0xff] %v7639_v33 }
 0x2ad   :  { %v2046_v37 = vadd.f32 %v1840_v55, %v7120_v62  ;;  %v2047_v1 = vadd.f32 %v1953_v34, %v7122_v63  ;;  %10853 = vst [vmem:[#allocation97_spill] sm:$0xff] %v7641_v54  ;;  %v1697_v34 = vld [vmem:[%s10690_s0 + $0xcc] sm:$0xff] }
 0x2af   :  { %v7632_v21 = vadd.f32 %v7554_v61, %v2046_v37  ;;  %v7635_v45 = vadd.f32 %v7556_v51, %v2047_v1  ;;  %5746 = vmatmul.msk.f32.gmra.mxu0 %vm178_vm0, %v1696_v11  ;;  %5778 = vmatmul.msk.f32.gmra.mxu1 %vm178_vm0, %v1696_v11 }
 0x2b1   :  { %10851 = vst [vmem:[#allocation95_spill] sm:$0xff] %v7635_v45  ;;  %v10713_v32 = vmax.f32 %v7635_v45, 0.0  ;;  %v10714_v62 = vmax.f32 %v7632_v21, 0.0 }
 0x2b3   :  { %2381 = vmatmul.f32.gmra.mxu2 %v10714_v62  ;;  %5794 = vmatmul.msk.f32.gmra.mxu3 %vm2259_vm1, %v10713_v32  ;;  %v7665_v33 = vpop.f32.mrf.mxu2  ;;  %v7667_v45 = vpop.f32.mrf.mxu3 }
 0x2b4   :  { %v1843_v63 = vpop.f32.mrf.mxu0  ;;  %v1956_v55 = vpop.f32.mrf.mxu1  ;;  %10854 = vst [vmem:[#allocation98_spill] sm:$0xff] %v7667_v45 }
 0x2b5   :  { %v2048_v11 = vadd.f32 %v1843_v63, %v7136_v6  ;;  %v2049_v37 = vadd.f32 %v1956_v55, %v7138_v7  ;;  %v1698_v63 = vld [vmem:[%s10690_s0 + $0xd4] sm:$0xff] }
 0x2b7   :  { %v7656_v1 = vadd.f32 %v7554_v61, %v2048_v11  ;;  %v7659_v54 = vadd.f32 %v7556_v51, %v2049_v37  ;;  %5747 = vmatmul.msk.f32.gmra.mxu0 %vm178_vm0, %v1697_v34  ;;  %5779 = vmatmul.msk.f32.gmra.mxu1 %vm178_vm0, %v1697_v34 }
 0x2b9   :  { %v10716_v32 = vmax.f32 %v7659_v54, 0.0  ;;  %v10717_v62 = vmax.f32 %v7656_v1, 0.0 }
 0x2bb   :  { %2384 = vmatmul.f32.gmra.mxu2 %v10717_v62  ;;  %5795 = vmatmul.msk.f32.gmra.mxu3 %vm2259_vm1, %v10716_v32 }
 0x2bc   :  { %v1846_v6 = vpop.f32.mrf.mxu0  ;;  %v1959_v7 = vpop.f32.mrf.mxu1 }
 0x2bd   :  { %v2050_v55 = vadd.f32 %v1846_v6, %v7152_v14  ;;  %v2051_v34 = vadd.f32 %v1959_v7, %v7154_v15  ;;  %v1699_v6 = vld [vmem:[%s10690_s0 + $0xdc] sm:$0xff]  ;;  %v7697_v7 = vpop.f32.mrf.mxu2 }
 0x2be   :  { %10855 = vst [vmem:[#allocation99_spill] sm:$0xff] %v7697_v7 }
 0x2bf   :  { %v7680_v11 = vadd.f32 %v7554_v61, %v2050_v55  ;;  %v7683_v37 = vadd.f32 %v7556_v51, %v2051_v34  ;;  %5748 = vmatmul.msk.f32.gmra.mxu0 %vm178_vm0, %v1698_v63  ;;  %5780 = vmatmul.msk.f32.gmra.mxu1 %vm178_vm0, %v1698_v63  ;;  %v7699_v63 = vpop.f32.mrf.mxu3 }
 0x2c0   :  { %10856 = vst [vmem:[#allocation100_spill] sm:$0xff] %v7699_v63 }
 0x2c1   :  { %v10719_v32 = vmax.f32 %v7683_v37, 0.0  ;;  %v10718_v62 = vmax.f32 %v7680_v11, 0.0 }
 0x2c3   :  { %2387 = vmatmul.f32.gmra.mxu2 %v10718_v62  ;;  %5796 = vmatmul.msk.f32.gmra.mxu3 %vm2259_vm1, %v10719_v32 }
 0x2c4   :  { %v1849_v14 = vpop.f32.mrf.mxu0  ;;  %v1962_v15 = vpop.f32.mrf.mxu1 }
 0x2c5   :  { %v2052_v55 = vadd.f32 %v1849_v14, %v7168_v22  ;;  %v2053_v34 = vadd.f32 %v1962_v15, %v7170_v23  ;;  %v1700_v14 = vld [vmem:[%s10690_s0 + $0xe4] sm:$0xff] }
 0x2c7   :  { %v7704_v62 = vadd.f32 %v7554_v61, %v2052_v55  ;;  %v7707_v45 = vadd.f32 %v7556_v51, %v2053_v34  ;;  %5749 = vmatmul.msk.f32.gmra.mxu0 %vm178_vm0, %v1699_v6  ;;  %5781 = vmatmul.msk.f32.gmra.mxu1 %vm178_vm0, %v1699_v6  ;;  %v7723_v55 = vpop.f32.mrf.mxu2  ;;  %v7725_v34 = vpop.f32.mrf.mxu3 }
 0x2c9   :  { %v10721_v32 = vmax.f32 %v7707_v45, 0.0  ;;  %v10720_v7 = vmax.f32 %v7704_v62, 0.0 }
 0x2cb   :  { %2390 = vmatmul.f32.gmra.mxu2 %v10720_v7  ;;  %5797 = vmatmul.msk.f32.gmra.mxu3 %vm2259_vm1, %v10721_v32  ;;  %v1202_v32 = vadd.f32 %v7188_v41, %v6734_v58 }
 0x2cc   :  { %v1852_v22 = vpop.f32.mrf.mxu0  ;;  %v1965_v23 = vpop.f32.mrf.mxu1 }
 0x2cd   :  { %v2054_v15 = vadd.f32 %v1852_v22, %v7184_v30  ;;  %v2055_v6 = vadd.f32 %v1965_v23, %v7186_v31  ;;  %v1203_v30 = vadd.f32 %v7190_v52, %v6736_v59  ;;  %v1629_v23 = vadd.f32 %v7334_v13, %v1202_v32  ;;  %v1701_v59 = vld [vmem:[%s10690_s0 + $0xf4] sm:$0xff] }
 0x2ce   :  { %v1204_v32 = vadd.f32 %v7202_v0, %v6748_v4  ;;  %v5837_v4 = vld [vmem:[%s10694_s4 + $0x118] sm:$0xff] }
 0x2cf   :  { %v7728_v7 = vadd.f32 %v7554_v61, %v2054_v15  ;;  %v7731_v63 = vadd.f32 %v7556_v51, %v2055_v6  ;;  %5750 = vmatmul.msk.f32.gmra.mxu0 %vm178_vm0, %v1700_v14  ;;  %5782 = vmatmul.msk.f32.gmra.mxu1 %vm178_vm0, %v1700_v14  ;;  %v1630_v15 = vadd.f32 %v7336_v27, %v1203_v30  ;;  %v5838_v27 = vld [vmem:[%s10694_s4 + $0x120] sm:$0xff] }
 0x2d0   :  { %v1205_v30 = vadd.f32 %v7204_v40, %v6750_v5  ;;  %2604 = vmatpush.msrb.mxu0 %v5838_v27  ;;  %v1631_v5 = vadd.f32 %v7349_v28, %v1204_v32  ;;  %v5836_v28 = vld [vmem:[%s10694_s4 + $0x110] sm:$0xff]  ;;  %v5835_v32 = vld [vmem:[%s10694_s4 + $0x108] sm:$0xff] }
 0x2d1   :  { %v10738_v31 = vmax.f32 %v7731_v63, 0.0  ;;  %v10739_v22 = vmax.f32 %v7728_v7, 0.0 }
 0x2d2   :  { %v1632_v0 = vadd.f32 %v7351_v29, %v1205_v30  ;;  %2605 = vmatpush.msrb.mxu0 %v5837_v4  ;;  %v5834_v4 = vld [vmem:[%s10694_s4 + $0x100] sm:$0xff] }
 0x2d3   :  { %2393 = vmatmul.f32.gmra.mxu2 %v10739_v22  ;;  %5798 = vmatmul.msk.f32.gmra.mxu3 %vm2259_vm1, %v10738_v31  ;;  %v10883_v22 = vld [vmem:[#allocation84_spill] sm:$0xff] }
 0x2d4   :  { %v1855_v14 = vpop.f32.mrf.mxu0  ;;  %v1968_v58 = vpop.f32.mrf.mxu1  ;;  %2606 = vmatpush.msrb.mxu0 %v5836_v28  ;;  %v5833_v28 = vld [vmem:[%s10694_s4 + $0xf8] sm:$0xff] }
 0x2d5   :  { %v2056_v41 = vadd.f32 %v1855_v14, %v1629_v23  ;;  %v2057_v52 = vadd.f32 %v1968_v58, %v1630_v15  ;;  %v7766_v23 = vpop.f32.mrf.mxu2  ;;  %v7768_v15 = vpop.f32.mrf.mxu3 }
 0x2d6   :  { %2607 = vmatpush.msrb.mxu0 %v5835_v32 }
 0x2d7   :  { %v7752_v6 = vadd.f32 %v7554_v61, %v2056_v41  ;;  %v7755_v13 = vadd.f32 %v7556_v51, %v2057_v52  ;;  %5751 = vmatmul.msk.f32.gmra.mxu0 %vm178_vm0, %v1701_v59  ;;  %5783 = vmatmul.msk.f32.gmra.mxu1 %vm178_vm0, %v1701_v59  ;;  %v5843_v59 = vld [vmem:[%s10694_s4 + $0x148] sm:$0xff]  ;;  %v1702_v52 = vld [vmem:[%s10690_s0 + $0xfc] sm:$0xff] }
 0x2d8   :  { %2728 = vmatpush.msrb.mxu1 %v5843_v59  ;;  %2608 = vmatpush.msrb.mxu0 %v5834_v4  ;;  %v5831_v4 = vld [vmem:[%s10694_s4 + $0xe8] sm:$0xff] }
 0x2d9   :  { %v10734_v14 = vmax.f32 %v7755_v13, 0.0  ;;  %v10735_v58 = vmax.f32 %v7752_v6, 0.0 }
 0x2da   :  { %2609 = vmatpush.msrb.mxu0 %v5833_v28  ;;  %v5830_v28 = vld [vmem:[%s10694_s4 + $0xe0] sm:$0xff] }
 0x2db   :  { %2396 = vmatmul.f32.gmra.mxu2 %v10735_v58  ;;  %5799 = vmatmul.msk.f32.gmra.mxu3 %vm2259_vm1, %v10734_v14 }
 0x2dc   :  { %v1858_v40 = vpop.f32.mrf.mxu0  ;;  %v1971_v41 = vpop.f32.mrf.mxu1 }
 0x2dd   :  { %v2058_v27 = vadd.f32 %v1858_v40, %v1631_v5  ;;  %v2059_v29 = vadd.f32 %v1971_v41, %v1632_v0  ;;  %v1206_v5 = vadd.f32 %v7216_v10, %v6762_v16  ;;  %v1207_v0 = vadd.f32 %v7218_v53, %v6764_v17  ;;  %v7818_v32 = vpop.f32.mrf.mxu3  ;;  %v1703_v10 = vld [vmem:[%s10690_s0 + $0x104] sm:$0xff] }
 0x2df   :  { %v7795_v30 = vadd.f32 %v7554_v61, %v2058_v27  ;;  %v7798_v59 = vadd.f32 %v7556_v51, %v2059_v29  ;;  %5752 = vmatmul.msk.f32.gmra.mxu0 %vm178_vm0, %v1702_v52  ;;  %5784 = vmatmul.msk.f32.gmra.mxu1 %vm178_vm0, %v1702_v52  ;;  %v1633_v52 = vadd.f32 %v7362_v12, %v1206_v5  ;;  %v7816_v29 = vpop.f32.mrf.mxu2  ;;  %v5832_v12 = vld [vmem:[%s10694_s4 + $0xf0] sm:$0xff] }
 0x2e0   :  { %v1634_v27 = vadd.f32 %v7364_v48, %v1207_v0  ;;  %2610 = vmatpush.msrb.mxu0 %v5832_v12  ;;  %v5829_v12 = vld [vmem:[%s10694_s4 + $0xd8] sm:$0xff] }
 0x2e1   :  { %v10732_v40 = vmax.f32 %v7798_v59, 0.0  ;;  %v10733_v41 = vmax.f32 %v7795_v30, 0.0 }
 0x2e2   :  { %2611 = vmatpush.msrb.mxu0 %v5831_v4 }
 0x2e3   :  { %2399 = vmatmul.f32.gmra.mxu2 %v10733_v41  ;;  %5800 = vmatmul.msk.f32.gmra.mxu3 %vm2259_vm1, %v10732_v40  ;;  %v10873_v40 = vld [vmem:[#allocation49_spill] sm:$0xff] }
 0x2e4   :  { %v1861_v16 = vpop.f32.mrf.mxu0  ;;  %v1974_v17 = vpop.f32.mrf.mxu1  ;;  %2612 = vmatpush.msrb.mxu0 %v5830_v28  ;;  %v5827_v28 = vld [vmem:[%s10694_s4 + $0xc8] sm:$0xff] }
 0x2e5   :  { %v2060_v48 = vadd.f32 %v1861_v16, %v1633_v52  ;;  %v2061_v53 = vadd.f32 %v1974_v17, %v1634_v27  ;;  %v1208_v52 = vadd.f32 %v7230_v47, %v6779_v35  ;;  %v1209_v27 = vadd.f32 %v7232_v24, %v6781_v36  ;;  %v1704_v47 = vld [vmem:[%s10690_s0 + $0x10c] sm:$0xff] }
 0x2e6   :  { %2613 = vmatpush.msrb.mxu0 %v5829_v12  ;;  %v5828_v24 = vld [vmem:[%s10694_s4 + $0xd0] sm:$0xff]  ;;  %v5826_v12 = vld [vmem:[%s10694_s4 + $0xc0] sm:$0xff] }
 0x2e7   :  { %v7835_v5 = vadd.f32 %v7554_v61, %v2060_v48  ;;  %v7838_v0 = vadd.f32 %v7556_v51, %v2061_v53  ;;  %5753 = vmatmul.msk.f32.gmra.mxu0 %vm178_vm0, %v1703_v10  ;;  %5785 = vmatmul.msk.f32.gmra.mxu1 %vm178_vm0, %v1703_v10  ;;  %v1635_v10 = vadd.f32 %v7382_v39, %v1208_v52  ;;  %v7867_v39 = vpop.f32.mrf.mxu2 }
 0x2e8   :  { %v1636_v48 = vadd.f32 %v7384_v3, %v1209_v27  ;;  %v7869_v3 = vpop.f32.mrf.mxu3  ;;  %2614 = vmatpush.msrb.mxu0 %v5828_v24 }
 0x2e9   :  { %v10728_v16 = vmax.f32 %v7838_v0, 0.0  ;;  %v10729_v17 = vmax.f32 %v7835_v5, 0.0 }
 0x2ea   :  { %2615 = vmatpush.msrb.mxu0 %v5827_v28 }
 0x2eb   :  { %2402 = vmatmul.f32.gmra.mxu2 %v10729_v17  ;;  %5801 = vmatmul.msk.f32.gmra.mxu3 %vm2259_vm1, %v10728_v16 }
 0x2ec   :  { %v1864_v35 = vpop.f32.mrf.mxu0  ;;  %v1977_v36 = vpop.f32.mrf.mxu1  ;;  %2616 = vmatpush.msrb.mxu0 %v5826_v12 }
 0x2ed   :  { %v2062_v53 = vadd.f32 %v1864_v35, %v1635_v10  ;;  %v2063_v4 = vadd.f32 %v1977_v36, %v1636_v48  ;;  %v5842_v10 = vld [vmem:[%s10694_s4 + $0x140] sm:$0xff]  ;;  %v1210_v48 = vadd.f32 %v7244_v43, %v6790_v56  ;;  %v1211_v35 = vadd.f32 %v7246_v42, %v6792_v57 }
 0x2ee   :  { %2729 = vmatpush.msrb.mxu1 %v5842_v10  ;;  %v1705_v43 = vld [vmem:[%s10690_s0 + $0x11c] sm:$0xff]  ;;  %v5823_v10 = vld [vmem:[%s10694_s4 + $0xa8] sm:$0xff] }
 0x2ef   :  { %v7875_v52 = vadd.f32 %v7554_v61, %v2062_v53  ;;  %v7878_v27 = vadd.f32 %v7556_v51, %v2063_v4  ;;  %5754 = vmatmul.msk.f32.gmra.mxu0 %vm178_vm0, %v1704_v47  ;;  %5786 = vmatmul.msk.f32.gmra.mxu1 %vm178_vm0, %v1704_v47  ;;  %v5825_v47 = vld [vmem:[%s10694_s4 + $0xb8] sm:$0xff]  ;;  %v1637_v4 = vadd.f32 %v7395_v60, %v1210_v48  ;;  %v5824_v60 = vld [vmem:[%s10694_s4 + $0xb0] sm:$0xff]  ;;  %v5839_v48 = vld [vmem:[%s10694_s4 + $0x128] sm:$0xff] }
 0x2f0   :  { %v5841_v53 = vld [vmem:[%s10694_s4 + $0x138] sm:$0xff]  ;;  %v1638_v56 = vadd.f32 %v7397_v49, %v1211_v35  ;;  %2617 = vmatpush.msrb.mxu0 %v5825_v47  ;;  %v5840_v49 = vld [vmem:[%s10694_s4 + $0x130] sm:$0xff]  ;;  %v7922_v35 = vpop.f32.mrf.mxu2  ;;  %v7924_v47 = vpop.f32.mrf.mxu3 }
 0x2f1   :  { %v10724_v36 = vmax.f32 %v7878_v27, 0.0  ;;  %v10727_v24 = vmax.f32 %v7875_v52, 0.0  ;;  %2730 = vmatpush.msrb.mxu1 %v5841_v53 }
 0x2f2   :  { %2618 = vmatpush.msrb.mxu0 %v5824_v60 }
 0x2f3   :  { %2405 = vmatmul.f32.gmra.mxu2 %v10727_v24  ;;  %5802 = vmatmul.msk.f32.gmra.mxu3 %vm2259_vm1, %v10724_v36 }
 0x2f4   :  { %v1867_v57 = vpop.f32.mrf.mxu0  ;;  %v1980_v42 = vpop.f32.mrf.mxu1  ;;  %2731 = vmatpush.msrb.mxu1 %v5840_v49  ;;  %2619 = vmatpush.msrb.mxu0 %v5823_v10 }
 0x2f5   :  { %v2064_v28 = vadd.f32 %v1867_v57, %v1637_v4  ;;  %v2065_v12 = vadd.f32 %v1980_v42, %v1638_v56  ;;  %v1212_v56 = vadd.f32 %v7258_v25, %v6804_v8  ;;  %v1213_v57 = vadd.f32 %v7260_v46, %v6806_v9  ;;  %v1706_v9 = vld [vmem:[%s10690_s0 + $0x124] sm:$0xff] }
 0x2f6   :  { %2732 = vmatpush.msrb.mxu1 %v5839_v48  ;;  %v10858_v48 = vld [vmem:[#allocation9_spill] sm:$0xff] }
 0x2f7   :  { %v7927_v53 = vadd.f32 %v7554_v61, %v2064_v28  ;;  %v7930_v4 = vadd.f32 %v7556_v51, %v2065_v12  ;;  %5755 = vmatmul.msk.f32.gmra.mxu0 %vm178_vm0, %v1705_v43  ;;  %5787 = vmatmul.msk.f32.gmra.mxu1 %vm178_vm0, %v1705_v43  ;;  %v1639_v49 = vadd.f32 %v7419_v44, %v1212_v56  ;;  %v10859_v56 = vld [vmem:[#allocation45_spill] sm:$0xff] }
 0x2f8   :  { %v1640_v28 = vadd.f32 %v7421_v38, %v1213_v57  ;;  %v10857_v38 = vld [vmem:[#allocation44_spill] sm:$0xff]  ;;  %v1215_v57 = vadd.f32 %v10859_v56, %v10858_v48 }
 0x2f9   :  { %v10722_v42 = vmax.f32 %v7930_v4, 0.0  ;;  %v10723_v60 = vmax.f32 %v7927_v53, 0.0  ;;  %v1214_v10 = vadd.f32 %v10857_v38, %v6818_v20  ;;  %v1707_v38 = vld [vmem:[%s10690_s0 + $0x12c] sm:$0xff] }
 0x2fb   :  { %2408 = vmatmul.f32.gmra.mxu2 %v10723_v60  ;;  %5803 = vmatmul.msk.f32.gmra.mxu3 %vm2259_vm1, %v10722_v42  ;;  %v7962_v42 = vpop.f32.mrf.mxu2 }
 0x2fc   :  { %v1870_v43 = vpop.f32.mrf.mxu0  ;;  %v1983_v8 = vpop.f32.mrf.mxu1 }
 0x2fd   :  { %v2066_v25 = vadd.f32 %v1870_v43, %v1639_v49  ;;  %v2067_v46 = vadd.f32 %v1983_v8, %v1640_v28  ;;  %v7964_v49 = vpop.f32.mrf.mxu3  ;;  %v10860_v8 = vld [vmem:[#allocation70_spill] sm:$0xff] }
 0x2ff   :  { %v7951_v12 = vadd.f32 %v7554_v61, %v2066_v25  ;;  %v7954_v44 = vadd.f32 %v7556_v51, %v2067_v46  ;;  %5756 = vmatmul.msk.f32.gmra.mxu0 %vm178_vm0, %v1706_v9  ;;  %5788 = vmatmul.msk.f32.gmra.mxu1 %vm178_vm0, %v1706_v9  ;;  %v1641_v25 = vadd.f32 %v10860_v8, %v1214_v10  ;;  %v10861_v46 = vld [vmem:[#allocation71_spill] sm:$0xff]  ;;  %v10863_v8 = vld [vmem:[#allocation46_spill] sm:$0xff] }
 0x300   :  { %v1642_v60 = vadd.f32 %v10861_v46, %v1215_v57  ;;  %v10862_v57 = vld [vmem:[#allocation10_spill] sm:$0xff] }
 0x301   :  { %v10725_v28 = vmax.f32 %v7954_v44, 0.0  ;;  %v10726_v43 = vmax.f32 %v7951_v12, 0.0  ;;  %v1216_v46 = vadd.f32 %v10863_v8, %v10862_v57 }
 0x303   :  { %2411 = vmatmul.f32.gmra.mxu2 %v10726_v43  ;;  %5804 = vmatmul.msk.f32.gmra.mxu3 %vm2259_vm1, %v10725_v28  ;;  %v10864_v28 = vld [vmem:[#allocation11_spill] sm:$0xff] }
 0x304   :  { %v1873_v20 = vpop.f32.mrf.mxu0  ;;  %v1986_v9 = vpop.f32.mrf.mxu1  ;;  %v10865_v43 = vld [vmem:[#allocation47_spill] sm:$0xff] }
 0x305   :  { %v2068_v48 = vadd.f32 %v1873_v20, %v1641_v25  ;;  %v2069_v56 = vadd.f32 %v1986_v9, %v1642_v60  ;;  %v1217_v24 = vadd.f32 %v10865_v43, %v10864_v28  ;;  %v10866_v25 = vld [vmem:[#allocation76_spill] sm:$0xff]  ;;  %v10867_v9 = vld [vmem:[#allocation77_spill] sm:$0xff]  ;;  %v7996_v17 = vpop.f32.mrf.mxu3 }
 0x306   :  { %v1643_v20 = vadd.f32 %v10866_v25, %v1216_v46  ;;  %v10870_v25 = vld [vmem:[#allocation12_spill] sm:$0xff] }
 0x307   :  { %v7979_v36 = vadd.f32 %v7554_v61, %v2068_v48  ;;  %v7982_v10 = vadd.f32 %v7556_v51, %v2069_v56  ;;  %5757 = vmatmul.msk.f32.gmra.mxu0 %vm178_vm0, %v1707_v38  ;;  %5789 = vmatmul.msk.f32.gmra.mxu1 %vm178_vm0, %v1707_v38  ;;  %v1644_v48 = vadd.f32 %v10867_v9, %v1217_v24  ;;  %v7994_v56 = vpop.f32.mrf.mxu2  ;;  %v1708_v38 = vld [vmem:[%s10690_s0 + $0x134] sm:$0xff] }
 0x308   :  { %v10871_v9 = vld [vmem:[#allocation48_spill] sm:$0xff] }
 0x309   :  { %v10730_v16 = vmax.f32 %v7982_v10, 0.0  ;;  %v10731_v60 = vmax.f32 %v7979_v36, 0.0 }
 0x30b   :  { %2414 = vmatmul.f32.gmra.mxu2 %v10731_v60  ;;  %5805 = vmatmul.msk.f32.gmra.mxu3 %vm2259_vm1, %v10730_v16  ;;  %v1218_v16 = vadd.f32 %v10871_v9, %v10870_v25  ;;  %v10872_v60 = vld [vmem:[#allocation13_spill] sm:$0xff] }
 0x30c   :  { %v1876_v28 = vpop.f32.mrf.mxu0  ;;  %v1989_v43 = vpop.f32.mrf.mxu1  ;;  %v1219_v41 = vadd.f32 %v10873_v40, %v10872_v60 }
 0x30d   :  { %v2070_v57 = vadd.f32 %v1876_v28, %v1643_v20  ;;  %v2071_v8 = vadd.f32 %v1989_v43, %v1644_v48  ;;  %v10874_v48 = vld [vmem:[#allocation80_spill] sm:$0xff]  ;;  %v10875_v43 = vld [vmem:[#allocation81_spill] sm:$0xff]  ;;  %v8029_v60 = vpop.f32.mrf.mxu3 }
 0x30e   :  { %v1645_v28 = vadd.f32 %v10874_v48, %v1218_v16  ;;  %v10876_v16 = vmax.f32 %v7564_v50, 0.0  ;;  %v10877_v48 = vld [vmem:[#allocation90_spill] sm:$0xff] }
 0x30f   :  { %v8007_v24 = vadd.f32 %v7554_v61, %v2070_v57  ;;  %v8010_v46 = vadd.f32 %v7556_v51, %v2071_v8  ;;  %5758 = vmatmul.msk.f32.gmra.mxu0 %vm178_vm0, %v1708_v38  ;;  %5790 = vmatmul.msk.f32.gmra.mxu1 %vm178_vm0, %v1708_v38  ;;  %v1646_v57 = vadd.f32 %v10875_v43, %v1219_v41  ;;  %v8027_v40 = vpop.f32.mrf.mxu2  ;;  %v10878_v43 = vmax.f32 %v10877_v48, 0.0 }
 0x311   :  { %10868 = vst [vmem:[#allocation44_spill] sm:$0xff] %v8007_v24  ;;  %v10736_v14 = vmax.f32 %v8010_v46, 0.0  ;;  %v10737_v20 = vmax.f32 %v8007_v24, 0.0 }
 0x312   :  { %10869 = vst [vmem:[#allocation9_spill] sm:$0xff] %v8010_v46  ;;  %v10884_v46 = vld [vmem:[#allocation85_spill] sm:$0xff] }
 0x313   :  { %2417 = vmatmul.f32.gmra.mxu2 %v10737_v20  ;;  %5806 = vmatmul.msk.f32.gmra.mxu3 %vm2259_vm1, %v10736_v14  ;;  %v10879_v14 = vld [vmem:[#allocation14_spill] sm:$0xff] }
 0x314   :  { %v1879_v38 = vpop.f32.mrf.mxu0  ;;  %v1992_v8 = vpop.f32.mrf.mxu1 }
 0x315   :  { %v2072_v25 = vadd.f32 %v1879_v38, %v1645_v28  ;;  %v2073_v9 = vadd.f32 %v1992_v8, %v1646_v57  ;;  %v10880_v28 = vld [vmem:[#allocation50_spill] sm:$0xff]  ;;  %v10881_v38 = vld [vmem:[#allocation15_spill] sm:$0xff] }
 0x316   :  { %v1220_v57 = vadd.f32 %v10880_v28, %v10879_v14  ;;  %v10882_v8 = vld [vmem:[#allocation51_spill] sm:$0xff] }
 0x317   :  { %v8032_v58 = vadd.f32 %v7554_v61, %v2072_v25  ;;  %v8035_v41 = vadd.f32 %v7556_v51, %v2073_v9  ;;  %2620 = vmatmul.f32.vlgmr.msrb.gmra.mxu0 %v10876_v16  ;;  %5844 = vmatmul.msk.f32.vlgmr.msrb.gmra.mxu1 %vm2259_vm1, %v10878_v43  ;;  %v1221_v20 = vadd.f32 %v10882_v8, %v10881_v38  ;;  %v10888_v8 = vld [vmem:[#allocation16_spill] sm:$0xff] }
 0x318   :  { %v1647_v9 = vadd.f32 %v10883_v22, %v1220_v57  ;;  %v10887_v57 = vmax.f32 %v7591_v2, 0.0 }
 0x319   :  { %v10742_v31 = vmax.f32 %v8035_v41, 0.0  ;;  %v10743_v25 = vmax.f32 %v8032_v58, 0.0  ;;  %v1648_v24 = vadd.f32 %v10884_v46, %v1221_v20  ;;  %v10886_v20 = vmax.f32 %v7588_v26, 0.0 }
 0x31b   :  { %2420 = vmatmul.f32.gmra.mxu2 %v10743_v25  ;;  %5807 = vmatmul.msk.f32.gmra.mxu3 %vm2259_vm1, %v10742_v31  ;;  %v10892_v25 = vld [vmem:[#allocation88_spill] sm:$0xff] }
 0x31c   :  { %v1882_v50 = vpop.f32.mrf.mxu0  ;;  %v1995_v14 = vpop.f32.mrf.mxu1 }
 0x31d   :  { %v2074_v16 = vadd.f32 %v1882_v50, %v1647_v9  ;;  %v2075_v48 = vadd.f32 %v1995_v14, %v1648_v24  ;;  %v10889_v9 = vld [vmem:[#allocation52_spill] sm:$0xff]  ;;  %v10890_v50 = vld [vmem:[#allocation17_spill] sm:$0xff] }
 0x31e   :  { %v2373_v43 = vpop.f32.mrf.mxu2  ;;  %v2486_v28 = vpop.f32.mrf.mxu3  ;;  %v1222_v24 = vadd.f32 %v10889_v9, %v10888_v8  ;;  %v10891_v14 = vld [vmem:[#allocation53_spill] sm:$0xff] }
 0x31f   :  { %v8056_v38 = vadd.f32 %v7554_v61, %v2074_v16  ;;  %v8059_v22 = vadd.f32 %v7556_v51, %v2075_v48  ;;  %v8061_v46 = vadd.f32 %v2486_v28, %v2373_v43  ;;  %2623 = vmatmul.f32.gmra.mxu0 %v10886_v20  ;;  %5845 = vmatmul.msk.f32.gmra.mxu1 %vm2259_vm1, %v10887_v57  ;;  %v10893_v28 = vld [vmem:[#allocation89_spill] sm:$0xff] }
 0x320   :  { %v1223_v31 = vadd.f32 %v10891_v14, %v10890_v50  ;;  %v1649_v43 = vadd.f32 %v10892_v25, %v1222_v24  ;;  %v10896_v24 = vmax.f32 %v7612_v19, 0.0  ;;  %v10897_v14 = vmax.f32 %v7615_v18, 0.0 }
 0x321   :  { %10885 = vst [vmem:[#allocation45_spill] sm:$0xff] %v8061_v46  ;;  %v10744_v16 = vmax.f32 %v8059_v22, 0.0  ;;  %v10745_v48 = vmax.f32 %v8056_v38, 0.0 }
 0x322   :  { %v1650_v46 = vadd.f32 %v10893_v28, %v1223_v31  ;;  %v10898_v28 = vld [vmem:[#allocation18_spill] sm:$0xff] }
 0x323   :  { %2423 = vmatmul.f32.gmra.mxu2 %v10745_v48  ;;  %5808 = vmatmul.msk.f32.gmra.mxu3 %vm2259_vm1, %v10744_v16  ;;  %v10902_v48 = vld [vmem:[#allocation91_spill] sm:$0xff] }
 0x324   :  { %v1885_v2 = vpop.f32.mrf.mxu0  ;;  %v1998_v26 = vpop.f32.mrf.mxu1 }
 0x325   :  { %v2076_v20 = vadd.f32 %v1885_v2, %v1649_v43  ;;  %v2077_v57 = vadd.f32 %v1998_v26, %v1650_v46  ;;  %v10899_v43 = vld [vmem:[#allocation54_spill] sm:$0xff]  ;;  %v10900_v2 = vld [vmem:[#allocation19_spill] sm:$0xff] }
 0x326   :  { %v2376_v8 = vpop.f32.mrf.mxu2  ;;  %v2489_v9 = vpop.f32.mrf.mxu3  ;;  %v1224_v46 = vadd.f32 %v10899_v43, %v10898_v28  ;;  %v10901_v26 = vld [vmem:[#allocation55_spill] sm:$0xff] }
 0x327   :  { %v8082_v50 = vadd.f32 %v7554_v61, %v2076_v20  ;;  %v8085_v25 = vadd.f32 %v7556_v51, %v2077_v57  ;;  %v8087_v31 = vadd.f32 %v2489_v9, %v2376_v8  ;;  %2626 = vmatmul.f32.gmra.mxu0 %v10896_v24  ;;  %5846 = vmatmul.msk.f32.gmra.mxu1 %vm2259_vm1, %v10897_v14  ;;  %v10903_v9 = vld [vmem:[#allocation92_spill] sm:$0xff] }
 0x328   :  { %v1225_v16 = vadd.f32 %v10901_v26, %v10900_v2  ;;  %v1651_v8 = vadd.f32 %v10902_v48, %v1224_v46  ;;  %v10905_v46 = vmax.f32 %v7632_v21, 0.0  ;;  %v10906_v26 = vld [vmem:[#allocation95_spill] sm:$0xff] }
 0x329   :  { %10894 = vst [vmem:[#allocation70_spill] sm:$0xff] %v8085_v25  ;;  %v10746_v20 = vmax.f32 %v8085_v25, 0.0  ;;  %v10747_v57 = vmax.f32 %v8082_v50, 0.0  ;;  %v10912_v25 = vld [vmem:[#allocation93_spill] sm:$0xff] }
 0x32a   :  { %10895 = vst [vmem:[#allocation71_spill] sm:$0xff] %v8087_v31  ;;  %v1652_v31 = vadd.f32 %v10903_v9, %v1225_v16  ;;  %v10907_v9 = vmax.f32 %v10906_v26, 0.0 }
 0x32b   :  { %2426 = vmatmul.f32.gmra.mxu2 %v10747_v57  ;;  %5809 = vmatmul.msk.f32.gmra.mxu3 %vm2259_vm1, %v10746_v20  ;;  %v10908_v20 = vld [vmem:[#allocation20_spill] sm:$0xff] }
 0x32c   :  { %v1888_v19 = vpop.f32.mrf.mxu0  ;;  %v2001_v18 = vpop.f32.mrf.mxu1 }
 0x32d   :  { %v2078_v24 = vadd.f32 %v1888_v19, %v1651_v8  ;;  %v2079_v14 = vadd.f32 %v2001_v18, %v1652_v31  ;;  %v10909_v8 = vld [vmem:[#allocation56_spill] sm:$0xff]  ;;  %v10910_v19 = vld [vmem:[#allocation21_spill] sm:$0xff] }
 0x32e   :  { %v2379_v28 = vpop.f32.mrf.mxu2  ;;  %v2492_v43 = vpop.f32.mrf.mxu3  ;;  %v1226_v31 = vadd.f32 %v10909_v8, %v10908_v20  ;;  %v10911_v18 = vld [vmem:[#allocation57_spill] sm:$0xff] }
 0x32f   :  { %v8108_v2 = vadd.f32 %v7554_v61, %v2078_v24  ;;  %v8111_v48 = vadd.f32 %v7556_v51, %v2079_v14  ;;  %v8113_v16 = vadd.f32 %v2492_v43, %v2379_v28  ;;  %2629 = vmatmul.f32.gmra.mxu0 %v10905_v46  ;;  %5847 = vmatmul.msk.f32.gmra.mxu1 %vm2259_vm1, %v10907_v9  ;;  %v10913_v43 = vld [vmem:[#allocation94_spill] sm:$0xff] }
 0x330   :  { %v1227_v57 = vadd.f32 %v10911_v18, %v10910_v19  ;;  %v1653_v28 = vadd.f32 %v10912_v25, %v1226_v31  ;;  %v10915_v31 = vmax.f32 %v7656_v1, 0.0  ;;  %v10916_v18 = vmax.f32 %v7659_v54, 0.0 }
 0x331   :  { %10904 = vst [vmem:[#allocation10_spill] sm:$0xff] %v8113_v16  ;;  %v10749_v24 = vmax.f32 %v8111_v48, 0.0  ;;  %v10750_v14 = vmax.f32 %v8108_v2, 0.0 }
 0x332   :  { %v1654_v16 = vadd.f32 %v10913_v43, %v1227_v57  ;;  %v10917_v43 = vld [vmem:[#allocation22_spill] sm:$0xff] }
 0x333   :  { %2429 = vmatmul.f32.gmra.mxu2 %v10750_v14  ;;  %5810 = vmatmul.msk.f32.gmra.mxu3 %vm2259_vm1, %v10749_v24  ;;  %v10921_v14 = vld [vmem:[#allocation96_spill] sm:$0xff] }
 0x334   :  { %v1891_v21 = vpop.f32.mrf.mxu0  ;;  %v2004_v20 = vpop.f32.mrf.mxu1 }
 0x335   :  { %v2080_v46 = vadd.f32 %v1891_v21, %v1653_v28  ;;  %v2081_v26 = vadd.f32 %v2004_v20, %v1654_v16  ;;  %v10918_v28 = vld [vmem:[#allocation58_spill] sm:$0xff]  ;;  %v10919_v21 = vld [vmem:[#allocation23_spill] sm:$0xff] }
 0x336   :  { %v2382_v9 = vpop.f32.mrf.mxu2  ;;  %v2495_v8 = vpop.f32.mrf.mxu3  ;;  %v1228_v16 = vadd.f32 %v10918_v28, %v10917_v43  ;;  %v10920_v20 = vld [vmem:[#allocation59_spill] sm:$0xff] }
 0x337   :  { %v8134_v19 = vadd.f32 %v7554_v61, %v2080_v46  ;;  %v8137_v25 = vadd.f32 %v7556_v51, %v2081_v26  ;;  %v8139_v57 = vadd.f32 %v2495_v8, %v2382_v9  ;;  %2632 = vmatmul.f32.gmra.mxu0 %v10915_v31  ;;  %5848 = vmatmul.msk.f32.gmra.mxu1 %vm2259_vm1, %v10916_v18  ;;  %v10922_v8 = vld [vmem:[#allocation97_spill] sm:$0xff] }
 0x338   :  { %v1229_v24 = vadd.f32 %v10920_v20, %v10919_v21  ;;  %v1655_v9 = vadd.f32 %v10921_v14, %v1228_v16  ;;  %v10924_v16 = vmax.f32 %v7680_v11, 0.0  ;;  %v10925_v20 = vmax.f32 %v7683_v37, 0.0 }
 0x339   :  { %10914 = vst [vmem:[#allocation46_spill] sm:$0xff] %v8139_v57  ;;  %v10751_v46 = vmax.f32 %v8137_v25, 0.0  ;;  %v10752_v26 = vmax.f32 %v8134_v19, 0.0 }
 0x33a   :  { %v1656_v57 = vadd.f32 %v10922_v8, %v1229_v24  ;;  %v10926_v8 = vld [vmem:[#allocation24_spill] sm:$0xff] }
 0x33b   :  { %2432 = vmatmul.f32.gmra.mxu2 %v10752_v26  ;;  %5811 = vmatmul.msk.f32.gmra.mxu3 %vm2259_vm1, %v10751_v46 }
 0x33c   :  { %v1894_v54 = vpop.f32.mrf.mxu0  ;;  %v2007_v1 = vpop.f32.mrf.mxu1 }
 0x33d   :  { %v2082_v31 = vadd.f32 %v1894_v54, %v1655_v9  ;;  %v2083_v18 = vadd.f32 %v2007_v1, %v1656_v57  ;;  %v10927_v9 = vld [vmem:[#allocation60_spill] sm:$0xff]  ;;  %v10928_v54 = vld [vmem:[#allocation25_spill] sm:$0xff] }
 0x33e   :  { %v2385_v43 = vpop.f32.mrf.mxu2  ;;  %v2498_v28 = vpop.f32.mrf.mxu3  ;;  %v1230_v57 = vadd.f32 %v10927_v9, %v10926_v8  ;;  %v10929_v1 = vld [vmem:[#allocation61_spill] sm:$0xff] }
 0x33f   :  { %v8160_v21 = vadd.f32 %v7554_v61, %v2082_v31  ;;  %v8163_v14 = vadd.f32 %v7556_v51, %v2083_v18  ;;  %v8165_v24 = vadd.f32 %v2498_v28, %v2385_v43  ;;  %2635 = vmatmul.f32.gmra.mxu0 %v10924_v16  ;;  %5849 = vmatmul.msk.f32.gmra.mxu1 %vm2259_vm1, %v10925_v20  ;;  %v10930_v28 = vld [vmem:[#allocation98_spill] sm:$0xff] }
 0x340   :  { %v1231_v46 = vadd.f32 %v10929_v1, %v10928_v54  ;;  %v1657_v43 = vadd.f32 %v7665_v33, %v1230_v57  ;;  %v10931_v57 = vmax.f32 %v7704_v62, 0.0  ;;  %v10932_v1 = vmax.f32 %v7707_v45, 0.0 }
 0x341   :  { %10923 = vst [vmem:[#allocation11_spill] sm:$0xff] %v8165_v24  ;;  %v10753_v31 = vmax.f32 %v8163_v14, 0.0  ;;  %v10754_v18 = vmax.f32 %v8160_v21, 0.0 }
 0x342   :  { %v1658_v26 = vadd.f32 %v10930_v28, %v1231_v46  ;;  %v10933_v28 = vld [vmem:[#allocation26_spill] sm:$0xff] }
 0x343   :  { %2435 = vmatmul.f32.gmra.mxu2 %v10754_v18  ;;  %5812 = vmatmul.msk.f32.gmra.mxu3 %vm2259_vm1, %v10753_v31  ;;  %v10937_v18 = vld [vmem:[#allocation99_spill] sm:$0xff] }
 0x344   :  { %v1897_v11 = vpop.f32.mrf.mxu0  ;;  %v2010_v37 = vpop.f32.mrf.mxu1 }
 0x345   :  { %v2084_v16 = vadd.f32 %v1897_v11, %v1657_v43  ;;  %v2085_v20 = vadd.f32 %v2010_v37, %v1658_v26  ;;  %v10934_v43 = vld [vmem:[#allocation62_spill] sm:$0xff]  ;;  %v10935_v11 = vld [vmem:[#allocation27_spill] sm:$0xff] }
 0x346   :  { %v2388_v8 = vpop.f32.mrf.mxu2  ;;  %v2501_v9 = vpop.f32.mrf.mxu3  ;;  %v1232_v26 = vadd.f32 %v10934_v43, %v10933_v28  ;;  %v10936_v37 = vld [vmem:[#allocation63_spill] sm:$0xff] }
 0x347   :  { %v8186_v54 = vadd.f32 %v7554_v61, %v2084_v16  ;;  %v8189_v33 = vadd.f32 %v7556_v51, %v2085_v20  ;;  %v8191_v46 = vadd.f32 %v2501_v9, %v2388_v8  ;;  %2638 = vmatmul.f32.gmra.mxu0 %v10931_v57  ;;  %5850 = vmatmul.msk.f32.gmra.mxu1 %vm2259_vm1, %v10932_v1  ;;  %v10938_v9 = vld [vmem:[#allocation100_spill] sm:$0xff] }
 0x348   :  { %v1233_v31 = vadd.f32 %v10936_v37, %v10935_v11  ;;  %v1659_v8 = vadd.f32 %v10937_v18, %v1232_v26  ;;  %v10939_v26 = vmax.f32 %v7728_v7, 0.0  ;;  %v10940_v37 = vmax.f32 %v7731_v63, 0.0 }
 0x349   :  { %v10755_v16 = vmax.f32 %v8189_v33, 0.0  ;;  %v2218_v20 = vmax.f32 %v8186_v54, 0.0 }
 0x34a   :  { %v1660_v24 = vadd.f32 %v10938_v9, %v1233_v31  ;;  %v10941_v9 = vld [vmem:[#allocation28_spill] sm:$0xff] }
 0x34b   :  { %2438 = vmatmul.f32.gmra.mxu2 %v2218_v20  ;;  %5813 = vmatmul.msk.f32.gmra.mxu3 %vm2259_vm1, %v10755_v16 }
 0x34c   :  { %v1900_v45 = vpop.f32.mrf.mxu0  ;;  %v2013_v62 = vpop.f32.mrf.mxu1 }
 0x34d   :  { %v2086_v57 = vadd.f32 %v1900_v45, %v1659_v8  ;;  %v2087_v1 = vadd.f32 %v2013_v62, %v1660_v24  ;;  %v10942_v8 = vld [vmem:[#allocation64_spill] sm:$0xff]  ;;  %v10943_v45 = vld [vmem:[#allocation29_spill] sm:$0xff] }
 0x34e   :  { %v2391_v28 = vpop.f32.mrf.mxu2  ;;  %v2504_v43 = vpop.f32.mrf.mxu3  ;;  %v1234_v24 = vadd.f32 %v10942_v8, %v10941_v9  ;;  %v10944_v62 = vld [vmem:[#allocation65_spill] sm:$0xff] }
 0x34f   :  { %v8212_v11 = vadd.f32 %v7554_v61, %v2086_v57  ;;  %v8215_v18 = vadd.f32 %v7556_v51, %v2087_v1  ;;  %v8217_v31 = vadd.f32 %v2504_v43, %v2391_v28  ;;  %2641 = vmatmul.f32.gmra.mxu0 %v10939_v26  ;;  %5851 = vmatmul.msk.f32.gmra.mxu1 %vm2259_vm1, %v10940_v37 }
 0x350   :  { %v1235_v16 = vadd.f32 %v10944_v62, %v10943_v45  ;;  %v1661_v28 = vadd.f32 %v7723_v55, %v1234_v24  ;;  %v10946_v24 = vmax.f32 %v7755_v13, 0.0  ;;  %v10947_v62 = vld [vmem:[#allocation30_spill] sm:$0xff] }
 0x351   :  { %v10756_v57 = vmax.f32 %v8215_v18, 0.0  ;;  %v2220_v1 = vmax.f32 %v8212_v11, 0.0 }
 0x352   :  { %v1662_v43 = vadd.f32 %v7725_v34, %v1235_v16  ;;  %v10945_v16 = vmax.f32 %v7752_v6, 0.0 }
 0x353   :  { %2441 = vmatmul.f32.gmra.mxu2 %v2220_v1  ;;  %5814 = vmatmul.msk.f32.gmra.mxu3 %vm2259_vm1, %v10756_v57 }
 0x354   :  { %v1903_v7 = vpop.f32.mrf.mxu0  ;;  %v2016_v63 = vpop.f32.mrf.mxu1 }
 0x355   :  { %v2088_v26 = vadd.f32 %v1903_v7, %v1661_v28  ;;  %v2089_v37 = vadd.f32 %v2016_v63, %v1662_v43  ;;  %v10948_v28 = vld [vmem:[#allocation66_spill] sm:$0xff]  ;;  %v10949_v7 = vld [vmem:[#allocation31_spill] sm:$0xff] }
 0x356   :  { %v2394_v9 = vpop.f32.mrf.mxu2  ;;  %v2507_v8 = vpop.f32.mrf.mxu3  ;;  %v1236_v43 = vadd.f32 %v10948_v28, %v10947_v62  ;;  %v10950_v63 = vld [vmem:[#allocation67_spill] sm:$0xff] }
 0x357   :  { %v8238_v45 = vadd.f32 %v7554_v61, %v2088_v26  ;;  %v8241_v55 = vadd.f32 %v7556_v51, %v2089_v37  ;;  %v8243_v34 = vadd.f32 %v2507_v8, %v2394_v9  ;;  %2644 = vmatmul.f32.gmra.mxu0 %v10945_v16  ;;  %5852 = vmatmul.msk.f32.gmra.mxu1 %vm2259_vm1, %v10946_v24 }
 0x358   :  { %v1237_v57 = vadd.f32 %v10950_v63, %v10949_v7  ;;  %v1663_v9 = vadd.f32 %v7766_v23, %v1236_v43  ;;  %v10951_v23 = vmax.f32 %v7795_v30, 0.0  ;;  %v10954_v43 = vld [vmem:[#allocation68_spill] sm:$0xff]  ;;  %v10955_v63 = vld [vmem:[#allocation33_spill] sm:$0xff] }
 0x359   :  { %v10757_v26 = vmax.f32 %v8241_v55, 0.0  ;;  %v2222_v37 = vmax.f32 %v8238_v45, 0.0 }
 0x35a   :  { %v1664_v8 = vadd.f32 %v7768_v15, %v1237_v57  ;;  %v10952_v15 = vmax.f32 %v7798_v59, 0.0  ;;  %v10953_v57 = vld [vmem:[#allocation32_spill] sm:$0xff] }
 0x35b   :  { %2444 = vmatmul.f32.gmra.mxu2 %v2222_v37  ;;  %5815 = vmatmul.msk.f32.gmra.mxu3 %vm2259_vm1, %v10757_v26  ;;  %v1238_v7 = vadd.f32 %v10954_v43, %v10953_v57  ;;  %v10956_v26 = vld [vmem:[#allocation69_spill] sm:$0xff]  ;;  %v10959_v57 = vld [vmem:[#allocation34_spill] sm:$0xff]  ;;  %v10960_v43 = vld [vmem:[#allocation72_spill] sm:$0xff] }
 0x35c   :  { %v1906_v6 = vpop.f32.mrf.mxu0  ;;  %v2019_v13 = vpop.f32.mrf.mxu1 }
 0x35d   :  { %v2090_v16 = vadd.f32 %v1906_v6, %v1663_v9  ;;  %v2091_v24 = vadd.f32 %v2019_v13, %v1664_v8  ;;  %v1239_v9 = vadd.f32 %v10956_v26, %v10955_v63  ;;  %v1665_v13 = vadd.f32 %v7816_v29, %v1238_v7  ;;  %v10961_v63 = vld [vmem:[#allocation35_spill] sm:$0xff] }
 0x35e   :  { %v10957_v29 = vmax.f32 %v7835_v5, 0.0  ;;  %v1240_v7 = vadd.f32 %v10960_v43, %v10959_v57  ;;  %v10965_v43 = vld [vmem:[#allocation36_spill] sm:$0xff] }
 0x35f   :  { %v8264_v62 = vadd.f32 %v7554_v61, %v2090_v16  ;;  %v8267_v28 = vadd.f32 %v7556_v51, %v2091_v24  ;;  %2647 = vmatmul.f32.gmra.mxu0 %v10951_v23  ;;  %5853 = vmatmul.msk.f32.gmra.mxu1 %vm2259_vm1, %v10952_v15  ;;  %v1666_v16 = vadd.f32 %v7818_v32, %v1239_v9  ;;  %v10958_v32 = vmax.f32 %v7838_v0, 0.0  ;;  %v10962_v9 = vld [vmem:[#allocation73_spill] sm:$0xff] }
 0x361   :  { %v2225_v8 = vmax.f32 %v8267_v28, 0.0  ;;  %v2224_v6 = vmax.f32 %v8264_v62, 0.0 }
 0x363   :  { %2447 = vmatmul.f32.gmra.mxu2 %v2224_v6  ;;  %5816 = vmatmul.msk.f32.gmra.mxu3 %vm2259_vm1, %v2225_v8 }
 0x364   :  { %v1909_v30 = vpop.f32.mrf.mxu0  ;;  %v2022_v59 = vpop.f32.mrf.mxu1 }
 0x365   :  { %v2092_v24 = vadd.f32 %v1909_v30, %v1665_v13  ;;  %v2093_v23 = vadd.f32 %v2022_v59, %v1666_v16  ;;  %v1241_v13 = vadd.f32 %v10962_v9, %v10961_v63  ;;  %v1667_v59 = vadd.f32 %v7867_v39, %v1240_v7  ;;  %v10966_v7 = vld [vmem:[#allocation74_spill] sm:$0xff]  ;;  %v10967_v9 = vld [vmem:[#allocation37_spill] sm:$0xff] }
 0x366   :  { %v10963_v39 = vmax.f32 %v7875_v52, 0.0  ;;  %v1242_v63 = vadd.f32 %v10966_v7, %v10965_v43  ;;  %v10971_v7 = vld [vmem:[#allocation38_spill] sm:$0xff] }
 0x367   :  { %v8288_v26 = vadd.f32 %v7554_v61, %v2092_v24  ;;  %v8291_v15 = vadd.f32 %v7556_v51, %v2093_v23  ;;  %2650 = vmatmul.f32.gmra.mxu0 %v10957_v29  ;;  %5854 = vmatmul.msk.f32.gmra.mxu1 %vm2259_vm1, %v10958_v32  ;;  %v1668_v24 = vadd.f32 %v7869_v3, %v1241_v13  ;;  %v10964_v3 = vmax.f32 %v7878_v27, 0.0  ;;  %v10968_v13 = vld [vmem:[#allocation75_spill] sm:$0xff] }
 0x369   :  { %v2227_v16 = vmax.f32 %v8291_v15, 0.0  ;;  %v2226_v30 = vmax.f32 %v8288_v26, 0.0 }
 0x36b   :  { %2450 = vmatmul.f32.gmra.mxu2 %v2226_v30  ;;  %5817 = vmatmul.msk.f32.gmra.mxu3 %vm2259_vm1, %v2227_v16 }
 0x36c   :  { %v1912_v5 = vpop.f32.mrf.mxu0  ;;  %v2025_v0 = vpop.f32.mrf.mxu1 }
 0x36d   :  { %v2094_v23 = vadd.f32 %v1912_v5, %v1667_v59  ;;  %v2095_v29 = vadd.f32 %v2025_v0, %v1668_v24  ;;  %v1243_v59 = vadd.f32 %v10968_v13, %v10967_v9  ;;  %v1669_v0 = vadd.f32 %v7922_v35, %v1242_v63  ;;  %v10972_v63 = vld [vmem:[#allocation78_spill] sm:$0xff]  ;;  %v10973_v13 = vld [vmem:[#allocation39_spill] sm:$0xff] }
 0x36e   :  { %v10969_v35 = vmax.f32 %v7927_v53, 0.0  ;;  %v1244_v9 = vadd.f32 %v10972_v63, %v10971_v7  ;;  %v10977_v63 = vld [vmem:[#allocation40_spill] sm:$0xff] }
 0x36f   :  { %v8312_v32 = vadd.f32 %v7554_v61, %v2094_v23  ;;  %v8315_v57 = vadd.f32 %v7556_v51, %v2095_v29  ;;  %2653 = vmatmul.f32.gmra.mxu0 %v10963_v39  ;;  %5855 = vmatmul.msk.f32.gmra.mxu1 %vm2259_vm1, %v10964_v3  ;;  %v1670_v23 = vadd.f32 %v7924_v47, %v1243_v59  ;;  %v10970_v47 = vmax.f32 %v7930_v4, 0.0  ;;  %v10974_v59 = vld [vmem:[#allocation79_spill] sm:$0xff] }
 0x371   :  { %v2229_v24 = vmax.f32 %v8315_v57, 0.0  ;;  %v2228_v5 = vmax.f32 %v8312_v32, 0.0 }
 0x373   :  { %2453 = vmatmul.f32.gmra.mxu2 %v2228_v5  ;;  %5818 = vmatmul.msk.f32.gmra.mxu3 %vm2259_vm1, %v2229_v24 }
 0x374   :  { %v1915_v52 = vpop.f32.mrf.mxu0  ;;  %v2028_v27 = vpop.f32.mrf.mxu1 }
 0x375   :  { %v2096_v29 = vadd.f32 %v1915_v52, %v1669_v0  ;;  %v2097_v39 = vadd.f32 %v2028_v27, %v1670_v23  ;;  %v1245_v0 = vadd.f32 %v10974_v59, %v10973_v13  ;;  %v1671_v27 = vadd.f32 %v7962_v42, %v1244_v9  ;;  %v10978_v9 = vld [vmem:[#allocation82_spill] sm:$0xff]  ;;  %v10979_v59 = vld [vmem:[#allocation41_spill] sm:$0xff] }
 0x376   :  { %v10975_v42 = vmax.f32 %v7951_v12, 0.0  ;;  %v1246_v13 = vadd.f32 %v10978_v9, %v10977_v63  ;;  %v10983_v9 = vld [vmem:[#allocation42_spill] sm:$0xff] }
 0x377   :  { %v8336_v3 = vadd.f32 %v7554_v61, %v2096_v29  ;;  %v8339_v43 = vadd.f32 %v7556_v51, %v2097_v39  ;;  %2656 = vmatmul.f32.gmra.mxu0 %v10969_v35  ;;  %5856 = vmatmul.msk.f32.gmra.mxu1 %vm2259_vm1, %v10970_v47  ;;  %v1672_v29 = vadd.f32 %v7964_v49, %v1245_v0  ;;  %v10976_v49 = vmax.f32 %v7954_v44, 0.0  ;;  %v10980_v0 = vld [vmem:[#allocation83_spill] sm:$0xff] }
 0x379   :  { %v10764_v23 = vmax.f32 %v8339_v43, 0.0  ;;  %v2230_v52 = vmax.f32 %v8336_v3, 0.0  ;;  %v11010_v26 = vmax.f32 %v8339_v43, 0.0 }
 0x37b   :  { %2456 = vmatmul.f32.gmra.mxu2 %v2230_v52  ;;  %5819 = vmatmul.msk.f32.gmra.mxu3 %vm2259_vm1, %v10764_v23 }
 0x37c   :  { %v1918_v53 = vpop.f32.mrf.mxu0  ;;  %v2031_v4 = vpop.f32.mrf.mxu1 }
 0x37d   :  { %v2098_v39 = vadd.f32 %v1918_v53, %v1671_v27  ;;  %v2099_v35 = vadd.f32 %v2031_v4, %v1672_v29  ;;  %v1247_v27 = vadd.f32 %v10980_v0, %v10979_v59  ;;  %v1673_v4 = vadd.f32 %v7994_v56, %v1246_v13  ;;  %v10984_v13 = vld [vmem:[#allocation86_spill] sm:$0xff]  ;;  %v10985_v0 = vld [vmem:[#allocation43_spill] sm:$0xff] }
 0x37e   :  { %v10981_v56 = vmax.f32 %v7979_v36, 0.0  ;;  %v1248_v59 = vadd.f32 %v10984_v13, %v10983_v9 }
 0x37f   :  { %v8360_v47 = vadd.f32 %v7554_v61, %v2098_v39  ;;  %v8363_v7 = vadd.f32 %v7556_v51, %v2099_v35  ;;  %2659 = vmatmul.f32.gmra.mxu0 %v10975_v42  ;;  %5857 = vmatmul.msk.f32.gmra.mxu1 %vm2259_vm1, %v10976_v49  ;;  %v1674_v39 = vadd.f32 %v7996_v17, %v1247_v27  ;;  %v10982_v17 = vmax.f32 %v7982_v10, 0.0  ;;  %v10986_v27 = vld [vmem:[#allocation87_spill] sm:$0xff] }
 0x381   :  { %v10762_v29 = vmax.f32 %v8363_v7, 0.0  ;;  %v10763_v53 = vmax.f32 %v8360_v47, 0.0  ;;  %v11013_v57 = vmax.f32 %v8360_v47, 0.0 }
 0x383   :  { %2459 = vmatmul.f32.gmra.mxu2 %v10763_v53  ;;  %5820 = vmatmul.msk.f32.gmra.mxu3 %vm2259_vm1, %v10762_v29 }
 0x384   :  { %v1921_v12 = vpop.f32.mrf.mxu0  ;;  %v2034_v44 = vpop.f32.mrf.mxu1 }
 0x385   :  { %v2100_v35 = vadd.f32 %v1921_v12, %v1673_v4  ;;  %v2101_v42 = vadd.f32 %v2034_v44, %v1674_v39  ;;  %v1249_v4 = vadd.f32 %v10986_v27, %v10985_v0  ;;  %v1675_v44 = vadd.f32 %v8027_v40, %v1248_v59  ;;  %v10987_v40 = vld [vmem:[#allocation44_spill] sm:$0xff] }
 0x386   :  { %v10988_v13 = vmax.f32 %v10987_v40, 0.0  ;;  %v8445_v40 = vpop.f32.mrf.mxu3 }
 0x387   :  { %v8384_v49 = vadd.f32 %v7554_v61, %v2100_v35  ;;  %v8387_v63 = vadd.f32 %v7556_v51, %v2101_v42  ;;  %2662 = vmatmul.f32.gmra.mxu0 %v10981_v56  ;;  %5858 = vmatmul.msk.f32.gmra.mxu1 %vm2259_vm1, %v10982_v17  ;;  %v1676_v35 = vadd.f32 %v8029_v60, %v1249_v4  ;;  %v10989_v60 = vld [vmem:[#allocation9_spill] sm:$0xff]  ;;  %v10992_v4 = vmax.f32 %v8032_v58, 0.0 }
 0x388   :  { %v10990_v59 = vmax.f32 %v10989_v60, 0.0  ;;  %v10997_v60 = vld [vmem:[#allocation70_spill] sm:$0xff] }
 0x389   :  { %v10760_v39 = vmax.f32 %v8387_v63, 0.0  ;;  %v10761_v12 = vmax.f32 %v8384_v49, 0.0 }
 0x38b   :  { %2462 = vmatmul.f32.gmra.mxu2 %v10761_v12  ;;  %5821 = vmatmul.msk.f32.gmra.mxu3 %vm2259_vm1, %v10760_v39 }
 0x38c   :  { %v1924_v36 = vpop.f32.mrf.mxu0  ;;  %v2037_v10 = vpop.f32.mrf.mxu1 }
 0x38d   :  { %v2102_v42 = vadd.f32 %v1924_v36, %v1675_v44  ;;  %v2103_v56 = vadd.f32 %v2037_v10, %v1676_v35  ;;  %v10993_v44 = vmax.f32 %v8035_v41, 0.0  ;;  %v10994_v10 = vmax.f32 %v8056_v38, 0.0 }
 0x38f   :  { %v8408_v17 = vadd.f32 %v7554_v61, %v2102_v42  ;;  %v8411_v9 = vadd.f32 %v7556_v51, %v2103_v56  ;;  %2665 = vmatmul.f32.gmra.mxu0 %v10988_v13  ;;  %5859 = vmatmul.msk.f32.gmra.mxu1 %vm2259_vm1, %v10990_v59  ;;  %v10995_v42 = vmax.f32 %v8059_v22, 0.0  ;;  %v8443_v56 = vpop.f32.mrf.mxu2  ;;  %v10996_v13 = vmax.f32 %v8082_v50, 0.0 }
 0x390   :  { %v10998_v59 = vmax.f32 %v10997_v60, 0.0 }
 0x391   :  { %v10758_v0 = vmax.f32 %v8411_v9, 0.0  ;;  %v10759_v27 = vmax.f32 %v8408_v17, 0.0 }
 0x393   :  { %2465 = vmatmul.f32.gmra.mxu2 %v10759_v27  ;;  %5822 = vmatmul.msk.f32.gmra.mxu3 %vm2259_vm1, %v10758_v0  ;;  %v11001_v0 = vmax.f32 %v8134_v19, 0.0  ;;  %v11002_v27 = vmax.f32 %v8137_v25, 0.0 }
 0x394   :  { %v8425_v51 = vpop.f32.mrf.mxu0  ;;  %v8427_v61 = vpop.f32.mrf.mxu1 }
 0x395   :  { %10991 = vst [vmem:[#allocation47_spill] sm:$0xff] %v8427_v61 }
 0x397   :  { %2668 = vmatmul.f32.gmra.mxu0 %v10992_v4  ;;  %5860 = vmatmul.msk.f32.gmra.mxu1 %vm2259_vm1, %v10993_v44  ;;  %v8460_v4 = vpop.f32.mrf.mxu2  ;;  %v8462_v44 = vpop.f32.mrf.mxu3 }
 0x39c   :  { %v8434_v35 = vpop.f32.mrf.mxu0  ;;  %v8436_v36 = vpop.f32.mrf.mxu1 }
 0x39f   :  { %2671 = vmatmul.f32.gmra.mxu0 %v10994_v10  ;;  %5861 = vmatmul.msk.f32.gmra.mxu1 %vm2259_vm1, %v10995_v42  ;;  %v10999_v10 = vmax.f32 %v8108_v2, 0.0  ;;  %v11000_v42 = vmax.f32 %v8111_v48, 0.0  ;;  %v8473_v60 = vpop.f32.mrf.mxu2 }
 0x3a4   :  { %v8447_v58 = vpop.f32.mrf.mxu0  ;;  %v8449_v41 = vpop.f32.mrf.mxu1 }
 0x3a7   :  { %2674 = vmatmul.f32.gmra.mxu0 %v10996_v13  ;;  %5862 = vmatmul.msk.f32.gmra.mxu1 %vm2259_vm1, %v10998_v59  ;;  %v8475_v59 = vpop.f32.mrf.mxu3  ;;  %v8491_v39 = vpop.f32.mrf.mxu2 }
 0x3ac   :  { %v8456_v38 = vpop.f32.mrf.mxu0  ;;  %v8458_v22 = vpop.f32.mrf.mxu1 }
 0x3af   :  { %2677 = vmatmul.f32.gmra.mxu0 %v10999_v10  ;;  %5863 = vmatmul.msk.f32.gmra.mxu1 %vm2259_vm1, %v11000_v42  ;;  %v11003_v10 = vmax.f32 %v8160_v21, 0.0  ;;  %v11004_v42 = vmax.f32 %v8163_v14, 0.0  ;;  %v8493_v12 = vpop.f32.mrf.mxu3  ;;  %v2409_v21 = vpop.f32.mrf.mxu2 }
 0x3b4   :  { %v8469_v50 = vpop.f32.mrf.mxu0  ;;  %v8471_v13 = vpop.f32.mrf.mxu1 }
 0x3b7   :  { %2680 = vmatmul.f32.gmra.mxu0 %v11001_v0  ;;  %5864 = vmatmul.msk.f32.gmra.mxu1 %vm2259_vm1, %v11002_v27  ;;  %v11005_v0 = vmax.f32 %v8189_v33, 0.0  ;;  %v2522_v27 = vpop.f32.mrf.mxu3  ;;  %v2412_v33 = vpop.f32.mrf.mxu2 }
 0x3bc   :  { %v8482_v2 = vpop.f32.mrf.mxu0  ;;  %v8484_v48 = vpop.f32.mrf.mxu1 }
 0x3bf   :  { %2683 = vmatmul.f32.gmra.mxu0 %v11003_v10  ;;  %5865 = vmatmul.msk.f32.gmra.mxu1 %vm2259_vm1, %v11004_v42  ;;  %v11006_v42 = vmax.f32 %v8215_v18, 0.0 }
 0x3c4   :  { %v8495_v19 = vpop.f32.mrf.mxu0  ;;  %v8497_v25 = vpop.f32.mrf.mxu1 }
 0x3c7   :  { %2686 = vmatmul.f32.gmra.mxu0 %v2218_v20  ;;  %5866 = vmatmul.msk.f32.gmra.mxu1 %vm2259_vm1, %v11005_v0  ;;  %v2525_v20 = vpop.f32.mrf.mxu3  ;;  %v11007_v0 = vmax.f32 %v8241_v55, 0.0 }
 0x3cc   :  { %v8504_v14 = vpop.f32.mrf.mxu0  ;;  %v8506_v10 = vpop.f32.mrf.mxu1 }
 0x3cf   :  { %2689 = vmatmul.f32.gmra.mxu0 %v2220_v1  ;;  %5867 = vmatmul.msk.f32.gmra.mxu1 %vm2259_vm1, %v11006_v42  ;;  %v2415_v1 = vpop.f32.mrf.mxu2  ;;  %v2528_v23 = vpop.f32.mrf.mxu3 }
 0x3d4   :  { %v8513_v29 = vpop.f32.mrf.mxu0  ;;  %v8515_v54 = vpop.f32.mrf.mxu1 }
 0x3d7   :  { %2692 = vmatmul.f32.gmra.mxu0 %v2222_v37  ;;  %5868 = vmatmul.msk.f32.gmra.mxu1 %vm2259_vm1, %v11007_v0  ;;  %v2418_v45 = vpop.f32.mrf.mxu2  ;;  %v2531_v55 = vpop.f32.mrf.mxu3 }
 0x3dc   :  { %v2648_v53 = vpop.f32.mrf.mxu0  ;;  %v2761_v11 = vpop.f32.mrf.mxu1 }
 0x3df   :  { %2695 = vmatmul.f32.gmra.mxu0 %v2224_v6  ;;  %5869 = vmatmul.msk.f32.gmra.mxu1 %vm2259_vm1, %v2225_v8  ;;  %v8537_v62 = vpop.f32.mrf.mxu2  ;;  %v8539_v28 = vpop.f32.mrf.mxu3 }
 0x3e0   :  { %11008 = vst [vmem:[#allocation76_spill] sm:$0xff] %v8537_v62 }
 0x3e1   :  { %11009 = vst [vmem:[#allocation77_spill] sm:$0xff] %v8539_v28  ;;  %v11018_v28 = vmax.f32 %v8387_v63, 0.0 }
 0x3e4   :  { %v2651_v18 = vpop.f32.mrf.mxu0  ;;  %v2764_v42 = vpop.f32.mrf.mxu1 }
 0x3e7   :  { %2698 = vmatmul.f32.gmra.mxu0 %v2226_v30  ;;  %5870 = vmatmul.msk.f32.gmra.mxu1 %vm2259_vm1, %v2227_v16  ;;  %v8546_v30 = vpop.f32.mrf.mxu2  ;;  %v8548_v32 = vpop.f32.mrf.mxu3 }
 0x3e8   :  { %11011 = vst [vmem:[#allocation12_spill] sm:$0xff] %v8546_v30  ;;  %v2529_v30 = vadd.f32 %v2528_v23, %v2415_v1  ;;  %v2523_v23 = vadd.f32 %v2522_v27, %v2409_v21  ;;  %v2514_v21 = vadd.f32 %v8462_v44, %v8460_v4  ;;  %v2759_v27 = vadd.f32 %v8515_v54, %v8513_v29 }
 0x3e9   :  { %11012 = vst [vmem:[#allocation48_spill] sm:$0xff] %v8548_v32  ;;  %v2753_v29 = vadd.f32 %v8497_v25, %v8495_v19  ;;  %v2744_v54 = vadd.f32 %v8458_v22, %v8456_v38  ;;  %v11029_v38 = vld [vmem:[#allocation46_spill] sm:$0xff]  ;;  %v11030_v22 = vld [vmem:[#allocation47_spill] sm:$0xff] }
 0x3ec   :  { %v2654_v37 = vpop.f32.mrf.mxu0  ;;  %v2767_v0 = vpop.f32.mrf.mxu1 }
 0x3ed   :  { %v2768_v1 = vadd.f32 %v2767_v0, %v2654_v37  ;;  %v11031_v0 = vld [vmem:[#allocation10_spill] sm:$0xff] }
 0x3ef   :  { %2701 = vmatmul.f32.gmra.mxu0 %v2228_v5  ;;  %5871 = vmatmul.msk.f32.gmra.mxu1 %vm2259_vm1, %v2229_v24  ;;  %v11014_v24 = vmax.f32 %v8363_v7, 0.0  ;;  %v8557_v43 = vpop.f32.mrf.mxu3 }
 0x3f0   :  { %11016 = vst [vmem:[#allocation49_spill] sm:$0xff] %v8557_v43  ;;  %v11020_v43 = vmax.f32 %v8411_v9, 0.0  ;;  %v2520_v9 = vadd.f32 %v8493_v12, %v8491_v39  ;;  %v2511_v39 = vadd.f32 %v8445_v40, %v8443_v56  ;;  %v2750_v56 = vadd.f32 %v8484_v48, %v8482_v2  ;;  %v11028_v2 = vld [vmem:[#allocation11_spill] sm:$0xff] }
 0x3f2   :  { %v2838_v44 = vmax.f32 %v2511_v39, %v2759_v27 }
 0x3f4   :  { %v2657_v8 = vpop.f32.mrf.mxu0  ;;  %v2770_v6 = vpop.f32.mrf.mxu1 }
 0x3f7   :  { %2704 = vmatmul.f32.gmra.mxu0 %v2230_v52  ;;  %5872 = vmatmul.msk.f32.gmra.mxu1 %vm2259_vm1, %v11010_v26  ;;  %v8555_v52 = vpop.f32.mrf.mxu2  ;;  %v11017_v26 = vmax.f32 %v8384_v49, 0.0  ;;  %v2526_v49 = vadd.f32 %v2525_v20, %v2412_v33  ;;  %v2765_v33 = vadd.f32 %v2764_v42, %v2651_v18 }
 0x3f8   :  { %11015 = vst [vmem:[#allocation13_spill] sm:$0xff] %v8555_v52  ;;  %v11019_v52 = vmax.f32 %v8408_v17, 0.0 }
 0x3fc   :  { %v2660_v15 = vpop.f32.mrf.mxu0  ;;  %v2773_v16 = vpop.f32.mrf.mxu1 }
 0x3ff   :  { %2707 = vmatmul.f32.gmra.mxu0 %v11013_v57  ;;  %5873 = vmatmul.msk.f32.gmra.mxu1 %vm2259_vm1, %v11014_v24  ;;  %v2532_v57 = vadd.f32 %v2531_v55, %v2418_v45  ;;  %v2774_v24 = vadd.f32 %v2773_v16, %v2660_v15  ;;  %v8571_v63 = vpop.f32.mrf.mxu2  ;;  %v2841_v15 = vmax.f32 %v2520_v9, %v2768_v1 }
 0x401   :  { %v2843_v55 = vmax.f32 %v2526_v49, %v2774_v24 }
 0x404   :  { %v2663_v5 = vpop.f32.mrf.mxu0  ;;  %v2776_v3 = vpop.f32.mrf.mxu1 }
 0x405   :  { %v2777_v32 = vadd.f32 %v2776_v3, %v2663_v5  ;;  %v11033_v5 = vld [vmem:[#allocation45_spill] sm:$0xff] }
 0x407   :  { %2710 = vmatmul.f32.gmra.mxu0 %v11017_v26  ;;  %5874 = vmatmul.msk.f32.gmra.mxu1 %vm2259_vm1, %v11018_v28  ;;  %v8573_v28 = vpop.f32.mrf.mxu3  ;;  %v2771_v26 = vadd.f32 %v2770_v6, %v2657_v8  ;;  %v2844_v45 = vmax.f32 %v2529_v30, %v2777_v32  ;;  %v2517_v8 = vadd.f32 %v8475_v59, %v8473_v60  ;;  %v8590_v12 = vpop.f32.mrf.mxu2 }
 0x408   :  { %11021 = vst [vmem:[#allocation80_spill] sm:$0xff] %v8573_v28  ;;  %v2762_v6 = vadd.f32 %v2761_v11, %v2648_v53  ;;  %v2756_v53 = vadd.f32 %v8506_v10, %v8504_v14  ;;  %v2747_v14 = vadd.f32 %v8471_v13, %v8469_v50  ;;  %v2836_v10 = vmax.f32 %v8217_v31, %v2753_v29 }
 0x409   :  { %v2842_v20 = vmax.f32 %v2523_v23, %v2771_v26  ;;  %v2840_v37 = vmax.f32 %v2517_v8, %v2765_v33  ;;  %v2835_v11 = vmax.f32 %v8191_v46, %v2750_v56  ;;  %v2738_v31 = vadd.f32 %v8436_v36, %v8434_v35 }
 0x40a   :  { %v2839_v60 = vmax.f32 %v2514_v21, %v2762_v6  ;;  %v2837_v40 = vmax.f32 %v8243_v34, %v2756_v53  ;;  %v2741_v34 = vadd.f32 %v8449_v41, %v8447_v58  ;;  %v2834_v48 = vmax.f32 %v11028_v2, %v2747_v14  ;;  %v11032_v58 = vld [vmem:[#allocation71_spill] sm:$0xff]  ;;  %v2862_v21 = vld [vmem:[%s10693_s3] sm:$0xff]  ;;  %v2868_v2 = vld [vmem:[%s10693_s3 + $0x30] sm:$0xff] }
 0x40b   :  { %v2833_v46 = vmax.f32 %v11029_v38, %v2744_v54  ;;  %v2735_v13 = vadd.f32 %v11030_v22, %v8425_v51  ;;  %v2831_v41 = vmax.f32 %v11032_v58, %v2738_v31  ;;  %v2866_v14 = vld [vmem:[%s10693_s3 + $0x20] sm:$0xff] }
 0x40c   :  { %v2666_v62 = vpop.f32.mrf.mxu0  ;;  %v2779_v47 = vpop.f32.mrf.mxu1  ;;  %v2832_v16 = vmax.f32 %v11031_v0, %v2741_v34  ;;  %v2870_v22 = vld [vmem:[%s10693_s3 + $0x40] sm:$0xff] }
 0x40d   :  { %v2780_v7 = vadd.f32 %v2779_v47, %v2666_v62  ;;  %v2830_v3 = vmax.f32 %v11033_v5, %v2735_v13 }
 0x40f   :  { %v8564_v61 = vmax.f32 %v2532_v57, %v2780_v7  ;;  %2713 = vmatmul.f32.gmra.mxu0 %v11019_v52  ;;  %5875 = vmatmul.msk.f32.gmra.mxu1 %vm2259_vm1, %v11020_v43  ;;  %v8592_v18 = vpop.f32.mrf.mxu3  ;;  %v8618_v42 = vpop.f32.mrf.mxu2 }
 0x411   :  { %2910 = vmatpush.msrb.mxu2 %v8564_v61 }
 0x413   :  { %2911 = vmatpush.msrb.mxu2 %v2844_v45 }
 0x414   :  { %v8576_v62 = vpop.f32.mrf.mxu0  ;;  %v8578_v17 = vpop.f32.mrf.mxu1 }
 0x415   :  { %11022 = vst [vmem:[#allocation81_spill] sm:$0xff] %v8576_v62  ;;  %2912 = vmatpush.msrb.mxu2 %v2843_v55 }
 0x416   :  { %11023 = vst [vmem:[#allocation90_spill] sm:$0xff] %v8578_v17 }
 0x417   :  { %2913 = vmatpush.msrb.mxu2 %v2842_v20  ;;  %v8620_v50 = vpop.f32.mrf.mxu3  ;;  %v8634_v35 = vpop.f32.mrf.mxu2 }
 0x419   :  { %2914 = vmatpush.msrb.mxu2 %v2841_v15 }
 0x41b   :  { %2915 = vmatpush.msrb.mxu2 %v2840_v37 }
 0x41c   :  { %v8596_v59 = vpop.f32.mrf.mxu0  ;;  %v8598_v4 = vpop.f32.mrf.mxu1 }
 0x41d   :  { %11024 = vst [vmem:[#allocation14_spill] sm:$0xff] %v8596_v59  ;;  %2916 = vmatpush.msrb.mxu2 %v2839_v60 }
 0x41e   :  { %11025 = vst [vmem:[#allocation50_spill] sm:$0xff] %v8598_v4 }
 0x41f   :  { %2917 = vmatpush.msrb.mxu2 %v2838_v44  ;;  %v8636_v36 = vpop.f32.mrf.mxu3  ;;  %v8643_v43 = vpop.f32.mrf.mxu2 }
 0x421   :  { %2918 = vmatpush.msrb.mxu2 %v2837_v40 }
 0x423   :  { %2919 = vmatpush.msrb.mxu2 %v2836_v10 }
 0x424   :  { %v8611_v19 = vpop.f32.mrf.mxu0  ;;  %v8613_v25 = vpop.f32.mrf.mxu1 }
 0x425   :  { %11026 = vst [vmem:[#allocation15_spill] sm:$0xff] %v8611_v19  ;;  %2920 = vmatpush.msrb.mxu2 %v2835_v11 }
 0x426   :  { %11027 = vst [vmem:[#allocation51_spill] sm:$0xff] %v8613_v25 }
 0x427   :  { %2921 = vmatpush.msrb.mxu2 %v2834_v48  ;;  %v8645_v47 = vpop.f32.mrf.mxu3 }
 0x429   :  { %2922 = vmatpush.msrb.mxu2 %v2833_v46 }
 0x42b   :  { %2923 = vmatpush.msrb.mxu2 %v2832_v16 }
 0x42c   :  { %v8629_v30 = vpop.f32.mrf.mxu0  ;;  %v8631_v32 = vpop.f32.mrf.mxu1 }
 0x42d   :  { %2924 = vmatpush.msrb.mxu2 %v2831_v41 }
 0x42f   :  { %2925 = vmatpush.msrb.mxu2 %v2830_v3  ;;  %v8653_v24 = vpop.f32.mrf.mxu3 }
 0x430   :  { %2926 = vmatmul.f32.vlgmr.msrb.gmra.mxu2 %v2862_v21 }
 0x431   :  { %3137 = vmatpush.msra.mxu2 %v8564_v61  ;;  %v8651_v61 = vpop.f32.mrf.mxu2 }
 0x433   :  { %3138 = vmatpush.msra.mxu2 %v2844_v45 }
 0x434   :  { %v8639_v51 = vpop.f32.mrf.mxu0  ;;  %v8641_v52 = vpop.f32.mrf.mxu1 }
 0x435   :  { %3139 = vmatpush.msra.mxu2 %v2843_v55 }
 0x437   :  { %3140 = vmatpush.msra.mxu2 %v2842_v20  ;;  %v8665_v55 = vpop.f32.mrf.mxu3 }
 0x439   :  { %3141 = vmatpush.msra.mxu2 %v2841_v15  ;;  %v8663_v1 = vpop.f32.mrf.mxu2 }
 0x43b   :  { %3142 = vmatpush.msra.mxu2 %v2840_v37 }
 0x43c   :  { %v8647_v57 = vpop.f32.mrf.mxu0  ;;  %v8649_v7 = vpop.f32.mrf.mxu1 }
 0x43d   :  { %3143 = vmatpush.msra.mxu2 %v2839_v60  ;;  %v2864_v60 = vld [vmem:[%s10693_s3 + $0x10] sm:$0xff] }
 0x43e   :  { %2929 = vmatmul.f32.gmra.mxu2 %v2864_v60 }
 0x43f   :  { %3144 = vmatpush.msra.mxu2 %v2838_v44  ;;  %v2564_v8 = vpop.f32.mrf.mxu3 }
 0x441   :  { %3145 = vmatpush.msra.mxu2 %v2837_v40  ;;  %v2451_v20 = vpop.f32.mrf.mxu2 }
 0x443   :  { %3146 = vmatpush.msra.mxu2 %v2836_v10 }
 0x444   :  { %v8655_v49 = vpop.f32.mrf.mxu0  ;;  %v8657_v26 = vpop.f32.mrf.mxu1 }
 0x445   :  { %3147 = vmatpush.msra.mxu2 %v2835_v11 }
 0x446   :  { %2932 = vmatmul.f32.gmra.mxu2 %v2866_v14 }
 0x447   :  { %3148 = vmatpush.msra.mxu2 %v2834_v48  ;;  %v2567_v37 = vpop.f32.mrf.mxu3 }
 0x449   :  { %3149 = vmatpush.msra.mxu2 %v2833_v46  ;;  %v2454_v27 = vpop.f32.mrf.mxu2 }
 0x44b   :  { %3150 = vmatpush.msra.mxu2 %v2832_v16  ;;  %v2872_v16 = vld [vmem:[%s10693_s3 + $0x50] sm:$0xff] }
 0x44c   :  { %v8659_v45 = vpop.f32.mrf.mxu0  ;;  %v8661_v23 = vpop.f32.mrf.mxu1 }
 0x44d   :  { %3151 = vmatpush.msra.mxu2 %v2831_v41 }
 0x44e   :  { %2935 = vmatmul.f32.gmra.mxu2 %v2868_v2 }
 0x44f   :  { %3152 = vmatpush.msra.mxu2 %v2830_v3  ;;  %v2570_v44 = vpop.f32.mrf.mxu3 }
 0x451   :  { %v2457_v29 = vpop.f32.mrf.mxu2 }
 0x452   :  { %v2571_v25 = vadd.f32 %v2570_v44, %v2457_v29  ;;  %v2559_v44 = vadd.f32 %v8653_v24, %v8651_v61  ;;  %v2553_v61 = vadd.f32 %v8636_v36, %v8634_v35  ;;  %v2798_v24 = vadd.f32 %v8649_v7, %v8647_v57  ;;  %v2878_v36 = vld [vmem:[%s10693_s3 + $0x80] sm:$0xff]  ;;  %v11035_v57 = vld [vmem:[#allocation15_spill] sm:$0xff] }
 0x454   :  { %v8667_v9 = vpop.f32.mrf.mxu0  ;;  %v8669_v33 = vpop.f32.mrf.mxu1 }
 0x456   :  { %2938 = vmatmul.f32.gmra.mxu2 %v2870_v22 }
 0x457   :  { %v2573_v34 = vpop.f32.mrf.mxu3 }
 0x459   :  { %v2460_v11 = vpop.f32.mrf.mxu2 }
 0x45a   :  { %v2574_v4 = vadd.f32 %v2573_v34, %v2460_v11  ;;  %v11046_v34 = vld [vmem:[#allocation77_spill] sm:$0xff] }
 0x45c   :  { %v2696_v6 = vpop.f32.mrf.mxu0  ;;  %v2809_v15 = vpop.f32.mrf.mxu1 }
 0x45e   :  { %2941 = vmatmul.f32.gmra.mxu2 %v2872_v16  ;;  %v2880_v16 = vld [vmem:[%s10693_s3 + $0x90] sm:$0xff] }
 0x45f   :  { %v2576_v46 = vpop.f32.mrf.mxu3 }
 0x461   :  { %v2463_v38 = vpop.f32.mrf.mxu2 }
 0x462   :  { %v2577_v2 = vadd.f32 %v2576_v46, %v2463_v38 }
 0x464   :  { %v2699_v39 = vpop.f32.mrf.mxu0  ;;  %v2812_v53 = vpop.f32.mrf.mxu1 }
 0x467   :  { %v2579_v41 = vpop.f32.mrf.mxu3 }
 0x469   :  { %v2466_v58 = vpop.f32.mrf.mxu2 }
 0x46a   :  { %v2580_v21 = vadd.f32 %v2579_v41, %v2466_v58  ;;  %v2863_v41 = vld [vmem:[%s10693_s3 + $0x8] sm:$0xff] }
 0x46c   :  { %v2702_v56 = vpop.f32.mrf.mxu0  ;;  %v2815_v40 = vpop.f32.mrf.mxu1 }
 0x46d   :  { %v2816_v19 = vadd.f32 %v2815_v40, %v2702_v56  ;;  %v11045_v40 = vld [vmem:[#allocation76_spill] sm:$0xff] }
 0x46e   :  { %v2535_v46 = vadd.f32 %v11046_v34, %v11045_v40  ;;  %v5888_v34 = vld [vmem:[%s10693_s3 + $0x1e0] sm:$0xff] }
 0x474   :  { %v2705_v10 = vpop.f32.mrf.mxu0  ;;  %v2818_v54 = vpop.f32.mrf.mxu1 }
 0x475   :  { %v2819_v22 = vadd.f32 %v2818_v54, %v2705_v10  ;;  %v2565_v10 = vadd.f32 %v2564_v8, %v2451_v20  ;;  %v2810_v54 = vadd.f32 %v2809_v15, %v2696_v6  ;;  %v11039_v20 = vld [vmem:[#allocation14_spill] sm:$0xff]  ;;  %v11041_v6 = vld [vmem:[#allocation12_spill] sm:$0xff] }
 0x476   :  { %v11042_v15 = vld [vmem:[#allocation48_spill] sm:$0xff] }
 0x477   :  { %v2858_v38 = vmax.f32 %v2571_v25, %v2819_v22  ;;  %v2804_v25 = vadd.f32 %v8661_v23, %v8659_v45  ;;  %v2550_v23 = vadd.f32 %v8620_v50, %v8618_v42  ;;  %v11034_v42 = vld [vmem:[#allocation80_spill] sm:$0xff]  ;;  %v2873_v22 = vld [vmem:[%s10693_s3 + $0x58] sm:$0xff] }
 0x478   :  { %v2544_v50 = vadd.f32 %v11034_v42, %v8571_v63  ;;  %v2893_v42 = vld [vmem:[%s10693_s3 + $0xf8] sm:$0xff] }
 0x479   :  { %v2851_v35 = vmax.f32 %v2550_v23, %v2798_v24  ;;  %v2887_v24 = vld [vmem:[%s10693_s3 + $0xc8] sm:$0xff]  ;;  %v2906_v23 = vld [vmem:[%s10693_s3 + $0x160] sm:$0xff] }
 0x47c   :  { %v2708_v48 = vpop.f32.mrf.mxu0  ;;  %v2821_v31 = vpop.f32.mrf.mxu1 }
 0x47d   :  { %v2822_v17 = vadd.f32 %v2821_v31, %v2708_v48  ;;  %v2568_v48 = vadd.f32 %v2567_v37, %v2454_v27  ;;  %v2813_v31 = vadd.f32 %v2812_v53, %v2699_v39  ;;  %v2538_v37 = vadd.f32 %v11042_v15, %v11041_v6  ;;  %v11043_v39 = vld [vmem:[#allocation81_spill] sm:$0xff]  ;;  %v11044_v53 = vld [vmem:[#allocation90_spill] sm:$0xff] }
 0x47e   :  { %v2783_v56 = vadd.f32 %v11044_v53, %v11043_v39  ;;  %v5884_v15 = vld [vmem:[%s10693_s3 + $0x1c0] sm:$0xff]  ;;  %v5886_v53 = vld [vmem:[%s10693_s3 + $0x1d0] sm:$0xff] }
 0x47f   :  { %v8694_v28 = vmax.f32 %v2574_v4, %v2822_v17  ;;  %v2857_v11 = vmax.f32 %v2568_v48, %v2816_v19  ;;  %v2562_v17 = vadd.f32 %v8665_v55, %v8663_v1  ;;  %v2807_v4 = vadd.f32 %v8669_v33, %v8667_v9  ;;  %v2876_v19 = vld [vmem:[%s10693_s3 + $0x70] sm:$0xff]  ;;  %v2875_v48 = vld [vmem:[%s10693_s3 + $0x68] sm:$0xff] }
 0x480   :  { %v2856_v29 = vmax.f32 %v2565_v10, %v2813_v31  ;;  %v2556_v1 = vadd.f32 %v8645_v47, %v8643_v43  ;;  %v2801_v55 = vadd.f32 %v8657_v26, %v8655_v49  ;;  %v2795_v33 = vadd.f32 %v8641_v52, %v8639_v51  ;;  %v11036_v51 = vld [vmem:[#allocation51_spill] sm:$0xff]  ;;  %v11037_v26 = vld [vmem:[#allocation13_spill] sm:$0xff]  ;;  %v2894_v31 = vld [vmem:[%s10693_s3 + $0x100] sm:$0xff] }
 0x481   :  { %v2855_v27 = vmax.f32 %v2562_v17, %v2810_v54  ;;  %v2854_v9 = vmax.f32 %v2559_v44, %v2807_v4  ;;  %v2547_v47 = vadd.f32 %v8592_v18, %v8590_v12  ;;  %v2792_v49 = vadd.f32 %v8631_v32, %v8629_v30  ;;  %v11038_v12 = vld [vmem:[#allocation49_spill] sm:$0xff]  ;;  %v11040_v30 = vld [vmem:[#allocation50_spill] sm:$0xff]  ;;  %v2896_v54 = vld [vmem:[%s10693_s3 + $0x110] sm:$0xff] }
 0x482   :  { %v2853_v45 = vmax.f32 %v2556_v1, %v2804_v25  ;;  %v2852_v43 = vmax.f32 %v2553_v61, %v2801_v55  ;;  %v2789_v52 = vadd.f32 %v11036_v51, %v11035_v57  ;;  %v2541_v18 = vadd.f32 %v11038_v12, %v11037_v26  ;;  %v2877_v10 = vld [vmem:[%s10693_s3 + $0x78] sm:$0xff]  ;;  %v2879_v17 = vld [vmem:[%s10693_s3 + $0x88] sm:$0xff]  ;;  %v2898_v4 = vld [vmem:[%s10693_s3 + $0x120] sm:$0xff] }
 0x483   :  { %v2850_v7 = vmax.f32 %v2547_v47, %v2795_v33  ;;  %v2786_v32 = vadd.f32 %v11040_v30, %v11039_v20  ;;  %v2849_v8 = vmax.f32 %v2544_v50, %v2792_v49  ;;  %v2846_v58 = vmax.f32 %v2535_v46, %v2783_v56  ;;  %v2900_v25 = vld [vmem:[%s10693_s3 + $0x130] sm:$0xff]  ;;  %v2902_v1 = vld [vmem:[%s10693_s3 + $0x140] sm:$0xff]  ;;  %v2885_v55 = vld [vmem:[%s10693_s3 + $0xb8] sm:$0xff] }
 0x484   :  { %v2711_v13 = vpop.f32.mrf.mxu0  ;;  %v2824_v0 = vpop.f32.mrf.mxu1  ;;  %v2848_v63 = vmax.f32 %v2541_v18, %v2789_v52  ;;  %v2904_v61 = vld [vmem:[%s10693_s3 + $0x150] sm:$0xff]  ;;  %v2889_v33 = vld [vmem:[%s10693_s3 + $0xd8] sm:$0xff]  ;;  %v2891_v49 = vld [vmem:[%s10693_s3 + $0xe8] sm:$0xff] }
 0x485   :  { %v2825_v60 = vadd.f32 %v2824_v0, %v2711_v13  ;;  %v2874_v13 = vld [vmem:[%s10693_s3 + $0x60] sm:$0xff]  ;;  %v2847_v0 = vmax.f32 %v2538_v37, %v2786_v32  ;;  %v2908_v47 = vld [vmem:[%s10693_s3 + $0x170] sm:$0xff]  ;;  %v2895_v51 = vld [vmem:[%s10693_s3 + $0x108] sm:$0xff] }
 0x486   :  { %2944 = vmatmul.f32.gmra.mxu2 %v2874_v13  ;;  %v2892_v13 = vld [vmem:[%s10693_s3 + $0xf0] sm:$0xff]  ;;  %v5880_v26 = vld [vmem:[%s10693_s3 + $0x1a0] sm:$0xff]  ;;  %v2897_v12 = vld [vmem:[%s10693_s3 + $0x118] sm:$0xff] }
 0x487   :  { %v8691_v59 = vmax.f32 %v2577_v2, %v2825_v60  ;;  %v2888_v60 = vld [vmem:[%s10693_s3 + $0xd0] sm:$0xff]  ;;  %v2890_v2 = vld [vmem:[%s10693_s3 + $0xe0] sm:$0xff]  ;;  %v2899_v32 = vld [vmem:[%s10693_s3 + $0x128] sm:$0xff] }
 0x488   :  { %v5878_v57 = vld [vmem:[%s10693_s3 + $0x190] sm:$0xff]  ;;  %v2901_v37 = vld [vmem:[%s10693_s3 + $0x138] sm:$0xff]  ;;  %v2903_v56 = vld [vmem:[%s10693_s3 + $0x148] sm:$0xff] }
 0x489   :  { %v5882_v30 = vld [vmem:[%s10693_s3 + $0x1b0] sm:$0xff]  ;;  %v2905_v46 = vld [vmem:[%s10693_s3 + $0x158] sm:$0xff] }
 0x48c   :  { %v2714_v5 = vpop.f32.mrf.mxu0  ;;  %v2827_v3 = vpop.f32.mrf.mxu1 }
 0x48d   :  { %v2828_v14 = vadd.f32 %v2827_v3, %v2714_v5  ;;  %v2882_v5 = vld [vmem:[%s10693_s3 + $0xa0] sm:$0xff]  ;;  %v2865_v3 = vld [vmem:[%s10693_s3 + $0x18] sm:$0xff] }
 0x48e   :  { %2947 = vmatmul.f32.gmra.mxu2 %v2876_v19 }
 0x48f   :  { %v8689_v62 = vmax.f32 %v2580_v21, %v2828_v14  ;;  %v2869_v21 = vld [vmem:[%s10693_s3 + $0x38] sm:$0xff]  ;;  %v2871_v14 = vld [vmem:[%s10693_s3 + $0x48] sm:$0xff] }
 0x491   :  { %2999 = vmatpush.msrb.mxu3 %v8689_v62 }
 0x493   :  { %3000 = vmatpush.msrb.mxu3 %v8691_v59 }
 0x495   :  { %3001 = vmatpush.msrb.mxu3 %v8694_v28 }
 0x496   :  { %2950 = vmatmul.f32.gmra.mxu2 %v2878_v36  ;;  %v5876_v36 = vld [vmem:[%s10693_s3 + $0x180] sm:$0xff] }
 0x497   :  { %3002 = vmatpush.msrb.mxu3 %v2858_v38 }
 0x499   :  { %3003 = vmatpush.msrb.mxu3 %v2857_v11 }
 0x49b   :  { %3004 = vmatpush.msrb.mxu3 %v2856_v29 }
 0x49d   :  { %3005 = vmatpush.msrb.mxu3 %v2855_v27 }
 0x49e   :  { %2953 = vmatmul.f32.gmra.mxu2 %v2880_v16 }
 0x49f   :  { %3006 = vmatpush.msrb.mxu3 %v2854_v9 }
 0x4a1   :  { %3007 = vmatpush.msrb.mxu3 %v2853_v45 }
 0x4a3   :  { %3008 = vmatpush.msrb.mxu3 %v2852_v43 }
 0x4a5   :  { %3009 = vmatpush.msrb.mxu3 %v2851_v35 }
 0x4a6   :  { %2956 = vmatmul.f32.gmra.mxu2 %v2882_v5 }
 0x4a7   :  { %3010 = vmatpush.msrb.mxu3 %v2850_v7 }
 0x4a9   :  { %3011 = vmatpush.msrb.mxu3 %v2849_v8 }
 0x4ab   :  { %3012 = vmatpush.msrb.mxu3 %v2848_v63 }
 0x4ad   :  { %3013 = vmatpush.msrb.mxu3 %v2847_v0 }
 0x4af   :  { %3014 = vmatpush.msrb.mxu3 %v2846_v58 }
 0x4b0   :  { %3015 = vmatmul.f32.vlgmr.msrb.gmra.mxu3 %v2863_v41  ;;  %v2907_v41 = vld [vmem:[%s10693_s3 + $0x168] sm:$0xff] }
 0x4b1   :  { %3226 = vmatpush.msra.mxu3 %v8689_v62  ;;  %v2884_v62 = vld [vmem:[%s10693_s3 + $0xb0] sm:$0xff] }
 0x4b2   :  { %2959 = vmatmul.f32.gmra.mxu2 %v2884_v62  ;;  %v5892_v62 = vld [vmem:[%s10693_s3 + $0x200] sm:$0xff] }
 0x4b3   :  { %3227 = vmatpush.msra.mxu3 %v8691_v59  ;;  %v2867_v59 = vld [vmem:[%s10693_s3 + $0x28] sm:$0xff] }
 0x4b5   :  { %3228 = vmatpush.msra.mxu3 %v8694_v28  ;;  %v2886_v28 = vld [vmem:[%s10693_s3 + $0xc0] sm:$0xff] }
 0x4b7   :  { %3229 = vmatpush.msra.mxu3 %v2858_v38  ;;  %v8793_v38 = vpop.f32.mrf.mxu2 }
 0x4b8   :  { %3018 = vmatmul.f32.gmra.mxu3 %v2865_v3 }
 0x4b9   :  { %3230 = vmatpush.msra.mxu3 %v2857_v11 }
 0x4ba   :  { %2962 = vmatmul.f32.gmra.mxu2 %v2886_v28 }
 0x4bb   :  { %3231 = vmatpush.msra.mxu3 %v2856_v29  ;;  %v2881_v29 = vld [vmem:[%s10693_s3 + $0x98] sm:$0xff] }
 0x4bd   :  { %3232 = vmatpush.msra.mxu3 %v2855_v27  ;;  %v2883_v27 = vld [vmem:[%s10693_s3 + $0xa8] sm:$0xff] }
 0x4bf   :  { %3233 = vmatpush.msra.mxu3 %v2854_v9 }
 0x4c0   :  { %3021 = vmatmul.f32.gmra.mxu3 %v2867_v59  ;;  %v2909_v59 = vld [vmem:[%s10693_s3 + $0x178] sm:$0xff] }
 0x4c1   :  { %3234 = vmatpush.msra.mxu3 %v2853_v45  ;;  %v8801_v11 = vpop.f32.mrf.mxu2 }
 0x4c2   :  { %2965 = vmatmul.f32.gmra.mxu2 %v2888_v60  ;;  %v5894_v60 = vld [vmem:[%s10693_s3 + $0x210] sm:$0xff] }
 0x4c3   :  { %3235 = vmatpush.msra.mxu3 %v2852_v43 }
 0x4c5   :  { %3236 = vmatpush.msra.mxu3 %v2851_v35 }
 0x4c7   :  { %3237 = vmatpush.msra.mxu3 %v2850_v7 }
 0x4c8   :  { %3024 = vmatmul.f32.gmra.mxu3 %v2869_v21 }
 0x4c9   :  { %3238 = vmatpush.msra.mxu3 %v2849_v8  ;;  %v8812_v44 = vpop.f32.mrf.mxu2 }
 0x4ca   :  { %2968 = vmatmul.f32.gmra.mxu2 %v2890_v2 }
 0x4cb   :  { %3239 = vmatpush.msra.mxu3 %v2848_v63 }
 0x4cd   :  { %3240 = vmatpush.msra.mxu3 %v2847_v0 }
 0x4cf   :  { %3241 = vmatpush.msra.mxu3 %v2846_v58  ;;  %v5890_v58 = vld [vmem:[%s10693_s3 + $0x1f0] sm:$0xff] }
 0x4d0   :  { %3027 = vmatmul.f32.gmra.mxu3 %v2871_v14  ;;  %v5877_v14 = vld [vmem:[%s10693_s3 + $0x188] sm:$0xff] }
 0x4d1   :  { %v8820_v19 = vpop.f32.mrf.mxu2 }
 0x4d2   :  { %2971 = vmatmul.f32.gmra.mxu2 %v2892_v13  ;;  %v5879_v13 = vld [vmem:[%s10693_s3 + $0x198] sm:$0xff] }
 0x4d8   :  { %3030 = vmatmul.f32.gmra.mxu3 %v2873_v22  ;;  %v5896_v22 = vld [vmem:[%s10693_s3 + $0x220] sm:$0xff] }
 0x4d9   :  { %v8828_v9 = vpop.f32.mrf.mxu2 }
 0x4da   :  { %2974 = vmatmul.f32.gmra.mxu2 %v2894_v31 }
 0x4e0   :  { %3033 = vmatmul.f32.gmra.mxu3 %v2875_v48 }
 0x4e1   :  { %v8836_v45 = vpop.f32.mrf.mxu2 }
 0x4e2   :  { %2977 = vmatmul.f32.gmra.mxu2 %v2896_v54  ;;  %v5881_v54 = vld [vmem:[%s10693_s3 + $0x1a8] sm:$0xff] }
 0x4e8   :  { %3036 = vmatmul.f32.gmra.mxu3 %v2877_v10  ;;  %v5898_v10 = vld [vmem:[%s10693_s3 + $0x230] sm:$0xff] }
 0x4ea   :  { %2980 = vmatmul.f32.gmra.mxu2 %v2898_v4 }
 0x4f0   :  { %3039 = vmatmul.f32.gmra.mxu3 %v2879_v17 }
 0x4f2   :  { %2983 = vmatmul.f32.gmra.mxu2 %v2900_v25  ;;  %v5883_v25 = vld [vmem:[%s10693_s3 + $0x1b8] sm:$0xff] }
 0x4f8   :  { %3042 = vmatmul.f32.gmra.mxu3 %v2881_v29  ;;  %v5900_v29 = vld [vmem:[%s10693_s3 + $0x240] sm:$0xff] }
 0x4fa   :  { %2986 = vmatmul.f32.gmra.mxu2 %v2902_v1 }
 0x500   :  { %3045 = vmatmul.f32.gmra.mxu3 %v2883_v27 }
 0x502   :  { %2989 = vmatmul.f32.gmra.mxu2 %v2904_v61  ;;  %v5885_v61 = vld [vmem:[%s10693_s3 + $0x1c8] sm:$0xff] }
 0x508   :  { %3048 = vmatmul.f32.gmra.mxu3 %v2885_v55  ;;  %v5902_v55 = vld [vmem:[%s10693_s3 + $0x250] sm:$0xff] }
 0x509   :  { %v8844_v43 = vpop.f32.mrf.mxu2 }
 0x50a   :  { %2992 = vmatmul.f32.gmra.mxu2 %v2906_v23 }
 0x510   :  { %3051 = vmatmul.f32.gmra.mxu3 %v2887_v24 }
 0x511   :  { %v8852_v35 = vpop.f32.mrf.mxu2 }
 0x512   :  { %2995 = vmatmul.f32.gmra.mxu2 %v2908_v47  ;;  %v5887_v47 = vld [vmem:[%s10693_s3 + $0x1d8] sm:$0xff] }
 0x518   :  { %3054 = vmatmul.f32.gmra.mxu3 %v2889_v33  ;;  %v5904_v33 = vld [vmem:[%s10693_s3 + $0x260] sm:$0xff] }
 0x519   :  { %v8860_v50 = vpop.f32.mrf.mxu2 }
 0x51a   :  { %3153 = vmatmul.f32.vlgmr.msra.gmra.mxu2 %v5876_v36  ;;  %v5906_v36 = vld [vmem:[%s10693_s3 + $0x270] sm:$0xff] }
 0x520   :  { %3057 = vmatmul.f32.gmra.mxu3 %v2891_v49 }
 0x521   :  { %v8868_v52 = vpop.f32.mrf.mxu2 }
 0x522   :  { %3156 = vmatmul.f32.gmra.mxu2 %v5878_v57 }
 0x528   :  { %3060 = vmatmul.f32.gmra.mxu3 %v2893_v42  ;;  %v5889_v42 = vld [vmem:[%s10693_s3 + $0x1e8] sm:$0xff] }
 0x529   :  { %v8878_v18 = vpop.f32.mrf.mxu2 }
 0x52a   :  { %3159 = vmatmul.f32.gmra.mxu2 %v5880_v26  ;;  %v5908_v26 = vld [vmem:[%s10693_s3 + $0x280] sm:$0xff] }
 0x530   :  { %3063 = vmatmul.f32.gmra.mxu3 %v2895_v51 }
 0x532   :  { %3162 = vmatmul.f32.gmra.mxu2 %v5882_v30 }
 0x533   :  { %v8870_v7 = vpop.f32.mrf.mxu3 }
 0x535   :  { %v8890_v6 = vpop.f32.mrf.mxu2 }
 0x538   :  { %3066 = vmatmul.f32.gmra.mxu3 %v2897_v12  ;;  %v5891_v12 = vld [vmem:[%s10693_s3 + $0x1f8] sm:$0xff] }
 0x53a   :  { %3165 = vmatmul.f32.gmra.mxu2 %v5884_v15  ;;  %v5910_v15 = vld [vmem:[%s10693_s3 + $0x290] sm:$0xff] }
 0x53b   :  { %v8880_v20 = vpop.f32.mrf.mxu3 }
 0x53d   :  { %v8906_v63 = vpop.f32.mrf.mxu2 }
 0x540   :  { %3069 = vmatmul.f32.gmra.mxu3 %v2899_v32 }
 0x542   :  { %3168 = vmatmul.f32.gmra.mxu2 %v5886_v53 }
 0x543   :  { %v8888_v8 = vpop.f32.mrf.mxu3 }
 0x545   :  { %v8916_v0 = vpop.f32.mrf.mxu2 }
 0x548   :  { %3072 = vmatmul.f32.gmra.mxu3 %v2901_v37  ;;  %v5893_v37 = vld [vmem:[%s10693_s3 + $0x208] sm:$0xff] }
 0x54a   :  { %3171 = vmatmul.f32.gmra.mxu2 %v5888_v34  ;;  %v5912_v34 = vld [vmem:[%s10693_s3 + $0x2a0] sm:$0xff] }
 0x54b   :  { %v8898_v39 = vpop.f32.mrf.mxu3 }
 0x54d   :  { %v8926_v5 = vpop.f32.mrf.mxu2 }
 0x550   :  { %3075 = vmatmul.f32.gmra.mxu3 %v2903_v56 }
 0x552   :  { %3174 = vmatmul.f32.gmra.mxu2 %v5890_v58 }
 0x553   :  { %v8908_v40 = vpop.f32.mrf.mxu3 }
 0x555   :  { %v8938_v21 = vpop.f32.mrf.mxu2 }
 0x558   :  { %3078 = vmatmul.f32.gmra.mxu3 %v2905_v46  ;;  %v5895_v46 = vld [vmem:[%s10693_s3 + $0x218] sm:$0xff] }
 0x55a   :  { %3177 = vmatmul.f32.gmra.mxu2 %v5892_v62  ;;  %v5914_v62 = vld [vmem:[%s10693_s3 + $0x2b0] sm:$0xff] }
 0x55b   :  { %v8918_v16 = vpop.f32.mrf.mxu3 }
 0x55d   :  { %v8954_v48 = vpop.f32.mrf.mxu2 }
 0x560   :  { %3081 = vmatmul.f32.gmra.mxu3 %v2907_v41 }
 0x562   :  { %3180 = vmatmul.f32.gmra.mxu2 %v5894_v60 }
 0x563   :  { %v8928_v3 = vpop.f32.mrf.mxu3 }
 0x565   :  { %v8964_v17 = vpop.f32.mrf.mxu2 }
 0x568   :  { %3084 = vmatmul.f32.gmra.mxu3 %v2909_v59  ;;  %v5897_v59 = vld [vmem:[%s10693_s3 + $0x228] sm:$0xff] }
 0x56a   :  { %3183 = vmatmul.f32.gmra.mxu2 %v5896_v22 }
 0x56b   :  { %v8936_v28 = vpop.f32.mrf.mxu3 }
 0x56d   :  { %v8974_v27 = vpop.f32.mrf.mxu2 }
 0x570   :  { %3242 = vmatmul.f32.vlgmr.msra.gmra.mxu3 %v5877_v14  ;;  %v5916_v14 = vld [vmem:[%s10693_s3 + $0x2c0] sm:$0xff] }
 0x572   :  { %3186 = vmatmul.f32.gmra.mxu2 %v5898_v10 }
 0x573   :  { %v8946_v2 = vpop.f32.mrf.mxu3 }
 0x575   :  { %v8986_v23 = vpop.f32.mrf.mxu2 }
 0x578   :  { %3245 = vmatmul.f32.gmra.mxu3 %v5879_v13  ;;  %v5899_v13 = vld [vmem:[%s10693_s3 + $0x238] sm:$0xff] }
 0x57a   :  { %3189 = vmatmul.f32.gmra.mxu2 %v5900_v29  ;;  %v5944_v29 = vld [vmem:[%s10695_s5 + $0x150] sm:$0xf] }
 0x57b   :  { %v8956_v31 = vpop.f32.mrf.mxu3  ;;  %5946 = vmatpush.msk.msra.mxu0 %vm3482_vm2, %v5944_v29  ;;  %v6026_v29 = vld [vmem:[%s10695_s5 + $0x1c0] sm:$0xff] }
 0x57d   :  { %v9002_v57 = vpop.f32.mrf.mxu2 }
 0x580   :  { %3248 = vmatmul.f32.gmra.mxu3 %v5881_v54  ;;  %v5918_v54 = vld [vmem:[%s10693_s3 + $0x2d0] sm:$0xff] }
 0x582   :  { %3192 = vmatmul.f32.gmra.mxu2 %v5902_v55  ;;  %v5901_v55 = vld [vmem:[%s10693_s3 + $0x248] sm:$0xff] }
 0x583   :  { %v8966_v4 = vpop.f32.mrf.mxu3 }
 0x585   :  { %v9012_v30 = vpop.f32.mrf.mxu2 }
 0x588   :  { %3251 = vmatmul.f32.gmra.mxu3 %v5883_v25  ;;  %v5945_v25 = vld [vmem:[%s10695_s5 + $0x158] sm:$0xf] }
 0x589   :  { %5963 = vmatpush.msk.msra.mxu1 %vm3482_vm2, %v5945_v25  ;;  %v5934_v25 = vld [vmem:[%s10695_s5 + $0x100] sm:$0xff] }
 0x58a   :  { %3195 = vmatmul.f32.gmra.mxu2 %v5904_v33 }
 0x58b   :  { %v8976_v1 = vpop.f32.mrf.mxu3 }
 0x58d   :  { %v9022_v53 = vpop.f32.mrf.mxu2 }
 0x590   :  { %3254 = vmatmul.f32.gmra.mxu3 %v5885_v61  ;;  %v6034_v61 = vld [vmem:[%s10695_s5 + $0x200] sm:$0xf] }
 0x591   :  { %6036 = vmatpush.msk.msrb.mxu2 %vm3482_vm2, %v6034_v61  ;;  %v6024_v61 = vld [vmem:[%s10695_s5 + $0x1b0] sm:$0xff] }
 0x592   :  { %3198 = vmatmul.f32.gmra.mxu2 %v5906_v36  ;;  %v5943_v36 = vld [vmem:[%s10695_s5 + $0x148] sm:$0xff] }
 0x593   :  { %v8984_v24 = vpop.f32.mrf.mxu3  ;;  %3560 = vmatpush.msra.mxu1 %v5943_v36  ;;  %v5932_v36 = vld [vmem:[%s10695_s5 + $0xf0] sm:$0xff] }
 0x595   :  { %v9034_v41 = vpop.f32.mrf.mxu2 }
 0x598   :  { %3257 = vmatmul.f32.gmra.mxu3 %v5887_v47  ;;  %v5942_v47 = vld [vmem:[%s10695_s5 + $0x140] sm:$0xff] }
 0x599   :  { %3495 = vmatpush.msra.mxu0 %v5942_v47 }
 0x59a   :  { %3201 = vmatmul.f32.gmra.mxu2 %v5908_v26  ;;  %v5940_v26 = vld [vmem:[%s10695_s5 + $0x130] sm:$0xff] }
 0x59b   :  { %v8994_v49 = vpop.f32.mrf.mxu3  ;;  %3496 = vmatpush.msra.mxu0 %v5940_v26  ;;  %v6022_v26 = vld [vmem:[%s10695_s5 + $0x1a0] sm:$0xff] }
 0x59d   :  { %v9047_v22 = vpop.f32.mrf.mxu2 }
 0x5a0   :  { %3260 = vmatmul.f32.gmra.mxu3 %v5889_v42  ;;  %v6032_v42 = vld [vmem:[%s10695_s5 + $0x1f0] sm:$0xff] }
 0x5a1   :  { %3895 = vmatpush.msrb.mxu2 %v6032_v42  ;;  %v5933_v42 = vld [vmem:[%s10695_s5 + $0xf8] sm:$0xff] }
 0x5a2   :  { %3204 = vmatmul.f32.gmra.mxu2 %v5910_v15  ;;  %v6030_v15 = vld [vmem:[%s10695_s5 + $0x1e0] sm:$0xff] }
 0x5a3   :  { %v9004_v51 = vpop.f32.mrf.mxu3  ;;  %3896 = vmatpush.msrb.mxu2 %v6030_v15  ;;  %v5922_v15 = vld [vmem:[%s10693_s3 + $0x2f0] sm:$0xff] }
 0x5a5   :  { %v9072_v33 = vpop.f32.mrf.mxu2 }
 0x5a8   :  { %3263 = vmatmul.f32.gmra.mxu3 %v5891_v12  ;;  %v5941_v12 = vld [vmem:[%s10695_s5 + $0x138] sm:$0xff] }
 0x5a9   :  { %3561 = vmatpush.msra.mxu1 %v5941_v12 }
 0x5aa   :  { %3207 = vmatmul.f32.gmra.mxu2 %v5912_v34 }
 0x5ab   :  { %v9014_v32 = vpop.f32.mrf.mxu3 }
 0x5ad   :  { %v9127_v47 = vpop.f32.mrf.mxu2 }
 0x5b0   :  { %3266 = vmatmul.f32.gmra.mxu3 %v5893_v37  ;;  %v5920_v37 = vld [vmem:[%s10693_s3 + $0x2e0] sm:$0xff] }
 0x5b2   :  { %3210 = vmatmul.f32.gmra.mxu2 %v5914_v62  ;;  %v5939_v62 = vld [vmem:[%s10695_s5 + $0x128] sm:$0xff] }
 0x5b3   :  { %v9024_v56 = vpop.f32.mrf.mxu3  ;;  %3562 = vmatpush.msra.mxu1 %v5939_v62  ;;  %v6020_v62 = vld [vmem:[%s10695_s5 + $0x190] sm:$0xff] }
 0x5b8   :  { %3269 = vmatmul.f32.gmra.mxu3 %v5895_v46  ;;  %v5938_v46 = vld [vmem:[%s10695_s5 + $0x120] sm:$0xff] }
 0x5b9   :  { %3497 = vmatpush.msra.mxu0 %v5938_v46  ;;  %v5931_v46 = vld [vmem:[%s10695_s5 + $0xe8] sm:$0xff] }
 0x5ba   :  { %3213 = vmatmul.f32.gmra.mxu2 %v5916_v14  ;;  %v5903_v14 = vld [vmem:[%s10693_s3 + $0x258] sm:$0xff] }
 0x5bb   :  { %v9032_v58 = vpop.f32.mrf.mxu3 }
 0x5c0   :  { %3272 = vmatmul.f32.gmra.mxu3 %v5897_v59  ;;  %v6028_v59 = vld [vmem:[%s10695_s5 + $0x1d0] sm:$0xff] }
 0x5c1   :  { %3897 = vmatpush.msrb.mxu2 %v6028_v59  ;;  %v5905_v59 = vld [vmem:[%s10693_s3 + $0x268] sm:$0xff] }
 0x5c2   :  { %3216 = vmatmul.f32.gmra.mxu2 %v5918_v54  ;;  %v5937_v54 = vld [vmem:[%s10695_s5 + $0x118] sm:$0xff] }
 0x5c3   :  { %v9042_v60 = vpop.f32.mrf.mxu3  ;;  %3563 = vmatpush.msra.mxu1 %v5937_v54  ;;  %3898 = vmatpush.msrb.mxu2 %v6026_v29  ;;  %v6018_v54 = vld [vmem:[%s10695_s5 + $0x180] sm:$0xff] }
 0x5c4   :  { %v5926_v29 = vld [vmem:[%s10695_s5 + $0xc0] sm:$0xff] }
 0x5c5   :  { %3899 = vmatpush.msrb.mxu2 %v6024_v61  ;;  %v5924_v61 = vld [vmem:[%s10695_s5 + $0xb0] sm:$0xff] }
 0x5c7   :  { %3900 = vmatpush.msrb.mxu2 %v6022_v26  ;;  %v9182_v26 = vpop.f32.mrf.mxu2 }
 0x5c8   :  { %3275 = vmatmul.f32.gmra.mxu3 %v5899_v13  ;;  %v5936_v13 = vld [vmem:[%s10695_s5 + $0x110] sm:$0xff] }
 0x5c9   :  { %3498 = vmatpush.msra.mxu0 %v5936_v13  ;;  %v5929_v13 = vld [vmem:[%s10695_s5 + $0xd8] sm:$0xff]  ;;  %3901 = vmatpush.msrb.mxu2 %v6020_v62 }
 0x5ca   :  { %3219 = vmatmul.f32.gmra.mxu2 %v5920_v37  ;;  %v5930_v37 = vld [vmem:[%s10695_s5 + $0xe0] sm:$0xff] }
 0x5cb   :  { %v9052_v10 = vpop.f32.mrf.mxu3  ;;  %3499 = vmatpush.msra.mxu0 %v5934_v25  ;;  %v5927_v25 = vld [vmem:[%s10695_s5 + $0xc8] sm:$0xff]  ;;  %3902 = vmatpush.msrb.mxu2 %v6018_v54 }
 0x5cd   :  { %3500 = vmatpush.msra.mxu0 %v5932_v36  ;;  %v5925_v36 = vld [vmem:[%s10695_s5 + $0xb8] sm:$0xff] }
 0x5cf   :  { %3501 = vmatpush.msra.mxu0 %v5930_v37  ;;  %v5907_v37 = vld [vmem:[%s10693_s3 + $0x278] sm:$0xff]  ;;  %v9191_v62 = vpop.f32.mrf.mxu2 }
 0x5d0   :  { %3278 = vmatmul.f32.gmra.mxu3 %v5901_v55  ;;  %v5935_v55 = vld [vmem:[%s10695_s5 + $0x108] sm:$0xff] }
 0x5d1   :  { %3564 = vmatpush.msra.mxu1 %v5935_v55  ;;  %v6016_v55 = vld [vmem:[%s10695_s5 + $0x170] sm:$0xff] }
 0x5d2   :  { %3222 = vmatmul.f32.gmra.mxu2 %v5922_v15 }
 0x5d3   :  { %v9095_v34 = vpop.f32.mrf.mxu3  ;;  %3565 = vmatpush.msra.mxu1 %v5933_v42  ;;  %v6014_v42 = vld [vmem:[%s10695_s5 + $0x160] sm:$0xff]  ;;  %3903 = vmatpush.msrb.mxu2 %v6016_v55 }
 0x5d5   :  { %3566 = vmatpush.msra.mxu1 %v5931_v46  ;;  %3904 = vmatpush.msrb.mxu2 %v6014_v42 }
 0x5d7   :  { %3567 = vmatpush.msra.mxu1 %v5929_v13  ;;  %v5911_v13 = vld [vmem:[%s10693_s3 + $0x298] sm:$0xff]  ;;  %v9199_v54 = vpop.f32.mrf.mxu2 }
 0x5d8   :  { %3281 = vmatmul.f32.gmra.mxu3 %v5903_v14  ;;  %v5928_v14 = vld [vmem:[%s10695_s5 + $0xd0] sm:$0xff] }
 0x5d9   :  { %3502 = vmatpush.msra.mxu0 %v5928_v14  ;;  %3568 = vmatpush.msra.mxu1 %v5927_v25  ;;  %v3017_v25 = vadd.f32 %v8870_v7, %v8793_v38  ;;  %v6033_v38 = vld [vmem:[%s10695_s5 + $0x1f8] sm:$0xff] }
 0x5db   :  { %v9138_v12 = vpop.f32.mrf.mxu3  ;;  %3503 = vmatpush.msra.mxu0 %v5926_v29  ;;  %3569 = vmatpush.msra.mxu1 %v5925_v36  ;;  %v3020_v36 = vadd.f32 %v8880_v20, %v8801_v11  ;;  %v6031_v11 = vld [vmem:[%s10695_s5 + $0x1e8] sm:$0xff] }
 0x5dd   :  { %3504 = vmatpush.msra.mxu0 %v5924_v61  ;;  %v6035_v61 = vld [vmem:[%s10695_s5 + $0x208] sm:$0xf] }
 0x5de   :  { %6053 = vmatpush.msk.msrb.mxu3 %vm3482_vm2, %v6035_v61 }
 0x5e0   :  { %3284 = vmatmul.f32.gmra.mxu3 %v5905_v59  ;;  %v5909_v59 = vld [vmem:[%s10693_s3 + $0x288] sm:$0xff] }
 0x5e1   :  { %3960 = vmatpush.msrb.mxu3 %v6033_v38  ;;  %v5915_v38 = vld [vmem:[%s10693_s3 + $0x2b8] sm:$0xff] }
 0x5e3   :  { %v9184_v15 = vpop.f32.mrf.mxu3  ;;  %3961 = vmatpush.msrb.mxu3 %v6031_v11 }
 0x5e8   :  { %3287 = vmatmul.f32.gmra.mxu3 %v5907_v37 }
 0x5eb   :  { %v9189_v46 = vpop.f32.mrf.mxu3 }
 0x5f0   :  { %3290 = vmatmul.f32.gmra.mxu3 %v5909_v59 }
 0x5f3   :  { %v3243_v14 = vpop.f32.mrf.mxu3 }
 0x5f4   :  { %v3244_v29 = vadd.f32 %v3243_v14, %v9047_v22  ;;  %v5913_v22 = vld [vmem:[%s10693_s3 + $0x2a8] sm:$0xff] }
 0x5f6   :  { %v9209_v42 = vmax.f32 %v3017_v25, %v3244_v29  ;;  %v6029_v29 = vld [vmem:[%s10695_s5 + $0x1d8] sm:$0xff] }
 0x5f7   :  { %3962 = vmatpush.msrb.mxu3 %v6029_v29 }
 0x5f8   :  { %3293 = vmatmul.f32.gmra.mxu3 %v5911_v13  ;;  %v3386_v20 = vrot.slane %v9209_v42, 1  ;;  %v3788_v59 = vrot.slane %v9209_v42, 2  ;;  %v9228_v13 = vpop.f32.mrf.mxu2 }
 0x5fb   :  { %v3246_v55 = vpop.f32.mrf.mxu3 }
 0x5fc   :  { %v3247_v37 = vadd.f32 %v3246_v55, %v9072_v33 }
 0x5fe   :  { %v9219_v7 = vmax.f32 %v3020_v36, %v3247_v37  ;;  %v6027_v36 = vld [vmem:[%s10695_s5 + $0x1c8] sm:$0xff]  ;;  %v3023_v37 = vadd.f32 %v8888_v8, %v8812_v44 }
 0x5ff   :  { %3963 = vmatpush.msrb.mxu3 %v6027_v36  ;;  %v6021_v36 = vld [vmem:[%s10695_s5 + $0x198] sm:$0xff] }
 0x600   :  { %3296 = vmatmul.f32.gmra.mxu3 %v5913_v22  ;;  %v3387_v33 = vrot.slane %v9219_v7, 1  ;;  %v3789_v14 = vrot.slane %v9219_v7, 2 }
 0x602   :  { %v3388_v25 = vsel %vm3385_vm3, %v3386_v20, %v3387_v33  ;;  %v9235_v55 = vsel %vm3787_vm5, %v3788_v59, %v3789_v14  ;;  %v6025_v20 = vld [vmem:[%s10695_s5 + $0x1b8] sm:$0xff] }
 0x603   :  { %v3249_v61 = vpop.f32.mrf.mxu3  ;;  %5947 = vmatmul.msk.f32.vlgmr.msra.gmra.mxu0 %vm3449_vm4, %v3388_v25  ;;  %5964 = vmatmul.msk.f32.vlgmr.msra.gmra.mxu1 %vm3449_vm4, %v3388_v25  ;;  %v3175_v25 = vpop.f32.mrf.mxu2 }
 0x604   :  { %v3250_v22 = vadd.f32 %v3249_v61, %v9127_v47  ;;  %6037 = vmatmul.msk.f32.vlgmr.msrb.gmra.mxu2 %vm3449_vm4, %v9235_v55  ;;  %3964 = vmatpush.msrb.mxu3 %v6025_v20  ;;  %v6023_v47 = vld [vmem:[%s10695_s5 + $0x1a8] sm:$0xff] }
 0x605   :  { %v6015_v20 = vld [vmem:[%s10695_s5 + $0x168] sm:$0xff] }
 0x606   :  { %v9250_v11 = vmax.f32 %v3023_v37, %v3250_v22  ;;  %3965 = vmatpush.msrb.mxu3 %v6023_v47  ;;  %v6017_v22 = vld [vmem:[%s10695_s5 + $0x178] sm:$0xff] }
 0x608   :  { %3299 = vmatmul.f32.gmra.mxu3 %v5915_v38  ;;  %v3389_v44 = vrot.slane %v9250_v11, 1  ;;  %v3791_v8 = vrot.slane %v9250_v11, 2  ;;  %v3026_v38 = vadd.f32 %v8898_v39, %v8820_v19 }
 0x609   :  { %3966 = vmatpush.msrb.mxu3 %v6021_v36 }
 0x60a   :  { %v3390_v59 = vsel %vm3385_vm3, %v3387_v33, %v3389_v44  ;;  %v9262_v29 = vsel %vm3787_vm5, %v3789_v14, %v3791_v8  ;;  %v5917_v33 = vld [vmem:[%s10693_s3 + $0x2c8] sm:$0xff]  ;;  %v3029_v8 = vadd.f32 %v8908_v40, %v8828_v9 }
 0x60b   :  { %v3252_v61 = vpop.f32.mrf.mxu3  ;;  %5948 = vmatmul.msk.f32.gmra.mxu0 %vm3449_vm4, %v3390_v59  ;;  %5965 = vmatmul.msk.f32.gmra.mxu1 %vm3449_vm4, %v3390_v59  ;;  %v6019_v14 = vld [vmem:[%s10695_s5 + $0x188] sm:$0xff]  ;;  %v3178_v59 = vpop.f32.mrf.mxu2 }
 0x60c   :  { %6038 = vmatmul.msk.f32.gmra.mxu2 %vm3449_vm4, %v9262_v29  ;;  %v3253_v37 = vadd.f32 %v3252_v61, %v9182_v26  ;;  %3967 = vmatpush.msrb.mxu3 %v6019_v14  ;;  %v5919_v61 = vld [vmem:[%s10693_s3 + $0x2d8] sm:$0xff] }
 0x60e   :  { %3968 = vmatpush.msrb.mxu3 %v6017_v22  ;;  %v9288_v47 = vmax.f32 %v3026_v38, %v3253_v37  ;;  %v3032_v37 = vadd.f32 %v8918_v16, %v8836_v45  ;;  %v5921_v38 = vld [vmem:[%s10693_s3 + $0x2e8] sm:$0xff] }
 0x610   :  { %3302 = vmatmul.f32.gmra.mxu3 %v5917_v33  ;;  %v3391_v39 = vrot.slane %v9288_v47, 1  ;;  %v3793_v33 = vrot.slane %v9288_v47, 2 }
 0x611   :  { %3969 = vmatpush.msrb.mxu3 %v6015_v20 }
 0x613   :  { %v3255_v44 = vpop.f32.mrf.mxu3 }
 0x614   :  { %v3256_v26 = vadd.f32 %v3255_v44, %v9191_v62  ;;  %v3181_v44 = vpop.f32.mrf.mxu2 }
 0x616   :  { %v9294_v19 = vmax.f32 %v3029_v8, %v3256_v26 }
 0x618   :  { %3305 = vmatmul.f32.gmra.mxu3 %v5919_v61  ;;  %v3392_v36 = vrot.slane %v9294_v19, 1  ;;  %v3794_v9 = vrot.slane %v9294_v19, 2 }
 0x61a   :  { %v3393_v40 = vsel %vm3385_vm3, %v3391_v39, %v3392_v36  ;;  %v3795_v62 = vsel %vm3787_vm5, %v3793_v33, %v3794_v9 }
 0x61b   :  { %v3258_v14 = vpop.f32.mrf.mxu3  ;;  %5949 = vmatmul.msk.f32.gmra.mxu0 %vm3449_vm4, %v3393_v40  ;;  %5966 = vmatmul.msk.f32.gmra.mxu1 %vm3449_vm4, %v3393_v40 }
 0x61c   :  { %v3259_v22 = vadd.f32 %v3258_v14, %v9199_v54  ;;  %6039 = vmatmul.msk.f32.gmra.mxu2 %vm3449_vm4, %v3795_v62  ;;  %v5923_v54 = vld [vmem:[%s10693_s3 + $0x2f8] sm:$0xff]  ;;  %v3184_v33 = vpop.f32.mrf.mxu2 }
 0x61e   :  { %v9311_v20 = vmax.f32 %v3032_v37, %v3259_v22 }
 0x620   :  { %3308 = vmatmul.f32.gmra.mxu3 %v5921_v38  ;;  %v3394_v8 = vrot.slane %v9311_v20, 1  ;;  %v3796_v26 = vrot.slane %v9311_v20, 2 }
 0x622   :  { %v3395_v61 = vsel %vm3385_vm3, %v3392_v36, %v3394_v8  ;;  %v3797_v45 = vsel %vm3787_vm5, %v3794_v9, %v3796_v26  ;;  %v3035_v36 = vadd.f32 %v8928_v3, %v8844_v43  ;;  %v3038_v9 = vadd.f32 %v8936_v28, %v8852_v35 }
 0x623   :  { %v3261_v16 = vpop.f32.mrf.mxu3  ;;  %5950 = vmatmul.msk.f32.gmra.mxu0 %vm3449_vm4, %v3395_v61  ;;  %5967 = vmatmul.msk.f32.gmra.mxu1 %vm3449_vm4, %v3395_v61 }
 0x624   :  { %6040 = vmatmul.msk.f32.gmra.mxu2 %vm3449_vm4, %v3797_v45  ;;  %v3262_v39 = vadd.f32 %v3261_v16, %v9228_v13  ;;  %v3187_v28 = vpop.f32.mrf.mxu2 }
 0x626   :  { %v9328_v14 = vmax.f32 %v3035_v36, %v3262_v39 }
 0x628   :  { %3311 = vmatmul.f32.gmra.mxu3 %v5923_v54  ;;  %v3396_v38 = vrot.slane %v9328_v14, 1  ;;  %v3798_v8 = vrot.slane %v9328_v14, 2 }
 0x62b   :  { %v3264_v40 = vpop.f32.mrf.mxu3 }
 0x62c   :  { %v3265_v37 = vadd.f32 %v3264_v40, %v3175_v25 }
 0x62e   :  { %v9330_v22 = vmax.f32 %v3038_v9, %v3265_v37  ;;  %v3047_v9 = vadd.f32 %v8966_v4, %v8878_v18 }
 0x630   :  { %6054 = vmatmul.msk.f32.vlgmr.msrb.gmra.mxu3 %vm3449_vm4, %v9235_v55  ;;  %v3397_v13 = vrot.slane %v9330_v22, 1  ;;  %v3799_v43 = vrot.slane %v9330_v22, 2  ;;  %v3041_v55 = vadd.f32 %v8946_v2, %v8860_v50  ;;  %v3190_v50 = vpop.f32.mrf.mxu2 }
 0x632   :  { %v3398_v3 = vsel %vm3385_vm3, %v3396_v38, %v3397_v13  ;;  %v3800_v35 = vsel %vm3787_vm5, %v3798_v8, %v3799_v43 }
 0x633   :  { %v3267_v26 = vpop.f32.mrf.mxu3  ;;  %5951 = vmatmul.msk.f32.gmra.mxu0 %vm3449_vm4, %v3398_v3  ;;  %5968 = vmatmul.msk.f32.gmra.mxu1 %vm3449_vm4, %v3398_v3 }
 0x634   :  { %v3268_v25 = vadd.f32 %v3267_v26, %v3178_v59  ;;  %6041 = vmatmul.msk.f32.gmra.mxu2 %vm3449_vm4, %v3800_v35 }
 0x636   :  { %v9345_v61 = vmax.f32 %v3041_v55, %v3268_v25 }
 0x638   :  { %6055 = vmatmul.msk.f32.gmra.mxu3 %vm3449_vm4, %v9262_v29  ;;  %v3399_v16 = vrot.slane %v9345_v61, 1  ;;  %v3801_v54 = vrot.slane %v9345_v61, 2  ;;  %v3044_v29 = vadd.f32 %v8956_v31, %v8868_v52  ;;  %v3193_v8 = vpop.f32.mrf.mxu2 }
 0x63a   :  { %v3400_v39 = vsel %vm3385_vm3, %v3397_v13, %v3399_v16  ;;  %v3802_v36 = vsel %vm3787_vm5, %v3799_v43, %v3801_v54 }
 0x63b   :  { %v3270_v40 = vpop.f32.mrf.mxu3  ;;  %5952 = vmatmul.msk.f32.gmra.mxu0 %vm3449_vm4, %v3400_v39  ;;  %5969 = vmatmul.msk.f32.gmra.mxu1 %vm3449_vm4, %v3400_v39 }
 0x63c   :  { %6042 = vmatmul.msk.f32.gmra.mxu2 %vm3449_vm4, %v3802_v36  ;;  %v3271_v2 = vadd.f32 %v3270_v40, %v3181_v44  ;;  %v3056_v40 = vadd.f32 %v8994_v49, %v8916_v0  ;;  %v3059_v49 = vadd.f32 %v9004_v51, %v8926_v5 }
 0x63e   :  { %v9361_v37 = vmax.f32 %v3044_v29, %v3271_v2 }
 0x640   :  { %6056 = vmatmul.msk.f32.gmra.mxu3 %vm3449_vm4, %v3795_v62  ;;  %v3401_v43 = vrot.slane %v9361_v37, 1  ;;  %v3803_v62 = vrot.slane %v9361_v37, 2  ;;  %v3196_v25 = vpop.f32.mrf.mxu2 }
 0x643   :  { %v3273_v59 = vpop.f32.mrf.mxu3 }
 0x644   :  { %v3274_v38 = vadd.f32 %v3273_v59, %v3184_v33 }
 0x646   :  { %v9363_v13 = vmax.f32 %v3047_v9, %v3274_v38 }
 0x648   :  { %6057 = vmatmul.msk.f32.gmra.mxu3 %vm3449_vm4, %v3797_v45  ;;  %v3402_v44 = vrot.slane %v9363_v13, 1  ;;  %v3804_v52 = vrot.slane %v9363_v13, 2  ;;  %v3050_v45 = vadd.f32 %v8976_v1, %v8890_v6  ;;  %v3053_v1 = vadd.f32 %v8984_v24, %v8906_v63 }
 0x64a   :  { %v3403_v31 = vsel %vm3385_vm3, %v3401_v43, %v3402_v44  ;;  %v3805_v18 = vsel %vm3787_vm5, %v3803_v62, %v3804_v52 }
 0x64b   :  { %v3276_v4 = vpop.f32.mrf.mxu3  ;;  %5953 = vmatmul.msk.f32.gmra.mxu0 %vm3449_vm4, %v3403_v31  ;;  %5970 = vmatmul.msk.f32.gmra.mxu1 %vm3449_vm4, %v3403_v31 }
 0x64c   :  { %v3277_v33 = vadd.f32 %v3276_v4, %v3187_v28  ;;  %6043 = vmatmul.msk.f32.gmra.mxu2 %vm3449_vm4, %v3805_v18 }
 0x64e   :  { %v9377_v3 = vmax.f32 %v3050_v45, %v3277_v33  ;;  %v3062_v45 = vadd.f32 %v9014_v32, %v8938_v21 }
 0x650   :  { %6058 = vmatmul.msk.f32.gmra.mxu3 %vm3449_vm4, %v3800_v35  ;;  %v3404_v26 = vrot.slane %v9377_v3, 1  ;;  %v3806_v55 = vrot.slane %v9377_v3, 2  ;;  %v3199_v35 = vpop.f32.mrf.mxu2 }
 0x652   :  { %v3405_v16 = vsel %vm3385_vm3, %v3402_v44, %v3404_v26  ;;  %v3807_v54 = vsel %vm3787_vm5, %v3804_v52, %v3806_v55  ;;  %v3065_v26 = vadd.f32 %v9024_v56, %v8954_v48 }
 0x653   :  { %v3279_v39 = vpop.f32.mrf.mxu3  ;;  %5954 = vmatmul.msk.f32.gmra.mxu0 %vm3449_vm4, %v3405_v16  ;;  %5971 = vmatmul.msk.f32.gmra.mxu1 %vm3449_vm4, %v3405_v16 }
 0x654   :  { %6044 = vmatmul.msk.f32.gmra.mxu2 %vm3449_vm4, %v3807_v54  ;;  %v3280_v6 = vadd.f32 %v3279_v39, %v3190_v50 }
 0x656   :  { %v9392_v2 = vmax.f32 %v3053_v1, %v3280_v6 }
 0x658   :  { %6059 = vmatmul.msk.f32.gmra.mxu3 %vm3449_vm4, %v3802_v36  ;;  %v3406_v9 = vrot.slane %v9392_v2, 1  ;;  %v3808_v36 = vrot.slane %v9392_v2, 2  ;;  %v3202_v43 = vpop.f32.mrf.mxu2 }
 0x65b   :  { %v3282_v28 = vpop.f32.mrf.mxu3 }
 0x65c   :  { %v3283_v29 = vadd.f32 %v3282_v28, %v3193_v8 }
 0x65e   :  { %v9394_v59 = vmax.f32 %v3056_v40, %v3283_v29 }
 0x660   :  { %6060 = vmatmul.msk.f32.gmra.mxu3 %vm3449_vm4, %v3805_v18  ;;  %v3407_v50 = vrot.slane %v9394_v59, 1  ;;  %v3809_v63 = vrot.slane %v9394_v59, 2  ;;  %v3205_v5 = vpop.f32.mrf.mxu2 }
 0x662   :  { %v3408_v24 = vsel %vm3385_vm3, %v3406_v9, %v3407_v50  ;;  %v3810_v38 = vsel %vm3787_vm5, %v3808_v36, %v3809_v63 }
 0x663   :  { %v3285_v0 = vpop.f32.mrf.mxu3  ;;  %5955 = vmatmul.msk.f32.gmra.mxu0 %vm3449_vm4, %v3408_v24  ;;  %5972 = vmatmul.msk.f32.gmra.mxu1 %vm3449_vm4, %v3408_v24 }
 0x664   :  { %v3286_v8 = vadd.f32 %v3285_v0, %v3196_v25  ;;  %6045 = vmatmul.msk.f32.gmra.mxu2 %vm3449_vm4, %v3810_v38 }
 0x666   :  { %v9408_v44 = vmax.f32 %v3059_v49, %v3286_v8  ;;  %v6147_v49 = vld [vmem:[%s10695_s5 + $0x368] sm:$0xf]  ;;  %v3357_v8 = vld [vmem:[%s10695_s5 + $0x90] sm:$0xff] }
 0x667   :  { %6165 = vmatpush.msk.msra.mxu3 %vm3482_vm2, %v6147_v49  ;;  %v3077_v49 = vadd.f32 %v9095_v34, %v9002_v57  ;;  %v6132_v57 = vld [vmem:[%s10695_s5 + $0x2f0] sm:$0xff] }
 0x668   :  { %6061 = vmatmul.msk.f32.gmra.mxu3 %vm3449_vm4, %v3807_v54  ;;  %v3409_v62 = vrot.slane %v9408_v44, 1  ;;  %v3811_v52 = vrot.slane %v9408_v44, 2  ;;  %v3208_v21 = vpop.f32.mrf.mxu2 }
 0x66a   :  { %v3410_v31 = vsel %vm3385_vm3, %v3407_v50, %v3409_v62  ;;  %v3812_v18 = vsel %vm3787_vm5, %v3809_v63, %v3811_v52  ;;  %v6144_v62 = vld [vmem:[%s10695_s5 + $0x350] sm:$0xff]  ;;  %v6145_v52 = vld [vmem:[%s10695_s5 + $0x358] sm:$0xff] }
 0x66b   :  { %v3288_v4 = vpop.f32.mrf.mxu3  ;;  %5956 = vmatmul.msk.f32.gmra.mxu0 %vm3449_vm4, %v3410_v31  ;;  %5973 = vmatmul.msk.f32.gmra.mxu1 %vm3449_vm4, %v3410_v31  ;;  %v3355_v31 = vld [vmem:[%s10695_s5 + $0x80] sm:$0xff] }
 0x66c   :  { %6046 = vmatmul.msk.f32.gmra.mxu2 %vm3449_vm4, %v3812_v18  ;;  %v3289_v51 = vadd.f32 %v3288_v4, %v3199_v35  ;;  %v3068_v35 = vadd.f32 %v9032_v58, %v8964_v17  ;;  %v3359_v17 = vld [vmem:[%s10695_s5 + $0xa0] sm:$0xf]  ;;  %v3360_v58 = vld [vmem:[%s10695_s5 + $0xa8] sm:$0xf]  ;;  %4487 = vmatpush.msra.mxu3 %v6145_v52  ;;  %v3346_v52 = vld [vmem:[%s10695_s5 + $0x38] sm:$0xff] }
 0x66d   :  { %5980 = vmatpush.msk.msrb.mxu0 %vm3482_vm2, %v3359_v17  ;;  %5997 = vmatpush.msk.msrb.mxu1 %vm3482_vm2, %v3360_v58  ;;  %v3356_v4 = vld [vmem:[%s10695_s5 + $0x88] sm:$0xff]  ;;  %v3347_v17 = vld [vmem:[%s10695_s5 + $0x40] sm:$0xff] }
 0x66e   :  { %v9423_v55 = vmax.f32 %v3062_v45, %v3289_v51  ;;  %v6143_v51 = vld [vmem:[%s10695_s5 + $0x348] sm:$0xff] }
 0x66f   :  { %3663 = vmatpush.msrb.mxu0 %v3357_v8  ;;  %4488 = vmatpush.msra.mxu3 %v6143_v51  ;;  %v6130_v51 = vld [vmem:[%s10695_s5 + $0x2e0] sm:$0xff] }
 0x670   :  { %6062 = vmatmul.msk.f32.gmra.mxu3 %vm3449_vm4, %v3810_v38  ;;  %v3411_v54 = vrot.slane %v9423_v55, 1  ;;  %v3813_v6 = vrot.slane %v9423_v55, 2  ;;  %v3211_v63 = vpop.f32.mrf.mxu2  ;;  %v6146_v38 = vld [vmem:[%s10695_s5 + $0x360] sm:$0xf] }
 0x671   :  { %6148 = vmatpush.msk.msra.mxu2 %vm3482_vm2, %v6146_v38  ;;  %3664 = vmatpush.msrb.mxu0 %v3355_v31  ;;  %v3348_v38 = vld [vmem:[%s10695_s5 + $0x48] sm:$0xff]  ;;  %v6133_v31 = vld [vmem:[%s10695_s5 + $0x2f8] sm:$0xff] }
 0x673   :  { %v3291_v33 = vpop.f32.mrf.mxu3  ;;  %4422 = vmatpush.msra.mxu2 %v6144_v62  ;;  %v3345_v62 = vld [vmem:[%s10695_s5 + $0x30] sm:$0xff] }
 0x674   :  { %v3292_v25 = vadd.f32 %v3291_v33, %v3202_v43  ;;  %v3358_v43 = vld [vmem:[%s10695_s5 + $0x98] sm:$0xff] }
 0x675   :  { %3728 = vmatpush.msrb.mxu1 %v3358_v43  ;;  %v6135_v43 = vld [vmem:[%s10695_s5 + $0x308] sm:$0xff] }
 0x676   :  { %v9425_v16 = vmax.f32 %v3065_v26, %v3292_v25  ;;  %v3353_v26 = vld [vmem:[%s10695_s5 + $0x70] sm:$0xff]  ;;  %v3354_v25 = vld [vmem:[%s10695_s5 + $0x78] sm:$0xff] }
 0x677   :  { %3729 = vmatpush.msrb.mxu1 %v3356_v4  ;;  %3665 = vmatpush.msrb.mxu0 %v3353_v26 }
 0x678   :  { %6063 = vmatmul.msk.f32.gmra.mxu3 %vm3449_vm4, %v3812_v18  ;;  %v3412_v39 = vrot.slane %v9425_v16, 1  ;;  %v3814_v1 = vrot.slane %v9425_v16, 2  ;;  %v3071_v18 = vadd.f32 %v9042_v60, %v8974_v27  ;;  %v3074_v60 = vadd.f32 %v9052_v10, %v8986_v23  ;;  %v6141_v23 = vld [vmem:[%s10695_s5 + $0x338] sm:$0xff] }
 0x679   :  { %3730 = vmatpush.msrb.mxu1 %v3354_v25  ;;  %4489 = vmatpush.msra.mxu3 %v6141_v23  ;;  %v6131_v25 = vld [vmem:[%s10695_s5 + $0x2e8] sm:$0xff]  ;;  %v3342_v23 = vld [vmem:[%s10695_s5 + $0x18] sm:$0xff] }
 0x67a   :  { %v3413_v32 = vsel %vm3385_vm3, %v3411_v54, %v3412_v39  ;;  %v3815_v48 = vsel %vm3787_vm5, %v3813_v6, %v3814_v1  ;;  %v6140_v54 = vld [vmem:[%s10695_s5 + $0x330] sm:$0xff]  ;;  %v3351_v6 = vld [vmem:[%s10695_s5 + $0x60] sm:$0xff] }
 0x67b   :  { %v3294_v56 = vpop.f32.mrf.mxu3  ;;  %5957 = vmatmul.msk.f32.gmra.mxu0 %vm3449_vm4, %v3413_v32  ;;  %5974 = vmatmul.msk.f32.gmra.mxu1 %vm3449_vm4, %v3413_v32 }
 0x67c   :  { %v3295_v28 = vadd.f32 %v3294_v56, %v3205_v5  ;;  %6047 = vmatmul.msk.f32.gmra.mxu2 %vm3449_vm4, %v3815_v48  ;;  %v6142_v5 = vld [vmem:[%s10695_s5 + $0x340] sm:$0xff]  ;;  %3666 = vmatpush.msrb.mxu0 %v3351_v6  ;;  %v6128_v6 = vld [vmem:[%s10695_s5 + $0x2d0] sm:$0xff] }
 0x67d   :  { %4423 = vmatpush.msra.mxu2 %v6142_v5  ;;  %v3344_v5 = vld [vmem:[%s10695_s5 + $0x28] sm:$0xff] }
 0x67e   :  { %v9439_v40 = vmax.f32 %v3068_v35, %v3295_v28 }
 0x67f   :  { %4424 = vmatpush.msra.mxu2 %v6140_v54  ;;  %v3341_v54 = vld [vmem:[%s10695_s5 + $0x10] sm:$0xff] }
 0x680   :  { %6064 = vmatmul.msk.f32.gmra.mxu3 %vm3449_vm4, %v3815_v48  ;;  %v3414_v29 = vrot.slane %v9439_v40, 1  ;;  %v3816_v9 = vrot.slane %v9439_v40, 2  ;;  %v6139_v48 = vld [vmem:[%s10695_s5 + $0x328] sm:$0xff] }
 0x681   :  { %4490 = vmatpush.msra.mxu3 %v6139_v48  ;;  %v6126_v48 = vld [vmem:[%s10695_s5 + $0x2c0] sm:$0xff] }
 0x682   :  { %v3415_v50 = vsel %vm3385_vm3, %v3412_v39, %v3414_v29  ;;  %v3817_v36 = vsel %vm3787_vm5, %v3814_v1, %v3816_v9  ;;  %v3214_v39 = vpop.f32.mrf.mxu2  ;;  %v3352_v1 = vld [vmem:[%s10695_s5 + $0x68] sm:$0xff]  ;;  %v3349_v29 = vld [vmem:[%s10695_s5 + $0x50] sm:$0xff]  ;;  %v3350_v9 = vld [vmem:[%s10695_s5 + $0x58] sm:$0xff] }
 0x683   :  { %v3297_v24 = vpop.f32.mrf.mxu3  ;;  %5958 = vmatmul.msk.f32.gmra.mxu0 %vm3449_vm4, %v3415_v50  ;;  %5975 = vmatmul.msk.f32.gmra.mxu1 %vm3449_vm4, %v3415_v50  ;;  %v6136_v50 = vld [vmem:[%s10695_s5 + $0x310] sm:$0xff] }
 0x684   :  { %6048 = vmatmul.msk.f32.gmra.mxu2 %vm3449_vm4, %v3817_v36  ;;  %v3298_v0 = vadd.f32 %v3297_v24, %v3208_v21  ;;  %v6138_v21 = vld [vmem:[%s10695_s5 + $0x320] sm:$0xff]  ;;  %3731 = vmatpush.msrb.mxu1 %v3352_v1  ;;  %v6137_v24 = vld [vmem:[%s10695_s5 + $0x318] sm:$0xff] }
 0x685   :  { %4425 = vmatpush.msra.mxu2 %v6138_v21  ;;  %3667 = vmatpush.msrb.mxu0 %v3349_v29  ;;  %v6129_v1 = vld [vmem:[%s10695_s5 + $0x2d8] sm:$0xff]  ;;  %v3339_v21 = vld [vmem:[%s10695_s5] sm:$0xff]  ;;  %v3080_v29 = vadd.f32 %v9138_v12, %v9012_v30  ;;  %v9630_v30 = vpop.f32.mrf.mxu1 }
 0x686   :  { %v9492_v45 = vmax.f32 %v3071_v18, %v3298_v0  ;;  %3732 = vmatpush.msrb.mxu1 %v3350_v9  ;;  %v6134_v0 = vld [vmem:[%s10695_s5 + $0x300] sm:$0xff]  ;;  %4491 = vmatpush.msra.mxu3 %v6137_v24 }
 0x687   :  { %4426 = vmatpush.msra.mxu2 %v6136_v50  ;;  %3668 = vmatpush.msrb.mxu0 %v3347_v17  ;;  %v3343_v18 = vld [vmem:[%s10695_s5 + $0x20] sm:$0xff]  ;;  %v3083_v50 = vadd.f32 %v9184_v15, %v9022_v53 }
 0x688   :  { %6065 = vmatmul.msk.f32.gmra.mxu3 %vm3449_vm4, %v3817_v36  ;;  %v3416_v32 = vrot.slane %v9492_v45, 1  ;;  %v3818_v35 = vrot.slane %v9492_v45, 2  ;;  %3733 = vmatpush.msrb.mxu1 %v3348_v38 }
 0x689   :  { %4427 = vmatpush.msra.mxu2 %v6134_v0  ;;  %4492 = vmatpush.msra.mxu3 %v6135_v43  ;;  %v3086_v43 = vadd.f32 %v9189_v46, %v9034_v41 }
 0x68a   :  { %v3217_v4 = vpop.f32.mrf.mxu2  ;;  %3669 = vmatpush.msrb.mxu0 %v3345_v62  ;;  %3734 = vmatpush.msrb.mxu1 %v3346_v52 }
 0x68b   :  { %v3300_v27 = vpop.f32.mrf.mxu3  ;;  %4428 = vmatpush.msra.mxu2 %v6132_v57  ;;  %4493 = vmatpush.msra.mxu3 %v6133_v31 }
 0x68c   :  { %v3301_v33 = vadd.f32 %v3300_v27, %v3211_v63  ;;  %3670 = vmatpush.msrb.mxu0 %v3343_v18  ;;  %3735 = vmatpush.msrb.mxu1 %v3344_v5  ;;  %v4316_v5 = vrot.slane %v9219_v7, 4 }
 0x68d   :  { %4429 = vmatpush.msra.mxu2 %v6130_v51  ;;  %4494 = vmatpush.msra.mxu3 %v6131_v25  ;;  %v9650_v46 = vpop.f32.mrf.mxu1  ;;  %v4315_v51 = vrot.slane %v9209_v42, 4 }
 0x68e   :  { %v9508_v10 = vmax.f32 %v3074_v60, %v3301_v33  ;;  %3671 = vmatpush.msrb.mxu0 %v3341_v54  ;;  %3736 = vmatpush.msrb.mxu1 %v3342_v23  ;;  %v4321_v23 = vrot.slane %v9294_v19, 4 }
 0x68f   :  { %4430 = vmatpush.msra.mxu2 %v6128_v6  ;;  %4495 = vmatpush.msra.mxu3 %v6129_v1  ;;  %v4320_v6 = vrot.slane %v9288_v47, 4 }
 0x690   :  { %v3417_v56 = vrot.slane %v9508_v10, 1  ;;  %v3819_v28 = vrot.slane %v9508_v10, 2  ;;  %3672 = vmatpush.msrb.mxu0 %v3339_v21 }
 0x691   :  { %4431 = vmatpush.msra.mxu2 %v6126_v48  ;;  %v4322_v1 = vsel %vm3482_vm2, %v4320_v6, %v4321_v23  ;;  %v4323_v48 = vrot.slane %v9311_v20, 4 }
 0x692   :  { %v3418_v36 = vsel %vm3385_vm3, %v3416_v32, %v3417_v56  ;;  %v3820_v63 = vsel %vm3787_vm5, %v3818_v35, %v3819_v28  ;;  %v3340_v32 = vld [vmem:[%s10695_s5 + $0x8] sm:$0xff] }
 0x693   :  { %v3303_v58 = vpop.f32.mrf.mxu3  ;;  %5959 = vmatmul.msk.f32.gmra.mxu0 %vm3449_vm4, %v3418_v36  ;;  %5976 = vmatmul.msk.f32.gmra.mxu1 %vm3449_vm4, %v3418_v36 }
 0x694   :  { %v3304_v8 = vadd.f32 %v3303_v58, %v3214_v39  ;;  %6049 = vmatmul.msk.f32.gmra.mxu2 %vm3449_vm4, %v3820_v63  ;;  %6066 = vmatmul.msk.f32.gmra.mxu3 %vm3449_vm4, %v3820_v63 }
 0x695   :  { %3737 = vmatpush.msrb.mxu1 %v3340_v32 }
 0x696   :  { %v9567_v34 = vmax.f32 %v3077_v49, %v3304_v8  ;;  %v9628_v49 = vpop.f32.mrf.mxu0 }
 0x698   :  { %v3419_v27 = vrot.slane %v9567_v34, 1  ;;  %v3821_v60 = vrot.slane %v9567_v34, 2 }
 0x69a   :  { %v3420_v33 = vsel %vm3385_vm3, %v3417_v56, %v3419_v27  ;;  %v3822_v26 = vsel %vm3787_vm5, %v3819_v28, %v3821_v60  ;;  %v6127_v56 = vld [vmem:[%s10695_s5 + $0x2c8] sm:$0xff]  ;;  %v3220_v28 = vpop.f32.mrf.mxu2  ;;  %v4317_v27 = vsel %vm3482_vm2, %v4315_v51, %v4316_v5  ;;  %v4336_v51 = vrot.slane %v9394_v59, 4 }
 0x69b   :  { %v3306_v39 = vpop.f32.mrf.mxu3  ;;  %5960 = vmatmul.msk.f32.gmra.mxu0 %vm3449_vm4, %v3420_v33  ;;  %5977 = vmatmul.msk.f32.gmra.mxu1 %vm3449_vm4, %v3420_v33  ;;  %v9663_v33 = vpop.f32.mrf.mxu1 }
 0x69c   :  { %6050 = vmatmul.msk.f32.gmra.mxu2 %vm3449_vm4, %v3822_v26  ;;  %6067 = vmatmul.msk.f32.gmra.mxu3 %vm3449_vm4, %v3822_v26  ;;  %v3307_v35 = vadd.f32 %v3306_v39, %v3217_v4  ;;  %v4318_v26 = vrot.slane %v9250_v11, 4 }
 0x69d   :  { %4496 = vmatpush.msra.mxu3 %v6127_v56  ;;  %v4324_v56 = vsel %vm3482_vm2, %v4321_v23, %v4323_v48 }
 0x69e   :  { %v9620_v36 = vmax.f32 %v3080_v29, %v3307_v35  ;;  %v9648_v41 = vpop.f32.mrf.mxu0  ;;  %v4319_v25 = vsel %vm3482_vm2, %v4316_v5, %v4318_v26  ;;  %v4326_v35 = vrot.slane %v9330_v22, 4 }
 0x6a0   :  { %v3421_v17 = vrot.slane %v9620_v36, 1  ;;  %v3823_v38 = vrot.slane %v9620_v36, 2 }
 0x6a2   :  { %v3223_v15 = vpop.f32.mrf.mxu2 }
 0x6a3   :  { %v3309_v9 = vpop.f32.mrf.mxu3  ;;  %v9677_v39 = vpop.f32.mrf.mxu1 }
 0x6a4   :  { %v3310_v63 = vadd.f32 %v3309_v9, %v3220_v28  ;;  %v4325_v9 = vrot.slane %v9328_v14, 4 }
 0x6a6   :  { %v9622_v24 = vmax.f32 %v3083_v50, %v3310_v63  ;;  %v9661_v60 = vpop.f32.mrf.mxu0  ;;  %v4327_v50 = vsel %vm3482_vm2, %v4325_v9, %v4326_v35  ;;  %v4328_v63 = vrot.slane %v9345_v61, 4 }
 0x6a8   :  { %v3422_v58 = vrot.slane %v9622_v24, 1  ;;  %v3824_v0 = vrot.slane %v9622_v24, 2 }
 0x6aa   :  { %v3423_v12 = vsel %vm3385_vm3, %v3421_v17, %v3422_v58  ;;  %v3825_v53 = vsel %vm3787_vm5, %v3823_v38, %v3824_v0  ;;  %v4329_v38 = vsel %vm3482_vm2, %v4326_v35, %v4328_v63  ;;  %v6091_v63 = vld [vmem:[%s10695_s5 + $0x2b8] sm:$0xf] }
 0x6ab   :  { %v3312_v8 = vpop.f32.mrf.mxu3  ;;  %5961 = vmatmul.msk.f32.gmra.mxu0 %vm3449_vm4, %v3423_v12  ;;  %5978 = vmatmul.msk.f32.gmra.mxu1 %vm3449_vm4, %v3423_v12  ;;  %v4330_v12 = vrot.slane %v9361_v37, 4 }
 0x6ac   :  { %v3313_v62 = vadd.f32 %v3312_v8, %v3223_v15  ;;  %6051 = vmatmul.msk.f32.gmra.mxu2 %vm3449_vm4, %v3825_v53  ;;  %6068 = vmatmul.msk.f32.gmra.mxu3 %vm3449_vm4, %v3825_v53 }
 0x6ad   :  { %6109 = vmatpush.msk.msra.mxu1 %vm3482_vm2, %v6091_v63 }
 0x6ae   :  { %v9640_v52 = vmax.f32 %v3086_v43, %v3313_v62  ;;  %v9675_v54 = vpop.f32.mrf.mxu0  ;;  %v4333_v62 = vrot.slane %v9377_v3, 4 }
 0x6b0   :  { %v3424_v57 = vrot.slane %v9640_v52, 1  ;;  %v3826_v31 = vrot.slane %v9640_v52, 2  ;;  %v9690_v32 = vpop.f32.mrf.mxu1 }
 0x6b2   :  { %v3425_v18 = vsel %vm3385_vm3, %v3422_v58, %v3424_v57  ;;  %v3827_v4 = vsel %vm3787_vm5, %v3824_v0, %v3826_v31  ;;  %v4331_v0 = vrot.slane %v9363_v13, 4 }
 0x6b3   :  { %5962 = vmatmul.msk.f32.gmra.mxu0 %vm3449_vm4, %v3425_v18  ;;  %5979 = vmatmul.msk.f32.gmra.mxu1 %vm3449_vm4, %v3425_v18  ;;  %v9738_v43 = vpop.f32.mrf.mxu3 }
 0x6b4   :  { %6052 = vmatmul.msk.f32.gmra.mxu2 %vm3449_vm4, %v3827_v4  ;;  %6069 = vmatmul.msk.f32.gmra.mxu3 %vm3449_vm4, %v3827_v4  ;;  %v4332_v8 = vsel %vm3482_vm2, %v4330_v12, %v4331_v0  ;;  %v4334_v18 = vsel %vm3482_vm2, %v4331_v0, %v4333_v62  ;;  %v9750_v4 = vpop.f32.mrf.mxu2  ;;  %v4341_v0 = vrot.slane %v9425_v16, 4  ;;  %v6088_v12 = vld [vmem:[%s10695_s5 + $0x2a0] sm:$0xff]  ;;  %v4340_v62 = vrot.slane %v9423_v55, 4 }
 0x6b6   :  { %v9688_v21 = vpop.f32.mrf.mxu0 }
 0x6b8   :  { %v9703_v29 = vpop.f32.mrf.mxu1 }
 0x6bb   :  { %5981 = vmatmul.msk.f32.vlgmr.msrb.gmra.mxu0 %vm3449_vm4, %v9209_v42  ;;  %5998 = vmatmul.msk.f32.vlgmr.msrb.gmra.mxu1 %vm3449_vm4, %v9209_v42  ;;  %v9754_v5 = vpop.f32.mrf.mxu3 }
 0x6bc   :  { %6149 = vmatmul.msk.f32.vlgmr.msra.gmra.mxu2 %vm3449_vm4, %v4317_v27  ;;  %6166 = vmatmul.msk.f32.vlgmr.msra.gmra.mxu3 %vm3449_vm4, %v4317_v27  ;;  %v4335_v27 = vrot.slane %v9392_v2, 4  ;;  %v9769_v6 = vpop.f32.mrf.mxu2 }
 0x6be   :  { %v9701_v28 = vpop.f32.mrf.mxu0  ;;  %v4337_v26 = vsel %vm3482_vm2, %v4335_v27, %v4336_v51 }
 0x6c3   :  { %5982 = vmatmul.msk.f32.gmra.mxu0 %vm3449_vm4, %v9219_v7  ;;  %5999 = vmatmul.msk.f32.gmra.mxu1 %vm3449_vm4, %v9219_v7  ;;  %v9772_v48 = vpop.f32.mrf.mxu3 }
 0x6c4   :  { %6150 = vmatmul.msk.f32.gmra.mxu2 %vm3449_vm4, %v4319_v25  ;;  %6167 = vmatmul.msk.f32.gmra.mxu3 %vm3449_vm4, %v4319_v25 }
 0x6c8   :  { %v9714_v17 = vpop.f32.mrf.mxu0  ;;  %v9716_v58 = vpop.f32.mrf.mxu1 }
 0x6cb   :  { %5983 = vmatmul.msk.f32.gmra.mxu0 %vm3449_vm4, %v9288_v47  ;;  %6000 = vmatmul.msk.f32.gmra.mxu1 %vm3449_vm4, %v9288_v47  ;;  %v9809_v27 = vpop.f32.mrf.mxu3 }
 0x6cc   :  { %6151 = vmatmul.msk.f32.gmra.mxu2 %vm3449_vm4, %v4322_v1  ;;  %6168 = vmatmul.msk.f32.gmra.mxu3 %vm3449_vm4, %v4322_v1  ;;  %v4338_v1 = vrot.slane %v9408_v44, 4 }
 0x6d0   :  { %v9727_v53 = vpop.f32.mrf.mxu0  ;;  %v9729_v15 = vpop.f32.mrf.mxu1 }
 0x6d1   :  { %11047 = vst [vmem:[#allocation84_spill] sm:$0xff] %v9727_v53 }
 0x6d2   :  { %11048 = vst [vmem:[#allocation85_spill] sm:$0xff] %v9729_v15 }
 0x6d3   :  { %5984 = vmatmul.msk.f32.gmra.mxu0 %vm3449_vm4, %v9294_v19  ;;  %6001 = vmatmul.msk.f32.gmra.mxu1 %vm3449_vm4, %v9294_v19 }
 0x6d4   :  { %6152 = vmatmul.msk.f32.gmra.mxu2 %vm3449_vm4, %v4324_v56  ;;  %6169 = vmatmul.msk.f32.gmra.mxu3 %vm3449_vm4, %v4324_v56  ;;  %v4339_v56 = vsel %vm3482_vm2, %v4336_v51, %v4338_v1  ;;  %v6087_v51 = vld [vmem:[%s10695_s5 + $0x298] sm:$0xff]  ;;  %v6084_v1 = vld [vmem:[%s10695_s5 + $0x280] sm:$0xff] }
 0x6db   :  { %5985 = vmatmul.msk.f32.gmra.mxu0 %vm3449_vm4, %v9328_v14  ;;  %6002 = vmatmul.msk.f32.gmra.mxu1 %vm3449_vm4, %v9328_v14 }
 0x6dc   :  { %6153 = vmatmul.msk.f32.gmra.mxu2 %vm3449_vm4, %v4327_v50  ;;  %6170 = vmatmul.msk.f32.gmra.mxu3 %vm3449_vm4, %v4327_v50  ;;  %v6090_v50 = vld [vmem:[%s10695_s5 + $0x2b0] sm:$0xf] }
 0x6dd   :  { %6092 = vmatpush.msk.msra.mxu0 %vm3482_vm2, %v6090_v50 }
 0x6df   :  { %4159 = vmatpush.msra.mxu0 %v6088_v12  ;;  %v6082_v12 = vld [vmem:[%s10695_s5 + $0x270] sm:$0xff] }
 0x6e0   :  { %v9741_v57 = vpop.f32.mrf.mxu0  ;;  %v9743_v31 = vpop.f32.mrf.mxu1 }
 0x6e1   :  { %11049 = vst [vmem:[#allocation16_spill] sm:$0xff] %v9741_v57 }
 0x6e2   :  { %11050 = vst [vmem:[#allocation52_spill] sm:$0xff] %v9743_v31  ;;  %v4052_v31 = vrot.slane %v9209_v42, 3  ;;  %v4058_v42 = vrot.slane %v9294_v19, 3 }
 0x6e3   :  { %5986 = vmatmul.msk.f32.gmra.mxu0 %vm3449_vm4, %v9330_v22  ;;  %6003 = vmatmul.msk.f32.gmra.mxu1 %vm3449_vm4, %v9330_v22 }
 0x6e4   :  { %6154 = vmatmul.msk.f32.gmra.mxu2 %vm3449_vm4, %v4329_v38  ;;  %6171 = vmatmul.msk.f32.gmra.mxu3 %vm3449_vm4, %v4329_v38  ;;  %v9793_v38 = vpop.f32.mrf.mxu2 }
 0x6e8   :  { %v9763_v25 = vpop.f32.mrf.mxu0  ;;  %v9765_v23 = vpop.f32.mrf.mxu1 }
 0x6e9   :  { %11051 = vst [vmem:[#allocation17_spill] sm:$0xff] %v9763_v25 }
 0x6ea   :  { %11052 = vst [vmem:[#allocation53_spill] sm:$0xff] %v9765_v23 }
 0x6eb   :  { %5987 = vmatmul.msk.f32.gmra.mxu0 %vm3449_vm4, %v9361_v37  ;;  %6004 = vmatmul.msk.f32.gmra.mxu1 %vm3449_vm4, %v9361_v37 }
 0x6ec   :  { %6155 = vmatmul.msk.f32.gmra.mxu2 %vm3449_vm4, %v4332_v8  ;;  %6172 = vmatmul.msk.f32.gmra.mxu3 %vm3449_vm4, %v4332_v8  ;;  %v6089_v8 = vld [vmem:[%s10695_s5 + $0x2a8] sm:$0xff] }
 0x6ed   :  { %4224 = vmatpush.msra.mxu1 %v6089_v8  ;;  %v6083_v8 = vld [vmem:[%s10695_s5 + $0x278] sm:$0xff] }
 0x6ef   :  { %4225 = vmatpush.msra.mxu1 %v6087_v51  ;;  %v6081_v51 = vld [vmem:[%s10695_s5 + $0x268] sm:$0xff] }
 0x6f3   :  { %5988 = vmatmul.msk.f32.gmra.mxu0 %vm3449_vm4, %v9363_v13  ;;  %6005 = vmatmul.msk.f32.gmra.mxu1 %vm3449_vm4, %v9363_v13 }
 0x6f4   :  { %6156 = vmatmul.msk.f32.gmra.mxu2 %vm3449_vm4, %v4334_v18  ;;  %6173 = vmatmul.msk.f32.gmra.mxu3 %vm3449_vm4, %v4334_v18  ;;  %v6086_v18 = vld [vmem:[%s10695_s5 + $0x290] sm:$0xff] }
 0x6f5   :  { %4160 = vmatpush.msra.mxu0 %v6086_v18  ;;  %v6080_v18 = vld [vmem:[%s10695_s5 + $0x260] sm:$0xff] }
 0x6f7   :  { %4161 = vmatpush.msra.mxu0 %v6084_v1 }
 0x6f8   :  { %v9779_v35 = vpop.f32.mrf.mxu0  ;;  %v9781_v9 = vpop.f32.mrf.mxu1 }
 0x6f9   :  { %11053 = vst [vmem:[#allocation88_spill] sm:$0xff] %v9779_v35  ;;  %4162 = vmatpush.msra.mxu0 %v6082_v12  ;;  %v6079_v12 = vld [vmem:[%s10695_s5 + $0x258] sm:$0xff] }
 0x6fa   :  { %11054 = vst [vmem:[#allocation89_spill] sm:$0xff] %v9781_v9 }
 0x6fb   :  { %5989 = vmatmul.msk.f32.gmra.mxu0 %vm3449_vm4, %v9392_v2  ;;  %6006 = vmatmul.msk.f32.gmra.mxu1 %vm3449_vm4, %v9392_v2 }
 0x6fc   :  { %6157 = vmatmul.msk.f32.gmra.mxu2 %vm3449_vm4, %v4337_v26  ;;  %6174 = vmatmul.msk.f32.gmra.mxu3 %vm3449_vm4, %v4337_v26  ;;  %v4342_v26 = vsel %vm3482_vm2, %v4340_v62, %v4341_v0  ;;  %v4343_v62 = vrot.slane %v9439_v40, 4 }
 0x6fd   :  { %4163 = vmatpush.msra.mxu0 %v6080_v18  ;;  %v4345_v18 = vrot.slane %v9492_v45, 4 }
 0x6fe   :  { %v4344_v1 = vsel %vm3482_vm2, %v4341_v0, %v4343_v62  ;;  %v6076_v0 = vld [vmem:[%s10695_s5 + $0x240] sm:$0xff]  ;;  %v6077_v62 = vld [vmem:[%s10695_s5 + $0x248] sm:$0xff] }
 0x700   :  { %v9824_v50 = vpop.f32.mrf.mxu0  ;;  %v9826_v63 = vpop.f32.mrf.mxu1 }
 0x701   :  { %11055 = vst [vmem:[#allocation18_spill] sm:$0xff] %v9824_v50 }
 0x702   :  { %11056 = vst [vmem:[#allocation54_spill] sm:$0xff] %v9826_v63 }
 0x703   :  { %5990 = vmatmul.msk.f32.gmra.mxu0 %vm3449_vm4, %v9394_v59  ;;  %6007 = vmatmul.msk.f32.gmra.mxu1 %vm3449_vm4, %v9394_v59 }
 0x704   :  { %6158 = vmatmul.msk.f32.gmra.mxu2 %vm3449_vm4, %v4339_v56  ;;  %6175 = vmatmul.msk.f32.gmra.mxu3 %vm3449_vm4, %v4339_v56  ;;  %v6085_v56 = vld [vmem:[%s10695_s5 + $0x288] sm:$0xff] }
 0x705   :  { %4226 = vmatpush.msra.mxu1 %v6085_v56  ;;  %v6078_v56 = vld [vmem:[%s10695_s5 + $0x250] sm:$0xff] }
 0x706   :  { %4164 = vmatpush.msra.mxu0 %v6078_v56 }
 0x707   :  { %4227 = vmatpush.msra.mxu1 %v6083_v8  ;;  %v9856_v8 = vpop.f32.mrf.mxu3 }
 0x708   :  { %4165 = vmatpush.msra.mxu0 %v6076_v0  ;;  %v6073_v0 = vld [vmem:[%s10695_s5 + $0x228] sm:$0xff] }
 0x709   :  { %4228 = vmatpush.msra.mxu1 %v6081_v51  ;;  %v6074_v51 = vld [vmem:[%s10695_s5 + $0x230] sm:$0xff] }
 0x70a   :  { %4166 = vmatpush.msra.mxu0 %v6074_v51 }
 0x70b   :  { %5991 = vmatmul.msk.f32.gmra.mxu0 %vm3449_vm4, %v9423_v55  ;;  %6008 = vmatmul.msk.f32.gmra.mxu1 %vm3449_vm4, %v9423_v55 }
 0x70c   :  { %6159 = vmatmul.msk.f32.gmra.mxu2 %vm3449_vm4, %v4342_v26  ;;  %6176 = vmatmul.msk.f32.gmra.mxu3 %vm3449_vm4, %v4342_v26  ;;  %v9835_v26 = vpop.f32.mrf.mxu2 }
 0x70d   :  { %4229 = vmatpush.msra.mxu1 %v6079_v12  ;;  %v6072_v12 = vld [vmem:[%s10695_s5 + $0x220] sm:$0xff] }
 0x70e   :  { %4167 = vmatpush.msra.mxu0 %v6072_v12  ;;  %v4351_v12 = vrot.slane %v9622_v24, 4 }
 0x70f   :  { %4230 = vmatpush.msra.mxu1 %v6077_v62  ;;  %v6070_v62 = vld [vmem:[%s10695_s5 + $0x210] sm:$0xff] }
 0x710   :  { %v9858_v63 = vpop.f32.mrf.mxu0  ;;  %v9860_v50 = vpop.f32.mrf.mxu1  ;;  %4168 = vmatpush.msra.mxu0 %v6070_v62 }
 0x711   :  { %11057 = vst [vmem:[#allocation19_spill] sm:$0xff] %v9858_v63  ;;  %v9897_v63 = vpop.f32.mrf.mxu3 }
 0x712   :  { %11058 = vst [vmem:[#allocation55_spill] sm:$0xff] %v9860_v50  ;;  %v6075_v50 = vld [vmem:[%s10695_s5 + $0x238] sm:$0xff] }
 0x713   :  { %5992 = vmatmul.msk.f32.gmra.mxu0 %vm3449_vm4, %v9425_v16  ;;  %6009 = vmatmul.msk.f32.gmra.mxu1 %vm3449_vm4, %v9425_v16 }
 0x714   :  { %6160 = vmatmul.msk.f32.gmra.mxu2 %vm3449_vm4, %v4344_v1  ;;  %6177 = vmatmul.msk.f32.gmra.mxu3 %vm3449_vm4, %v4344_v1  ;;  %v4346_v1 = vrot.slane %v9508_v10, 4  ;;  %v9869_v9 = vpop.f32.mrf.mxu2 }
 0x715   :  { %4231 = vmatpush.msra.mxu1 %v6075_v50 }
 0x716   :  { %v4347_v56 = vsel %vm3482_vm2, %v4345_v18, %v4346_v1  ;;  %v6071_v18 = vld [vmem:[%s10695_s5 + $0x218] sm:$0xff] }
 0x717   :  { %4232 = vmatpush.msra.mxu1 %v6073_v0 }
 0x718   :  { %v9900_v35 = vpop.f32.mrf.mxu0  ;;  %v9902_v23 = vpop.f32.mrf.mxu1 }
 0x719   :  { %11059 = vst [vmem:[#allocation91_spill] sm:$0xff] %v9900_v35  ;;  %4233 = vmatpush.msra.mxu1 %v6071_v18  ;;  %v4350_v18 = vrot.slane %v9620_v36, 4  ;;  %v9921_v35 = vpop.f32.mrf.mxu3 }
 0x71a   :  { %11060 = vst [vmem:[#allocation92_spill] sm:$0xff] %v9902_v23 }
 0x71b   :  { %5993 = vmatmul.msk.f32.gmra.mxu0 %vm3449_vm4, %v9492_v45  ;;  %6010 = vmatmul.msk.f32.gmra.mxu1 %vm3449_vm4, %v9492_v45  ;;  %11063 = vst [vmem:[#allocation56_spill] sm:$0xff] %v9921_v35 }
 0x71c   :  { %6161 = vmatmul.msk.f32.gmra.mxu2 %vm3449_vm4, %v4347_v56  ;;  %6178 = vmatmul.msk.f32.gmra.mxu3 %vm3449_vm4, %v4347_v56  ;;  %v4348_v56 = vrot.slane %v9567_v34, 4  ;;  %v9904_v50 = vpop.f32.mrf.mxu2 }
 0x71e   :  { %v4349_v51 = vsel %vm3482_vm2, %v4346_v1, %v4348_v56  ;;  %v4352_v1 = vsel %vm3482_vm2, %v4350_v18, %v4351_v12  ;;  %v4353_v56 = vrot.slane %v9640_v52, 4 }
 0x721   :  { %v9942_v18 = vpop.f32.mrf.mxu3 }
 0x722   :  { %11067 = vst [vmem:[#allocation94_spill] sm:$0xff] %v9942_v18 }
 0x723   :  { %5994 = vmatmul.msk.f32.gmra.mxu0 %vm3449_vm4, %v9508_v10  ;;  %6011 = vmatmul.msk.f32.gmra.mxu1 %vm3449_vm4, %v9508_v10 }
 0x724   :  { %6162 = vmatmul.msk.f32.gmra.mxu2 %vm3449_vm4, %v4349_v51  ;;  %6179 = vmatmul.msk.f32.gmra.mxu3 %vm3449_vm4, %v4349_v51  ;;  %v9919_v23 = vpop.f32.mrf.mxu2 }
 0x728   :  { %v9914_v0 = vpop.f32.mrf.mxu0  ;;  %v9916_v62 = vpop.f32.mrf.mxu1 }
 0x729   :  { %11061 = vst [vmem:[#allocation95_spill] sm:$0xff] %v9914_v0  ;;  %v4354_v0 = vsel %vm3482_vm2, %v4351_v12, %v4353_v56  ;;  %v4055_v12 = vrot.slane %v9250_v11, 3 }
 0x72a   :  { %11062 = vst [vmem:[#allocation20_spill] sm:$0xff] %v9916_v62 }
 0x72b   :  { %5995 = vmatmul.msk.f32.gmra.mxu0 %vm3449_vm4, %v9620_v36  ;;  %6012 = vmatmul.msk.f32.gmra.mxu1 %vm3449_vm4, %v9620_v36 }
 0x72c   :  { %6163 = vmatmul.msk.f32.gmra.mxu2 %vm3449_vm4, %v4352_v1  ;;  %6180 = vmatmul.msk.f32.gmra.mxu3 %vm3449_vm4, %v4352_v1  ;;  %v9940_v25 = vpop.f32.mrf.mxu2  ;;  %v4053_v1 = vrot.slane %v9219_v7, 3 }
 0x72d   :  { %11066 = vst [vmem:[#allocation93_spill] sm:$0xff] %v9940_v25 }
 0x72e   :  { %v4054_v57 = vsel %vm4051_vm6, %v4052_v31, %v4053_v1  ;;  %v4056_v7 = vsel %vm4051_vm6, %v4053_v1, %v4055_v12  ;;  %v4060_v1 = vrot.slane %v9311_v20, 3  ;;  %v9973_v12 = vpop.f32.mrf.mxu3  ;;  %v4062_v20 = vrot.slane %v9328_v14, 3 }
 0x72f   :  { %11068 = vst [vmem:[#allocation22_spill] sm:$0xff] %v9973_v12 }
 0x730   :  { %v9931_v51 = vpop.f32.mrf.mxu0  ;;  %v9933_v62 = vpop.f32.mrf.mxu1  ;;  %v4061_v15 = vsel %vm4051_vm6, %v4058_v42, %v4060_v1 }
 0x731   :  { %11064 = vst [vmem:[#allocation21_spill] sm:$0xff] %v9931_v51 }
 0x732   :  { %11065 = vst [vmem:[#allocation57_spill] sm:$0xff] %v9933_v62 }
 0x733   :  { %5996 = vmatmul.msk.f32.gmra.mxu0 %vm3449_vm4, %v9622_v24  ;;  %6013 = vmatmul.msk.f32.gmra.mxu1 %vm3449_vm4, %v9622_v24 }
 0x734   :  { %6164 = vmatmul.msk.f32.gmra.mxu2 %vm3449_vm4, %v4354_v0  ;;  %6181 = vmatmul.msk.f32.gmra.mxu3 %vm3449_vm4, %v4354_v0  ;;  %v9979_v19 = vpop.f32.mrf.mxu2 }
 0x735   :  { %11069 = vst [vmem:[#allocation58_spill] sm:$0xff] %v9979_v19 }
 0x736   :  { %v9990_v12 = vpop.f32.mrf.mxu3 }
 0x737   :  { %11070 = vst [vmem:[#allocation23_spill] sm:$0xff] %v9990_v12 }
 0x738   :  { %v9947_v62 = vpop.f32.mrf.mxu0  ;;  %v9949_v51 = vpop.f32.mrf.mxu1 }
 0x73b   :  { %6093 = vmatmul.msk.f32.vlgmr.msra.gmra.mxu0 %vm3449_vm4, %v4054_v57  ;;  %6110 = vmatmul.msk.f32.vlgmr.msra.gmra.mxu1 %vm3449_vm4, %v4054_v57  ;;  %v4057_v57 = vrot.slane %v9288_v47, 3  ;;  %v4063_v47 = vrot.slane %v9330_v22, 3 }
 0x73c   :  { %v9993_v35 = vpop.f32.mrf.mxu2 }
 0x73d   :  { %v4059_v11 = vsel %vm4051_vm6, %v4057_v57, %v4058_v42  ;;  %v4064_v53 = vsel %vm4051_vm6, %v4062_v20, %v4063_v47  ;;  %11071 = vst [vmem:[#allocation59_spill] sm:$0xff] %v9993_v35  ;;  %v4068_v20 = vrot.slane %v9363_v13, 3 }
 0x73e   :  { %v10005_v14 = vpop.f32.mrf.mxu3 }
 0x73f   :  { %11073 = vst [vmem:[#allocation97_spill] sm:$0xff] %v10005_v14 }
 0x740   :  { %v9956_v56 = vpop.f32.mrf.mxu0  ;;  %v9958_v0 = vpop.f32.mrf.mxu1 }
 0x743   :  { %6094 = vmatmul.msk.f32.gmra.mxu0 %vm3449_vm4, %v4056_v7  ;;  %6111 = vmatmul.msk.f32.gmra.mxu1 %vm3449_vm4, %v4056_v7 }
 0x744   :  { %v10003_v19 = vpop.f32.mrf.mxu2 }
 0x745   :  { %11072 = vst [vmem:[#allocation96_spill] sm:$0xff] %v10003_v19 }
 0x748   :  { %v9964_v18 = vpop.f32.mrf.mxu0  ;;  %v9966_v31 = vpop.f32.mrf.mxu1 }
 0x74b   :  { %6095 = vmatmul.msk.f32.gmra.mxu0 %vm3449_vm4, %v4059_v11  ;;  %6112 = vmatmul.msk.f32.gmra.mxu1 %vm3449_vm4, %v4059_v11 }
 0x750   :  { %v9975_v25 = vpop.f32.mrf.mxu0  ;;  %v9977_v7 = vpop.f32.mrf.mxu1 }
 0x753   :  { %6096 = vmatmul.msk.f32.gmra.mxu0 %vm3449_vm4, %v4061_v15  ;;  %6113 = vmatmul.msk.f32.gmra.mxu1 %vm3449_vm4, %v4061_v15  ;;  %v4065_v15 = vrot.slane %v9345_v61, 3  ;;  %v4067_v61 = vrot.slane %v9361_v37, 3 }
 0x755   :  { %v4066_v1 = vsel %vm4051_vm6, %v4063_v47, %v4065_v15  ;;  %v4069_v35 = vsel %vm4051_vm6, %v4067_v61, %v4068_v20  ;;  %v10018_v47 = vpop.f32.mrf.mxu2  ;;  %v10020_v15 = vpop.f32.mrf.mxu3 }
 0x756   :  { %11074 = vst [vmem:[#allocation24_spill] sm:$0xff] %v10018_v47 }
 0x757   :  { %11075 = vst [vmem:[#allocation60_spill] sm:$0xff] %v10020_v15 }
 0x758   :  { %v9985_v57 = vpop.f32.mrf.mxu0  ;;  %v9987_v11 = vpop.f32.mrf.mxu1 }
 0x75b   :  { %6097 = vmatmul.msk.f32.gmra.mxu0 %vm3449_vm4, %v4064_v53  ;;  %6114 = vmatmul.msk.f32.gmra.mxu1 %vm3449_vm4, %v4064_v53 }
 0x75d   :  { %v10030_v37 = vpop.f32.mrf.mxu2  ;;  %v10032_v61 = vpop.f32.mrf.mxu3 }
 0x75e   :  { %11077 = vst [vmem:[#allocation61_spill] sm:$0xff] %v10030_v37  ;;  %v4663_v37 = vld [vmem:[#allocation4 + $0x78] sm:$0xff] }
 0x75f   :  { %11078 = vst [vmem:[#allocation98_spill] sm:$0xff] %v10032_v61  ;;  %4716 = vmatpush.msrb.mxu0 %v4663_v37 }
 0x760   :  { %v9998_v42 = vpop.f32.mrf.mxu0  ;;  %v10000_v22 = vpop.f32.mrf.mxu1 }
 0x763   :  { %6098 = vmatmul.msk.f32.gmra.mxu0 %vm3449_vm4, %v4066_v1  ;;  %6115 = vmatmul.msk.f32.gmra.mxu1 %vm3449_vm4, %v4066_v1  ;;  %v4070_v1 = vrot.slane %v9377_v3, 3  ;;  %v4072_v3 = vrot.slane %v9392_v2, 3 }
 0x765   :  { %v4071_v19 = vsel %vm4051_vm6, %v4068_v20, %v4070_v1  ;;  %v10044_v20 = vpop.f32.mrf.mxu2  ;;  %v10046_v1 = vpop.f32.mrf.mxu3 }
 0x766   :  { %11080 = vst [vmem:[#allocation62_spill] sm:$0xff] %v10044_v20  ;;  %v4860_v20 = vld [vmem:[#allocation4 + $0x108] sm:$0xff] }
 0x767   :  { %11081 = vst [vmem:[#allocation27_spill] sm:$0xff] %v10046_v1  ;;  %v4661_v1 = vld [vmem:[#allocation4 + $0x68] sm:$0xff] }
 0x768   :  { %v10010_v12 = vpop.f32.mrf.mxu0  ;;  %v10012_v53 = vpop.f32.mrf.mxu1 }
 0x76b   :  { %6099 = vmatmul.msk.f32.gmra.mxu0 %vm3449_vm4, %v4069_v35  ;;  %6116 = vmatmul.msk.f32.gmra.mxu1 %vm3449_vm4, %v4069_v35  ;;  %v4073_v35 = vrot.slane %v9394_v59, 3 }
 0x770   :  { %v10023_v14 = vpop.f32.mrf.mxu0  ;;  %v10025_v13 = vpop.f32.mrf.mxu1 }
 0x771   :  { %11076 = vst [vmem:[#allocation25_spill] sm:$0xff] %v10025_v13  ;;  %v4074_v13 = vsel %vm4051_vm6, %v4072_v3, %v4073_v35  ;;  %v4078_v3 = vrot.slane %v9425_v16, 3  ;;  %v4858_v16 = vld [vmem:[#allocation4 + $0xf8] sm:$0xff] }
 0x773   :  { %6100 = vmatmul.msk.f32.gmra.mxu0 %vm3449_vm4, %v4071_v19  ;;  %6117 = vmatmul.msk.f32.gmra.mxu1 %vm3449_vm4, %v4071_v19  ;;  %v4075_v19 = vrot.slane %v9408_v44, 3  ;;  %v4861_v44 = vld [vmem:[#allocation4 + $0x110] sm:$0xff] }
 0x775   :  { %v4076_v2 = vsel %vm4051_vm6, %v4073_v35, %v4075_v19  ;;  %v4077_v35 = vrot.slane %v9423_v55, 3  ;;  %v4660_v19 = vld [vmem:[#allocation4 + $0x60] sm:$0xff]  ;;  %v4657_v55 = vld [vmem:[#allocation4 + $0x48] sm:$0xff] }
 0x778   :  { %v10035_v47 = vpop.f32.mrf.mxu0  ;;  %v10037_v15 = vpop.f32.mrf.mxu1 }
 0x779   :  { %11079 = vst [vmem:[#allocation26_spill] sm:$0xff] %v10037_v15  ;;  %v4862_v15 = vld [vmem:[#allocation4 + $0x118] sm:$0xff] }
 0x77a   :  { %4867 = vmatpush.msrb.mxu2 %v4862_v15 }
 0x77b   :  { %6101 = vmatmul.msk.f32.gmra.mxu0 %vm3449_vm4, %v4074_v13  ;;  %6118 = vmatmul.msk.f32.gmra.mxu1 %vm3449_vm4, %v4074_v13  ;;  %v4662_v13 = vld [vmem:[#allocation4 + $0x70] sm:$0xff] }
 0x77c   :  { %4717 = vmatpush.msrb.mxu0 %v4662_v13  ;;  %4868 = vmatpush.msrb.mxu2 %v4861_v44  ;;  %v4659_v13 = vld [vmem:[#allocation4 + $0x58] sm:$0xff]  ;;  %v4079_v44 = vsel %vm4051_vm6, %v4077_v35, %v4078_v3  ;;  %v4656_v35 = vld [vmem:[#allocation4 + $0x40] sm:$0xff] }
 0x77e   :  { %4718 = vmatpush.msrb.mxu0 %v4661_v1  ;;  %4869 = vmatpush.msrb.mxu2 %v4860_v20  ;;  %v4658_v1 = vld [vmem:[#allocation4 + $0x50] sm:$0xff] }
 0x77f   :  { %v4857_v20 = vld [vmem:[#allocation4 + $0xf0] sm:$0xff] }
 0x780   :  { %v10048_v61 = vpop.f32.mrf.mxu0  ;;  %v10050_v59 = vpop.f32.mrf.mxu1  ;;  %4719 = vmatpush.msrb.mxu0 %v4660_v19 }
 0x781   :  { %11082 = vst [vmem:[#allocation63_spill] sm:$0xff] %v10048_v61  ;;  %v10056_v61 = vpop.f32.mrf.mxu2 }
 0x782   :  { %11083 = vst [vmem:[#allocation99_spill] sm:$0xff] %v10050_v59  ;;  %v10058_v59 = vpop.f32.mrf.mxu3  ;;  %4720 = vmatpush.msrb.mxu0 %v4659_v13  ;;  %v4655_v13 = vld [vmem:[#allocation4 + $0x38] sm:$0xff] }
 0x783   :  { %6102 = vmatmul.msk.f32.gmra.mxu0 %vm3449_vm4, %v4076_v2  ;;  %6119 = vmatmul.msk.f32.gmra.mxu1 %vm3449_vm4, %v4076_v2  ;;  %11084 = vst [vmem:[#allocation100_spill] sm:$0xff] %v10056_v61  ;;  %v4859_v2 = vld [vmem:[#allocation4 + $0x100] sm:$0xff]  ;;  %v4856_v61 = vld [vmem:[#allocation4 + $0xe8] sm:$0xff] }
 0x784   :  { %11085 = vst [vmem:[#allocation28_spill] sm:$0xff] %v10058_v59  ;;  %4870 = vmatpush.msrb.mxu2 %v4859_v2  ;;  %v4080_v59 = vrot.slane %v9439_v40, 3  ;;  %4721 = vmatpush.msrb.mxu0 %v4658_v1  ;;  %v4654_v1 = vld [vmem:[#allocation4 + $0x30] sm:$0xff] }
 0x786   :  { %4871 = vmatpush.msrb.mxu2 %v4858_v16  ;;  %4722 = vmatpush.msrb.mxu0 %v4657_v55  ;;  %v4854_v16 = vld [vmem:[#allocation4 + $0xd8] sm:$0xff]  ;;  %v4081_v40 = vsel %vm4051_vm6, %v4078_v3, %v4080_v59  ;;  %v4653_v55 = vld [vmem:[#allocation4 + $0x28] sm:$0xff]  ;;  %v4082_v59 = vrot.slane %v9492_v45, 3  ;;  %v4652_v3 = vld [vmem:[#allocation4 + $0x20] sm:$0xff] }
 0x787   :  { %v4866_v45 = vld [vmem:[#allocation4 + $0x138] sm:$0xff] }
 0x788   :  { %v10060_v37 = vpop.f32.mrf.mxu0  ;;  %v10062_v15 = vpop.f32.mrf.mxu1  ;;  %4872 = vmatpush.msrb.mxu2 %v4857_v20  ;;  %4723 = vmatpush.msrb.mxu0 %v4656_v35  ;;  %v4853_v20 = vld [vmem:[#allocation4 + $0xd0] sm:$0xff] }
 0x789   :  { %11086 = vst [vmem:[#allocation64_spill] sm:$0xff] %v10060_v37  ;;  %v10073_v37 = vpop.f32.mrf.mxu2  ;;  %4944 = vmatpush.msrb.mxu3 %v4866_v45  ;;  %v4847_v45 = vld [vmem:[#allocation4 + $0xa0] sm:$0xff] }
 0x78a   :  { %11087 = vst [vmem:[#allocation29_spill] sm:$0xff] %v10062_v15  ;;  %4873 = vmatpush.msrb.mxu2 %v4856_v61  ;;  %v4855_v15 = vld [vmem:[#allocation4 + $0xe0] sm:$0xff]  ;;  %4724 = vmatpush.msrb.mxu0 %v4655_v13  ;;  %v4083_v61 = vrot.slane %v9508_v10, 3  ;;  %v4651_v13 = vld [vmem:[#allocation4 + $0x18] sm:$0xff] }
 0x78b   :  { %6103 = vmatmul.msk.f32.gmra.mxu0 %vm3449_vm4, %v4079_v44  ;;  %6120 = vmatmul.msk.f32.gmra.mxu1 %vm3449_vm4, %v4079_v44  ;;  %11090 = vst [vmem:[#allocation66_spill] sm:$0xff] %v10073_v37  ;;  %v10075_v44 = vpop.f32.mrf.mxu3  ;;  %v4667_v10 = vld [vmem:[#allocation4 + $0x98] sm:$0xff] }
 0x78c   :  { %11091 = vst [vmem:[#allocation31_spill] sm:$0xff] %v10075_v44  ;;  %4874 = vmatpush.msrb.mxu2 %v4855_v15  ;;  %4725 = vmatpush.msrb.mxu0 %v4654_v1  ;;  %v4852_v44 = vld [vmem:[#allocation4 + $0xc8] sm:$0xff]  ;;  %v4851_v15 = vld [vmem:[#allocation4 + $0xc0] sm:$0xff]  ;;  %v4084_v35 = vsel %vm4051_vm6, %v4082_v59, %v4083_v61  ;;  %v4865_v59 = vld [vmem:[#allocation4 + $0x130] sm:$0xff] }
 0x78d   :  { %4793 = vmatpush.msrb.mxu1 %v4667_v10  ;;  %4945 = vmatpush.msrb.mxu3 %v4865_v59  ;;  %v4648_v10 = vld [vmem:[#allocation4] sm:$0xff] }
 0x78e   :  { %4875 = vmatpush.msrb.mxu2 %v4854_v16  ;;  %4726 = vmatpush.msrb.mxu0 %v4653_v55  ;;  %v4850_v16 = vld [vmem:[#allocation4 + $0xb8] sm:$0xff]  ;;  %v4849_v55 = vld [vmem:[#allocation4 + $0xb0] sm:$0xff] }
 0x790   :  { %v10069_v19 = vpop.f32.mrf.mxu0  ;;  %v10071_v2 = vpop.f32.mrf.mxu1  ;;  %4876 = vmatpush.msrb.mxu2 %v4853_v20  ;;  %4727 = vmatpush.msrb.mxu0 %v4652_v3  ;;  %v4666_v20 = vld [vmem:[#allocation4 + $0x90] sm:$0xff]  ;;  %v4085_v3 = vrot.slane %v9567_v34, 3  ;;  %v4863_v34 = vld [vmem:[#allocation4 + $0x120] sm:$0xff] }
 0x791   :  { %11088 = vst [vmem:[#allocation65_spill] sm:$0xff] %v10069_v19  ;;  %4794 = vmatpush.msrb.mxu1 %v4666_v20  ;;  %v4864_v19 = vld [vmem:[#allocation4 + $0x128] sm:$0xff] }
 0x792   :  { %11089 = vst [vmem:[#allocation30_spill] sm:$0xff] %v10071_v2  ;;  %4877 = vmatpush.msrb.mxu2 %v4852_v44  ;;  %4728 = vmatpush.msrb.mxu0 %v4651_v13  ;;  %v4650_v44 = vld [vmem:[#allocation4 + $0x10] sm:$0xff] }
 0x793   :  { %6104 = vmatmul.msk.f32.gmra.mxu0 %vm3449_vm4, %v4081_v40  ;;  %6121 = vmatmul.msk.f32.gmra.mxu1 %vm3449_vm4, %v4081_v40  ;;  %v10087_v40 = vpop.f32.mrf.mxu2  ;;  %v10089_v1 = vpop.f32.mrf.mxu3 }
 0x794   :  { %4878 = vmatpush.msrb.mxu2 %v4851_v15  ;;  %4729 = vmatpush.msrb.mxu0 %v4650_v44  ;;  %v4649_v15 = vld [vmem:[#allocation4 + $0x8] sm:$0xff]  ;;  %v4086_v44 = vsel %vm4051_vm6, %v4083_v61, %v4085_v3  ;;  %v4090_v3 = vrot.slane %v9640_v52, 3  ;;  %v4578_v52 = vld [vmem:[%s10696_s6] sm:$0x3] }
 0x795   :  { %4946 = vmatpush.msrb.mxu3 %v4864_v19  ;;  %v4087_v19 = vrot.slane %v9620_v36, 3  ;;  %v3740_v36 = vadd.f32 %v9949_v51, %v9630_v30  ;;  %v10131_v30 = vperm.slane %v4578_v52, 0 }
 0x796   :  { %4879 = vmatpush.msrb.mxu2 %v4850_v16  ;;  %4730 = vmatpush.msrb.mxu0 %v4649_v15  ;;  %v4664_v16 = vld [vmem:[#allocation4 + $0x80] sm:$0xff] }
 0x797   :  { %4947 = vmatpush.msrb.mxu3 %v4863_v34  ;;  %v3675_v34 = vadd.f32 %v9947_v62, %v9628_v49 }
 0x798   :  { %v10081_v37 = vpop.f32.mrf.mxu0  ;;  %v10083_v2 = vpop.f32.mrf.mxu1  ;;  %4880 = vmatpush.msrb.mxu2 %v4849_v55  ;;  %4731 = vmatpush.msrb.mxu0 %v4648_v10 }
 0x799   :  { %11092 = vst [vmem:[#allocation67_spill] sm:$0xff] %v10081_v37  ;;  %v4848_v37 = vld [vmem:[#allocation4 + $0xa8] sm:$0xff] }
 0x79a   :  { %11093 = vst [vmem:[#allocation32_spill] sm:$0xff] %v10083_v2  ;;  %v4665_v2 = vld [vmem:[#allocation4 + $0x88] sm:$0xff]  ;;  %4881 = vmatpush.msrb.mxu2 %v4848_v37 }
 0x79b   :  { %6105 = vmatmul.msk.f32.gmra.mxu0 %vm3449_vm4, %v4084_v35  ;;  %6122 = vmatmul.msk.f32.gmra.mxu1 %vm3449_vm4, %v4084_v35  ;;  %v4436_v20 = vpop.f32.mrf.mxu2  ;;  %v4501_v55 = vpop.f32.mrf.mxu3 }
 0x79c   :  { %4795 = vmatpush.msrb.mxu1 %v4665_v2  ;;  %4882 = vmatpush.msrb.mxu2 %v4847_v45  ;;  %v4088_v2 = vrot.slane %v9622_v24, 3 }
 0x79e   :  { %4796 = vmatpush.msrb.mxu1 %v4664_v16  ;;  %v4089_v61 = vsel %vm4051_vm6, %v4087_v19, %v4088_v2  ;;  %v4091_v24 = vsel %vm4051_vm6, %v4088_v2, %v4090_v3  ;;  %v4020_v19 = vadd.f32 %v9738_v43, %v3740_v36 }
 0x7a0   :  { %v10094_v35 = vpop.f32.mrf.mxu0  ;;  %v10096_v13 = vpop.f32.mrf.mxu1 }
 0x7a3   :  { %6106 = vmatmul.msk.f32.gmra.mxu0 %vm3449_vm4, %v4086_v44  ;;  %6123 = vmatmul.msk.f32.gmra.mxu1 %vm3449_vm4, %v4086_v44  ;;  %v4439_v15 = vpop.f32.mrf.mxu2  ;;  %v4504_v10 = vpop.f32.mrf.mxu3  ;;  %v4019_v44 = vadd.f32 %v9750_v4, %v3675_v34  ;;  %v3743_v4 = vadd.f32 %v9958_v0, %v9650_v46  ;;  %v3681_v46 = vadd.f32 %v9964_v18, %v9661_v60 }
 0x7a4   :  { %v3746_v0 = vadd.f32 %v9966_v31, %v9663_v33  ;;  %v3684_v33 = vadd.f32 %v9975_v25, %v9675_v54  ;;  %v3749_v31 = vadd.f32 %v9977_v7, %v9677_v39  ;;  %v3687_v39 = vadd.f32 %v9985_v57, %v9688_v21 }
 0x7a5   :  { %v3752_v7 = vadd.f32 %v9987_v11, %v9690_v32  ;;  %v3690_v11 = vadd.f32 %v9998_v42, %v9701_v28 }
 0x7a8   :  { %v10102_v59 = vpop.f32.mrf.mxu0  ;;  %v10104_v37 = vpop.f32.mrf.mxu1 }
 0x7a9   :  { %11094 = vst [vmem:[#allocation68_spill] sm:$0xff] %v10104_v37 }
 0x7ab   :  { %6107 = vmatmul.msk.f32.gmra.mxu0 %vm3449_vm4, %v4089_v61  ;;  %6124 = vmatmul.msk.f32.gmra.mxu1 %vm3449_vm4, %v4089_v61  ;;  %v10127_v3 = vpop.f32.mrf.mxu2  ;;  %v10129_v49 = vpop.f32.mrf.mxu3 }
 0x7b0   :  { %v10111_v16 = vpop.f32.mrf.mxu0  ;;  %v10113_v45 = vpop.f32.mrf.mxu1 }
 0x7b1   :  { %11095 = vst [vmem:[#allocation33_spill] sm:$0xff] %v10111_v16 }
 0x7b2   :  { %11096 = vst [vmem:[#allocation69_spill] sm:$0xff] %v10113_v45  ;;  %v10133_v45 = vperm.slane %v4578_v52, 1  ;;  %v4022_v52 = vadd.f32 %v9754_v5, %v3743_v4 }
 0x7b3   :  { %6108 = vmatmul.msk.f32.gmra.mxu0 %vm3449_vm4, %v4091_v24  ;;  %6125 = vmatmul.msk.f32.gmra.mxu1 %vm3449_vm4, %v4091_v24  ;;  %v3678_v24 = vadd.f32 %v9956_v56, %v9648_v41 }
 0x7b8   :  { %v4170_v61 = vpop.f32.mrf.mxu0  ;;  %v4235_v2 = vpop.f32.mrf.mxu1 }
 0x7b9   :  { %v4283_v62 = vadd.f32 %v4170_v61, %v4019_v44  ;;  %v4284_v51 = vadd.f32 %v4235_v2, %v4020_v19  ;;  %v4021_v19 = vadd.f32 %v9769_v6, %v3678_v24  ;;  %v4510_v6 = vpop.f32.mrf.mxu3  ;;  %v4024_v24 = vadd.f32 %v9772_v48, %v3746_v0 }
 0x7bb   :  { %v4546_v43 = vadd.f32 %v10087_v40, %v4283_v62  ;;  %v4547_v34 = vadd.f32 %v10089_v1, %v4284_v51  ;;  %v4445_v40 = vpop.f32.mrf.mxu2  ;;  %v4023_v51 = vadd.f32 %v9793_v38, %v3681_v46 }
 0x7bd   :  { %v4584_v36 = vadd.f32 %v10131_v30, %v4546_v43  ;;  %v4585_v16 = vadd.f32 %v10133_v45, %v4547_v34 }
 0x7bf   :  { %v4616_v44 = vmax.f32 %v4584_v36, 0.0  ;;  %v4617_v61 = vmax.f32 %v4585_v16, 0.0 }
 0x7c0   :  { %v4173_v2 = vpop.f32.mrf.mxu0  ;;  %v4238_v37 = vpop.f32.mrf.mxu1 }
 0x7c1   :  { %v4285_v41 = vadd.f32 %v4173_v2, %v4021_v19  ;;  %v4286_v56 = vadd.f32 %v4238_v37, %v4022_v52  ;;  %4732 = vmatmul.f32.vlgmr.msrb.gmra.mxu0 %v4616_v44  ;;  %6182 = vmatmul.msk.f32.vlgmr.msrb.gmra.mxu1 %vm178_vm0, %v4617_v61  ;;  %v4025_v19 = vadd.f32 %v9835_v26, %v3684_v33 }
 0x7c2   :  { %4883 = vmatmul.f32.vlgmr.msrb.gmra.mxu2 %v4616_v44  ;;  %6198 = vmatmul.msk.f32.vlgmr.msrb.gmra.mxu3 %vm178_vm0, %v4617_v61  ;;  %v4026_v52 = vadd.f32 %v9809_v27, %v3749_v31 }
 0x7c3   :  { %v4548_v1 = vadd.f32 %v4436_v20, %v4285_v41  ;;  %v4549_v5 = vadd.f32 %v4501_v55, %v4286_v56  ;;  %v4448_v48 = vpop.f32.mrf.mxu2  ;;  %v4513_v55 = vpop.f32.mrf.mxu3 }
 0x7c5   :  { %v4587_v16 = vadd.f32 %v10133_v45, %v4549_v5  ;;  %v4586_v37 = vadd.f32 %v10131_v30, %v4548_v1  ;;  %v4027_v5 = vadd.f32 %v9869_v9, %v3687_v39 }
 0x7c7   :  { %v4619_v62 = vmax.f32 %v4587_v16, 0.0  ;;  %v4618_v4 = vmax.f32 %v4586_v37, 0.0  ;;  %v4028_v16 = vadd.f32 %v9856_v8, %v3752_v7 }
 0x7c8   :  { %v4176_v43 = vpop.f32.mrf.mxu0  ;;  %v4241_v34 = vpop.f32.mrf.mxu1 }
 0x7c9   :  { %v4287_v60 = vadd.f32 %v4176_v43, %v4023_v51  ;;  %v4288_v18 = vadd.f32 %v4241_v34, %v4024_v24  ;;  %4735 = vmatmul.f32.gmra.mxu0 %v4618_v4  ;;  %6183 = vmatmul.msk.f32.gmra.mxu1 %vm178_vm0, %v4619_v62 }
 0x7ca   :  { %4886 = vmatmul.f32.gmra.mxu2 %v4618_v4  ;;  %6199 = vmatmul.msk.f32.gmra.mxu3 %vm178_vm0, %v4619_v62  ;;  %v4029_v4 = vadd.f32 %v9904_v50, %v3690_v11  ;;  %v3758_v50 = vadd.f32 %v10012_v53, %v9716_v58  ;;  %v11100_v53 = vld [vmem:[#allocation25_spill] sm:$0xff] }
 0x7cb   :  { %v4550_v38 = vadd.f32 %v4439_v15, %v4287_v60  ;;  %v4551_v20 = vadd.f32 %v4504_v10, %v4288_v18  ;;  %v4451_v46 = vpop.f32.mrf.mxu2  ;;  %v4516_v0 = vpop.f32.mrf.mxu3 }
 0x7cd   :  { %v4589_v36 = vadd.f32 %v10133_v45, %v4551_v20  ;;  %v4588_v44 = vadd.f32 %v10131_v30, %v4550_v38 }
 0x7cf   :  { %v4621_v61 = vmax.f32 %v4589_v36, 0.0  ;;  %v4620_v2 = vmax.f32 %v4588_v44, 0.0  ;;  %v11097_v36 = vld [vmem:[#allocation56_spill] sm:$0xff] }
 0x7d0   :  { %v4179_v41 = vpop.f32.mrf.mxu0  ;;  %v4244_v56 = vpop.f32.mrf.mxu1  ;;  %v4032_v44 = vadd.f32 %v11097_v36, %v3758_v50  ;;  %v11110_v50 = vld [vmem:[#allocation53_spill] sm:$0xff] }
 0x7d1   :  { %v4289_v54 = vadd.f32 %v4179_v41, %v4025_v19  ;;  %v4290_v25 = vadd.f32 %v4244_v56, %v4026_v52  ;;  %4738 = vmatmul.f32.gmra.mxu0 %v4620_v2  ;;  %6184 = vmatmul.msk.f32.gmra.mxu1 %vm178_vm0, %v4621_v61 }
 0x7d2   :  { %4889 = vmatmul.f32.gmra.mxu2 %v4620_v2  ;;  %6200 = vmatmul.msk.f32.gmra.mxu3 %vm178_vm0, %v4621_v61 }
 0x7d3   :  { %v4552_v26 = vadd.f32 %v10127_v3, %v4289_v54  ;;  %v4553_v27 = vadd.f32 %v10129_v49, %v4290_v25  ;;  %v3755_v3 = vadd.f32 %v10000_v22, %v9703_v29  ;;  %v4454_v33 = vpop.f32.mrf.mxu2  ;;  %v4519_v31 = vpop.f32.mrf.mxu3  ;;  %v3693_v29 = vadd.f32 %v10010_v12, %v9714_v17  ;;  %v11098_v17 = vld [vmem:[#allocation84_spill] sm:$0xff]  ;;  %v11099_v12 = vld [vmem:[#allocation85_spill] sm:$0xff] }
 0x7d4   :  { %v3696_v58 = vadd.f32 %v10023_v14, %v11098_v17 }
 0x7d5   :  { %v4591_v15 = vadd.f32 %v10133_v45, %v4553_v27  ;;  %v4590_v10 = vadd.f32 %v10131_v30, %v4552_v26  ;;  %v4030_v43 = vadd.f32 %v9897_v63, %v3755_v3  ;;  %v4031_v20 = vadd.f32 %v9919_v23, %v3693_v29  ;;  %v11101_v26 = vld [vmem:[#allocation93_spill] sm:$0xff] }
 0x7d6   :  { %v4033_v27 = vadd.f32 %v11101_v26, %v3696_v58 }
 0x7d7   :  { %v4623_v1 = vmax.f32 %v4591_v15, 0.0  ;;  %v4622_v37 = vmax.f32 %v4590_v10, 0.0  ;;  %v11102_v15 = vld [vmem:[#allocation94_spill] sm:$0xff] }
 0x7d8   :  { %v4182_v21 = vpop.f32.mrf.mxu0  ;;  %v4247_v57 = vpop.f32.mrf.mxu1 }
 0x7d9   :  { %v4291_v62 = vadd.f32 %v4182_v21, %v4027_v5  ;;  %v4292_v32 = vadd.f32 %v4247_v57, %v4028_v16  ;;  %4741 = vmatmul.f32.gmra.mxu0 %v4622_v37  ;;  %6185 = vmatmul.msk.f32.gmra.mxu1 %vm178_vm0, %v4623_v1  ;;  %v11104_v21 = vld [vmem:[#allocation52_spill] sm:$0xff]  ;;  %v11105_v57 = vld [vmem:[#allocation26_spill] sm:$0xff] }
 0x7da   :  { %4892 = vmatmul.f32.gmra.mxu2 %v4622_v37  ;;  %6201 = vmatmul.msk.f32.gmra.mxu3 %vm178_vm0, %v4623_v1 }
 0x7db   :  { %v4554_v9 = vadd.f32 %v4445_v40, %v4291_v62  ;;  %v4555_v49 = vadd.f32 %v4510_v6, %v4292_v32  ;;  %v4457_v23 = vpop.f32.mrf.mxu2  ;;  %v3764_v62 = vadd.f32 %v11105_v57, %v11104_v21 }
 0x7dd   :  { %v4593_v8 = vadd.f32 %v10133_v45, %v4555_v49  ;;  %v4592_v51 = vadd.f32 %v10131_v30, %v4554_v9 }
 0x7df   :  { %v4625_v24 = vmax.f32 %v4593_v8, 0.0  ;;  %v4624_v34 = vmax.f32 %v4592_v51, 0.0 }
 0x7e0   :  { %v4185_v60 = vpop.f32.mrf.mxu0  ;;  %v4250_v18 = vpop.f32.mrf.mxu1 }
 0x7e1   :  { %v4293_v28 = vadd.f32 %v4185_v60, %v4029_v4  ;;  %v4294_v42 = vadd.f32 %v4250_v18, %v4030_v43  ;;  %4744 = vmatmul.f32.gmra.mxu0 %v4624_v34  ;;  %6186 = vmatmul.msk.f32.gmra.mxu1 %vm178_vm0, %v4625_v24  ;;  %v11107_v43 = vld [vmem:[#allocation22_spill] sm:$0xff] }
 0x7e2   :  { %4895 = vmatmul.f32.gmra.mxu2 %v4624_v34  ;;  %6202 = vmatmul.msk.f32.gmra.mxu3 %vm178_vm0, %v4625_v24  ;;  %v11106_v24 = vld [vmem:[#allocation58_spill] sm:$0xff]  ;;  %v4036_v34 = vadd.f32 %v11107_v43, %v3764_v62 }
 0x7e3   :  { %v4556_v63 = vadd.f32 %v4448_v48, %v4293_v28  ;;  %v4557_v22 = vadd.f32 %v4513_v55, %v4294_v42  ;;  %v3761_v48 = vadd.f32 %v11100_v53, %v11099_v12  ;;  %v4522_v55 = vpop.f32.mrf.mxu3  ;;  %v4460_v3 = vpop.f32.mrf.mxu2 }
 0x7e5   :  { %v4595_v40 = vadd.f32 %v10133_v45, %v4557_v22  ;;  %v4594_v6 = vadd.f32 %v10131_v30, %v4556_v63  ;;  %v4034_v10 = vadd.f32 %v11102_v15, %v3761_v48  ;;  %v11111_v63 = vld [vmem:[#allocation99_spill] sm:$0xff] }
 0x7e6   :  { %v3767_v22 = vadd.f32 %v11111_v63, %v11110_v50 }
 0x7e7   :  { %v4627_v38 = vmax.f32 %v4595_v40, 0.0  ;;  %v4626_v61 = vmax.f32 %v4594_v6, 0.0 }
 0x7e8   :  { %v4188_v19 = vpop.f32.mrf.mxu0  ;;  %v4253_v52 = vpop.f32.mrf.mxu1 }
 0x7e9   :  { %v4295_v2 = vadd.f32 %v4188_v19, %v4031_v20  ;;  %v4296_v41 = vadd.f32 %v4253_v52, %v4032_v44  ;;  %4747 = vmatmul.f32.gmra.mxu0 %v4626_v61  ;;  %6187 = vmatmul.msk.f32.gmra.mxu1 %vm178_vm0, %v4627_v38  ;;  %v11112_v19 = vld [vmem:[#allocation59_spill] sm:$0xff] }
 0x7ea   :  { %4898 = vmatmul.f32.gmra.mxu2 %v4626_v61  ;;  %6203 = vmatmul.msk.f32.gmra.mxu3 %vm178_vm0, %v4627_v38 }
 0x7eb   :  { %v4558_v56 = vadd.f32 %v4451_v46, %v4295_v2  ;;  %v4559_v54 = vadd.f32 %v4516_v0, %v4296_v41  ;;  %v11103_v46 = vld [vmem:[#allocation16_spill] sm:$0xff]  ;;  %v4525_v9 = vpop.f32.mrf.mxu3  ;;  %v4463_v36 = vpop.f32.mrf.mxu2  ;;  %v11113_v2 = vld [vmem:[#allocation23_spill] sm:$0xff] }
 0x7ec   :  { %v3699_v0 = vadd.f32 %v10035_v47, %v11103_v46  ;;  %v4038_v41 = vadd.f32 %v11113_v2, %v3767_v22  ;;  %v11126_v22 = vld [vmem:[#allocation19_spill] sm:$0xff] }
 0x7ed   :  { %v4597_v25 = vadd.f32 %v10133_v45, %v4559_v54  ;;  %v4596_v39 = vadd.f32 %v10131_v30, %v4558_v56  ;;  %v11116_v54 = vld [vmem:[#allocation89_spill] sm:$0xff] }
 0x7ee   :  { %v4035_v4 = vadd.f32 %v11106_v24, %v3699_v0 }
 0x7ef   :  { %v4629_v7 = vmax.f32 %v4597_v25, 0.0  ;;  %v4628_v1 = vmax.f32 %v4596_v39, 0.0  ;;  %v11117_v25 = vld [vmem:[#allocation29_spill] sm:$0xff] }
 0x7f0   :  { %v4191_v5 = vpop.f32.mrf.mxu0  ;;  %v4256_v16 = vpop.f32.mrf.mxu1  ;;  %v3770_v39 = vadd.f32 %v11117_v25, %v11116_v54 }
 0x7f1   :  { %v4297_v14 = vadd.f32 %v4191_v5, %v4033_v27  ;;  %v4298_v37 = vadd.f32 %v4256_v16, %v4034_v10  ;;  %4750 = vmatmul.f32.gmra.mxu0 %v4628_v1  ;;  %6188 = vmatmul.msk.f32.gmra.mxu1 %vm178_vm0, %v4629_v7  ;;  %v11119_v16 = vld [vmem:[#allocation97_spill] sm:$0xff] }
 0x7f2   :  { %4901 = vmatmul.f32.gmra.mxu2 %v4628_v1  ;;  %6204 = vmatmul.msk.f32.gmra.mxu3 %vm178_vm0, %v4629_v7  ;;  %v11118_v1 = vld [vmem:[#allocation96_spill] sm:$0xff] }
 0x7f3   :  { %v4560_v32 = vadd.f32 %v4454_v33, %v4297_v14  ;;  %v4561_v11 = vadd.f32 %v4519_v31, %v4298_v37  ;;  %v11108_v33 = vld [vmem:[#allocation17_spill] sm:$0xff]  ;;  %v11109_v31 = vld [vmem:[#allocation63_spill] sm:$0xff]  ;;  %v4528_v44 = vpop.f32.mrf.mxu3  ;;  %v4040_v14 = vadd.f32 %v11119_v16, %v3770_v39  ;;  %v4466_v21 = vpop.f32.mrf.mxu2 }
 0x7f4   :  { %v3702_v29 = vadd.f32 %v11109_v31, %v11108_v33  ;;  %v11132_v39 = vld [vmem:[#allocation91_spill] sm:$0xff] }
 0x7f5   :  { %v4599_v49 = vadd.f32 %v10133_v45, %v4561_v11  ;;  %v4598_v8 = vadd.f32 %v10131_v30, %v4560_v32  ;;  %v11120_v11 = vld [vmem:[#allocation18_spill] sm:$0xff] }
 0x7f6   :  { %v4037_v52 = vadd.f32 %v11112_v19, %v3702_v29 }
 0x7f7   :  { %v4631_v51 = vmax.f32 %v4599_v49, 0.0  ;;  %v4630_v60 = vmax.f32 %v4598_v8, 0.0  ;;  %v11122_v49 = vld [vmem:[#allocation54_spill] sm:$0xff] }
 0x7f8   :  { %v4194_v18 = vpop.f32.mrf.mxu0  ;;  %v4259_v28 = vpop.f32.mrf.mxu1  ;;  %v11123_v8 = vld [vmem:[#allocation30_spill] sm:$0xff] }
 0x7f9   :  { %v4299_v47 = vadd.f32 %v4194_v18, %v4035_v4  ;;  %v4300_v42 = vadd.f32 %v4259_v28, %v4036_v34  ;;  %4753 = vmatmul.f32.gmra.mxu0 %v4630_v60  ;;  %6189 = vmatmul.msk.f32.gmra.mxu1 %vm178_vm0, %v4631_v51  ;;  %v11124_v18 = vld [vmem:[#allocation24_spill] sm:$0xff] }
 0x7fa   :  { %4904 = vmatmul.f32.gmra.mxu2 %v4630_v60  ;;  %6205 = vmatmul.msk.f32.gmra.mxu3 %vm178_vm0, %v4631_v51  ;;  %v3773_v51 = vadd.f32 %v11123_v8, %v11122_v49  ;;  %v11137_v49 = vld [vmem:[#allocation20_spill] sm:$0xff] }
 0x7fb   :  { %v4562_v40 = vadd.f32 %v4457_v23, %v4299_v47  ;;  %v4563_v6 = vadd.f32 %v4522_v55, %v4300_v42  ;;  %v11114_v23 = vld [vmem:[#allocation88_spill] sm:$0xff]  ;;  %v4531_v57 = vpop.f32.mrf.mxu3 }
 0x7fc   :  { %v11115_v55 = vld [vmem:[#allocation64_spill] sm:$0xff] }
 0x7fd   :  { %v4601_v38 = vadd.f32 %v10133_v45, %v4563_v6  ;;  %v4600_v20 = vadd.f32 %v10131_v30, %v4562_v40  ;;  %v3705_v56 = vadd.f32 %v11115_v55, %v11114_v23  ;;  %v11125_v47 = vld [vmem:[#allocation60_spill] sm:$0xff]  ;;  %v11127_v40 = vld [vmem:[#allocation67_spill] sm:$0xff] }
 0x7fe   :  { %v4042_v42 = vadd.f32 %v11125_v47, %v3773_v51  ;;  %v3711_v6 = vadd.f32 %v11127_v40, %v11126_v22  ;;  %v11138_v8 = vld [vmem:[#allocation68_spill] sm:$0xff]  ;;  %v11141_v40 = vld [vmem:[#allocation21_spill] sm:$0xff] }
 0x7ff   :  { %v4633_v61 = vmax.f32 %v4601_v38, 0.0  ;;  %v4632_v17 = vmax.f32 %v4600_v20, 0.0  ;;  %v4039_v5 = vadd.f32 %v11118_v1, %v3705_v56  ;;  %v11128_v38 = vld [vmem:[#allocation55_spill] sm:$0xff]  ;;  %v11129_v20 = vld [vmem:[#allocation32_spill] sm:$0xff]  ;;  %v3782_v51 = vadd.f32 %v11138_v8, %v11137_v49 }
 0x800   :  { %v4197_v58 = vpop.f32.mrf.mxu0  ;;  %v4262_v12 = vpop.f32.mrf.mxu1  ;;  %v11139_v47 = vld [vmem:[#allocation100_spill] sm:$0xff] }
 0x801   :  { %v4301_v53 = vadd.f32 %v4197_v58, %v4037_v52  ;;  %v4302_v48 = vadd.f32 %v4262_v12, %v4038_v41  ;;  %4756 = vmatmul.f32.gmra.mxu0 %v4632_v17  ;;  %6190 = vmatmul.msk.f32.gmra.mxu1 %vm178_vm0, %v4633_v61  ;;  %v11130_v58 = vld [vmem:[#allocation61_spill] sm:$0xff] }
 0x802   :  { %4907 = vmatmul.f32.gmra.mxu2 %v4632_v17  ;;  %6206 = vmatmul.msk.f32.gmra.mxu3 %vm178_vm0, %v4633_v61  ;;  %v4043_v12 = vadd.f32 %v11130_v58, %v3711_v6  ;;  %v11142_v6 = vld [vmem:[#allocation33_spill] sm:$0xff] }
 0x803   :  { %v4564_v7 = vadd.f32 %v4460_v3, %v4301_v53  ;;  %v4565_v26 = vadd.f32 %v4525_v9, %v4302_v48  ;;  %v11121_v3 = vld [vmem:[#allocation65_spill] sm:$0xff]  ;;  %v4534_v61 = vpop.f32.mrf.mxu3  ;;  %v11131_v53 = vld [vmem:[#allocation98_spill] sm:$0xff] }
 0x804   :  { %v3708_v9 = vadd.f32 %v11121_v3, %v11120_v11 }
 0x805   :  { %v4603_v27 = vadd.f32 %v10133_v45, %v4565_v26  ;;  %v4602_v15 = vadd.f32 %v10131_v30, %v4564_v7  ;;  %v3714_v7 = vadd.f32 %v10094_v35, %v11132_v39  ;;  %v11133_v26 = vld [vmem:[#allocation92_spill] sm:$0xff] }
 0x806   :  { %v4041_v28 = vadd.f32 %v11124_v18, %v3708_v9 }
 0x807   :  { %v4635_v10 = vmax.f32 %v4603_v27, 0.0  ;;  %v4634_v37 = vmax.f32 %v4602_v15, 0.0  ;;  %v3779_v27 = vadd.f32 %v10096_v13, %v11133_v26  ;;  %v11136_v13 = vld [vmem:[#allocation95_spill] sm:$0xff] }
 0x808   :  { %v4200_v46 = vpop.f32.mrf.mxu0  ;;  %v4265_v0 = vpop.f32.mrf.mxu1  ;;  %v3717_v9 = vadd.f32 %v10102_v59, %v11136_v13 }
 0x809   :  { %v4303_v62 = vadd.f32 %v4200_v46, %v4039_v5  ;;  %v4304_v32 = vadd.f32 %v4265_v0, %v4040_v14  ;;  %4759 = vmatmul.f32.gmra.mxu0 %v4634_v37  ;;  %6191 = vmatmul.msk.f32.gmra.mxu1 %vm178_vm0, %v4635_v10  ;;  %v11134_v46 = vld [vmem:[#allocation62_spill] sm:$0xff] }
 0x80a   :  { %4910 = vmatmul.f32.gmra.mxu2 %v4634_v37  ;;  %6207 = vmatmul.msk.f32.gmra.mxu3 %vm178_vm0, %v4635_v10  ;;  %v4045_v0 = vadd.f32 %v11134_v46, %v3714_v7 }
 0x80b   :  { %v4566_v24 = vadd.f32 %v4463_v36, %v4303_v62  ;;  %v4567_v4 = vadd.f32 %v4528_v44, %v4304_v32  ;;  %v3776_v36 = vadd.f32 %v11129_v20, %v11128_v38  ;;  %v4469_v44 = vpop.f32.mrf.mxu2  ;;  %v4537_v5 = vpop.f32.mrf.mxu3  ;;  %v3720_v38 = vadd.f32 %v11142_v6, %v11141_v40  ;;  %v11143_v20 = vld [vmem:[#allocation57_spill] sm:$0xff] }
 0x80d   :  { %v4605_v43 = vadd.f32 %v10133_v45, %v4567_v4  ;;  %v4604_v34 = vadd.f32 %v10131_v30, %v4566_v24  ;;  %v4044_v48 = vadd.f32 %v11131_v53, %v3776_v36  ;;  %v11144_v36 = vld [vmem:[#allocation69_spill] sm:$0xff] }
 0x80f   :  { %v4637_v60 = vmax.f32 %v4605_v43, 0.0  ;;  %v4636_v33 = vmax.f32 %v4604_v34, 0.0 }
 0x810   :  { %v4203_v31 = vpop.f32.mrf.mxu0  ;;  %v4268_v29 = vpop.f32.mrf.mxu1 }
 0x811   :  { %v4305_v50 = vadd.f32 %v4203_v31, %v4041_v28  ;;  %v4306_v63 = vadd.f32 %v4268_v29, %v4042_v42  ;;  %4762 = vmatmul.f32.gmra.mxu0 %v4636_v33  ;;  %6192 = vmatmul.msk.f32.gmra.mxu1 %vm178_vm0, %v4637_v60  ;;  %v4047_v42 = vadd.f32 %v11139_v47, %v3717_v9 }
 0x812   :  { %4913 = vmatmul.f32.gmra.mxu2 %v4636_v33  ;;  %6208 = vmatmul.msk.f32.gmra.mxu3 %vm178_vm0, %v4637_v60  ;;  %v11140_v33 = vld [vmem:[#allocation28_spill] sm:$0xff] }
 0x813   :  { %v4568_v19 = vadd.f32 %v4466_v21, %v4305_v50  ;;  %v4569_v52 = vadd.f32 %v4531_v57, %v4306_v63  ;;  %v4472_v1 = vpop.f32.mrf.mxu2  ;;  %v11135_v21 = vld [vmem:[#allocation27_spill] sm:$0xff]  ;;  %v4540_v18 = vpop.f32.mrf.mxu3  ;;  %v4048_v31 = vadd.f32 %v11140_v33, %v3782_v51 }
 0x814   :  { %v4046_v57 = vadd.f32 %v11135_v21, %v3779_v27 }
 0x815   :  { %v4607_v2 = vadd.f32 %v10133_v45, %v4569_v52  ;;  %v4606_v41 = vadd.f32 %v10131_v30, %v4568_v19 }
 0x817   :  { %v4639_v17 = vmax.f32 %v4607_v2, 0.0  ;;  %v4638_v23 = vmax.f32 %v4606_v41, 0.0 }
 0x818   :  { %v4206_v55 = vpop.f32.mrf.mxu0  ;;  %v4271_v56 = vpop.f32.mrf.mxu1 }
 0x819   :  { %v4307_v54 = vadd.f32 %v4206_v55, %v4043_v12  ;;  %v4308_v25 = vadd.f32 %v4271_v56, %v4044_v48  ;;  %4765 = vmatmul.f32.gmra.mxu0 %v4638_v23  ;;  %6193 = vmatmul.msk.f32.gmra.mxu1 %vm178_vm0, %v4639_v17  ;;  %v11146_v12 = vld [vmem:[#allocation31_spill] sm:$0xff] }
 0x81a   :  { %4916 = vmatmul.f32.gmra.mxu2 %v4638_v23  ;;  %6209 = vmatmul.msk.f32.gmra.mxu3 %vm178_vm0, %v4639_v17  ;;  %v11145_v17 = vld [vmem:[#allocation66_spill] sm:$0xff] }
 0x81b   :  { %v4570_v15 = vadd.f32 %v4469_v44, %v4307_v54  ;;  %v4571_v10 = vadd.f32 %v4534_v61, %v4308_v25  ;;  %v4475_v60 = vpop.f32.mrf.mxu2  ;;  %v3785_v44 = vadd.f32 %v11144_v36, %v11143_v20  ;;  %v4049_v58 = vadd.f32 %v11145_v17, %v3720_v38  ;;  %v4543_v39 = vpop.f32.mrf.mxu3 }
 0x81d   :  { %v4609_v16 = vadd.f32 %v10133_v45, %v4571_v10  ;;  %v4608_v14 = vadd.f32 %v10131_v30, %v4570_v15  ;;  %v4050_v53 = vadd.f32 %v11146_v12, %v3785_v44 }
 0x81f   :  { %v4641_v37 = vmax.f32 %v4609_v16, 0.0  ;;  %v4640_v62 = vmax.f32 %v4608_v14, 0.0 }
 0x820   :  { %v4209_v32 = vpop.f32.mrf.mxu0  ;;  %v4274_v11 = vpop.f32.mrf.mxu1 }
 0x821   :  { %v4309_v35 = vadd.f32 %v4209_v32, %v4045_v0  ;;  %v4310_v3 = vadd.f32 %v4274_v11, %v4046_v57  ;;  %4768 = vmatmul.f32.gmra.mxu0 %v4640_v62  ;;  %6194 = vmatmul.msk.f32.gmra.mxu1 %vm178_vm0, %v4641_v37 }
 0x822   :  { %4919 = vmatmul.f32.gmra.mxu2 %v4640_v62  ;;  %6210 = vmatmul.msk.f32.gmra.mxu3 %vm178_vm0, %v4641_v37 }
 0x823   :  { %v4572_v24 = vadd.f32 %v4472_v1, %v4309_v35  ;;  %v4573_v4 = vadd.f32 %v4537_v5, %v4310_v3  ;;  %v4478_v25 = vpop.f32.mrf.mxu2 }
 0x825   :  { %v4611_v43 = vadd.f32 %v10133_v45, %v4573_v4  ;;  %v4610_v34 = vadd.f32 %v10131_v30, %v4572_v24 }
 0x827   :  { %v4643_v28 = vmax.f32 %v4611_v43, 0.0  ;;  %v4642_v29 = vmax.f32 %v4610_v34, 0.0 }
 0x828   :  { %v4212_v50 = vpop.f32.mrf.mxu0  ;;  %v4277_v63 = vpop.f32.mrf.mxu1 }
 0x829   :  { %v4311_v59 = vadd.f32 %v4212_v50, %v4047_v42  ;;  %v4312_v22 = vadd.f32 %v4277_v63, %v4048_v31  ;;  %4771 = vmatmul.f32.gmra.mxu0 %v4642_v29  ;;  %6195 = vmatmul.msk.f32.gmra.mxu1 %vm178_vm0, %v4643_v28 }
 0x82a   :  { %4922 = vmatmul.f32.gmra.mxu2 %v4642_v29  ;;  %6211 = vmatmul.msk.f32.gmra.mxu3 %vm178_vm0, %v4643_v28 }
 0x82b   :  { %v4574_v61 = vadd.f32 %v4475_v60, %v4311_v59  ;;  %v4575_v19 = vadd.f32 %v4540_v18, %v4312_v22 }
 0x82d   :  { %v4613_v52 = vadd.f32 %v10133_v45, %v4575_v19  ;;  %v4612_v2 = vadd.f32 %v10131_v30, %v4574_v61 }
 0x82f   :  { %v4645_v41 = vmax.f32 %v4613_v52, 0.0  ;;  %v4644_v48 = vmax.f32 %v4612_v2, 0.0 }
 0x830   :  { %v4215_v23 = vpop.f32.mrf.mxu0  ;;  %v4280_v55 = vpop.f32.mrf.mxu1 }
 0x831   :  { %v4313_v56 = vadd.f32 %v4215_v23, %v4049_v58  ;;  %v4314_v54 = vadd.f32 %v4280_v55, %v4050_v53  ;;  %4774 = vmatmul.f32.gmra.mxu0 %v4644_v48  ;;  %6196 = vmatmul.msk.f32.gmra.mxu1 %vm178_vm0, %v4645_v41 }
 0x832   :  { %4925 = vmatmul.f32.gmra.mxu2 %v4644_v48  ;;  %6212 = vmatmul.msk.f32.gmra.mxu3 %vm178_vm0, %v4645_v41 }
 0x833   :  { %v4576_v7 = vadd.f32 %v4478_v25, %v4313_v56  ;;  %v4577_v26 = vadd.f32 %v4543_v39, %v4314_v54 }
 0x835   :  { %v4615_v27 = vadd.f32 %v10133_v45, %v4577_v26  ;;  %v4614_v15 = vadd.f32 %v10131_v30, %v4576_v7 }
 0x837   :  { %v4647_v10 = vmax.f32 %v4615_v27, 0.0  ;;  %v4646_v1 = vmax.f32 %v4614_v15, 0.0 }
 0x839   :  { %4777 = vmatmul.f32.gmra.mxu0 %v4646_v1  ;;  %6197 = vmatmul.msk.f32.gmra.mxu1 %vm178_vm0, %v4647_v10 }
 0x83a   :  { %4928 = vmatmul.f32.gmra.mxu2 %v4646_v1  ;;  %6213 = vmatmul.msk.f32.gmra.mxu3 %vm178_vm0, %v4647_v10 }
 0x83e   :  { %v4733_v5 = vpop.f32.mrf.mxu0  ;;  %v4798_v16 = vpop.f32.mrf.mxu1 }
 0x83f   :  { %v4799_v14 = vadd.f32 %v4798_v16, %v4733_v5 }
 0x845   :  { %v4884_v37 = vpop.f32.mrf.mxu2  ;;  %v4949_v46 = vpop.f32.mrf.mxu3 }
 0x846   :  { %v4950_v0 = vadd.f32 %v4949_v46, %v4884_v37  ;;  %v4736_v21 = vpop.f32.mrf.mxu0  ;;  %v4801_v57 = vpop.f32.mrf.mxu1 }
 0x847   :  { %v4802_v62 = vadd.f32 %v4801_v57, %v4736_v21 }
 0x848   :  { %v10293_v45 = vmax.f32 %v4799_v14, %v4950_v0 }
 0x84d   :  { %v4887_v30 = vpop.f32.mrf.mxu2  ;;  %v4952_v32 = vpop.f32.mrf.mxu3 }
 0x84e   :  { %v4953_v11 = vadd.f32 %v4952_v32, %v4887_v30  ;;  %v4739_v35 = vpop.f32.mrf.mxu0  ;;  %v4804_v3 = vpop.f32.mrf.mxu1 }
 0x84f   :  { %v4805_v13 = vadd.f32 %v4804_v3, %v4739_v35 }
 0x850   :  { %v10295_v9 = vmax.f32 %v4802_v62, %v4953_v11 }
 0x855   :  { %v4890_v49 = vpop.f32.mrf.mxu2  ;;  %v4955_v8 = vpop.f32.mrf.mxu3 }
 0x856   :  { %v4956_v51 = vadd.f32 %v4955_v8, %v4890_v49  ;;  %v4742_v24 = vpop.f32.mrf.mxu0  ;;  %v4807_v4 = vpop.f32.mrf.mxu1 }
 0x857   :  { %v4808_v43 = vadd.f32 %v4807_v4, %v4742_v24 }
 0x858   :  { %v10297_v34 = vmax.f32 %v4805_v13, %v4956_v51 }
 0x85d   :  { %v4893_v60 = vpop.f32.mrf.mxu2  ;;  %v4958_v18 = vpop.f32.mrf.mxu3 }
 0x85e   :  { %v4959_v28 = vadd.f32 %v4958_v18, %v4893_v60  ;;  %v4745_v47 = vpop.f32.mrf.mxu0  ;;  %v4810_v42 = vpop.f32.mrf.mxu1 }
 0x85f   :  { %v4811_v33 = vadd.f32 %v4810_v42, %v4745_v47 }
 0x860   :  { %v10299_v31 = vmax.f32 %v4808_v43, %v4959_v28 }
 0x865   :  { %v4896_v29 = vpop.f32.mrf.mxu2  ;;  %v4961_v50 = vpop.f32.mrf.mxu3 }
 0x866   :  { %v4962_v63 = vadd.f32 %v4961_v50, %v4896_v29  ;;  %v4748_v59 = vpop.f32.mrf.mxu0  ;;  %v4813_v22 = vpop.f32.mrf.mxu1 }
 0x867   :  { %v4814_v40 = vadd.f32 %v4813_v22, %v4748_v59 }
 0x868   :  { %v10301_v6 = vmax.f32 %v4811_v33, %v4962_v63 }
 0x86d   :  { %v4899_v38 = vpop.f32.mrf.mxu2  ;;  %v4964_v20 = vpop.f32.mrf.mxu3 }
 0x86e   :  { %v4965_v36 = vadd.f32 %v4964_v20, %v4899_v38  ;;  %v4751_v44 = vpop.f32.mrf.mxu0  ;;  %v4816_v61 = vpop.f32.mrf.mxu1 }
 0x86f   :  { %v4817_v19 = vadd.f32 %v4816_v61, %v4751_v44 }
 0x870   :  { %v10303_v52 = vmax.f32 %v4814_v40, %v4965_v36 }
 0x875   :  { %v4902_v2 = vpop.f32.mrf.mxu2  ;;  %v4967_v41 = vpop.f32.mrf.mxu3 }
 0x876   :  { %v4968_v17 = vadd.f32 %v4967_v41, %v4902_v2  ;;  %v4754_v58 = vpop.f32.mrf.mxu0  ;;  %v4819_v12 = vpop.f32.mrf.mxu1 }
 0x877   :  { %v4820_v53 = vadd.f32 %v4819_v12, %v4754_v58 }
 0x878   :  { %v10305_v48 = vmax.f32 %v4817_v19, %v4968_v17 }
 0x87d   :  { %v4905_v23 = vpop.f32.mrf.mxu2  ;;  %v4970_v55 = vpop.f32.mrf.mxu3 }
 0x87e   :  { %v4971_v56 = vadd.f32 %v4970_v55, %v4905_v23  ;;  %v4757_v54 = vpop.f32.mrf.mxu0  ;;  %v4822_v25 = vpop.f32.mrf.mxu1 }
 0x87f   :  { %v4823_v39 = vadd.f32 %v4822_v25, %v4757_v54  ;;  %v6217_v54 = vld [vmem:[%s10697_s7 + $0x58] sm:$0xff]  ;;  %v5017_v25 = vld [vmem:[%s10697_s7 + $0x20] sm:$0xff] }
 0x880   :  { %v10307_v7 = vmax.f32 %v4820_v53, %v4971_v56 }
 0x885   :  { %v4908_v26 = vpop.f32.mrf.mxu2  ;;  %v4973_v27 = vpop.f32.mrf.mxu3 }
 0x886   :  { %v4974_v15 = vadd.f32 %v4973_v27, %v4908_v26  ;;  %v4760_v10 = vpop.f32.mrf.mxu0  ;;  %v4825_v1 = vpop.f32.mrf.mxu1  ;;  %v6219_v26 = vld [vmem:[%s10697_s7 + $0x68] sm:$0xff]  ;;  %v5019_v27 = vld [vmem:[%s10697_s7 + $0x30] sm:$0xff] }
 0x887   :  { %v4826_v23 = vadd.f32 %v4825_v1, %v4760_v10  ;;  %v5020_v10 = vld [vmem:[%s10697_s7 + $0x38] sm:$0xff] }
 0x888   :  { %v5005_v5 = vmax.f32 %v4823_v39, %v4974_v15  ;;  %v6218_v39 = vld [vmem:[%s10697_s7 + $0x60] sm:$0xff]  ;;  %v6220_v15 = vld [vmem:[%s10697_s7 + $0x70] sm:$0xff]  ;;  %v6221_v1 = vld [vmem:[%s10697_s7 + $0x78] sm:$0xff] }
 0x88d   :  { %v4911_v16 = vpop.f32.mrf.mxu2  ;;  %v4976_v14 = vpop.f32.mrf.mxu3 }
 0x88e   :  { %v4763_v37 = vpop.f32.mrf.mxu0  ;;  %v4828_v46 = vpop.f32.mrf.mxu1  ;;  %v4977_v58 = vadd.f32 %v4976_v14, %v4911_v16  ;;  %v5129_v16 = vld [vmem:[%s10699_s9 + $0x48] sm:$0xff]  ;;  %v6230_v14 = vld [vmem:[%s10699_s9 + $0x90] sm:$0xff] }
 0x88f   :  { %v4829_v12 = vadd.f32 %v4828_v46, %v4763_v37  ;;  %5215 = vmatpush.msra.mxu3 %v5129_v16  ;;  %v5128_v37 = vld [vmem:[%s10699_s9 + $0x40] sm:$0xff]  ;;  %v6229_v46 = vld [vmem:[%s10699_s9 + $0x88] sm:$0xff] }
 0x890   :  { %v5006_v56 = vmax.f32 %v4826_v23, %v4977_v58  ;;  %v6250_v58 = vld [vmem:[%s10699_s9 + $0x118] sm:$0xff] }
 0x891   :  { %5216 = vmatpush.msra.mxu3 %v5128_v37 }
 0x895   :  { %v4914_v0 = vpop.f32.mrf.mxu2  ;;  %v4979_v21 = vpop.f32.mrf.mxu3 }
 0x896   :  { %v4766_v57 = vpop.f32.mrf.mxu0  ;;  %v4831_v62 = vpop.f32.mrf.mxu1  ;;  %v4980_v2 = vadd.f32 %v4979_v21, %v4914_v0  ;;  %v6228_v0 = vld [vmem:[%s10699_s9 + $0x80] sm:$0xff] }
 0x897   :  { %v4832_v41 = vadd.f32 %v4831_v62, %v4766_v57  ;;  %v6227_v62 = vld [vmem:[%s10699_s9 + $0x78] sm:$0xff] }
 0x898   :  { %v5007_v55 = vmax.f32 %v4829_v12, %v4980_v2  ;;  %v6235_v2 = vld [vmem:[%s10699_s9 + $0xa8] sm:$0xff]  ;;  %v6249_v12 = vld [vmem:[%s10699_s9 + $0x110] sm:$0xff] }
 0x89d   :  { %v4917_v30 = vpop.f32.mrf.mxu2  ;;  %v4982_v32 = vpop.f32.mrf.mxu3 }
 0x89e   :  { %v4769_v11 = vpop.f32.mrf.mxu0  ;;  %v4834_v35 = vpop.f32.mrf.mxu1  ;;  %v4983_v44 = vadd.f32 %v4982_v32, %v4917_v30  ;;  %v6226_v30 = vld [vmem:[%s10699_s9 + $0x70] sm:$0xff]  ;;  %v6225_v32 = vld [vmem:[%s10699_s9 + $0x68] sm:$0xff] }
 0x89f   :  { %v4835_v61 = vadd.f32 %v4834_v35, %v4769_v11  ;;  %v6224_v11 = vld [vmem:[%s10699_s9 + $0x60] sm:$0xff]  ;;  %v5127_v35 = vld [vmem:[%s10699_s9 + $0x38] sm:$0xff] }
 0x8a0   :  { %v5008_v53 = vmax.f32 %v4832_v41, %v4983_v44  ;;  %5217 = vmatpush.msra.mxu3 %v5127_v35  ;;  %v6251_v41 = vld [vmem:[%s10699_s9 + $0x120] sm:$0xff] }
 0x8a5   :  { %v4920_v3 = vpop.f32.mrf.mxu2  ;;  %v4985_v13 = vpop.f32.mrf.mxu3 }
 0x8a6   :  { %v4772_v49 = vpop.f32.mrf.mxu0  ;;  %v4837_v8 = vpop.f32.mrf.mxu1  ;;  %v4986_v38 = vadd.f32 %v4985_v13, %v4920_v3  ;;  %v5126_v3 = vld [vmem:[%s10699_s9 + $0x30] sm:$0xff] }
 0x8a7   :  { %v4838_v20 = vadd.f32 %v4837_v8, %v4772_v49  ;;  %5218 = vmatpush.msra.mxu3 %v5126_v3  ;;  %v6223_v8 = vld [vmem:[%s10699_s9 + $0x58] sm:$0xff] }
 0x8a8   :  { %v5009_v17 = vmax.f32 %v4835_v61, %v4986_v38  ;;  %v6237_v38 = vld [vmem:[%s10699_s9 + $0xb8] sm:$0xff] }
 0x8ad   :  { %v4923_v51 = vpop.f32.mrf.mxu2  ;;  %v4988_v24 = vpop.f32.mrf.mxu3 }
 0x8ae   :  { %v4775_v4 = vpop.f32.mrf.mxu0  ;;  %v4840_v43 = vpop.f32.mrf.mxu1  ;;  %v4989_v59 = vadd.f32 %v4988_v24, %v4923_v51  ;;  %v5125_v51 = vld [vmem:[%s10699_s9 + $0x28] sm:$0xff]  ;;  %v6222_v24 = vld [vmem:[%s10699_s9 + $0x50] sm:$0xff] }
 0x8af   :  { %v4841_v22 = vadd.f32 %v4840_v43, %v4775_v4  ;;  %5219 = vmatpush.msra.mxu3 %v5125_v51  ;;  %v5124_v4 = vld [vmem:[%s10699_s9 + $0x20] sm:$0xff]  ;;  %v6243_v43 = vld [vmem:[%s10699_s9 + $0xe8] sm:$0xff] }
 0x8b0   :  { %v5010_v19 = vmax.f32 %v4838_v20, %v4989_v59  ;;  %v6239_v59 = vld [vmem:[%s10699_s9 + $0xc8] sm:$0xff]  ;;  %v6253_v20 = vld [vmem:[%s10699_s9 + $0x130] sm:$0xff] }
 0x8b1   :  { %5220 = vmatpush.msra.mxu3 %v5124_v4 }
 0x8b5   :  { %v4926_v60 = vpop.f32.mrf.mxu2  ;;  %v4991_v18 = vpop.f32.mrf.mxu3 }
 0x8b6   :  { %v4778_v28 = vpop.f32.mrf.mxu0  ;;  %v4843_v47 = vpop.f32.mrf.mxu1  ;;  %v4992_v29 = vadd.f32 %v4991_v18, %v4926_v60  ;;  %v6242_v60 = vld [vmem:[%s10699_s9 + $0xe0] sm:$0xff]  ;;  %v5123_v18 = vld [vmem:[%s10699_s9 + $0x18] sm:$0xff] }
 0x8b7   :  { %v4844_v50 = vadd.f32 %v4843_v47, %v4778_v28  ;;  %v6241_v28 = vld [vmem:[%s10699_s9 + $0xd8] sm:$0xff]  ;;  %5221 = vmatpush.msra.mxu3 %v5123_v18  ;;  %v5122_v47 = vld [vmem:[%s10699_s9 + $0x10] sm:$0xff] }
 0x8b8   :  { %v5011_v36 = vmax.f32 %v4841_v22, %v4992_v29  ;;  %v5121_v29 = vld [vmem:[%s10699_s9 + $0x8] sm:$0xff]  ;;  %v6254_v22 = vld [vmem:[%s10699_s9 + $0x138] sm:$0xff] }
 0x8b9   :  { %5222 = vmatpush.msra.mxu3 %v5122_v47 }
 0x8bb   :  { %5223 = vmatpush.msra.mxu3 %v5121_v29 }
 0x8bd   :  { %v4929_v42 = vpop.f32.mrf.mxu2  ;;  %v4994_v33 = vpop.f32.mrf.mxu3 }
 0x8be   :  { %v4995_v63 = vadd.f32 %v4994_v33, %v4929_v42 }
 0x8c0   :  { %v5012_v40 = vmax.f32 %v4844_v50, %v4995_v63  ;;  %v6240_v50 = vld [vmem:[%s10699_s9 + $0xd0] sm:$0xff]  ;;  %v5120_v63 = vld [vmem:[%s10699_s9] sm:$0xff] }
 0x8c1   :  { %5224 = vmatpush.msra.mxu3 %v5120_v63  ;;  %v6265_v63 = vld [vmem:[%s10699_s9 + $0x188] sm:$0xff] }
 0x8c2   :  { %5021 = vmatpush.msra.mxu0 %v5012_v40  ;;  %5071 = vmatpush.msra.mxu1 %v5012_v40  ;;  %v6238_v40 = vld [vmem:[%s10699_s9 + $0xc0] sm:$0xff] }
 0x8c3   :  { %5310 = vmatpush.msrb.mxu3 %v6254_v22  ;;  %v5393_v22 = vld [vmem:[%s10701_s11 + $0x70] sm:$0xff] }
 0x8c4   :  { %5022 = vmatpush.msra.mxu0 %v5011_v36  ;;  %5072 = vmatpush.msra.mxu1 %v5011_v36  ;;  %v6252_v36 = vld [vmem:[%s10699_s9 + $0x128] sm:$0xff] }
 0x8c5   :  { %5311 = vmatpush.msrb.mxu3 %v6253_v20 }
 0x8c6   :  { %5023 = vmatpush.msra.mxu0 %v5010_v19  ;;  %5073 = vmatpush.msra.mxu1 %v5010_v19  ;;  %v6236_v19 = vld [vmem:[%s10699_s9 + $0xb0] sm:$0xff] }
 0x8c7   :  { %5312 = vmatpush.msrb.mxu3 %v6252_v36 }
 0x8c8   :  { %5024 = vmatpush.msra.mxu0 %v5009_v17  ;;  %5074 = vmatpush.msra.mxu1 %v5009_v17  ;;  %v6234_v17 = vld [vmem:[%s10699_s9 + $0xa0] sm:$0xff] }
 0x8c9   :  { %5313 = vmatpush.msrb.mxu3 %v6251_v41 }
 0x8ca   :  { %5025 = vmatpush.msra.mxu0 %v5008_v53  ;;  %5075 = vmatpush.msra.mxu1 %v5008_v53  ;;  %v6248_v53 = vld [vmem:[%s10699_s9 + $0x108] sm:$0xff] }
 0x8cb   :  { %5314 = vmatpush.msrb.mxu3 %v6250_v58 }
 0x8cc   :  { %5026 = vmatpush.msra.mxu0 %v5007_v55  ;;  %5076 = vmatpush.msra.mxu1 %v5007_v55 }
 0x8cd   :  { %5315 = vmatpush.msrb.mxu3 %v6249_v12 }
 0x8ce   :  { %5027 = vmatpush.msra.mxu0 %v5006_v56  ;;  %5077 = vmatpush.msra.mxu1 %v5006_v56  ;;  %v6247_v56 = vld [vmem:[%s10699_s9 + $0x100] sm:$0xff] }
 0x8cf   :  { %5316 = vmatpush.msrb.mxu3 %v6248_v53 }
 0x8d0   :  { %5028 = vmatpush.msra.mxu0 %v5005_v5  ;;  %5078 = vmatpush.msra.mxu1 %v5005_v5  ;;  %v6231_v5 = vld [vmem:[%s10699_s9 + $0x98] sm:$0xff] }
 0x8d1   :  { %5179 = vmatpush.msra.mxu2 %v6231_v5  ;;  %5317 = vmatpush.msrb.mxu3 %v6247_v56 }
 0x8d2   :  { %5029 = vmatpush.msra.mxu0 %v10307_v7  ;;  %5079 = vmatpush.msra.mxu1 %v10307_v7  ;;  %v5018_v7 = vld [vmem:[%s10697_s7 + $0x28] sm:$0xff] }
 0x8d3   :  { %5180 = vmatpush.msra.mxu2 %v6230_v14 }
 0x8d4   :  { %5030 = vmatpush.msra.mxu0 %v10305_v48  ;;  %5080 = vmatpush.msra.mxu1 %v10305_v48  ;;  %v5016_v48 = vld [vmem:[%s10697_s7 + $0x18] sm:$0xff] }
 0x8d5   :  { %5181 = vmatpush.msra.mxu2 %v6229_v46 }
 0x8d6   :  { %5031 = vmatpush.msra.mxu0 %v10303_v52  ;;  %5081 = vmatpush.msra.mxu1 %v10303_v52  ;;  %v5013_v52 = vld [vmem:[%s10697_s7] sm:$0xff] }
 0x8d7   :  { %5182 = vmatpush.msra.mxu2 %v6228_v0 }
 0x8d8   :  { %5032 = vmatpush.msra.mxu0 %v10301_v6  ;;  %5082 = vmatpush.msra.mxu1 %v10301_v6  ;;  %v6214_v6 = vld [vmem:[%s10697_s7 + $0x40] sm:$0xff] }
 0x8d9   :  { %5183 = vmatpush.msra.mxu2 %v6227_v62 }
 0x8da   :  { %5033 = vmatpush.msra.mxu0 %v10299_v31  ;;  %5083 = vmatpush.msra.mxu1 %v10299_v31  ;;  %v5015_v31 = vld [vmem:[%s10697_s7 + $0x10] sm:$0xff] }
 0x8db   :  { %5184 = vmatpush.msra.mxu2 %v6226_v30 }
 0x8dc   :  { %5034 = vmatpush.msra.mxu0 %v10297_v34  ;;  %5084 = vmatpush.msra.mxu1 %v10297_v34  ;;  %v5014_v34 = vld [vmem:[%s10697_s7 + $0x8] sm:$0xff] }
 0x8dd   :  { %5185 = vmatpush.msra.mxu2 %v6225_v32 }
 0x8de   :  { %5035 = vmatpush.msra.mxu0 %v10295_v9  ;;  %5085 = vmatpush.msra.mxu1 %v10295_v9  ;;  %v6215_v9 = vld [vmem:[%s10697_s7 + $0x48] sm:$0xff] }
 0x8df   :  { %5186 = vmatpush.msra.mxu2 %v6224_v11 }
 0x8e0   :  { %5036 = vmatpush.msra.mxu0 %v10293_v45  ;;  %5086 = vmatpush.msra.mxu1 %v10293_v45  ;;  %v6216_v45 = vld [vmem:[%s10697_s7 + $0x50] sm:$0xff] }
 0x8e1   :  { %5037 = vmatmul.f32.vlgmr.msra.gmra.mxu0 %v5013_v52  ;;  %5087 = vmatmul.f32.vlgmr.msra.gmra.mxu1 %v6214_v6  ;;  %v6246_v52 = vld [vmem:[%s10699_s9 + $0xf8] sm:$0xff]  ;;  %v6245_v6 = vld [vmem:[%s10699_s9 + $0xf0] sm:$0xff] }
 0x8e2   :  { %5187 = vmatpush.msra.mxu2 %v6223_v8  ;;  %5318 = vmatpush.msrb.mxu3 %v6246_v52  ;;  %v6263_v52 = vld [vmem:[%s10699_s9 + $0x178] sm:$0xff] }
 0x8e4   :  { %5188 = vmatpush.msra.mxu2 %v6222_v24  ;;  %5319 = vmatpush.msrb.mxu3 %v6245_v6  ;;  %v5391_v6 = vld [vmem:[%s10701_s11 + $0x60] sm:$0xff] }
 0x8e6   :  { %5262 = vmatpush.msrb.mxu2 %v6243_v43 }
 0x8e8   :  { %5263 = vmatpush.msrb.mxu2 %v6242_v60 }
 0x8e9   :  { %5040 = vmatmul.f32.gmra.mxu0 %v5014_v34  ;;  %5090 = vmatmul.f32.gmra.mxu1 %v6215_v9 }
 0x8ea   :  { %5264 = vmatpush.msrb.mxu2 %v6241_v28 }
 0x8ec   :  { %5265 = vmatpush.msrb.mxu2 %v6240_v50 }
 0x8ee   :  { %5266 = vmatpush.msrb.mxu2 %v6239_v59 }
 0x8f0   :  { %5267 = vmatpush.msrb.mxu2 %v6238_v40 }
 0x8f1   :  { %5043 = vmatmul.f32.gmra.mxu0 %v5015_v31  ;;  %5093 = vmatmul.f32.gmra.mxu1 %v6216_v45 }
 0x8f2   :  { %5268 = vmatpush.msrb.mxu2 %v6237_v38 }
 0x8f4   :  { %5269 = vmatpush.msrb.mxu2 %v6236_v19  ;;  %v6264_v19 = vld [vmem:[%s10699_s9 + $0x180] sm:$0xff] }
 0x8f6   :  { %5270 = vmatpush.msrb.mxu2 %v6235_v2  ;;  %v5392_v2 = vld [vmem:[%s10701_s11 + $0x68] sm:$0xff] }
 0x8f8   :  { %5271 = vmatpush.msrb.mxu2 %v6234_v17 }
 0x8f9   :  { %5046 = vmatmul.f32.gmra.mxu0 %v5016_v48  ;;  %5096 = vmatmul.f32.gmra.mxu1 %v6217_v54 }
 0x901   :  { %5049 = vmatmul.f32.gmra.mxu0 %v5017_v25  ;;  %5099 = vmatmul.f32.gmra.mxu1 %v6218_v39 }
 0x909   :  { %5052 = vmatmul.f32.gmra.mxu0 %v5018_v7  ;;  %5102 = vmatmul.f32.gmra.mxu1 %v6219_v26 }
 0x911   :  { %5055 = vmatmul.f32.gmra.mxu0 %v5019_v27  ;;  %5105 = vmatmul.f32.gmra.mxu1 %v6220_v15 }
 0x919   :  { %5058 = vmatmul.f32.gmra.mxu0 %v5020_v10  ;;  %5108 = vmatmul.f32.gmra.mxu1 %v6221_v1 }
 0x95e   :  { %v10391_v21 = vpop.f32.mrf.mxu0  ;;  %v10393_v57 = vpop.f32.mrf.mxu1 }
 0x95f   :  { %v10503_v31 = vmax.f32 %v10391_v21, %v10393_v57 }
 0x961   :  { %v5149_v26 = vrot.slane %v10503_v31, 1  ;;  %v5288_v40 = vrot.slane %v10503_v31, 3 }
 0x966   :  { %v10413_v13 = vpop.f32.mrf.mxu0  ;;  %v10415_v49 = vpop.f32.mrf.mxu1 }
 0x967   :  { %v10507_v45 = vmax.f32 %v10413_v13, %v10415_v49 }
 0x969   :  { %v5193_v27 = vrot.slane %v10507_v45, 7  ;;  %v5151_v16 = vsel %vm5150_vm7, %v10507_v45, %v5149_v26  ;;  %v5241_v46 = vrot.slane %v10507_v45, 1  ;;  %v5289_v0 = vrot.slane %v10507_v45, 2  ;;  %v6262_v26 = vld [vmem:[%s10699_s9 + $0x170] sm:$0xff] }
 0x96b   :  { %v5194_v62 = vsel %vm5150_vm7, %v5193_v27, %v10503_v31  ;;  %v5290_v17 = vsel %vm5150_vm7, %v5289_v0, %v5288_v40  ;;  %v5432_v40 = vld [vmem:[#allocation6 + $0x48] sm:$0xff] }
 0x96e   :  { %v5044_v42 = vpop.f32.mrf.mxu0  ;;  %v5094_v33 = vpop.f32.mrf.mxu1 }
 0x96f   :  { %v10509_v48 = vmax.f32 %v5044_v42, %v5094_v33  ;;  %v5240_v33 = vrot.slane %v10503_v31, 2 }
 0x971   :  { %v5152_v10 = vrot.slane %v10509_v48, 7  ;;  %v5195_v1 = vrot.slane %v10509_v48, 6  ;;  %v5291_v29 = vrot.slane %v10509_v48, 1  ;;  %v5242_v41 = vsel %vm5150_vm7, %v5241_v46, %v5240_v33  ;;  %v5383_v33 = vld [vmem:[%s10701_s11 + $0x20] sm:$0xff] }
 0x972   :  { %v5243_v53 = vsel %vm5153_vm8, %v10509_v48, %v5242_v41 }
 0x973   :  { %v5154_v11 = vsel %vm5153_vm8, %v5152_v10, %v5151_v16  ;;  %v5196_v35 = vsel %vm5153_vm8, %v5195_v1, %v5194_v62  ;;  %v5337_v62 = vrot.slane %v10507_v45, 3 }
 0x976   :  { %v5047_v44 = vpop.f32.mrf.mxu0  ;;  %v5097_v61 = vpop.f32.mrf.mxu1 }
 0x977   :  { %v10511_v39 = vmax.f32 %v5047_v44, %v5097_v61 }
 0x979   :  { %v5155_v14 = vrot.slane %v10511_v39, 6  ;;  %v5197_v37 = vrot.slane %v10511_v39, 5  ;;  %v5244_v38 = vrot.slane %v10511_v39, 7 }
 0x97b   :  { %v5157_v24 = vsel %vm5156_vm9, %v5155_v14, %v5154_v11  ;;  %v5198_v4 = vsel %vm5156_vm9, %v5197_v37, %v5196_v35  ;;  %v6261_v14 = vld [vmem:[%s10699_s9 + $0x168] sm:$0xff]  ;;  %v5336_v11 = vrot.slane %v10503_v31, 4  ;;  %v5341_v35 = vrot.slane %v10511_v39, 1 }
 0x97c   :  { %v6257_v31 = vld [vmem:[%s10699_s9 + $0x148] sm:$0xff] }
 0x97e   :  { %v5050_v23 = vpop.f32.mrf.mxu0  ;;  %v5100_v55 = vpop.f32.mrf.mxu1 }
 0x97f   :  { %v10513_v7 = vmax.f32 %v5050_v23, %v5100_v55  ;;  %v5292_v23 = vsel %vm5153_vm8, %v5291_v29, %v5290_v17  ;;  %v5382_v29 = vld [vmem:[%s10701_s11 + $0x18] sm:$0xff] }
 0x981   :  { %v5158_v21 = vrot.slane %v10513_v7, 5  ;;  %v5199_v57 = vrot.slane %v10513_v7, 4  ;;  %v5246_v44 = vrot.slane %v10513_v7, 6  ;;  %v5294_v61 = vrot.slane %v10513_v7, 7 }
 0x983   :  { %v5160_v43 = vsel %vm5159_vm10, %v5158_v21, %v5157_v24  ;;  %v5200_v60 = vsel %vm5159_vm10, %v5199_v57, %v5198_v4  ;;  %v6260_v57 = vld [vmem:[%s10699_s9 + $0x160] sm:$0xff] }
 0x986   :  { %v5053_v34 = vpop.f32.mrf.mxu0  ;;  %v5103_v9 = vpop.f32.mrf.mxu1 }
 0x987   :  { %v10517_v15 = vmax.f32 %v5053_v34, %v5103_v9  ;;  %v5293_v34 = vsel %vm5156_vm9, %v10511_v39, %v5292_v23  ;;  %v5245_v9 = vsel %vm5156_vm9, %v5244_v38, %v5243_v53  ;;  %v5431_v38 = vld [vmem:[#allocation6 + $0x40] sm:$0xff] }
 0x988   :  { %v5247_v27 = vsel %vm5159_vm10, %v5246_v44, %v5245_v9  ;;  %v5295_v10 = vsel %vm5159_vm10, %v5294_v61, %v5293_v34  ;;  %v5428_v61 = vld [vmem:[#allocation6 + $0x28] sm:$0xff]  ;;  %v5425_v9 = vld [vmem:[#allocation6 + $0x10] sm:$0xff] }
 0x989   :  { %v5161_v30 = vrot.slane %v10517_v15, 4  ;;  %v5201_v32 = vrot.slane %v10517_v15, 3  ;;  %v5248_v58 = vrot.slane %v10517_v15, 5  ;;  %v5296_v12 = vrot.slane %v10517_v15, 6 }
 0x98a   :  { %v5344_v45 = vrot.slane %v10517_v15, 7  ;;  %v6256_v15 = vld [vmem:[%s10699_s9 + $0x140] sm:$0xff] }
 0x98b   :  { %v5163_v18 = vsel %vm5162_vm11, %v5161_v30, %v5160_v43  ;;  %v5202_v47 = vsel %vm5162_vm11, %v5201_v32, %v5200_v60  ;;  %v5249_v1 = vsel %vm5162_vm11, %v5248_v58, %v5247_v27  ;;  %v5297_v16 = vsel %vm5162_vm11, %v5296_v12, %v5295_v10  ;;  %v6259_v32 = vld [vmem:[%s10699_s9 + $0x158] sm:$0xff]  ;;  %v5388_v60 = vld [vmem:[%s10701_s11 + $0x48] sm:$0xff] }
 0x98c   :  { %v5339_v30 = vrot.slane %v10509_v48, 2 }
 0x98e   :  { %v5056_v54 = vpop.f32.mrf.mxu0  ;;  %v5106_v25 = vpop.f32.mrf.mxu1 }
 0x98f   :  { %v10521_v5 = vmax.f32 %v5056_v54, %v5106_v25 }
 0x991   :  { %v5164_v3 = vrot.slane %v10521_v5, 3  ;;  %v5203_v13 = vrot.slane %v10521_v5, 2  ;;  %v5250_v55 = vrot.slane %v10521_v5, 4  ;;  %v5298_v56 = vrot.slane %v10521_v5, 5 }
 0x993   :  { %v5166_v50 = vsel %vm5165_vm12, %v5164_v3, %v5163_v18  ;;  %v5204_v59 = vsel %vm5165_vm12, %v5203_v13, %v5202_v47  ;;  %v5251_v37 = vsel %vm5165_vm12, %v5250_v55, %v5249_v1  ;;  %v5299_v46 = vsel %vm5165_vm12, %v5298_v56, %v5297_v16  ;;  %v6258_v3 = vld [vmem:[%s10699_s9 + $0x150] sm:$0xff]  ;;  %v5387_v18 = vld [vmem:[%s10701_s11 + $0x40] sm:$0xff] }
 0x994   :  { %v5338_v13 = vsel %vm5150_vm7, %v5337_v62, %v5336_v11  ;;  %v5385_v47 = vld [vmem:[%s10701_s11 + $0x30] sm:$0xff]  ;;  %v6277_v55 = vld [vmem:[%s10700_s10] ss:$0 sm:$0xff] }
 0x995   :  { %v5340_v48 = vsel %vm5153_vm8, %v5339_v30, %v5338_v13  ;;  %v6279_v16 = vld [vmem:[%s10704_s14] ss:$0 sm:$0xff] }
 0x996   :  { %v5059_v49 = vpop.f32.mrf.mxu0  ;;  %v5109_v8 = vpop.f32.mrf.mxu1  ;;  %v5342_v39 = vsel %vm5156_vm9, %v5341_v35, %v5340_v48 }
 0x997   :  { %v10539_v51 = vmax.f32 %v5059_v49, %v5109_v8  ;;  %v5346_v49 = vrot.slane %v10521_v5, 6  ;;  %v5343_v24 = vsel %vm5159_vm10, %v10513_v7, %v5342_v39  ;;  %v5389_v7 = vld [vmem:[%s10701_s11 + $0x50] sm:$0xff] }
 0x998   :  { %v5345_v4 = vsel %vm5162_vm11, %v5344_v45, %v5343_v24 }
 0x999   :  { %v5167_v28 = vrot.slane %v10539_v51, 2  ;;  %v5205_v42 = vrot.slane %v10539_v51, 1  ;;  %v5252_v54 = vrot.slane %v10539_v51, 3  ;;  %v5300_v25 = vrot.slane %v10539_v51, 4 }
 0x99a   :  { %v5348_v8 = vrot.slane %v10539_v51, 5  ;;  %v5347_v5 = vsel %vm5165_vm12, %v5346_v49, %v5345_v4  ;;  %v5390_v51 = vld [vmem:[%s10701_s11 + $0x58] sm:$0xff] }
 0x99b   :  { %v5169_v20 = vsel %vm5168_vm13, %v5167_v28, %v5166_v50  ;;  %v5206_v36 = vsel %vm5168_vm13, %v5205_v42, %v5204_v59  ;;  %v5253_v0 = vsel %vm5168_vm13, %v5252_v54, %v5251_v37  ;;  %v5301_v21 = vsel %vm5168_vm13, %v5300_v25, %v5299_v46  ;;  %v5386_v28 = vld [vmem:[%s10701_s11 + $0x38] sm:$0xff]  ;;  %v5384_v42 = vld [vmem:[%s10701_s11 + $0x28] sm:$0xff]  ;;  %v5381_v50 = vld [vmem:[%s10701_s11 + $0x10] sm:$0xff] }
 0x99c   :  { %6232 = vmatmul.msk.f32.vlgmr.msra.gmra.mxu2 %vm5170_vm14, %v5169_v20  ;;  %6233 = vmatmul.msk.f32.vlgmr.msra.gmra.mxu3 %vm5170_vm14, %v5206_v36  ;;  %v5349_v43 = vsel %vm5168_vm13, %v5348_v8, %v5347_v5  ;;  %v5379_v59 = vld [vmem:[%s10701_s11] sm:$0xff]  ;;  %v5430_v20 = vld [vmem:[#allocation6 + $0x38] sm:$0xff]  ;;  %v5429_v36 = vld [vmem:[#allocation6 + $0x30] sm:$0xff] }
 0x99d   :  { %5358 = vmatpush.msra.mxu2 %v6265_v63  ;;  %5403 = vmatpush.msra.mxu3 %v5393_v22  ;;  %v5380_v63 = vld [vmem:[%s10701_s11 + $0x8] sm:$0xff]  ;;  %v5433_v22 = vld [vmem:[#allocation6 + $0x50] sm:$0xf]  ;;  %v5423_v25 = vld [vmem:[#allocation6] sm:$0xff] }
 0x99e   :  { %v5424_v54 = vld [vmem:[#allocation6 + $0x8] sm:$0xff] }
 0x99f   :  { %5359 = vmatpush.msra.mxu2 %v6264_v19  ;;  %5404 = vmatpush.msra.mxu3 %v5392_v2  ;;  %v5427_v19 = vld [vmem:[#allocation6 + $0x20] sm:$0xff]  ;;  %v5426_v2 = vld [vmem:[#allocation6 + $0x18] sm:$0xff] }
 0x9a1   :  { %5360 = vmatpush.msra.mxu2 %v6263_v52  ;;  %5405 = vmatpush.msra.mxu3 %v5391_v6 }
 0x9a3   :  { %5361 = vmatpush.msra.mxu2 %v6262_v26  ;;  %5406 = vmatpush.msra.mxu3 %v5390_v51  ;;  %v6278_v26 = vld [vmem:[%s10702_s12] ss:$0 sm:$0xff] }
 0x9a4   :  { %6244 = vmatmul.msk.f32.vlgmr.msrb.gmra.mxu2 %vm5170_vm14, %v5253_v0  ;;  %6255 = vmatmul.msk.f32.vlgmr.msrb.gmra.mxu3 %vm5170_vm14, %v5301_v21 }
 0x9a5   :  { %5362 = vmatpush.msra.mxu2 %v6261_v14  ;;  %5407 = vmatpush.msra.mxu3 %v5389_v7 }
 0x9a7   :  { %5363 = vmatpush.msra.mxu2 %v6260_v57  ;;  %5408 = vmatpush.msra.mxu3 %v5388_v60 }
 0x9a9   :  { %5364 = vmatpush.msra.mxu2 %v6259_v32  ;;  %5409 = vmatpush.msra.mxu3 %v5387_v18 }
 0x9ab   :  { %5365 = vmatpush.msra.mxu2 %v6258_v3  ;;  %5410 = vmatpush.msra.mxu3 %v5386_v28 }
 0x9ad   :  { %5366 = vmatpush.msra.mxu2 %v6257_v31  ;;  %5411 = vmatpush.msra.mxu3 %v5385_v47 }
 0x9af   :  { %5367 = vmatpush.msra.mxu2 %v6256_v15  ;;  %5412 = vmatpush.msra.mxu3 %v5384_v42 }
 0x9b0   :  { %6266 = vmatmul.msk.f32.vlgmr.msra.gmra.mxu2 %vm5170_vm14, %v5349_v43 }
 0x9b1   :  { %5413 = vmatpush.msra.mxu3 %v5383_v33  ;;  %6268 = vmatpush.msk.msrb.mxu2 %vm3482_vm2, %v5433_v22 }
 0x9b3   :  { %5414 = vmatpush.msra.mxu3 %v5382_v29  ;;  %5450 = vmatpush.msrb.mxu2 %v5432_v40 }
 0x9b5   :  { %5415 = vmatpush.msra.mxu3 %v5381_v50  ;;  %5451 = vmatpush.msrb.mxu2 %v5431_v38 }
 0x9b7   :  { %5416 = vmatpush.msra.mxu3 %v5380_v63  ;;  %5452 = vmatpush.msrb.mxu2 %v5430_v20 }
 0x9b9   :  { %5417 = vmatpush.msra.mxu3 %v5379_v59  ;;  %5453 = vmatpush.msrb.mxu2 %v5429_v36 }
 0x9bb   :  { %5454 = vmatpush.msrb.mxu2 %v5428_v61 }
 0x9bd   :  { %5455 = vmatpush.msrb.mxu2 %v5427_v19 }
 0x9bf   :  { %5456 = vmatpush.msrb.mxu2 %v5426_v2 }
 0x9c1   :  { %5457 = vmatpush.msrb.mxu2 %v5425_v9 }
 0x9c3   :  { %5458 = vmatpush.msrb.mxu2 %v5424_v54 }
 0x9c5   :  { %5459 = vmatpush.msrb.mxu2 %v5423_v25 }
 0xa1f   :  { %v5190_v44 = vpop.f32.mrf.mxu2  ;;  %v5226_v41 = vpop.f32.mrf.mxu3 }
 0xa20   :  { %v5227_v58 = vadd.f32 %v5226_v41, %v5190_v44 }
 0xa27   :  { %v5273_v17 = vpop.f32.mrf.mxu2  ;;  %v5321_v53 = vpop.f32.mrf.mxu3 }
 0xa28   :  { %v5276_v12 = vadd.f32 %v5273_v17, %v5227_v58 }
 0xa2a   :  { %v5324_v23 = vadd.f32 %v5321_v53, %v5276_v12 }
 0xa33   :  { %v5369_v56 = vpop.f32.mrf.mxu2 }
 0xa34   :  { %v5372_v52 = vadd.f32 %v5369_v56, %v5324_v23 }
 0xa36   :  { %v5377_v6 = vadd.f32 %v6277_v55, %v5372_v52 }
 0xa38   :  { %v5378_v34 = vmax.f32 %v5377_v6, 0.0 }
 0xa3a   :  { %6267 = vmatmul.msk.f32.vlgmr.msra.gmra.mxu3 %vm5398_vm15, %v5378_v34 }
 0xabd   :  { %v5419_v27 = vpop.f32.mrf.mxu3 }
 0xabe   :  { %v5420_v10 = vadd.f32 %v6278_v26, %v5419_v27 }
 0xac0   :  { %v5422_v1 = vmax.f32 %v5420_v10, 0.0 }
 0xac2   :  { %6269 = vmatmul.msk.f32.vlgmr.msrb.gmra.mxu2 %vm3449_vm4, %v5422_v1 }
 0xb45   :  { %v5461_v14 = vpop.f32.mrf.mxu2 }
 0xb46   :  { %v5462_v37 = vadd.f32 %v6279_v16, %v5461_v14 }
 0xb48   :  { %5464 = vst [vmem:[%s10705_s15] sm:$0xff] %v5462_v37 }
 0xb49   :  { %5469 = vsyncpa [#allocation3], 1 }
 0xb4a   :  { %5470 = vsyncpa [#allocation5], 1 }

</bundles_post_ra>
